<compile_context>
chip_gen: v7x
topology: tpu7x:2x2x1
jax: 0.10.0
libtpu: 0.0.40
codegen_flags: <defaults>
</compile_context>

<pallas_src>
import jax
import jax.numpy as jnp
import numpy as np
from jax import lax
from jax.experimental import pallas as pl
from jax.experimental.pallas import tpu as pltpu


def _elu(x):
    return jnp.where(x > 0, x, jnp.exp(jnp.minimum(x, 0.0)) - 1.0)


def eegnet_kernel(x_ref, a1_ref, s1_ref, t1_ref, wd_ref, s2_ref, t2_ref,
                  sep_ref, s3_ref, t3_ref, fcm_ref, bfc_ref, out_ref):
    f32 = jnp.float32
    F1W0 = a1_ref.shape[1]
    D = s2_ref.shape[1] // F1W0
    E = wd_ref.shape[0] // D
    BB = x_ref.shape[0] // E            # rows of x are (electrode, sample-in-block)

    # --- conv1 (1,K1) valid conv: ONE fused Toeplitz matmul + BN1 + ELU -------
    h1 = jnp.dot(x_ref[...], a1_ref[...], preferred_element_type=f32)
    h1 = _elu(h1 * s1_ref[...] + t1_ref[...])            # (E*BB, F1*W0)

    # --- depthwise (E,1) grouped conv: E*D broadcast FMAs on the VPU ----------
    # rows are electrode-major, so each electrode is an aligned row slice and
    # the per-(d,e) weights are host-precomputed (1, F1*W0) broadcast rows.
    wd = wd_ref[...]
    parts = []
    for d in range(D):
        acc = h1[0:BB, :] * wd[d * E:d * E + 1, :]
        for e in range(1, E):
            acc = acc + h1[e * BB:(e + 1) * BB, :] * wd[d * E + e:d * E + e + 1, :]
        parts.append(acc)
    h2 = parts[0] if D == 1 else jnp.concatenate(parts, axis=1)
    h2 = _elu(h2 * s2_ref[...] + t2_ref[...])             # (BB, D*F1*W0)

    # --- avgpool(1,4) + separable conv (1,K2,'same'): ONE right matmul --------
    s = jnp.dot(h2.astype(sep_ref.dtype), sep_ref[...],
                preferred_element_type=f32)               # (BB, F2*W1)
    s = _elu(s * s3_ref[...] + t3_ref[...])

    # --- avgpool(1,8) + flatten + fc: ONE right matmul, lane-padded classes ---
    out_ref[...] = jnp.dot(s.astype(fcm_ref.dtype), fcm_ref[...],
                           preferred_element_type=f32) + bfc_ref[...]


def init_params(key, *, E, F1, F2, D, NC, K1, K2):
    F1D = F1 * D
    ks = list(jax.random.split(key, 24))
    f32 = jnp.float32

    def nrm(k, shape, s=0.1):
        return s * jax.random.normal(k, shape, f32)

    def bn(kg, kb, km, kv, C):
        gamma = 1.0 + 0.1 * jax.random.normal(kg, (C,), f32)
        beta = 0.1 * jax.random.normal(kb, (C,), f32)
        mean = 0.1 * jax.random.normal(km, (C,), f32)
        var = 0.5 + jax.random.uniform(kv, (C,), f32)
        scale = gamma / jnp.sqrt(var + 1e-5)
        shift = beta - mean * scale
        return scale, shift

    p = {}
    p["w1"] = nrm(ks[0], (F1, 1, 1, K1))
    p["b1"] = nrm(ks[1], (F1,))
    p["s1"], p["t1"] = bn(ks[2], ks[3], ks[4], ks[5], F1)
    p["wd"] = nrm(ks[6], (F1D, 1, E, 1))
    p["bd"] = nrm(ks[7], (F1D,))
    p["s2"], p["t2"] = bn(ks[8], ks[9], ks[10], ks[11], F1D)
    p["ws"] = nrm(ks[12], (F2, F1D, 1, K2))
    p["bs"] = nrm(ks[13], (F2,))
    p["s3"], p["t3"] = bn(ks[14], ks[15], ks[16], ks[17], F2)
    p["wfc"] = nrm(ks[18], (NC, 80))      # fc = Linear(80, num_classes)
    p["bfc"] = nrm(ks[19], (NC,))
    return p


def eegnet_pallas(x, p, *, block_b=None):
    B, E, T = x.shape
    F1, _, _, K1 = p["w1"].shape
    F2, F1D, _, K2 = p["ws"].shape
    D = F1D // F1
    NC, FC_IN = p["wfc"].shape
    W0 = T - K1 + 1
    W1 = W0 // 4
    W2 = W1 // 8
    assert F2 * W2 == FC_IN, "chunk_size incompatible with fc in_features (80)"
    f32, bf16 = jnp.float32, jnp.bfloat16
    NCP = 128                       # lane-padded class dim (full-lane output store)
    assert NC <= NCP

    cdiv = lambda a, b: -(-a // b)
    # batch blocking: rows multiple of 8, >=2 grid steps for B>8 (v7x megacore),
    # <=32 samples/step (amortizes the ~0.35us per-step pipeline overhead).
    if block_b is None:
        block_b = B if B <= 8 else min(32, 8 * cdiv(cdiv(B, 2), 8))
    n_steps = cdiv(B, block_b)
    b_pad = n_steps * block_b

    # ---- host-side weight restructuring (small, one-time) ----
    # conv1 Toeplitz, fused over filters: a1cat[t, f*W0 + w] = w1[f, t - w]
    w1_2d = p["w1"][:, 0, 0, :].astype(f32)                         # (F1, K1)
    t_idx = jnp.arange(T)[:, None]
    w_idx = jnp.arange(W0)[None, :]
    k_idx = t_idx - w_idx                                           # (T, W0)
    valid = (k_idx >= 0) & (k_idx < K1)
    a1 = jnp.where(valid[None, :, :],
                   w1_2d[:, jnp.clip(k_idx, 0, K1 - 1)], 0.0)       # (F1, T, W0)
    a1cat = jnp.transpose(a1, (1, 0, 2)).reshape(T, F1 * W0).astype(bf16)

    # eval-mode BN folds (conv biases folded into the BN shift)
    s1 = p["s1"].astype(f32)
    t1 = (p["t1"] + p["b1"] * p["s1"]).astype(f32)
    s2 = p["s2"].astype(f32)
    t2 = (p["t2"] + p["bd"] * p["s2"]).astype(f32)
    s3 = p["s3"].astype(f32)
    t3 = (p["t3"] + p["bs"] * p["s3"]).astype(f32)

    s1row = jnp.repeat(s1, W0)[None, :]                             # (1, F1*W0)
    t1row = jnp.repeat(t1, W0)[None, :]

    # depthwise weights as (D*E, F1*W0) broadcast rows: row (d,e), col (f,w)
    wd2d = p["wd"][:, 0, :, 0].astype(f32)                          # (F1D, E)
    wd_def = jnp.transpose(wd2d.reshape(F1, D, E), (1, 2, 0)).reshape(D * E, F1)
    wdrows = jnp.repeat(wd_def, W0, axis=1)                         # (D*E, F1*W0)

    s2row = jnp.repeat(s2.reshape(F1, D).T.reshape(-1), W0)[None, :]  # (1, D*F1*W0)
    t2row = jnp.repeat(t2.reshape(F1, D).T.reshape(-1), W0)[None, :]

    # avgpool(1,4) + separable conv(1,K2,'same') folded into one matrix:
    # sepm[(d,f,w0), (o,w)] = sum_k ws[o, f*D+d, k] * p4shift_k[w0, w]
    pad_l = (K2 - 1) // 2                                           # PyTorch 'same': 7 left, 8 right
    w0i = jnp.arange(W0)[:, None, None]
    w1i = jnp.arange(W1)[None, :, None]
    ki = jnp.arange(K2)[None, None, :]
    src = w1i + ki - pad_l                                          # (1, W1, K2)
    p4s = jnp.where((src >= 0) & (src < W1) & ((w0i // 4) == src), 0.25, 0.0)  # (W0, W1, K2)
    ws4 = p["ws"][:, :, 0, :].astype(f32).reshape(F2, F1, D, K2)    # [o, f, d, k]
    sepm = jnp.einsum('ofdk,vwk->dfvow', ws4, p4s).reshape(
        D * F1 * W0, F2 * W1).astype(bf16)

    s3row = jnp.repeat(s3, W1)[None, :]                             # (1, F2*W1)
    t3row = jnp.repeat(t3, W1)[None, :]

    # avgpool(1,8) + flatten + fc folded into one matrix, classes padded to NCP
    w1_pool_idx = jnp.minimum(jnp.arange(W1) // 8, W2 - 1)
    pool_valid = ((jnp.arange(W1) // 8) < W2).astype(f32)
    wfc3 = p["wfc"].astype(f32).reshape(NC, F2, W2)                 # [n, o, w2]
    fcm_small = (jnp.transpose(wfc3, (1, 2, 0))[:, w1_pool_idx, :]
                 * pool_valid[None, :, None] / 8.0)                 # (F2, W1, NC)
    fcm = jnp.zeros((F2 * W1, NCP), f32).at[:, :NC].set(
        fcm_small.reshape(F2 * W1, NC)).astype(bf16)
    bfc_row = jnp.zeros((1, NCP), f32).at[0, :NC].set(p["bfc"].astype(f32))

    # ---- input layout: electrode-major rows per batch block, bf16 ----
    xb = x.astype(bf16)
    if b_pad != B:
        xb = jnp.concatenate([xb, jnp.zeros((b_pad - B, E, T), bf16)], axis=0)
    x2 = (xb.reshape(n_steps, block_b, E, T)
            .transpose(0, 2, 1, 3)
            .reshape(n_steps * E * block_b, T))                     # rows (block, e, b)

    operands = (x2, a1cat, s1row, t1row, wdrows, s2row, t2row,
                sepm, s3row, t3row, fcm, bfc_row)

    in_specs = [pl.BlockSpec((E * block_b, T), lambda i: (i, 0))]
    for op in operands[1:]:
        nd = op.ndim
        in_specs.append(pl.BlockSpec(op.shape, lambda i, _n=nd: (0,) * _n))

    flops = 2 * b_pad * (E * T * F1 * W0            # conv1 (Toeplitz)
                         + D * E * F1 * W0          # depthwise (VPU)
                         + D * F1 * W0 * F2 * W1    # pool4 + separable conv
                         + F2 * W1 * NCP)           # pool8 + fc
    transcendentals = b_pad * (E * F1 * W0 + D * F1 * W0 + F2 * W1)
    bytes_accessed = (int(x2.size) * 2 + b_pad * NCP * 4
                      + sum(int(o.size) * o.dtype.itemsize for o in operands[1:]))

    out = pl.pallas_call(
        eegnet_kernel,
        out_shape=jax.ShapeDtypeStruct((b_pad, NCP), f32),
        grid=(n_steps,),
        in_specs=in_specs,
        out_specs=pl.BlockSpec((block_b, NCP), lambda i: (i, 0)),
        compiler_params=pltpu.CompilerParams(
            dimension_semantics=("parallel",)),
        cost_estimate=pl.CostEstimate(flops=flops,
                                      transcendentals=transcendentals,
                                      bytes_accessed=bytes_accessed),
    )(*operands)
    return out[:B, :NC]


def eegnet_reference(x, p):
    """Pure-JAX reference mirroring the PyTorch forward (eval mode)."""
    B = x.shape[0]
    F1 = p["w1"].shape[0]
    K2 = p["ws"].shape[-1]
    dn = ("NCHW", "OIHW", "NCHW")

    def bn_elu(h, s, t):
        h = h * s.reshape(1, -1, 1, 1) + t.reshape(1, -1, 1, 1)
        return jnp.where(h > 0, h, jnp.exp(jnp.minimum(h, 0.0)) - 1.0)

    h = x[:, None, :, :].astype(jnp.float32)
    h = lax.conv_general_dilated(h, p["w1"], (1, 1), "VALID", dimension_numbers=dn)
    h = h + p["b1"].reshape(1, -1, 1, 1)
    h = bn_elu(h, p["s1"], p["t1"])
    h = lax.conv_general_dilated(h, p["wd"], (1, 1), "VALID", dimension_numbers=dn,
                                 feature_group_count=F1)
    h = h + p["bd"].reshape(1, -1, 1, 1)
    h = bn_elu(h, p["s2"], p["t2"])
    W1 = h.shape[-1] // 4
    h = h[..., :W1 * 4].reshape(B, h.shape[1], 1, W1, 4).mean(-1)
    h = jnp.pad(h, ((0, 0), (0, 0), (0, 0), ((K2 - 1) // 2, K2 // 2)))
    h = lax.conv_general_dilated(h, p["ws"], (1, 1), "VALID", dimension_numbers=dn)
    h = h + p["bs"].reshape(1, -1, 1, 1)
    h = bn_elu(h, p["s3"], p["t3"])
    W2 = h.shape[-1] // 8
    h = h[..., :W2 * 8].reshape(B, h.shape[1], 1, W2, 8).mean(-1)
    flat = h.reshape(B, -1)
    return flat @ p["wfc"].T + p["bfc"][None, :]


if __name__ == "__main__":
    # chunk_size=223, num_electrodes=8 -> after conv1(K=64), pool/4, pool/8 the
    # flattened feature size is 16*5 = 80, matching the module's fc = Linear(80, 2).
    E, T = 8, 223
    key = jax.random.PRNGKey(0)
    kx, kx2, kp = jax.random.split(key, 3)
    params = init_params(kp, E=E, F1=8, F2=16, D=2, NC=2, K1=64, K2=16)

    # small batch (single grid step, block = full batch)
    B = 2
    x = jax.random.normal(kx, (B, E, T), jnp.float32)
    out = jax.block_until_ready(eegnet_pallas(x, params))
    ref = jax.block_until_ready(eegnet_reference(x, params))
    assert out.shape == (B, 2)
    np.testing.assert_allclose(np.asarray(out), np.asarray(ref), atol=3e-2, rtol=3e-2)

    # larger batch exercising the multi-step (>=2 grid steps) batched path
    B2 = 20
    x2 = jax.random.normal(kx2, (B2, E, T), jnp.float32)
    out2 = jax.block_until_ready(eegnet_pallas(x2, params))
    ref2 = jax.block_until_ready(eegnet_reference(x2, params))
    assert out2.shape == (B2, 2)
    np.testing.assert_allclose(np.asarray(out2), np.asarray(ref2), atol=3e-2, rtol=3e-2)

    print("KERNEL_OK")
</pallas_src>

<mosaic_0001>
module attributes {stable_mosaic.version = 11 : i64} {
  func.func @eegnet_kernel(%arg0: i32, %arg1: memref<16x223xbf16, #tpu.memory_space<vmem>>, %arg2: memref<223x1280xbf16, #tpu.memory_space<vmem>>, %arg3: memref<1x1280xf32, #tpu.memory_space<vmem>>, %arg4: memref<1x1280xf32, #tpu.memory_space<vmem>>, %arg5: memref<16x1280xf32, #tpu.memory_space<vmem>>, %arg6: memref<1x2560xf32, #tpu.memory_space<vmem>>, %arg7: memref<1x2560xf32, #tpu.memory_space<vmem>>, %arg8: memref<2560x640xbf16, #tpu.memory_space<vmem>>, %arg9: memref<1x640xf32, #tpu.memory_space<vmem>>, %arg10: memref<1x640xf32, #tpu.memory_space<vmem>>, %arg11: memref<640x128xbf16, #tpu.memory_space<vmem>>, %arg12: memref<1x128xf32, #tpu.memory_space<vmem>>, %arg13: memref<2x128xf32, #tpu.memory_space<vmem>>) attributes {dimension_semantics = [#tpu.dimension_semantics<parallel>], iteration_bounds = array<i64: 1>, scalar_prefetch = 0 : i64, scratch_operands = 0 : i64, tpu.core_type = #tpu.core_type<tc>, window_params = [{transform_indices = @transform_0, window_bounds = array<i64: 16, 223>}, {pipeline_mode = #tpu.pipeline_mode<synchronous>, transform_indices = @transform_1, window_bounds = array<i64: 223, 1280>}, {pipeline_mode = #tpu.pipeline_mode<synchronous>, transform_indices = @transform_2, window_bounds = array<i64: 1, 1280>}, {pipeline_mode = #tpu.pipeline_mode<synchronous>, transform_indices = @transform_3, window_bounds = array<i64: 1, 1280>}, {pipeline_mode = #tpu.pipeline_mode<synchronous>, transform_indices = @transform_4, window_bounds = array<i64: 16, 1280>}, {pipeline_mode = #tpu.pipeline_mode<synchronous>, transform_indices = @transform_5, window_bounds = array<i64: 1, 2560>}, {pipeline_mode = #tpu.pipeline_mode<synchronous>, transform_indices = @transform_6, window_bounds = array<i64: 1, 2560>}, {pipeline_mode = #tpu.pipeline_mode<synchronous>, transform_indices = @transform_7, window_bounds = array<i64: 2560, 640>}, {pipeline_mode = #tpu.pipeline_mode<synchronous>, transform_indices = @transform_8, window_bounds = array<i64: 1, 640>}, {pipeline_mode = #tpu.pipeline_mode<synchronous>, transform_indices = @transform_9, window_bounds = array<i64: 1, 640>}, {pipeline_mode = #tpu.pipeline_mode<synchronous>, transform_indices = @transform_10, window_bounds = array<i64: 640, 128>}, {pipeline_mode = #tpu.pipeline_mode<synchronous>, transform_indices = @transform_11, window_bounds = array<i64: 1, 128>}, {transform_indices = @transform_12, window_bounds = array<i64: 2, 128>}]} {
    %c0 = arith.constant 0 : index
    %c0_0 = arith.constant 0 : index
    %0 = vector.load %arg1[%c0, %c0_0] : memref<16x223xbf16, #tpu.memory_space<vmem>>, vector<16x223xbf16>
    %c0_1 = arith.constant 0 : index
    %c0_2 = arith.constant 0 : index
    %1 = vector.load %arg2[%c0_1, %c0_2] : memref<223x1280xbf16, #tpu.memory_space<vmem>>, vector<223x1280xbf16>
    %cst = arith.constant dense<0.000000e+00> : vector<16x1280xf32>
    %2 = tpu.matmul %0, %1, %cst {dimension_numbers = #tpu.dot_dimension_numbers<[1], [0], [0], [1], [0, 0, 1, 1], [], []>} : vector<16x223xbf16>, vector<223x1280xbf16>, vector<16x1280xf32> -> vector<16x1280xf32>
    %c0_3 = arith.constant 0 : index
    %c0_4 = arith.constant 0 : index
    %3 = vector.load %arg3[%c0_3, %c0_4] : memref<1x1280xf32, #tpu.memory_space<vmem>>, vector<1x1280xf32>
    %4 = vector.broadcast %3 : vector<1x1280xf32> to vector<16x1280xf32>
    %5 = arith.mulf %2, %4 : vector<16x1280xf32>
    %c0_5 = arith.constant 0 : index
    %c0_6 = arith.constant 0 : index
    %6 = vector.load %arg4[%c0_5, %c0_6] : memref<1x1280xf32, #tpu.memory_space<vmem>>, vector<1x1280xf32>
    %7 = vector.broadcast %6 : vector<1x1280xf32> to vector<16x1280xf32>
    %8 = arith.addf %5, %7 : vector<16x1280xf32>
    %cst_7 = arith.constant 0.000000e+00 : f32
    %9 = vector.broadcast %cst_7 : f32 to vector<16x1280xf32>
    %10 = arith.cmpf ogt, %8, %9 : vector<16x1280xf32>
    %cst_8 = arith.constant 0.000000e+00 : f32
    %11 = vector.broadcast %cst_8 : f32 to vector<16x1280xf32>
    %12 = arith.minimumf %8, %11 : vector<16x1280xf32>
    %13 = math.exp %12 : vector<16x1280xf32>
    %cst_9 = arith.constant 1.000000e+00 : f32
    %14 = vector.broadcast %cst_9 : f32 to vector<16x1280xf32>
    %15 = arith.subf %13, %14 : vector<16x1280xf32>
    %16 = arith.select %10, %8, %15 : vector<16x1280xi1>, vector<16x1280xf32>
    %c0_10 = arith.constant 0 : index
    %c0_11 = arith.constant 0 : index
    %17 = vector.load %arg5[%c0_10, %c0_11] : memref<16x1280xf32, #tpu.memory_space<vmem>>, vector<16x1280xf32>
    %18 = vector.extract_strided_slice %16 {offsets = [0, 0], sizes = [2, 1280], strides = [1, 1]} : vector<16x1280xf32> to vector<2x1280xf32>
    %19 = vector.extract_strided_slice %17 {offsets = [0, 0], sizes = [1, 1280], strides = [1, 1]} : vector<16x1280xf32> to vector<1x1280xf32>
    %20 = vector.broadcast %19 : vector<1x1280xf32> to vector<2x1280xf32>
    %21 = arith.mulf %18, %20 : vector<2x1280xf32>
    %22 = vector.extract_strided_slice %16 {offsets = [2, 0], sizes = [2, 1280], strides = [1, 1]} : vector<16x1280xf32> to vector<2x1280xf32>
    %23 = vector.extract_strided_slice %17 {offsets = [1, 0], sizes = [1, 1280], strides = [1, 1]} : vector<16x1280xf32> to vector<1x1280xf32>
    %24 = vector.broadcast %23 : vector<1x1280xf32> to vector<2x1280xf32>
    %25 = arith.mulf %22, %24 : vector<2x1280xf32>
    %26 = arith.addf %21, %25 : vector<2x1280xf32>
    %27 = vector.extract_strided_slice %16 {offsets = [4, 0], sizes = [2, 1280], strides = [1, 1]} : vector<16x1280xf32> to vector<2x1280xf32>
    %28 = vector.extract_strided_slice %17 {offsets = [2, 0], sizes = [1, 1280], strides = [1, 1]} : vector<16x1280xf32> to vector<1x1280xf32>
    %29 = vector.broadcast %28 : vector<1x1280xf32> to vector<2x1280xf32>
    %30 = arith.mulf %27, %29 : vector<2x1280xf32>
    %31 = arith.addf %26, %30 : vector<2x1280xf32>
    %32 = vector.extract_strided_slice %16 {offsets = [6, 0], sizes = [2, 1280], strides = [1, 1]} : vector<16x1280xf32> to vector<2x1280xf32>
    %33 = vector.extract_strided_slice %17 {offsets = [3, 0], sizes = [1, 1280], strides = [1, 1]} : vector<16x1280xf32> to vector<1x1280xf32>
    %34 = vector.broadcast %33 : vector<1x1280xf32> to vector<2x1280xf32>
    %35 = arith.mulf %32, %34 : vector<2x1280xf32>
    %36 = arith.addf %31, %35 : vector<2x1280xf32>
    %37 = vector.extract_strided_slice %16 {offsets = [8, 0], sizes = [2, 1280], strides = [1, 1]} : vector<16x1280xf32> to vector<2x1280xf32>
    %38 = vector.extract_strided_slice %17 {offsets = [4, 0], sizes = [1, 1280], strides = [1, 1]} : vector<16x1280xf32> to vector<1x1280xf32>
    %39 = vector.broadcast %38 : vector<1x1280xf32> to vector<2x1280xf32>
    %40 = arith.mulf %37, %39 : vector<2x1280xf32>
    %41 = arith.addf %36, %40 : vector<2x1280xf32>
    %42 = vector.extract_strided_slice %16 {offsets = [10, 0], sizes = [2, 1280], strides = [1, 1]} : vector<16x1280xf32> to vector<2x1280xf32>
    %43 = vector.extract_strided_slice %17 {offsets = [5, 0], sizes = [1, 1280], strides = [1, 1]} : vector<16x1280xf32> to vector<1x1280xf32>
    %44 = vector.broadcast %43 : vector<1x1280xf32> to vector<2x1280xf32>
    %45 = arith.mulf %42, %44 : vector<2x1280xf32>
    %46 = arith.addf %41, %45 : vector<2x1280xf32>
    %47 = vector.extract_strided_slice %16 {offsets = [12, 0], sizes = [2, 1280], strides = [1, 1]} : vector<16x1280xf32> to vector<2x1280xf32>
    %48 = vector.extract_strided_slice %17 {offsets = [6, 0], sizes = [1, 1280], strides = [1, 1]} : vector<16x1280xf32> to vector<1x1280xf32>
    %49 = vector.broadcast %48 : vector<1x1280xf32> to vector<2x1280xf32>
    %50 = arith.mulf %47, %49 : vector<2x1280xf32>
    %51 = arith.addf %46, %50 : vector<2x1280xf32>
    %52 = vector.extract_strided_slice %16 {offsets = [14, 0], sizes = [2, 1280], strides = [1, 1]} : vector<16x1280xf32> to vector<2x1280xf32>
    %53 = vector.extract_strided_slice %17 {offsets = [7, 0], sizes = [1, 1280], strides = [1, 1]} : vector<16x1280xf32> to vector<1x1280xf32>
    %54 = vector.broadcast %53 : vector<1x1280xf32> to vector<2x1280xf32>
    %55 = arith.mulf %52, %54 : vector<2x1280xf32>
    %56 = arith.addf %51, %55 : vector<2x1280xf32>
    %57 = vector.extract_strided_slice %16 {offsets = [0, 0], sizes = [2, 1280], strides = [1, 1]} : vector<16x1280xf32> to vector<2x1280xf32>
    %58 = vector.extract_strided_slice %17 {offsets = [8, 0], sizes = [1, 1280], strides = [1, 1]} : vector<16x1280xf32> to vector<1x1280xf32>
    %59 = vector.broadcast %58 : vector<1x1280xf32> to vector<2x1280xf32>
    %60 = arith.mulf %57, %59 : vector<2x1280xf32>
    %61 = vector.extract_strided_slice %16 {offsets = [2, 0], sizes = [2, 1280], strides = [1, 1]} : vector<16x1280xf32> to vector<2x1280xf32>
    %62 = vector.extract_strided_slice %17 {offsets = [9, 0], sizes = [1, 1280], strides = [1, 1]} : vector<16x1280xf32> to vector<1x1280xf32>
    %63 = vector.broadcast %62 : vector<1x1280xf32> to vector<2x1280xf32>
    %64 = arith.mulf %61, %63 : vector<2x1280xf32>
    %65 = arith.addf %60, %64 : vector<2x1280xf32>
    %66 = vector.extract_strided_slice %16 {offsets = [4, 0], sizes = [2, 1280], strides = [1, 1]} : vector<16x1280xf32> to vector<2x1280xf32>
    %67 = vector.extract_strided_slice %17 {offsets = [10, 0], sizes = [1, 1280], strides = [1, 1]} : vector<16x1280xf32> to vector<1x1280xf32>
    %68 = vector.broadcast %67 : vector<1x1280xf32> to vector<2x1280xf32>
    %69 = arith.mulf %66, %68 : vector<2x1280xf32>
    %70 = arith.addf %65, %69 : vector<2x1280xf32>
    %71 = vector.extract_strided_slice %16 {offsets = [6, 0], sizes = [2, 1280], strides = [1, 1]} : vector<16x1280xf32> to vector<2x1280xf32>
    %72 = vector.extract_strided_slice %17 {offsets = [11, 0], sizes = [1, 1280], strides = [1, 1]} : vector<16x1280xf32> to vector<1x1280xf32>
    %73 = vector.broadcast %72 : vector<1x1280xf32> to vector<2x1280xf32>
    %74 = arith.mulf %71, %73 : vector<2x1280xf32>
    %75 = arith.addf %70, %74 : vector<2x1280xf32>
    %76 = vector.extract_strided_slice %16 {offsets = [8, 0], sizes = [2, 1280], strides = [1, 1]} : vector<16x1280xf32> to vector<2x1280xf32>
    %77 = vector.extract_strided_slice %17 {offsets = [12, 0], sizes = [1, 1280], strides = [1, 1]} : vector<16x1280xf32> to vector<1x1280xf32>
    %78 = vector.broadcast %77 : vector<1x1280xf32> to vector<2x1280xf32>
    %79 = arith.mulf %76, %78 : vector<2x1280xf32>
    %80 = arith.addf %75, %79 : vector<2x1280xf32>
    %81 = vector.extract_strided_slice %16 {offsets = [10, 0], sizes = [2, 1280], strides = [1, 1]} : vector<16x1280xf32> to vector<2x1280xf32>
    %82 = vector.extract_strided_slice %17 {offsets = [13, 0], sizes = [1, 1280], strides = [1, 1]} : vector<16x1280xf32> to vector<1x1280xf32>
    %83 = vector.broadcast %82 : vector<1x1280xf32> to vector<2x1280xf32>
    %84 = arith.mulf %81, %83 : vector<2x1280xf32>
    %85 = arith.addf %80, %84 : vector<2x1280xf32>
    %86 = vector.extract_strided_slice %16 {offsets = [12, 0], sizes = [2, 1280], strides = [1, 1]} : vector<16x1280xf32> to vector<2x1280xf32>
    %87 = vector.extract_strided_slice %17 {offsets = [14, 0], sizes = [1, 1280], strides = [1, 1]} : vector<16x1280xf32> to vector<1x1280xf32>
    %88 = vector.broadcast %87 : vector<1x1280xf32> to vector<2x1280xf32>
    %89 = arith.mulf %86, %88 : vector<2x1280xf32>
    %90 = arith.addf %85, %89 : vector<2x1280xf32>
    %91 = vector.extract_strided_slice %16 {offsets = [14, 0], sizes = [2, 1280], strides = [1, 1]} : vector<16x1280xf32> to vector<2x1280xf32>
    %92 = vector.extract_strided_slice %17 {offsets = [15, 0], sizes = [1, 1280], strides = [1, 1]} : vector<16x1280xf32> to vector<1x1280xf32>
    %93 = vector.broadcast %92 : vector<1x1280xf32> to vector<2x1280xf32>
    %94 = arith.mulf %91, %93 : vector<2x1280xf32>
    %95 = arith.addf %90, %94 : vector<2x1280xf32>
    %96 = tpu.concatenate %56, %95 in 1 : vector<2x1280xf32>, vector<2x1280xf32> -> vector<2x2560xf32>
    %c0_12 = arith.constant 0 : index
    %c0_13 = arith.constant 0 : index
    %97 = vector.load %arg6[%c0_12, %c0_13] : memref<1x2560xf32, #tpu.memory_space<vmem>>, vector<1x2560xf32>
    %98 = vector.broadcast %97 : vector<1x2560xf32> to vector<2x2560xf32>
    %99 = arith.mulf %96, %98 : vector<2x2560xf32>
    %c0_14 = arith.constant 0 : index
    %c0_15 = arith.constant 0 : index
    %100 = vector.load %arg7[%c0_14, %c0_15] : memref<1x2560xf32, #tpu.memory_space<vmem>>, vector<1x2560xf32>
    %101 = vector.broadcast %100 : vector<1x2560xf32> to vector<2x2560xf32>
    %102 = arith.addf %99, %101 : vector<2x2560xf32>
    %cst_16 = arith.constant 0.000000e+00 : f32
    %103 = vector.broadcast %cst_16 : f32 to vector<2x2560xf32>
    %104 = arith.cmpf ogt, %102, %103 : vector<2x2560xf32>
    %cst_17 = arith.constant 0.000000e+00 : f32
    %105 = vector.broadcast %cst_17 : f32 to vector<2x2560xf32>
    %106 = arith.minimumf %102, %105 : vector<2x2560xf32>
    %107 = math.exp %106 : vector<2x2560xf32>
    %cst_18 = arith.constant 1.000000e+00 : f32
    %108 = vector.broadcast %cst_18 : f32 to vector<2x2560xf32>
    %109 = arith.subf %107, %108 : vector<2x2560xf32>
    %110 = arith.select %104, %102, %109 : vector<2x2560xi1>, vector<2x2560xf32>
    %111 = arith.truncf %110 : vector<2x2560xf32> to vector<2x2560xbf16>
    %c0_19 = arith.constant 0 : index
    %c0_20 = arith.constant 0 : index
    %112 = vector.load %arg8[%c0_19, %c0_20] : memref<2560x640xbf16, #tpu.memory_space<vmem>>, vector<2560x640xbf16>
    %cst_21 = arith.constant dense<0.000000e+00> : vector<2x640xf32>
    %113 = tpu.matmul %111, %112, %cst_21 {dimension_numbers = #tpu.dot_dimension_numbers<[1], [0], [0], [1], [0, 0, 1, 1], [], []>} : vector<2x2560xbf16>, vector<2560x640xbf16>, vector<2x640xf32> -> vector<2x640xf32>
    %c0_22 = arith.constant 0 : index
    %c0_23 = arith.constant 0 : index
    %114 = vector.load %arg9[%c0_22, %c0_23] : memref<1x640xf32, #tpu.memory_space<vmem>>, vector<1x640xf32>
    %115 = vector.broadcast %114 : vector<1x640xf32> to vector<2x640xf32>
    %116 = arith.mulf %113, %115 : vector<2x640xf32>
    %c0_24 = arith.constant 0 : index
    %c0_25 = arith.constant 0 : index
    %117 = vector.load %arg10[%c0_24, %c0_25] : memref<1x640xf32, #tpu.memory_space<vmem>>, vector<1x640xf32>
    %118 = vector.broadcast %117 : vector<1x640xf32> to vector<2x640xf32>
    %119 = arith.addf %116, %118 : vector<2x640xf32>
    %cst_26 = arith.constant 0.000000e+00 : f32
    %120 = vector.broadcast %cst_26 : f32 to vector<2x640xf32>
    %121 = arith.cmpf ogt, %119, %120 : vector<2x640xf32>
    %cst_27 = arith.constant 0.000000e+00 : f32
    %122 = vector.broadcast %cst_27 : f32 to vector<2x640xf32>
    %123 = arith.minimumf %119, %122 : vector<2x640xf32>
    %124 = math.exp %123 : vector<2x640xf32>
    %cst_28 = arith.constant 1.000000e+00 : f32
    %125 = vector.broadcast %cst_28 : f32 to vector<2x640xf32>
    %126 = arith.subf %124, %125 : vector<2x640xf32>
    %127 = arith.select %121, %119, %126 : vector<2x640xi1>, vector<2x640xf32>
    %128 = arith.truncf %127 : vector<2x640xf32> to vector<2x640xbf16>
    %c0_29 = arith.constant 0 : index
    %c0_30 = arith.constant 0 : index
    %129 = vector.load %arg11[%c0_29, %c0_30] : memref<640x128xbf16, #tpu.memory_space<vmem>>, vector<640x128xbf16>
    %cst_31 = arith.constant dense<0.000000e+00> : vector<2x128xf32>
    %130 = tpu.matmul %128, %129, %cst_31 {dimension_numbers = #tpu.dot_dimension_numbers<[1], [0], [0], [1], [0, 0, 1, 1], [], []>} : vector<2x640xbf16>, vector<640x128xbf16>, vector<2x128xf32> -> vector<2x128xf32>
    %c0_32 = arith.constant 0 : index
    %c0_33 = arith.constant 0 : index
    %131 = vector.load %arg12[%c0_32, %c0_33] : memref<1x128xf32, #tpu.memory_space<vmem>>, vector<1x128xf32>
    %132 = vector.broadcast %131 : vector<1x128xf32> to vector<2x128xf32>
    %133 = arith.addf %130, %132 : vector<2x128xf32>
    %c0_34 = arith.constant 0 : index
    %c0_35 = arith.constant 0 : index
    %134 = vector.load %arg13[%c0_34, %c0_35] : memref<2x128xf32, #tpu.memory_space<vmem>>, vector<2x128xf32>
    tpu.vector_store %arg13[%c0_34, %c0_35], %133 {strides = array<i32>} : memref<2x128xf32, #tpu.memory_space<vmem>>, vector<2x128xf32>,
    return
  }
  func.func @transform_0(%arg0: i32) -> (i32, i32) {
    %c0_i32 = arith.constant 0 : i32
    %c0_i32_0 = arith.constant 0 : i32
    return %arg0, %c0_i32 : i32, i32
  }
  func.func @transform_1(%arg0: i32) -> (i32, i32) {
    %c0_i32 = arith.constant 0 : i32
    %c0_i32_0 = arith.constant 0 : i32
    %c0_i32_1 = arith.constant 0 : i32
    return %c0_i32, %c0_i32_0 : i32, i32
  }
  func.func @transform_2(%arg0: i32) -> (i32, i32) {
    %c0_i32 = arith.constant 0 : i32
    %c0_i32_0 = arith.constant 0 : i32
    %c0_i32_1 = arith.constant 0 : i32
    return %c0_i32, %c0_i32_0 : i32, i32
  }
  func.func @transform_3(%arg0: i32) -> (i32, i32) {
    %c0_i32 = arith.constant 0 : i32
    %c0_i32_0 = arith.constant 0 : i32
    %c0_i32_1 = arith.constant 0 : i32
    return %c0_i32, %c0_i32_0 : i32, i32
  }
  func.func @transform_4(%arg0: i32) -> (i32, i32) {
    %c0_i32 = arith.constant 0 : i32
    %c0_i32_0 = arith.constant 0 : i32
    %c0_i32_1 = arith.constant 0 : i32
    return %c0_i32, %c0_i32_0 : i32, i32
  }
  func.func @transform_5(%arg0: i32) -> (i32, i32) {
    %c0_i32 = arith.constant 0 : i32
    %c0_i32_0 = arith.constant 0 : i32
    %c0_i32_1 = arith.constant 0 : i32
    return %c0_i32, %c0_i32_0 : i32, i32
  }
  func.func @transform_6(%arg0: i32) -> (i32, i32) {
    %c0_i32 = arith.constant 0 : i32
    %c0_i32_0 = arith.constant 0 : i32
    %c0_i32_1 = arith.constant 0 : i32
    return %c0_i32, %c0_i32_0 : i32, i32
  }
  func.func @transform_7(%arg0: i32) -> (i32, i32) {
    %c0_i32 = arith.constant 0 : i32
    %c0_i32_0 = arith.constant 0 : i32
    %c0_i32_1 = arith.constant 0 : i32
    return %c0_i32, %c0_i32_0 : i32, i32
  }
  func.func @transform_8(%arg0: i32) -> (i32, i32) {
    %c0_i32 = arith.constant 0 : i32
    %c0_i32_0 = arith.constant 0 : i32
    %c0_i32_1 = arith.constant 0 : i32
    return %c0_i32, %c0_i32_0 : i32, i32
  }
  func.func @transform_9(%arg0: i32) -> (i32, i32) {
    %c0_i32 = arith.constant 0 : i32
    %c0_i32_0 = arith.constant 0 : i32
    %c0_i32_1 = arith.constant 0 : i32
    return %c0_i32, %c0_i32_0 : i32, i32
  }
  func.func @transform_10(%arg0: i32) -> (i32, i32) {
    %c0_i32 = arith.constant 0 : i32
    %c0_i32_0 = arith.constant 0 : i32
    %c0_i32_1 = arith.constant 0 : i32
    return %c0_i32, %c0_i32_0 : i32, i32
  }
  func.func @transform_11(%arg0: i32) -> (i32, i32) {
    %c0_i32 = arith.constant 0 : i32
    %c0_i32_0 = arith.constant 0 : i32
    %c0_i32_1 = arith.constant 0 : i32
    return %c0_i32, %c0_i32_0 : i32, i32
  }
  func.func @transform_12(%arg0: i32) -> (i32, i32) {
    %c0_i32 = arith.constant 0 : i32
    %c0_i32_0 = arith.constant 0 : i32
    return %arg0, %c0_i32 : i32, i32
  }
}

</mosaic_0001>

<bundles_post_ra>
// kernel: tpu_custom_call.1
= control target key start
LH: loop header
LB: loop body
LE: loop exit
PB: predicated region body
PF: predicated region fallthrough
CT: control target
= control target key end

     0   :  { %17 = vsyncpa [#allocation3], 0  ;;  %s15019_s0 = inlined_call_operand.hbm [shape: bf16[16,223], index: 0, kind: input, shape index: {}]   ;;  %s15020_s1 = inlined_call_operand.hbm [shape: bf16[223,1280], index: 1, kind: input, shape index: {}]   ;;  %s15021_s2 = inlined_call_operand.hbm [shape: f32[1,1280], index: 2, kind: input, shape index: {}]   ;;  %s15022_s3 = inlined_call_operand.hbm [shape: f32[1,1280], index: 3, kind: input, shape index: {}]   ;;  %s15023_s4 = inlined_call_operand.hbm [shape: f32[16,1280], index: 4, kind: input, shape index: {}]   ;;  %s15024_s5 = inlined_call_operand.hbm [shape: f32[1,2560], index: 5, kind: input, shape index: {}]   ;;  %s15025_s6 = inlined_call_operand.hbm [shape: f32[1,2560], index: 6, kind: input, shape index: {}]   ;;  %s15026_s7 = inlined_call_operand.hbm [shape: bf16[2560,640], index: 7, kind: input, shape index: {}]   ;;  %s15027_s8 = inlined_call_operand.hbm [shape: f32[1,640], index: 8, kind: input, shape index: {}]   ;;  %s15028_s9 = inlined_call_operand.hbm [shape: f32[1,640], index: 9, kind: input, shape index: {}]   ;;  %s15029_s10 = inlined_call_operand.hbm [shape: bf16[640,128], index: 10, kind: input, shape index: {}]   ;;  %s15030_s11 = inlined_call_operand.hbm [shape: f32[1,128], index: 11, kind: input, shape index: {}]   ;;  %s15031_s12 = inlined_call_operand.hbm [shape: f32[2,128], index: 12, kind: output, shape index: {}]  }
   0x1   :  { %18 = vsyncpa [#allocation6], 0 }
   0x2   :  { %19 = vsyncpa [#allocation9], 0 }
   0x3   :  { %20 = vsyncpa [#allocation12], 0 }
   0x4   :  { %21 = vsyncpa [#allocation15], 0 }
   0x5   :  { %22 = vsyncpa [#allocation18], 0 }
   0x6   :  { %23 = vsyncpa [#allocation21], 0 }
   0x7   :  { %24 = vsyncpa [#allocation4], 0  ;;  %s13374_s21 = smov [#allocation5]   ;;  %s13072_s25 = scalar_lea.hbm %s15020_s1, 17920 }
   0x8   :  { %s42_s22 = sshll.u32 %s13374_s21, 4  ;;  %p13073_p0 = scmp.ne.s32.totalorder %s15020_s1, %s13072_s25  ;;  %s43_s22 = int_to_ptr.vmem [resolvable:$true] %s42_s22 }
   0x9   :  { %p13076_p1 = scmp.lt.u32.totalorder %s13072_s25, %s15020_s1 }
   0xb   :  { %p13078_p2 = pnand %p13076_p1, %p13073_p0 }
   0xd   :  { %13081 = shalt.err (!%p13078_p2)
}
   0xe   :  { %s13082_s30 = scalar_lea.vmem %s43_s22, 17920  ;;  %p13087_p4 = scmp.lt.s32.totalorder %s43_s22, %s43_s22 }
   0xf   :  { %p13083_p3 = scmp.ne.s32.totalorder %s43_s22, %s13082_s30  ;;  %p13088_p5 = scmp.lt.s32.totalorder %s13082_s30, %s13082_s30 }
  0x11   :  { %p13089_p6 = por %p13088_p5, %p13087_p4 }
  0x13   :  { %p13090_p7 = pnand %p13089_p6, %p13083_p3 }
  0x15   :  { %13093 = shalt.err (!%p13090_p7)
}
  0x16   :  { %s13375_s13 = smov 640   ;;  %s13376_s14 = smov 40  }
  0x17   :  { %48 = dma.hbm_to_vmem [thread:$0]  %s15020_s1, 17920, %s43_s22, [#allocation6], %s13375_s13, %s13375_s13, %s13376_s14  }
  0x18   :  { %s13377_s17 = smov [#allocation8]   ;;  %s13378_s19 = smov [#allocation11]  }
  0x19   :  { %s65_s18 = sshll.u32 %s13377_s17, 4  ;;  %s87_s20 = sshll.u32 %s13378_s19, 4  ;;  %s66_s18 = int_to_ptr.vmem [resolvable:$true] %s65_s18  ;;  %s88_s20 = int_to_ptr.vmem [resolvable:$true] %s87_s20 }
  0x1a   :  { %s13094_s24 = scalar_lea.hbm %s15022_s3, 160 }
  0x1b   :  { %p13095_p8 = scmp.ne.s32.totalorder %s15022_s3, %s13094_s24  ;;  %p13098_p9 = scmp.lt.u32.totalorder %s13094_s24, %s15022_s3 }
  0x1d   :  { %p13100_p10 = pnand %p13098_p9, %p13095_p8 }
  0x1f   :  { %13103 = shalt.err (!%p13100_p10)
}
  0x20   :  { %s13104_s1 = scalar_lea.vmem %s66_s18, 160  ;;  %p13109_p12 = scmp.lt.s32.totalorder %s66_s18, %s66_s18 }
  0x21   :  { %p13105_p11 = scmp.ne.s32.totalorder %s66_s18, %s13104_s1  ;;  %p13110_p13 = scmp.lt.s32.totalorder %s13104_s1, %s13104_s1 }
  0x23   :  { %p13111_p0 = por %p13110_p13, %p13109_p12 }
  0x25   :  { %p13112_p1 = pnand %p13111_p0, %p13105_p11 }
  0x27   :  { %13115 = shalt.err (!%p13112_p1)
}
  0x28   :  { %68 = dma.hbm_to_vmem [thread:$0]  %s15022_s3, 160, %s66_s18, [#allocation9]  }
  0x29   :  { %s13116_s14 = scalar_lea.hbm %s15024_s5, 320 }
  0x2a   :  { %p13117_p2 = scmp.ne.s32.totalorder %s15024_s5, %s13116_s14  ;;  %p13120_p3 = scmp.lt.u32.totalorder %s13116_s14, %s15024_s5 }
  0x2c   :  { %p13122_p4 = pnand %p13120_p3, %p13117_p2 }
  0x2e   :  { %13125 = shalt.err (!%p13122_p4)
}
  0x2f   :  { %s13126_s21 = scalar_lea.vmem %s88_s20, 320  ;;  %p13131_p6 = scmp.lt.s32.totalorder %s88_s20, %s88_s20 }
  0x30   :  { %p13127_p5 = scmp.ne.s32.totalorder %s88_s20, %s13126_s21  ;;  %p13132_p7 = scmp.lt.s32.totalorder %s13126_s21, %s13126_s21 }
  0x32   :  { %p13133_p8 = por %p13132_p7, %p13131_p6 }
  0x34   :  { %p13134_p9 = pnand %p13133_p8, %p13127_p5 }
  0x36   :  { %13137 = shalt.err (!%p13134_p9)
}
  0x37   :  { %90 = dma.hbm_to_vmem [thread:$0]  %s15024_s5, 320, %s88_s20, [#allocation12]  }
  0x38   :  { %s13379_s23 = smov [#allocation14]   ;;  %s13138_s27 = scalar_lea.hbm %s15026_s7, 102400 }
  0x39   :  { %s106_s24 = sshll.u32 %s13379_s23, 4  ;;  %p13139_p10 = scmp.ne.s32.totalorder %s15026_s7, %s13138_s27  ;;  %s107_s24 = int_to_ptr.vmem [resolvable:$true] %s106_s24 }
  0x3a   :  { %p13142_p11 = scmp.lt.u32.totalorder %s13138_s27, %s15026_s7 }
  0x3c   :  { %p13144_p12 = pnand %p13142_p11, %p13139_p10 }
  0x3e   :  { %13147 = shalt.err (!%p13144_p12)
}
  0x3f   :  { %s13148_s30 = scalar_lea.vmem %s107_s24, 102400  ;;  %p13153_p0 = scmp.lt.s32.totalorder %s107_s24, %s107_s24 }
  0x40   :  { %p13149_p13 = scmp.ne.s32.totalorder %s107_s24, %s13148_s30  ;;  %p13154_p1 = scmp.lt.s32.totalorder %s13148_s30, %s13148_s30 }
  0x42   :  { %p13155_p2 = por %p13154_p1, %p13153_p0 }
  0x44   :  { %p13156_p3 = pnand %p13155_p2, %p13149_p13 }
  0x46   :  { %13159 = shalt.err (!%p13156_p3)
}
  0x47   :  { %s13380_s5 = smov 320   ;;  %s13381_s20 = smov 20  }
  0x48   :  { %112 = dma.hbm_to_vmem [thread:$0]  %s15026_s7, 102400, %s107_s24, [#allocation15], %s13380_s5, %s13380_s5, %s13381_s20  }
  0x49   :  { %s13382_s15 = smov [#allocation17]   ;;  %s13383_s17 = smov [#allocation2]  }
  0x4a   :  { %s129_s16 = sshll.u32 %s13382_s15, 4  ;;  %s30_s19 = sshll.u32 %s13383_s17, 4  ;;  %s130_s16 = int_to_ptr.vmem [resolvable:$true] %s129_s16  ;;  %s13513_s19 = int_to_ptr.vmem [resolvable:$true] %s30_s19 }
  0x4b   :  { %s13160_s18 = scalar_lea.hbm %s15028_s9, 80 }
  0x4c   :  { %p13161_p4 = scmp.ne.s32.totalorder %s15028_s9, %s13160_s18  ;;  %p13164_p5 = scmp.lt.u32.totalorder %s13160_s18, %s15028_s9 }
  0x4e   :  { %p13166_p6 = pnand %p13164_p5, %p13161_p4 }
  0x50   :  { %13169 = shalt.err (!%p13166_p6)
}
  0x51   :  { %s13170_s7 = scalar_lea.vmem %s130_s16, 80  ;;  %s13174_s24 = scalar_lea.vmem %s130_s16, 96 }
  0x52   :  { %p13171_p7 = scmp.ne.s32.totalorder %s130_s16, %s13170_s7  ;;  %p13175_p8 = scmp.lt.s32.totalorder %s130_s16, %s130_s16 }
  0x53   :  { %p13176_p9 = scmp.lt.s32.totalorder %s13174_s24, %s13170_s7 }
  0x55   :  { %p13177_p10 = por %p13176_p9, %p13175_p8 }
  0x57   :  { %p13178_p11 = pnand %p13177_p10, %p13171_p7 }
  0x59   :  { %13181 = shalt.err (!%p13178_p11)
}
  0x5a   :  { %132 = dma.hbm_to_vmem [thread:$0]  %s15028_s9, 80, %s130_s16, [#allocation18]  }
  0x5b   :  { %s13182_s30 = scalar_lea.hbm %s15019_s0, 256 }
  0x5c   :  { %p13183_p12 = scmp.ne.s32.totalorder %s15019_s0, %s13182_s30  ;;  %p13186_p13 = scmp.lt.u32.totalorder %s13182_s30, %s15019_s0 }
  0x5e   :  { %p13188_p0 = pnand %p13186_p13, %p13183_p12 }
  0x60   :  { %13191 = shalt.err (!%p13188_p0)
}
  0x61   :  { %s13192_s15 = scalar_lea.vmem %s13513_s19, 256  ;;  %p13197_p2 = scmp.lt.s32.totalorder %s13513_s19, %s13513_s19 }
  0x62   :  { %p13193_p1 = scmp.ne.s32.totalorder %s13513_s19, %s13192_s15  ;;  %p13198_p3 = scmp.lt.s32.totalorder %s13192_s15, %s13192_s15 }
  0x64   :  { %p13199_p4 = por %p13198_p3, %p13197_p2 }
  0x66   :  { %p13200_p5 = pnand %p13199_p4, %p13193_p1 }
  0x68   :  { %13203 = shalt.err (!%p13200_p5)
}
  0x69   :  { %s13384_s9 = smov 128   ;;  %s13385_s16 = smov 8  }
  0x6a   :  { %36 = dma.hbm_to_vmem [thread:$0]  %s15019_s0, 256, %s13513_s19, [#allocation3], %s13384_s9, %s13384_s9, %s13385_s16  }
  0x6b   :  { %s13386_s3 = smov [#allocation7]   ;;  %s13387_s23 = smov [#allocation10]  }
  0x6c   :  { %s55_s18 = sshll.u32 %s13386_s3, 4  ;;  %s74_s25 = sshll.u32 %s13387_s23, 4  ;;  %s56_s18 = int_to_ptr.vmem [resolvable:$true] %s55_s18  ;;  %s13544_s25 = int_to_ptr.vmem [resolvable:$true] %s74_s25 }
  0x6d   :  { %s13204_s7 = scalar_lea.hbm %s15021_s2, 160 }
  0x6e   :  { %p13205_p6 = scmp.ne.s32.totalorder %s15021_s2, %s13204_s7  ;;  %p13208_p7 = scmp.lt.u32.totalorder %s13204_s7, %s15021_s2 }
  0x70   :  { %p13210_p8 = pnand %p13208_p7, %p13205_p6 }
  0x72   :  { %13213 = shalt.err (!%p13210_p8)
}
  0x73   :  { %s13214_s0 = scalar_lea.vmem %s56_s18, 160  ;;  %p13219_p10 = scmp.lt.s32.totalorder %s56_s18, %s56_s18 }
  0x74   :  { %p13215_p9 = scmp.ne.s32.totalorder %s56_s18, %s13214_s0  ;;  %p13220_p11 = scmp.lt.s32.totalorder %s13214_s0, %s13214_s0 }
  0x76   :  { %p13221_p12 = por %p13220_p11, %p13219_p10 }
  0x78   :  { %p13222_p13 = pnand %p13221_p12, %p13215_p9 }
  0x7a   :  { %13225 = shalt.err (!%p13222_p13)
}
  0x7b   :  { %58 = dma.hbm_to_vmem [thread:$0]  %s15021_s2, 160, %s56_s18, [#allocation6]  }
  0x7c   :  { %s13226_s20 = scalar_lea.hbm %s15023_s4, 2560 }
  0x7d   :  { %p13227_p0 = scmp.ne.s32.totalorder %s15023_s4, %s13226_s20  ;;  %p13230_p1 = scmp.lt.u32.totalorder %s13226_s20, %s15023_s4 }
  0x7f   :  { %p13232_p2 = pnand %p13230_p1, %p13227_p0 }
  0x81   :  { %13235 = shalt.err (!%p13232_p2)
}
  0x82   :  { %s13236_s16 = scalar_lea.vmem %s13544_s25, 2560  ;;  %p13241_p4 = scmp.lt.s32.totalorder %s13544_s25, %s13544_s25 }
  0x83   :  { %p13237_p3 = scmp.ne.s32.totalorder %s13544_s25, %s13236_s16  ;;  %p13242_p5 = scmp.lt.s32.totalorder %s13236_s16, %s13236_s16 }
  0x85   :  { %p13243_p6 = por %p13242_p5, %p13241_p4 }
  0x87   :  { %p13244_p7 = pnand %p13243_p6, %p13237_p3 }
  0x89   :  { %13247 = shalt.err (!%p13244_p7)
}
  0x8a   :  { %s13388_s2 = smov 1280   ;;  %s13389_s17 = smov 80  }
  0x8b   :  { %80 = dma.hbm_to_vmem [thread:$0]  %s15023_s4, 2560, %s13544_s25, [#allocation9], %s13388_s2, %s13388_s2, %s13389_s17  }
  0x8c   :  { %s13390_s18 = smov [#allocation13]   ;;  %s13391_s26 = smov [#allocation16]  }
  0x8d   :  { %s97_s23 = sshll.u32 %s13390_s18, 4  ;;  %s119_s27 = sshll.u32 %s13391_s26, 4  ;;  %s98_s23 = int_to_ptr.vmem [resolvable:$true] %s97_s23  ;;  %s120_s27 = int_to_ptr.vmem [resolvable:$true] %s119_s27 }
  0x8e   :  { %s13248_s28 = scalar_lea.hbm %s15025_s6, 320 }
  0x8f   :  { %p13249_p8 = scmp.ne.s32.totalorder %s15025_s6, %s13248_s28  ;;  %p13252_p9 = scmp.lt.u32.totalorder %s13248_s28, %s15025_s6 }
  0x91   :  { %p13254_p10 = pnand %p13252_p9, %p13249_p8 }
  0x93   :  { %13257 = shalt.err (!%p13254_p10)
}
  0x94   :  { %s13258_s4 = scalar_lea.vmem %s98_s23, 320  ;;  %p13263_p12 = scmp.lt.s32.totalorder %s98_s23, %s98_s23 }
  0x95   :  { %p13259_p11 = scmp.ne.s32.totalorder %s98_s23, %s13258_s4  ;;  %p13264_p13 = scmp.lt.s32.totalorder %s13258_s4, %s13258_s4 }
  0x97   :  { %p13265_p0 = por %p13264_p13, %p13263_p12 }
  0x99   :  { %p13266_p1 = pnand %p13265_p0, %p13259_p11 }
  0x9b   :  { %13269 = shalt.err (!%p13266_p1)
}
  0x9c   :  { %100 = dma.hbm_to_vmem [thread:$0]  %s15025_s6, 320, %s98_s23, [#allocation12]  }
  0x9d   :  { %s13270_s20 = scalar_lea.hbm %s15027_s8, 80 }
  0x9e   :  { %p13271_p2 = scmp.ne.s32.totalorder %s15027_s8, %s13270_s20  ;;  %p13274_p3 = scmp.lt.u32.totalorder %s13270_s20, %s15027_s8 }
  0xa0   :  { %p13276_p4 = pnand %p13274_p3, %p13271_p2 }
  0xa2   :  { %13279 = shalt.err (!%p13276_p4)
}
  0xa3   :  { %s13280_s16 = scalar_lea.vmem %s120_s27, 80  ;;  %s13284_s2 = scalar_lea.vmem %s120_s27, 96 }
  0xa4   :  { %p13281_p5 = scmp.ne.s32.totalorder %s120_s27, %s13280_s16  ;;  %p13285_p6 = scmp.lt.s32.totalorder %s120_s27, %s120_s27 }
  0xa5   :  { %p13286_p7 = scmp.lt.s32.totalorder %s13284_s2, %s13280_s16 }
  0xa7   :  { %p13287_p8 = por %p13286_p7, %p13285_p6 }
  0xa9   :  { %p13288_p9 = pnand %p13287_p8, %p13281_p5 }
  0xab   :  { %13291 = shalt.err (!%p13288_p9)
}
  0xac   :  { %122 = dma.hbm_to_vmem [thread:$0]  %s15027_s8, 80, %s120_s27, [#allocation15]  }
  0xad   :  { %s13392_s21 = smov [#allocation19]   ;;  %s13292_s26 = scalar_lea.hbm %s15029_s10, 5120 }
  0xae   :  { %s138_s3 = sshll.u32 %s13392_s21, 4  ;;  %p13293_p10 = scmp.ne.s32.totalorder %s15029_s10, %s13292_s26  ;;  %s139_s3 = int_to_ptr.vmem [resolvable:$true] %s138_s3 }
  0xaf   :  { %p13296_p11 = scmp.lt.u32.totalorder %s13292_s26, %s15029_s10 }
  0xb1   :  { %p13298_p12 = pnand %p13296_p11, %p13293_p10 }
  0xb3   :  { %13301 = shalt.err (!%p13298_p12)
}
  0xb4   :  { %s13302_s22 = scalar_lea.vmem %s139_s3, 5120  ;;  %p13307_p0 = scmp.lt.s32.totalorder %s139_s3, %s139_s3 }
  0xb5   :  { %p13303_p13 = scmp.ne.s32.totalorder %s139_s3, %s13302_s22  ;;  %p13308_p1 = scmp.lt.s32.totalorder %s13302_s22, %s13302_s22 }
  0xb7   :  { %p13309_p2 = por %p13308_p1, %p13307_p0 }
  0xb9   :  { %p13310_p3 = pnand %p13309_p2, %p13303_p13 }
  0xbb   :  { %13313 = shalt.err (!%p13310_p3)
}
  0xbc   :  { %s13393_s8 = smov 64   ;;  %s13394_s27 = smov 4  }
  0xbd   :  { %144 = dma.hbm_to_vmem [thread:$0]  %s15029_s10, 5120, %s139_s3, [#allocation18], %s13393_s8, %s13393_s8, %s13394_s27  }
  0xbe   :  { %s13395_s4 = smov [#allocation20]   ;;  %s13314_s5 = scalar_lea.hbm %s15030_s11, 16 }
  0xbf   :  { %s151_s25 = sshll.u32 %s13395_s4, 4  ;;  %p13315_p4 = scmp.ne.s32.totalorder %s15030_s11, %s13314_s5  ;;  %s152_s25 = int_to_ptr.vmem [resolvable:$true] %s151_s25 }
  0xc0   :  { %p13318_p5 = scmp.lt.u32.totalorder %s13314_s5, %s15030_s11 }
  0xc2   :  { %p13320_p6 = pnand %p13318_p5, %p13315_p4 }
  0xc4   :  { %13323 = shalt.err (!%p13320_p6)
}
  0xc5   :  { %s13324_s9 = scalar_lea.vmem %s152_s25, 16  ;;  %s13328_s10 = scalar_lea.vmem %s152_s25, 32 }
  0xc6   :  { %p13325_p7 = scmp.ne.s32.totalorder %s152_s25, %s13324_s9  ;;  %p13329_p8 = scmp.lt.s32.totalorder %s152_s25, %s152_s25 }
  0xc7   :  { %p13330_p9 = scmp.lt.s32.totalorder %s13328_s10, %s13324_s9 }
  0xc9   :  { %p13331_p10 = por %p13330_p9, %p13329_p8 }
  0xcb   :  { %p13332_p11 = pnand %p13331_p10, %p13325_p7 }
  0xcd   :  { %13335 = shalt.err (!%p13332_p11)
}
  0xce   :  { %154 = dma.hbm_to_vmem [thread:$0]  %s15030_s11, 16, %s152_s25, [#allocation21]  }
  0xcf   :  { %13358 = dma.done.wait [#allocation3], 256  }
  0xd0   :  { %13359 = vsyncadd [#allocation3], 4294967040 }
  0xd1   :  { %13360 = dma.done.wait [#allocation6], 18080  }
  0xd2   :  { %13361 = vsyncadd [#allocation6], 4294949216 }
  0xd3   :  { %13362 = dma.done.wait [#allocation9], 2720  }
  0xd4   :  { %13363 = vsyncadd [#allocation9], 4294964576 }
  0xd5   :  { %13364 = dma.done.wait [#allocation12], 640  }
  0xd6   :  { %13365 = vsyncadd [#allocation12], 4294966656 }
  0xd7   :  { %13366 = dma.done.wait [#allocation15], 102480  }
  0xd8   :  { %13367 = vsyncadd [#allocation15], 4294864816 }
  0xd9   :  { %13368 = dma.done.wait [#allocation18], 5200  }
  0xda   :  { %13369 = vsyncadd [#allocation18], 4294962096 }
  0xdb   :  { %13370 = dma.done.wait [#allocation21], 16  }
  0xdc   :  { %13371 = vsyncadd [#allocation21], 4294967280  ;;  %v11598_v0 = vld [vmem:[#allocation5 + $0x4] ss:$40 sps:$4 sm:$0xff]   ;;  %v11600_v1 = vld [vmem:[#allocation5] ss:$40 sps:$4 sm:$0xff]  }
  0xdd   :  { %1071 = vmatprep.subr.bf16.mxu0 %v11598_v0  ;;  %v11601_v2 = vld [vmem:[#allocation5 + $0x54] ss:$40 sps:$4 sm:$0xff]   ;;  %v11603_v3 = vld [vmem:[#allocation5 + $0x50] ss:$40 sps:$4 sm:$0xff]   ;;  %v11604_v4 = vld [vmem:[#allocation5 + $0xa4] ss:$40 sps:$4 sm:$0xff]  }
  0xde   :  { %1072 = vmatpush1.bf16.msra.mxu0 %v11600_v1  ;;  %v11606_v5 = vld [vmem:[#allocation5 + $0xa0] ss:$40 sps:$4 sm:$0xff]   ;;  %v11613_v6 = vld [vmem:[#allocation5 + $0xc] ss:$40 sps:$4 sm:$0xff]   ;;  %v11619_v9 = vld [vmem:[#allocation5 + $0x5c] ss:$40 sps:$4 sm:$0xff]  }
  0xdf   :  { %1073 = vmatprep.subr.bf16.mxu0 %v11601_v2  ;;  %v11615_v7 = vld [vmem:[#allocation5 + $0x8] ss:$40 sps:$4 sm:$0xff]   ;;  %v11607_v8 = vld [vmem:[#allocation5 + $0xf4] ss:$40 sps:$4 sm:$0xff]   ;;  %1114 = vmatprep.subr.bf16.mxu1 %v11613_v6  ;;  %v11621_v10 = vld [vmem:[#allocation5 + $0x58] ss:$40 sps:$4 sm:$0xff]  }
  0xe0   :  { %1115 = vmatpush1.bf16.msra.mxu1 %v11615_v7  ;;  %v11609_v11 = vld [vmem:[#allocation5 + $0xf0] ss:$40 sps:$4 sm:$0xff]   ;;  %v11610_v12 = vld [vmem:[#allocation5 + $0x144] ss:$40 sps:$4 sm:$0xff]   ;;  %v11612_v15 = vld [vmem:[#allocation5 + $0x140] ss:$40 sps:$4 sm:$0xff]  }
  0xe1   :  { %1116 = vmatprep.subr.bf16.mxu1 %v11619_v9  ;;  %v11625_v13 = vld [vmem:[#allocation5 + $0xac] ss:$40 sps:$4 sm:$0xff]   ;;  %v11627_v14 = vld [vmem:[#allocation5 + $0xa8] ss:$40 sps:$4 sm:$0xff]   ;;  %v11631_v16 = vld [vmem:[#allocation5 + $0xfc] ss:$40 sps:$4 sm:$0xff]  }
  0xe2   :  { %1074 = vmatpush1.bf16.msra.mxu0 %v11603_v3  ;;  %v11616_v17 = vld [vmem:[#allocation5 + $0x194] ss:$40 sps:$4 sm:$0xff]   ;;  %v11633_v18 = vld [vmem:[#allocation5 + $0xf8] ss:$40 sps:$4 sm:$0xff]   ;;  %v11622_v21 = vld [vmem:[#allocation5 + $0x1e4] ss:$40 sps:$4 sm:$0xff]  }
  0xe3   :  { %1075 = vmatprep.subr.bf16.mxu0 %v11604_v4  ;;  %v11618_v19 = vld [vmem:[#allocation5 + $0x190] ss:$40 sps:$4 sm:$0xff]   ;;  %v11637_v20 = vld [vmem:[#allocation5 + $0x14c] ss:$40 sps:$4 sm:$0xff]   ;;  %v11624_v23 = vld [vmem:[#allocation5 + $0x1e0] ss:$40 sps:$4 sm:$0xff]  }
  0xe4   :  { %1117 = vmatpush1.bf16.msra.mxu1 %v11621_v10  ;;  %v11639_v22 = vld [vmem:[#allocation5 + $0x148] ss:$40 sps:$4 sm:$0xff]   ;;  %v11643_v24 = vld [vmem:[#allocation5 + $0x19c] ss:$40 sps:$4 sm:$0xff]   ;;  %v11645_v26 = vld [vmem:[#allocation5 + $0x198] ss:$40 sps:$4 sm:$0xff]  }
  0xe5   :  { %1118 = vmatprep.subr.bf16.mxu1 %v11625_v13  ;;  %v11628_v25 = vld [vmem:[#allocation5 + $0x234] ss:$40 sps:$4 sm:$0xff]   ;;  %v11630_v27 = vld [vmem:[#allocation5 + $0x230] ss:$40 sps:$4 sm:$0xff]   ;;  %v11634_v29 = vld [vmem:[#allocation5 + $0x284] ss:$40 sps:$4 sm:$0xff]  }
  0xe6   :  { %1076 = vmatpush1.bf16.msra.mxu0 %v11606_v5  ;;  %v11649_v28 = vld [vmem:[#allocation5 + $0x1ec] ss:$40 sps:$4 sm:$0xff]   ;;  %v11636_v30 = vld [vmem:[#allocation5 + $0x280] ss:$40 sps:$4 sm:$0xff]   ;;  %v11655_v33 = vld [vmem:[#allocation5 + $0x23c] ss:$40 sps:$4 sm:$0xff]  }
  0xe7   :  { %1077 = vmatprep.subr.bf16.mxu0 %v11607_v8  ;;  %v11651_v31 = vld [vmem:[#allocation5 + $0x1e8] ss:$40 sps:$4 sm:$0xff]   ;;  %v11640_v32 = vld [vmem:[#allocation5 + $0x2d4] ss:$40 sps:$4 sm:$0xff]   ;;  %vm1033_vm0 = vcmask 777216   ;;  %vm1037_vm1 = vcmask 1046528  }
  0xe8   :  { %1119 = vmatpush1.bf16.msra.mxu1 %v11627_v14  ;;  %v13623_v34 = vld [vmem:[#allocation2 + $0x4] ss:$8 sps:$4 sm:$0xff]   ;;  %v11657_v35 = vld [vmem:[#allocation5 + $0x238] ss:$40 sps:$4 sm:$0xff]   ;;  %v11646_v38 = vld [vmem:[#allocation5 + $0x324] ss:$40 sps:$4 sm:$0xff]  }
  0xe9   :  { %1120 = vmatprep.subr.bf16.mxu1 %v11631_v16  ;;  %10316 = vmatprep.mubr.msk.bf16.mxu0 %vm1033_vm0, %v13623_v34  ;;  %v11642_v36 = vld [vmem:[#allocation5 + $0x2d0] ss:$40 sps:$4 sm:$0xff]   ;;  %v11661_v37 = vld [vmem:[#allocation5 + $0x28c] ss:$40 sps:$4 sm:$0xff]   ;;  %v11648_v40 = vld [vmem:[#allocation5 + $0x320] ss:$40 sps:$4 sm:$0xff]  }
  0xea   :  { %1078 = vmatpush1.bf16.msra.mxu0 %v11609_v11  ;;  %10317 = vmatprep.mubr.msk.bf16.mxu1 %vm1033_vm0, %v13623_v34  ;;  %v11663_v39 = vld [vmem:[#allocation5 + $0x288] ss:$40 sps:$4 sm:$0xff]   ;;  %v11667_v41 = vld [vmem:[#allocation5 + $0x2dc] ss:$40 sps:$4 sm:$0xff]   ;;  %vm1038_vm2 = vcmask 1047552   ;;  %v13396_v44 = vmov 65535  }
  0xeb   :  { %1079 = vmatprep.subr.bf16.mxu0 %v11610_v12  ;;  %v11652_v42 = vld [vmem:[#allocation5 + $0x374] ss:$40 sps:$4 sm:$0xff]   ;;  %v11654_v43 = vld [vmem:[#allocation5 + $0x370] ss:$40 sps:$4 sm:$0xff]   ;;  %v1039_v45 = vsel %vm1037_vm1, 4294967295, %v13396_v44  ;;  %s13399_s11 = smov [#allocation22]  }
  0xec   :  { %1121 = vmatpush1.bf16.msra.mxu1 %v11633_v18  ;;  %v11669_v46 = vld [vmem:[#allocation5 + $0x2d8] ss:$40 sps:$4 sm:$0xff]   ;;  %v11658_v47 = vld [vmem:[#allocation5 + $0x3c4] ss:$40 sps:$4 sm:$0xff]   ;;  %v11664_v49 = vld [vmem:[#allocation5 + $0x414] ss:$40 sps:$4 sm:$0xff]  }
  0xed   :  { %1122 = vmatprep.subr.bf16.mxu1 %v11637_v20  ;;  %v11673_v48 = vld [vmem:[#allocation5 + $0x32c] ss:$40 sps:$4 sm:$0xff]   ;;  %v13629_v50 = vsel %vm1038_vm2, %v1039_v45, 0  ;;  %v11660_v51 = vld [vmem:[#allocation5 + $0x3c0] ss:$40 sps:$4 sm:$0xff]   ;;  %s10159_s6 = sshll.u32 %s13399_s11, 4  ;;  %s10160_s6 = int_to_ptr.vmem [resolvable:$true] %s10159_s6 }
  0xee   :  { %1080 = vmatpush1.bf16.msra.mxu0 %v11612_v15  ;;  %v11675_v52 = vld [vmem:[#allocation5 + $0x328] ss:$40 sps:$4 sm:$0xff]   ;;  %v11676_v54 = vld [vmem:[#allocation5 + $0x37c] ss:$40 sps:$4 sm:$0xff]   ;;  %v1045_v55 = vand.u32 %v11664_v49, %v13629_v50  ;;  %v11678_v56 = vld [vmem:[#allocation5 + $0x378] ss:$40 sps:$4 sm:$0xff]   ;;  %p13341_p13 = scmp.lt.s32.totalorder %s10160_s6, %s10160_s6 }
  0xef   :  { %1081 = vmatprep.subr.bf16.mxu0 %v11616_v17  ;;  %v11666_v53 = vld [vmem:[#allocation5 + $0x410] ss:$40 sps:$4 sm:$0xff]   ;;  %v11679_v58 = vld [vmem:[#allocation5 + $0x3cc] ss:$40 sps:$4 sm:$0xff]   ;;  %v11682_v59 = vld [vmem:[#allocation5 + $0x41c] ss:$40 sps:$4 sm:$0xff]  }
  0xf0   :  { %1123 = vmatpush1.bf16.msra.mxu1 %v11639_v22  ;;  %v1042_v57 = vand.u32 %v11666_v53, %v13629_v50  ;;  %v11687_v60 = vld [vmem:[#allocation5 + $0x14] ss:$40 sps:$4 sm:$0xff]   ;;  %v13633_v61 = vld [vmem:[#allocation2] ss:$8 sps:$4 sm:$0xff]   ;;  %v1051_v0 = vand.u32 %v11682_v59, %v13629_v50  ;;  %v11690_v2 = vld [vmem:[#allocation5 + $0x64] ss:$40 sps:$4 sm:$0xff]  }
  0xf1   :  { %1124 = vmatprep.subr.bf16.mxu1 %v11643_v24  ;;  %v11681_v62 = vld [vmem:[#allocation5 + $0x3c8] ss:$40 sps:$4 sm:$0xff]   ;;  %v11684_v63 = vld [vmem:[#allocation5 + $0x418] ss:$40 sps:$4 sm:$0xff]   ;;  %v11729_v5 = vld [vmem:[#allocation5 + $0x1c] ss:$40 sps:$4 sm:$0xff]  }
  0xf2   :  { %1082 = vmatpush1.bf16.msra.mxu0 %v11618_v19  ;;  %v11685_v1 = vld [vmem:[#allocation5 + $0x10] ss:$40 sps:$4 sm:$0xff]   ;;  %v1048_v3 = vand.u32 %v11684_v63, %v13629_v50  ;;  %v11688_v4 = vld [vmem:[#allocation5 + $0x60] ss:$40 sps:$4 sm:$0xff]   ;;  %v11693_v6 = vld [vmem:[#allocation5 + $0xb4] ss:$40 sps:$4 sm:$0xff]  }
  0xf3   :  { %1083 = vmatprep.subr.bf16.mxu0 %v11622_v21  ;;  %v11727_v7 = vld [vmem:[#allocation5 + $0x18] ss:$40 sps:$4 sm:$0xff]   ;;  %v11732_v9 = vld [vmem:[#allocation5 + $0x6c] ss:$40 sps:$4 sm:$0xff]   ;;  %v11730_v11 = vld [vmem:[#allocation5 + $0x68] ss:$40 sps:$4 sm:$0xff]  }
  0xf4   :  { %1125 = vmatpush1.bf16.msra.mxu1 %v11645_v26  ;;  %v11691_v8 = vld [vmem:[#allocation5 + $0xb0] ss:$40 sps:$4 sm:$0xff]   ;;  %v11696_v10 = vld [vmem:[#allocation5 + $0x104] ss:$40 sps:$4 sm:$0xff]   ;;  %v11694_v12 = vld [vmem:[#allocation5 + $0x100] ss:$40 sps:$4 sm:$0xff]  }
  0xf5   :  { %1126 = vmatprep.subr.bf16.mxu1 %v11649_v28  ;;  %v11735_v13 = vld [vmem:[#allocation5 + $0xbc] ss:$40 sps:$4 sm:$0xff]   ;;  %v11733_v15 = vld [vmem:[#allocation5 + $0xb8] ss:$40 sps:$4 sm:$0xff]   ;;  %v11738_v17 = vld [vmem:[#allocation5 + $0x10c] ss:$40 sps:$4 sm:$0xff]  }
  0xf6   :  { %1084 = vmatpush1.bf16.msra.mxu0 %v11624_v23  ;;  %v11699_v14 = vld [vmem:[#allocation5 + $0x154] ss:$40 sps:$4 sm:$0xff]   ;;  %v11697_v16 = vld [vmem:[#allocation5 + $0x150] ss:$40 sps:$4 sm:$0xff]   ;;  %v11702_v18 = vld [vmem:[#allocation5 + $0x1a4] ss:$40 sps:$4 sm:$0xff]  }
  0xf7   :  { %1085 = vmatprep.subr.bf16.mxu0 %v11628_v25  ;;  %v11736_v19 = vld [vmem:[#allocation5 + $0x108] ss:$40 sps:$4 sm:$0xff]   ;;  %v11741_v21 = vld [vmem:[#allocation5 + $0x15c] ss:$40 sps:$4 sm:$0xff]   ;;  %v11739_v23 = vld [vmem:[#allocation5 + $0x158] ss:$40 sps:$4 sm:$0xff]  }
  0xf8   :  { %1127 = vmatpush1.bf16.msra.mxu1 %v11651_v31  ;;  %v11700_v20 = vld [vmem:[#allocation5 + $0x1a0] ss:$40 sps:$4 sm:$0xff]   ;;  %v11705_v22 = vld [vmem:[#allocation5 + $0x1f4] ss:$40 sps:$4 sm:$0xff]   ;;  %v11703_v24 = vld [vmem:[#allocation5 + $0x1f0] ss:$40 sps:$4 sm:$0xff]  }
  0xf9   :  { %1128 = vmatprep.subr.bf16.mxu1 %v11655_v33  ;;  %v11744_v25 = vld [vmem:[#allocation5 + $0x1ac] ss:$40 sps:$4 sm:$0xff]   ;;  %v11706_v28 = vld [vmem:[#allocation5 + $0x240] ss:$40 sps:$4 sm:$0xff]   ;;  %s13336_s17 = scalar_lea.vmem %s10160_s6, 32 }
  0xfa   :  { %1086 = vmatpush1.bf16.msra.mxu0 %v11630_v27  ;;  %v11708_v26 = vld [vmem:[#allocation5 + $0x244] ss:$40 sps:$4 sm:$0xff]   ;;  %v11742_v27 = vld [vmem:[#allocation5 + $0x1a8] ss:$40 sps:$4 sm:$0xff]   ;;  %v11745_v31 = vld [vmem:[#allocation5 + $0x1f8] ss:$40 sps:$4 sm:$0xff]   ;;  %p13337_p12 = scmp.ne.s32.totalorder %s10160_s6, %s13336_s17  ;;  %p13342_p0 = scmp.lt.s32.totalorder %s13336_s17, %s13336_s17 }
  0xfb   :  { %1087 = vmatprep.subr.bf16.mxu0 %v11634_v29  ;;  %v11747_v29 = vld [vmem:[#allocation5 + $0x1fc] ss:$40 sps:$4 sm:$0xff]   ;;  %v11750_v33 = vld [vmem:[#allocation5 + $0x24c] ss:$40 sps:$4 sm:$0xff]   ;;  %v11754_v44 = vld [vmem:[#allocation5 + $0x2e8] ss:$40 sps:$4 sm:$0xff]  }
  0xfc   :  { %1129 = vmatpush1.bf16.msra.mxu1 %v11657_v35  ;;  %v11714_v35 = vld [vmem:[#allocation5 + $0x2e4] ss:$40 sps:$4 sm:$0xff]   ;;  %v11718_v45 = vld [vmem:[#allocation5 + $0x380] ss:$40 sps:$4 sm:$0xff]   ;;  %p13343_p1 = por %p13342_p0, %p13341_p13 }
  0xfd   :  { %1130 = vmatprep.subr.bf16.mxu1 %v11661_v37  ;;  %v11712_v37 = vld [vmem:[#allocation5 + $0x2e0] ss:$40 sps:$4 sm:$0xff]   ;;  %v11762_v53 = vld [vmem:[#allocation5 + $0x38c] ss:$40 sps:$4 sm:$0xff]  }
  0xfe   :  { %1088 = vmatpush1.bf16.msra.mxu0 %v11636_v30  ;;  %v11711_v30 = vld [vmem:[#allocation5 + $0x294] ss:$40 sps:$4 sm:$0xff]   ;;  %v11757_v49 = vld [vmem:[#allocation5 + $0x338] ss:$40 sps:$4 sm:$0xff]   ;;  %p13344_p2 = pnand %p13343_p1, %p13337_p12 }
  0xff   :  { %1089 = vmatprep.subr.bf16.mxu0 %v11640_v32  ;;  %v11709_v32 = vld [vmem:[#allocation5 + $0x290] ss:$40 sps:$4 sm:$0xff]   ;;  %v11769_v63 = vld [vmem:[#allocation5 + $0x20] ss:$40 sps:$4 sm:$0xff]  }
 0x100   :  { %1131 = vmatpush1.bf16.msra.mxu1 %v11663_v39  ;;  %v11717_v39 = vld [vmem:[#allocation5 + $0x334] ss:$40 sps:$4 sm:$0xff]  }
 0x101   :  { %1132 = vmatprep.subr.bf16.mxu1 %v11667_v41  ;;  %v11720_v41 = vld [vmem:[#allocation5 + $0x384] ss:$40 sps:$4 sm:$0xff]  }
 0x102   :  { %1090 = vmatpush1.bf16.msra.mxu0 %v11642_v36  ;;  %v11748_v36 = vld [vmem:[#allocation5 + $0x248] ss:$40 sps:$4 sm:$0xff]  }
 0x103   :  { %1091 = vmatprep.subr.bf16.mxu0 %v11646_v38  ;;  %v11753_v38 = vld [vmem:[#allocation5 + $0x29c] ss:$40 sps:$4 sm:$0xff]  }
 0x104   :  { %1133 = vmatpush1.bf16.msra.mxu1 %v11669_v46  ;;  %v11759_v46 = vld [vmem:[#allocation5 + $0x33c] ss:$40 sps:$4 sm:$0xff]  }
 0x105   :  { %1134 = vmatprep.subr.bf16.mxu1 %v11673_v48  ;;  %v11726_v48 = vld [vmem:[#allocation5 + $0x424] ss:$40 sps:$4 sm:$0xff]  }
 0x106   :  { %1092 = vmatpush1.bf16.msra.mxu0 %v11648_v40  ;;  %v11715_v40 = vld [vmem:[#allocation5 + $0x330] ss:$40 sps:$4 sm:$0xff]  }
 0x107   :  { %1093 = vmatprep.subr.bf16.mxu0 %v11652_v42  ;;  %v11751_v42 = vld [vmem:[#allocation5 + $0x298] ss:$40 sps:$4 sm:$0xff]  }
 0x108   :  { %1135 = vmatpush1.bf16.msra.mxu1 %v11675_v52  ;;  %v11724_v52 = vld [vmem:[#allocation5 + $0x420] ss:$40 sps:$4 sm:$0xff]  }
 0x109   :  { %1136 = vmatprep.subr.bf16.mxu1 %v11676_v54  ;;  %v1057_v54 = vand.u32 %v11726_v48, %v13629_v50  ;;  %v1054_v59 = vand.u32 %v11724_v52, %v13629_v50  ;;  %v11847_v48 = vld [vmem:[#allocation14 + $0xf0] ss:$20 sps:$4 sm:$0xff]  }
 0x10a   :  { %1094 = vmatpush1.bf16.msra.mxu0 %v11654_v43  ;;  %v11756_v43 = vld [vmem:[#allocation5 + $0x2ec] ss:$40 sps:$4 sm:$0xff]  }
 0x10b   :  { %1095 = vmatprep.subr.bf16.mxu0 %v11658_v47  ;;  %v11723_v47 = vld [vmem:[#allocation5 + $0x3d4] ss:$40 sps:$4 sm:$0xff]   ;;  %v11855_v52 = vld [vmem:[#allocation14 + $0x11c] ss:$20 sps:$4 sm:$0xff]  }
 0x10c   :  { %1137 = vmatpush1.bf16.msra.mxu1 %v11678_v56  ;;  %v11765_v56 = vld [vmem:[#allocation5 + $0x3dc] ss:$40 sps:$4 sm:$0xff]  }
 0x10d   :  { %1138 = vmatprep.subr.bf16.mxu1 %v11679_v58  ;;  %v11771_v58 = vld [vmem:[#allocation5 + $0x24] ss:$40 sps:$4 sm:$0xff]  }
 0x10e   :  { %1096 = vmatpush1.bf16.msra.mxu0 %v11660_v51  ;;  %v11721_v51 = vld [vmem:[#allocation5 + $0x3d0] ss:$40 sps:$4 sm:$0xff]  }
 0x10f   :  { %1097 = vmatprep.subr.bf16.mxu0 %v1045_v55  ;;  %v11760_v55 = vld [vmem:[#allocation5 + $0x388] ss:$40 sps:$4 sm:$0xff]  }
 0x110   :  { %1139 = vmatpush1.bf16.msra.mxu1 %v11681_v62  ;;  %v11766_v62 = vld [vmem:[#allocation5 + $0x428] ss:$40 sps:$4 sm:$0xff]  }
 0x111   :  { %1140 = vmatprep.subr.bf16.mxu1 %v1051_v0  ;;  %v11774_v0 = vld [vmem:[#allocation5 + $0x74] ss:$40 sps:$4 sm:$0xff]  }
 0x112   :  { %1098 = vmatpush1.bf16.msra.mxu0 %v1042_v57  ;;  %v11768_v57 = vld [vmem:[#allocation5 + $0x42c] ss:$40 sps:$4 sm:$0xff]  }
 0x113   :  { %1157 = vmatprep.subr.bf16.mxu0 %v11687_v60  ;;  %v11763_v60 = vld [vmem:[#allocation5 + $0x3d8] ss:$40 sps:$4 sm:$0xff]  }
 0x114   :  { %1141 = vmatpush1.bf16.msra.mxu1 %v1048_v3  ;;  %v1060_v3 = vand.u32 %v11766_v62, %v13629_v50  ;;  %v11873_v62 = vld [vmem:[#allocation14 + $0x194] ss:$20 sps:$4 sm:$0xff]  }
 0x115   :  { %1104 = vmatmul.mubr.bf16.vlgmr.msra.gmra.mrb[0].mxu0 %v13633_v61  ;;  %1200 = vmatprep.subr.bf16.mxu1 %v11729_v5  ;;  %v11775_v5 = vld [vmem:[#allocation5 + $0xc0] ss:$40 sps:$4 sm:$0xff]  }
 0x116   :  { %1158 = vmatpush1.bf16.msra.mxu0 %v11685_v1  ;;  %10318 = vmatprep.mubr.msk.bf16.mxu0 %vm1033_vm0, %v13623_v34  ;;  %v1063_v1 = vand.u32 %v11768_v57, %v13629_v50  ;;  %v11867_v57 = vld [vmem:[#allocation14 + $0x16c] ss:$20 sps:$4 sm:$0xff]  }
 0x117   :  { %1159 = vmatprep.subr.bf16.mxu0 %v11690_v2  ;;  %1147 = vmatmul.mubr.bf16.vlgmr.msra.gmra.mrb[0].mxu1 %v13633_v61  ;;  %v11772_v2 = vld [vmem:[#allocation5 + $0x70] ss:$40 sps:$4 sm:$0xff]  }
 0x118   :  { %1201 = vmatpush1.bf16.msra.mxu1 %v11727_v7  ;;  %10319 = vmatprep.mubr.msk.bf16.mxu1 %vm1033_vm0, %v13623_v34  ;;  %v11778_v7 = vld [vmem:[#allocation5 + $0x110] ss:$40 sps:$4 sm:$0xff]  }
 0x119   :  { %1202 = vmatprep.subr.bf16.mxu1 %v11732_v9  ;;  %v11781_v9 = vld [vmem:[#allocation5 + $0x160] ss:$40 sps:$4 sm:$0xff]  }
 0x11a   :  { %1160 = vmatpush1.bf16.msra.mxu0 %v11688_v4  ;;  %v11777_v4 = vld [vmem:[#allocation5 + $0xc4] ss:$40 sps:$4 sm:$0xff]  }
 0x11b   :  { %1161 = vmatprep.subr.bf16.mxu0 %v11693_v6  ;;  %v11780_v6 = vld [vmem:[#allocation5 + $0x114] ss:$40 sps:$4 sm:$0xff]  }
 0x11c   :  { %1203 = vmatpush1.bf16.msra.mxu1 %v11730_v11  ;;  %v11784_v11 = vld [vmem:[#allocation5 + $0x1b0] ss:$40 sps:$4 sm:$0xff]  }
 0x11d   :  { %1204 = vmatprep.subr.bf16.mxu1 %v11735_v13  ;;  %v11792_v13 = vld [vmem:[#allocation5 + $0x254] ss:$40 sps:$4 sm:$0xff]  }
 0x11e   :  { %1162 = vmatpush1.bf16.msra.mxu0 %v11691_v8  ;;  %v11783_v8 = vld [vmem:[#allocation5 + $0x164] ss:$40 sps:$4 sm:$0xff]  }
 0x11f   :  { %1163 = vmatprep.subr.bf16.mxu0 %v11696_v10  ;;  %v11786_v10 = vld [vmem:[#allocation5 + $0x1b4] ss:$40 sps:$4 sm:$0xff]  }
 0x120   :  { %1205 = vmatpush1.bf16.msra.mxu1 %v11733_v15  ;;  %v11795_v15 = vld [vmem:[#allocation5 + $0x2a4] ss:$40 sps:$4 sm:$0xff]  }
 0x121   :  { %1206 = vmatprep.subr.bf16.mxu1 %v11738_v17  ;;  %v11798_v17 = vld [vmem:[#allocation5 + $0x2f4] ss:$40 sps:$4 sm:$0xff]  }
 0x122   :  { %1164 = vmatpush1.bf16.msra.mxu0 %v11694_v12  ;;  %v11789_v12 = vld [vmem:[#allocation5 + $0x204] ss:$40 sps:$4 sm:$0xff]  }
 0x123   :  { %1165 = vmatprep.subr.bf16.mxu0 %v11699_v14  ;;  %v11790_v14 = vld [vmem:[#allocation5 + $0x250] ss:$40 sps:$4 sm:$0xff]  }
 0x124   :  { %1207 = vmatpush1.bf16.msra.mxu1 %v11736_v19  ;;  %v11813_v19 = vld [vmem:[#allocation14 + $0x4] ss:$20 sps:$4 sm:$0xff]  }
 0x125   :  { %1208 = vmatprep.subr.bf16.mxu1 %v11741_v21  ;;  %v11811_v21 = vld [vmem:[#allocation14] ss:$20 sps:$4 sm:$0xff]  }
 0x126   :  { %1166 = vmatpush1.bf16.msra.mxu0 %v11697_v16  ;;  %v11793_v16 = vld [vmem:[#allocation5 + $0x2a0] ss:$40 sps:$4 sm:$0xff]  }
 0x127   :  { %1167 = vmatprep.subr.bf16.mxu0 %v11702_v18  ;;  %v11796_v18 = vld [vmem:[#allocation5 + $0x2f0] ss:$40 sps:$4 sm:$0xff]  }
 0x128   :  { %1209 = vmatpush1.bf16.msra.mxu1 %v11739_v23  ;;  %v11804_v23 = vld [vmem:[#allocation5 + $0x394] ss:$40 sps:$4 sm:$0xff]  }
 0x129   :  { %1210 = vmatprep.subr.bf16.mxu1 %v11744_v25  ;;  %v11819_v25 = vld [vmem:[#allocation14 + $0x2c] ss:$20 sps:$4 sm:$0xff]  }
 0x12a   :  { %1168 = vmatpush1.bf16.msra.mxu0 %v11700_v20  ;;  %v11801_v20 = vld [vmem:[#allocation5 + $0x344] ss:$40 sps:$4 sm:$0xff]  }
 0x12b   :  { %1169 = vmatprep.subr.bf16.mxu0 %v11705_v22  ;;  %v11799_v22 = vld [vmem:[#allocation5 + $0x340] ss:$40 sps:$4 sm:$0xff]  }
 0x12c   :  { %1211 = vmatpush1.bf16.msra.mxu1 %v11742_v27  ;;  %v11810_v27 = vld [vmem:[#allocation5 + $0x434] ss:$40 sps:$4 sm:$0xff]  }
 0x12d   :  { %1212 = vmatprep.subr.bf16.mxu1 %v11747_v29  ;;  %v11805_v29 = vld [vmem:[#allocation5 + $0x3e0] ss:$40 sps:$4 sm:$0xff]  }
 0x12e   :  { %1170 = vmatpush1.bf16.msra.mxu0 %v11703_v24  ;;  %v11802_v24 = vld [vmem:[#allocation5 + $0x390] ss:$40 sps:$4 sm:$0xff]  }
 0x12f   :  { %1171 = vmatprep.subr.bf16.mxu0 %v11708_v26  ;;  %v11807_v26 = vld [vmem:[#allocation5 + $0x3e4] ss:$40 sps:$4 sm:$0xff]  }
 0x130   :  { %1213 = vmatpush1.bf16.msra.mxu1 %v11745_v31  ;;  %v11808_v31 = vld [vmem:[#allocation5 + $0x430] ss:$40 sps:$4 sm:$0xff]  }
 0x131   :  { %1214 = vmatprep.subr.bf16.mxu1 %v11750_v33  ;;  %v1069_v33 = vand.u32 %v11810_v27, %v13629_v50  ;;  %v11898_v27 = vld [vmem:[#allocation14 + $0x238] ss:$20 sps:$4 sm:$0xff]  }
 0x132   :  { %1172 = vmatpush1.bf16.msra.mxu0 %v11706_v28  ;;  %v11817_v28 = vld [vmem:[#allocation14 + $0x28] ss:$20 sps:$4 sm:$0xff]  }
 0x133   :  { %1173 = vmatprep.subr.bf16.mxu0 %v11711_v30  ;;  %v11825_v30 = vld [vmem:[#allocation14 + $0x54] ss:$20 sps:$4 sm:$0xff]  }
 0x134   :  { %1215 = vmatpush1.bf16.msra.mxu1 %v11748_v36  ;;  %v11829_v36 = vld [vmem:[#allocation14 + $0x78] ss:$20 sps:$4 sm:$0xff]  }
 0x135   :  { %1216 = vmatprep.subr.bf16.mxu1 %v11753_v38  ;;  %v11816_v38 = vld [vmem:[#allocation14 + $0xc] ss:$20 sps:$4 sm:$0xff]  }
 0x136   :  { %1174 = vmatpush1.bf16.msra.mxu0 %v11709_v32  ;;  %v11823_v32 = vld [vmem:[#allocation14 + $0x50] ss:$20 sps:$4 sm:$0xff]  }
 0x137   :  { %1175 = vmatprep.subr.bf16.mxu0 %v11714_v35  ;;  %v11831_v35 = vld [vmem:[#allocation14 + $0x7c] ss:$20 sps:$4 sm:$0xff]  }
 0x138   :  { %1217 = vmatpush1.bf16.msra.mxu1 %v11751_v42  ;;  %v11835_v42 = vld [vmem:[#allocation14 + $0xa0] ss:$20 sps:$4 sm:$0xff]  }
 0x139   :  { %1218 = vmatprep.subr.bf16.mxu1 %v11756_v43  ;;  %v11843_v43 = vld [vmem:[#allocation14 + $0xcc] ss:$20 sps:$4 sm:$0xff]  }
 0x13a   :  { %1176 = vmatpush1.bf16.msra.mxu0 %v11712_v37  ;;  %v1066_v37 = vand.u32 %v11808_v31, %v13629_v50  ;;  %v11849_v50 = vld [vmem:[#allocation14 + $0xf4] ss:$20 sps:$4 sm:$0xff]   ;;  %v1290_v31 = vlaneseq }
 0x13b   :  { %1177 = vmatprep.subr.bf16.mxu0 %v11717_v39  ;;  %v11814_v39 = vld [vmem:[#allocation14 + $0x8] ss:$20 sps:$4 sm:$0xff]  }
 0x13c   :  { %1219 = vmatpush1.bf16.msra.mxu1 %v11754_v44  ;;  %v11820_v44 = vld [vmem:[#allocation14 + $0x30] ss:$20 sps:$4 sm:$0xff]  }
 0x13d   :  { %1220 = vmatprep.subr.bf16.mxu1 %v11759_v46  ;;  %v11841_v46 = vld [vmem:[#allocation14 + $0xc8] ss:$20 sps:$4 sm:$0xff]  }
 0x13e   :  { %1178 = vmatpush1.bf16.msra.mxu0 %v11715_v40  ;;  %v11837_v40 = vld [vmem:[#allocation14 + $0xa4] ss:$20 sps:$4 sm:$0xff]  }
 0x13f   :  { %1179 = vmatprep.subr.bf16.mxu0 %v11720_v41  ;;  %v11822_v41 = vld [vmem:[#allocation14 + $0x34] ss:$20 sps:$4 sm:$0xff]  }
 0x140   :  { %1221 = vmatpush1.bf16.msra.mxu1 %v11757_v49  ;;  %v11834_v49 = vld [vmem:[#allocation14 + $0x84] ss:$20 sps:$4 sm:$0xff]  }
 0x141   :  { %1222 = vmatprep.subr.bf16.mxu1 %v11762_v53  ;;  %v11840_v53 = vld [vmem:[#allocation14 + $0xac] ss:$20 sps:$4 sm:$0xff]  }
 0x142   :  { %1180 = vmatpush1.bf16.msra.mxu0 %v11718_v45  ;;  %v11828_v45 = vld [vmem:[#allocation14 + $0x5c] ss:$20 sps:$4 sm:$0xff]  }
 0x143   :  { %1181 = vmatprep.subr.bf16.mxu0 %v11723_v47  ;;  %v11826_v47 = vld [vmem:[#allocation14 + $0x58] ss:$20 sps:$4 sm:$0xff]  }
 0x144   :  { %1223 = vmatpush1.bf16.msra.mxu1 %v11760_v55  ;;  %v11859_v55 = vld [vmem:[#allocation14 + $0x140] ss:$20 sps:$4 sm:$0xff]  }
 0x145   :  { %1224 = vmatprep.subr.bf16.mxu1 %v11765_v56  ;;  %v11838_v56 = vld [vmem:[#allocation14 + $0xa8] ss:$20 sps:$4 sm:$0xff]  }
 0x146   :  { %1182 = vmatpush1.bf16.msra.mxu0 %v11721_v51  ;;  %v11832_v51 = vld [vmem:[#allocation14 + $0x80] ss:$20 sps:$4 sm:$0xff]  }
 0x147   :  { %1183 = vmatprep.subr.bf16.mxu0 %v1057_v54  ;;  %v11853_v54 = vld [vmem:[#allocation14 + $0x118] ss:$20 sps:$4 sm:$0xff]  }
 0x148   :  { %1225 = vmatpush1.bf16.msra.mxu1 %v11763_v60  ;;  %v11844_v60 = vld [vmem:[#allocation14 + $0xd0] ss:$20 sps:$4 sm:$0xff]  }
 0x149   :  { %1226 = vmatprep.subr.bf16.mxu1 %v1063_v1  ;;  %v11850_v1 = vld [vmem:[#allocation14 + $0xf8] ss:$20 sps:$4 sm:$0xff]  }
 0x14a   :  { %1184 = vmatpush1.bf16.msra.mxu0 %v1054_v59  ;;  %v11865_v59 = vld [vmem:[#allocation14 + $0x168] ss:$20 sps:$4 sm:$0xff]  }
 0x14b   :  { %1243 = vmatprep.subr.bf16.mxu0 %v11771_v58  ;;  %v11846_v58 = vld [vmem:[#allocation14 + $0xd4] ss:$20 sps:$4 sm:$0xff]  }
 0x14c   :  { %1227 = vmatpush1.bf16.msra.mxu1 %v1060_v3  ;;  %v11858_v3 = vld [vmem:[#allocation14 + $0x124] ss:$20 sps:$4 sm:$0xff]  }
 0x14d   :  { %1190 = vmatmul.mubr.bf16.vlgmr.msra.gmra.mrb[4].mxu0 %v13633_v61  ;;  %8386 = vmatprep.subr.bf16.mxu1 %v11813_v19  ;;  %v11901_v19 = vld [vmem:[#allocation14 + $0x258] ss:$20 sps:$4 sm:$0xff]  }
 0x14e   :  { %1244 = vmatpush1.bf16.msra.mxu0 %v11769_v63  ;;  %10320 = vmatprep.mubr.msk.bf16.mxu0 %vm1033_vm0, %v13623_v34  ;;  %v11787_v34 = vld [vmem:[#allocation5 + $0x200] ss:$40 sps:$4 sm:$0xff]   ;;  %v11852_v63 = vld [vmem:[#allocation14 + $0xfc] ss:$20 sps:$4 sm:$0xff]  }
 0x14f   :  { %1245 = vmatprep.subr.bf16.mxu0 %v11774_v0  ;;  %1233 = vmatmul.mubr.bf16.vlgmr.msra.gmra.mrb[4].mxu1 %v13633_v61  ;;  %v11871_v0 = vld [vmem:[#allocation14 + $0x190] ss:$20 sps:$4 sm:$0xff]  }
 0x150   :  { %8387 = vmatpush1.bf16.msra.mxu1 %v11811_v21  ;;  %v11888_v21 = vld [vmem:[#allocation14 + $0x1ec] ss:$20 sps:$4 sm:$0xff]  }
 0x151   :  { %8388 = vmatprep.subr.bf16.mxu1 %v11819_v25  ;;  %v11909_v25 = vld [vmem:[#allocation14 + $0x284] ss:$20 sps:$4 sm:$0xff]  }
 0x152   :  { %1246 = vmatpush1.bf16.msra.mxu0 %v11772_v2  ;;  %v11879_v2 = vld [vmem:[#allocation14 + $0x1bc] ss:$20 sps:$4 sm:$0xff]  }
 0x153   :  { %1247 = vmatprep.subr.bf16.mxu0 %v11777_v4  ;;  %v11856_v4 = vld [vmem:[#allocation14 + $0x120] ss:$20 sps:$4 sm:$0xff]  }
 0x154   :  { %8389 = vmatpush1.bf16.msra.mxu1 %v11817_v28  ;;  %v11906_v28 = vld [vmem:[#allocation14 + $0x264] ss:$20 sps:$4 sm:$0xff]  }
 0x155   :  { %8390 = vmatprep.subr.bf16.mxu1 %v11825_v30  ;;  %v11912_v30 = vld [vmem:[#allocation14 + $0x28c] ss:$20 sps:$4 sm:$0xff]  }
 0x156   :  { %1248 = vmatpush1.bf16.msra.mxu0 %v11775_v5  ;;  %v11877_v5 = vld [vmem:[#allocation14 + $0x1b8] ss:$20 sps:$4 sm:$0xff]  }
 0x157   :  { %1249 = vmatprep.subr.bf16.mxu0 %v11780_v6  ;;  %v11864_v6 = vld [vmem:[#allocation14 + $0x14c] ss:$20 sps:$4 sm:$0xff]  }
 0x158   :  { %8391 = vmatpush1.bf16.msra.mxu1 %v11823_v32  ;;  %v13654_v32 = vshrl.u32 %v1290_v31, 7 }
 0x159   :  { %8392 = vmatprep.subr.bf16.mxu1 %v11831_v35 }
 0x15a   :  { %1250 = vmatpush1.bf16.msra.mxu0 %v11778_v7  ;;  %v11885_v7 = vld [vmem:[#allocation14 + $0x1e4] ss:$20 sps:$4 sm:$0xff]   ;;  %v13659_v35 = vsub.s32 0, %v13654_v32 }
 0x15b   :  { %1251 = vmatprep.subr.bf16.mxu0 %v11783_v8  ;;  %v11883_v8 = vld [vmem:[#allocation14 + $0x1e0] ss:$20 sps:$4 sm:$0xff]  }
 0x15c   :  { %8393 = vmatpush1.bf16.msra.mxu1 %v11829_v36  ;;  %v13662_v36 = vsub.s32 1, %v13654_v32 }
 0x15d   :  { %8394 = vmatprep.subr.bf16.mxu1 %v11837_v40 }
 0x15e   :  { %1252 = vmatpush1.bf16.msra.mxu0 %v11781_v9  ;;  %v11862_v9 = vld [vmem:[#allocation14 + $0x148] ss:$20 sps:$4 sm:$0xff]  }
 0x15f   :  { %1253 = vmatprep.subr.bf16.mxu0 %v11786_v10  ;;  %v11891_v10 = vld [vmem:[#allocation14 + $0x20c] ss:$20 sps:$4 sm:$0xff]  }
 0x160   :  { %8395 = vmatpush1.bf16.msra.mxu1 %v11835_v42 }
 0x161   :  { %8396 = vmatprep.subr.bf16.mxu1 %v11843_v43  ;;  %v13675_v43 = vsub.s32 3, %v13654_v32 }
 0x162   :  { %1254 = vmatpush1.bf16.msra.mxu0 %v11784_v11  ;;  %v11870_v11 = vld [vmem:[#allocation14 + $0x174] ss:$20 sps:$4 sm:$0xff]  }
 0x163   :  { %1255 = vmatprep.subr.bf16.mxu0 %v11789_v12  ;;  %v11889_v12 = vld [vmem:[#allocation14 + $0x208] ss:$20 sps:$4 sm:$0xff]  }
 0x164   :  { %8397 = vmatpush1.bf16.msra.mxu1 %v11841_v46 }
 0x165   :  { %8398 = vmatprep.subr.bf16.mxu1 %v11849_v50 }
 0x166   :  { %1256 = vmatpush1.bf16.msra.mxu0 %v11787_v34  ;;  %v11868_v34 = vld [vmem:[#allocation14 + $0x170] ss:$20 sps:$4 sm:$0xff]  }
 0x167   :  { %1257 = vmatprep.subr.bf16.mxu0 %v11792_v13  ;;  %v11897_v13 = vld [vmem:[#allocation14 + $0x234] ss:$20 sps:$4 sm:$0xff]  }
 0x168   :  { %8399 = vmatpush1.bf16.msra.mxu1 %v11847_v48 }
 0x169   :  { %8400 = vmatprep.subr.bf16.mxu1 %v11855_v52 }
 0x16a   :  { %1258 = vmatpush1.bf16.msra.mxu0 %v11790_v14  ;;  %v11876_v14 = vld [vmem:[#allocation14 + $0x19c] ss:$20 sps:$4 sm:$0xff]  }
 0x16b   :  { %1259 = vmatprep.subr.bf16.mxu0 %v11795_v15  ;;  %v11895_v15 = vld [vmem:[#allocation14 + $0x230] ss:$20 sps:$4 sm:$0xff]  }
 0x16c   :  { %8401 = vmatpush1.bf16.msra.mxu1 %v11853_v54 }
 0x16e   :  { %1260 = vmatpush1.bf16.msra.mxu0 %v11793_v16  ;;  %v11874_v16 = vld [vmem:[#allocation14 + $0x198] ss:$20 sps:$4 sm:$0xff]  }
 0x16f   :  { %1261 = vmatprep.subr.bf16.mxu0 %v11798_v17  ;;  %v11903_v17 = vld [vmem:[#allocation14 + $0x25c] ss:$20 sps:$4 sm:$0xff]  }
 0x172   :  { %1262 = vmatpush1.bf16.msra.mxu0 %v11796_v18  ;;  %v11882_v18 = vld [vmem:[#allocation14 + $0x1c4] ss:$20 sps:$4 sm:$0xff]  }
 0x173   :  { %1263 = vmatprep.subr.bf16.mxu0 %v11801_v20  ;;  %v11880_v20 = vld [vmem:[#allocation14 + $0x1c0] ss:$20 sps:$4 sm:$0xff]  }
 0x176   :  { %1264 = vmatpush1.bf16.msra.mxu0 %v11799_v22  ;;  %v11886_v22 = vld [vmem:[#allocation14 + $0x1e8] ss:$20 sps:$4 sm:$0xff]  }
 0x177   :  { %1265 = vmatprep.subr.bf16.mxu0 %v11804_v23  ;;  %v11894_v23 = vld [vmem:[#allocation14 + $0x214] ss:$20 sps:$4 sm:$0xff]  }
 0x17a   :  { %1266 = vmatpush1.bf16.msra.mxu0 %v11802_v24  ;;  %v11892_v24 = vld [vmem:[#allocation14 + $0x210] ss:$20 sps:$4 sm:$0xff]  }
 0x17b   :  { %1267 = vmatprep.subr.bf16.mxu0 %v11807_v26  ;;  %v11900_v26 = vld [vmem:[#allocation14 + $0x23c] ss:$20 sps:$4 sm:$0xff]  }
 0x17e   :  { %1268 = vmatpush1.bf16.msra.mxu0 %v11805_v29  ;;  %v11904_v29 = vld [vmem:[#allocation14 + $0x260] ss:$20 sps:$4 sm:$0xff]  }
 0x17f   :  { %1269 = vmatprep.subr.bf16.mxu0 %v1069_v33  ;;  %v13656_v33 = vld [vmem:[#allocation7] sm:$0xff] }
 0x182   :  { %1270 = vmatpush1.bf16.msra.mxu0 %v1066_v37  ;;  %v13664_v37 = vld [vmem:[#allocation8] sm:$0xff] }
 0x183   :  { %8796 = vmatprep.subr.bf16.mxu0 %v11816_v38  ;;  %v1293_v38 = vrot.slane %v13656_v33, %v13659_v35  ;;  %v1367_v40 = vrot.slane %v13664_v37, %v13659_v35  ;;  %v1371_v42 = vrot.slane %v13664_v37, %v13662_v36 }
 0x185   :  { %1276 = vmatmul.mubr.bf16.vlgmr.msra.gmra.mrb[8].mxu0 %v13633_v61  ;;  %v11861_v61 = vld [vmem:[#allocation14 + $0x144] ss:$20 sps:$4 sm:$0xff]  }
 0x186   :  { %8797 = vmatpush1.bf16.msra.mxu0 %v11814_v39  ;;  %8402 = vmatprep.subr.bf16.mxu1 %v11861_v61  ;;  %v1297_v39 = vrot.slane %v13656_v33, %v13662_v36 }
 0x187   :  { %8798 = vmatprep.subr.bf16.mxu0 %v11822_v41  ;;  %8403 = vmatpush1.bf16.msra.mxu1 %v11859_v55 }
 0x188   :  { %8404 = vmatprep.subr.bf16.mxu1 %v11867_v57  ;;  %v1379_v57 = vrot.slane %v13664_v37, %v13675_v43 }
 0x18a   :  { %8799 = vmatpush1.bf16.msra.mxu0 %v11820_v44 }
 0x18b   :  { %8800 = vmatprep.subr.bf16.mxu0 %v11828_v45  ;;  %8405 = vmatpush1.bf16.msra.mxu1 %v11865_v59 }
 0x18c   :  { %8406 = vmatprep.subr.bf16.mxu1 %v11873_v62 }
 0x18e   :  { %8801 = vmatpush1.bf16.msra.mxu0 %v11826_v47 }
 0x18f   :  { %8802 = vmatprep.subr.bf16.mxu0 %v11834_v49  ;;  %8407 = vmatpush1.bf16.msra.mxu1 %v11871_v0 }
 0x190   :  { %8408 = vmatprep.subr.bf16.mxu1 %v11879_v2 }
 0x192   :  { %8803 = vmatpush1.bf16.msra.mxu0 %v11832_v51 }
 0x193   :  { %8804 = vmatprep.subr.bf16.mxu0 %v11840_v53  ;;  %8409 = vmatpush1.bf16.msra.mxu1 %v11877_v5  ;;  %v1305_v53 = vrot.slane %v13656_v33, %v13675_v43 }
 0x194   :  { %8410 = vmatprep.subr.bf16.mxu1 %v11885_v7 }
 0x196   :  { %8805 = vmatpush1.bf16.msra.mxu0 %v11838_v56 }
 0x197   :  { %8806 = vmatprep.subr.bf16.mxu0 %v11846_v58  ;;  %8411 = vmatpush1.bf16.msra.mxu1 %v11883_v8 }
 0x198   :  { %8412 = vmatprep.subr.bf16.mxu1 %v11891_v10 }
 0x19a   :  { %8807 = vmatpush1.bf16.msra.mxu0 %v11844_v60 }
 0x19b   :  { %8808 = vmatprep.subr.bf16.mxu0 %v11852_v63  ;;  %8413 = vmatpush1.bf16.msra.mxu1 %v11889_v12 }
 0x19c   :  { %8414 = vmatprep.subr.bf16.mxu1 %v11897_v13 }
 0x19e   :  { %8809 = vmatpush1.bf16.msra.mxu0 %v11850_v1 }
 0x19f   :  { %8810 = vmatprep.subr.bf16.mxu0 %v11858_v3  ;;  %8415 = vmatpush1.bf16.msra.mxu1 %v11895_v15 }
 0x1a0   :  { %8416 = vmatprep.subr.bf16.mxu1 %v11903_v17 }
 0x1a2   :  { %8811 = vmatpush1.bf16.msra.mxu0 %v11856_v4 }
 0x1a3   :  { %8812 = vmatprep.subr.bf16.mxu0 %v11864_v6  ;;  %8417 = vmatpush1.bf16.msra.mxu1 %v11901_v19  ;;  %v13706_v19 = vsub.s32 2, %v13654_v32 }
 0x1a4   :  { %8427 = vmatprep.subr.bf16.mxu1 %v11909_v25  ;;  %v13717_v25 = vsub.s32 5, %v13654_v32 }
 0x1a6   :  { %8813 = vmatpush1.bf16.msra.mxu0 %v11862_v9  ;;  %v13696_v9 = vld [vmem:[#allocation10] sm:$0xff] }
 0x1a7   :  { %8814 = vmatprep.subr.bf16.mxu0 %v11870_v11  ;;  %v1627_v15 = vrot.slane %v13696_v9, %v13662_v36 }
 0x1aa   :  { %8815 = vmatpush1.bf16.msra.mxu0 %v11868_v34 }
 0x1ab   :  { %8816 = vmatprep.subr.bf16.mxu0 %v11876_v14 }
 0x1ae   :  { %8817 = vmatpush1.bf16.msra.mxu0 %v11874_v16  ;;  %v13701_v16 = vld [vmem:[#allocation10 + $0x8] sm:$0xff] }
 0x1af   :  { %8818 = vmatprep.subr.bf16.mxu0 %v11882_v18  ;;  %v1721_v31 = vrot.slane %v13701_v16, %v13706_v19 }
 0x1b2   :  { %8819 = vmatpush1.bf16.msra.mxu0 %v11880_v20 }
 0x1b3   :  { %8820 = vmatprep.subr.bf16.mxu0 %v11888_v21  ;;  %v1577_v21 = vrot.slane %v13696_v9, %v13659_v35 }
 0x1b6   :  { %8821 = vmatpush1.bf16.msra.mxu0 %v11886_v22 }
 0x1b7   :  { %8822 = vmatprep.subr.bf16.mxu0 %v11894_v23  ;;  %v1717_v23 = vrot.slane %v13696_v9, %v13706_v19 }
 0x1ba   :  { %8823 = vmatpush1.bf16.msra.mxu0 %v11892_v24  ;;  %v13714_v24 = vsub.s32 4, %v13654_v32 }
 0x1bb   :  { %8824 = vmatprep.subr.bf16.mxu0 %v11900_v26  ;;  %v13720_v26 = vsub.s32 6, %v13654_v32 }
 0x1be   :  { %8825 = vmatpush1.bf16.msra.mxu0 %v11898_v27  ;;  %v1807_v27 = vrot.slane %v13696_v9, %v13675_v43 }
 0x1bf   :  { %8826 = vmatprep.subr.bf16.mxu0 %v11906_v28  ;;  %v1631_v28 = vrot.slane %v13701_v16, %v13662_v36 }
 0x1c2   :  { %8827 = vmatpush1.bf16.msra.mxu0 %v11904_v29 }
 0x1c3   :  { %8837 = vmatprep.subr.bf16.mxu0 %v11912_v30  ;;  %v1581_v30 = vrot.slane %v13701_v16, %v13659_v35 }
 0x1e8   :  { %v1105_v41 = vpop.f32.mrb[0].mxu0 }
 0x1e9   :  { %v1340_v44 = vmul.f32 %v1293_v38, %v1105_v41  ;;  %v1107_v45 = vpop.f32.mrb[1].mxu0  ;;  %v13739_v41 = vrot.slane %v13656_v33, %v13706_v19 }
 0x1ea   :  { %v1341_v46 = vmul.f32 %v1297_v39, %v1107_v45  ;;  %v1109_v50 = vpop.f32.mrb[2].mxu0  ;;  %v13679_v56 = vpop.f32.mrb[0].mxu1 }
 0x1eb   :  { %v1414_v47 = vadd.f32 %v1367_v40, %v1340_v44  ;;  %v1111_v48 = vpop.f32.mrb[3].mxu0  ;;  %v1350_v52 = vmul.f32 %v1293_v38, %v1109_v50  ;;  %v1150_v59 = vpop.f32.mrb[1].mxu1  ;;  %v13733_v38 = vsub.s32 7, %v13654_v32  ;;  %v13745_v44 = vld [vmem:[#allocation10 + $0x18] sm:$0xff]  ;;  %v1901_v32 = vrot.slane %v13701_v16, %v13714_v24 }
 0x1ec   :  { %v1415_v49 = vadd.f32 %v1371_v42, %v1341_v46  ;;  %v1351_v55 = vmul.f32 %v1297_v39, %v1111_v48  ;;  %v1343_v62 = vmul.f32 %v1305_v53, %v1150_v59  ;;  %v13685_v63 = vpop.f32.mrb[2].mxu1  ;;  %v1897_v46 = vrot.slane %v13696_v9, %v13714_v24 }
 0x1ed   :  { %v1454_v51 = vmin.f32 %v1414_v47, 0.0  ;;  %v13683_v60 = vadd.f32 %v1367_v40, %v1350_v52  ;;  %v1154_v0 = vpop.f32.mrb[3].mxu1  ;;  %vm1434_vm3 = vcmp.gt.f32.partialorder %v1414_v47, 0.0  ;;  %v1811_v40 = vrot.slane %v13701_v16, %v13675_v43 }
 0x1ee   :  { %v1455_v54 = vmin.f32 %v1415_v49, 0.0  ;;  %v13687_v1 = vadd.f32 %v1371_v42, %v1351_v55  ;;  %v13689_v2 = vadd.f32 %v1379_v57, %v1343_v62  ;;  %v1353_v3 = vmul.f32 %v1305_v53, %v1154_v0 }
 0x1ef   :  { %v1474_v61 = vmul.f32 1.442695, %v1454_v51  ;;  %v1464_v4 = vmin.f32 %v13683_v60, 0.0  ;;  %vm1435_vm4 = vcmp.gt.f32.partialorder %v1415_v49, 0.0  ;;  %v13743_v42 = vrot.slane %v13664_v37, %v13706_v19 }
 0x1f0   :  { %v1476_v58 = vmul.f32 1.442695, %v1455_v54  ;;  %v1457_v5 = vmin.f32 %v13689_v2, 0.0  ;;  %v13693_v6 = vadd.f32 %v1379_v57, %v1353_v3  ;;  %v1465_v7 = vmin.f32 %v13687_v1, 0.0 }
 0x1f1   :  { %12971 = vpow2.f32 %v1474_v61  ;;  %v1494_v10 = vmul.f32 1.442695, %v1464_v4  ;;  %v1961_v50 = vrot.slane %v13701_v16, %v13717_v25  ;;  %v1589_v52 = vrot.slane %v13745_v44, %v13659_v35 }
 0x1f2   :  { %12973 = vpow2.f32 %v1476_v58  ;;  %v1480_v8 = vmul.f32 1.442695, %v1457_v5  ;;  %v1467_v11 = vmin.f32 %v13693_v6, 0.0  ;;  %v1496_v34 = vmul.f32 1.442695, %v1465_v7  ;;  %v13768_v58 = vld [vmem:[#allocation11] sm:$0xff] }
 0x1f3   :  { %v1639_v54 = vrot.slane %v13745_v44, %v13662_v36  ;;  %v1729_v61 = vrot.slane %v13745_v44, %v13706_v19  ;;  %v1819_v55 = vrot.slane %v13745_v44, %v13675_v43  ;;  %v2141_v57 = vrot.slane %v13701_v16, %v13733_v38 }
 0x1f4   :  { %12975 = vpow2.f32 %v1480_v8  ;;  %v1500_v18 = vmul.f32 1.442695, %v1467_v11  ;;  %v1957_v0 = vrot.slane %v13696_v9, %v13717_v25  ;;  %v2047_v3 = vrot.slane %v13696_v9, %v13720_v26 }
 0x1f5   :  { %12977 = vpow2.f32 %v1494_v10  ;;  %v1342_v7 = vmul.f32 %v13739_v41, %v13679_v56  ;;  %vm1437_vm5 = vcmp.gt.f32.partialorder %v13689_v2, 0.0  ;;  %v2137_v8 = vrot.slane %v13696_v9, %v13733_v38 }
 0x1f6   :  { %12979 = vpow2.f32 %v1496_v34  ;;  %v2887_v34 = vrot.slane %v13768_v58, %v13662_v36  ;;  %v1969_v56 = vrot.slane %v13745_v44, %v13717_v25  ;;  %vm1444_vm6 = vcmp.gt.f32.partialorder %v13683_v60, 0.0 }
 0x1f7   :  { %12981 = vpow2.f32 %v1500_v18  ;;  %vm1445_vm7 = vcmp.gt.f32.partialorder %v13687_v1, 0.0  ;;  %vm1447_vm8 = vcmp.gt.f32.partialorder %v13693_v6, 0.0 }
 0x1fb   :  { %v12972_v12 = vpop.eup %12971 }
 0x1fc   :  { %v12974_v13 = vpop.eup %12973  ;;  %v10321_v14 = vadd.f32 -1.0, %v12972_v12 }
 0x1fd   :  { %v10322_v20 = vadd.f32 -1.0, %v12974_v13 }
 0x1fe   :  { %v13703_v17 = vsel %vm1434_vm3, %v1414_v47, %v10321_v14  ;;  %v12976_v45 = vpop.eup %12975  ;;  %v2051_v47 = vrot.slane %v13701_v16, %v13720_v26  ;;  %v2883_v14 = vrot.slane %v13768_v58, %v13659_v35 }
 0x1ff   :  { %v1664_v22 = vmul.f32 %v1627_v15, %v13703_v17  ;;  %v13726_v29 = vsel %vm1435_vm4, %v1415_v49, %v10322_v20  ;;  %v1614_v48 = vmul.f32 %v1577_v21, %v13703_v17  ;;  %v1754_v49 = vmul.f32 %v1717_v23, %v13703_v17  ;;  %v12978_v53 = vpop.eup %12977 }
 0x200   :  { %15048 = vst [vmem:[#allocation31_spill] sm:$0xff] %v13726_v29  ;;  %v1665_v51 = vmul.f32 %v1631_v28, %v13726_v29  ;;  %v10324_v62 = vadd.f32 -1.0, %v12976_v45  ;;  %v12980_v4 = vpop.eup %12979  ;;  %v1844_v5 = vmul.f32 %v1807_v27, %v13703_v17  ;;  %v10331_v12 = vadd.f32 -1.0, %v12978_v53 }
 0x201   :  { %v1684_v39 = vrot.slane %v1664_v22, 2  ;;  %v1774_v10 = vrot.slane %v1754_v49, 4  ;;  %v1615_v13 = vmul.f32 %v1581_v30, %v13726_v29  ;;  %v1909_v15 = vrot.slane %v13745_v44, %v13714_v24  ;;  %v12982_v16 = vpop.eup %12981 }
 0x202   :  { %v1685_v11 = vrot.slane %v1665_v51, 2  ;;  %v1755_v9 = vmul.f32 %v1721_v31, %v13726_v29  ;;  %v10332_v20 = vadd.f32 -1.0, %v12980_v4  ;;  %v13791_v21 = vsel %vm1437_vm5, %v13689_v2, %v10324_v62 }
 0x203   :  { %v1704_v59 = vadd.f32 %v1684_v39, %v1614_v48  ;;  %v1864_v22 = vrot.slane %v1844_v5, 6  ;;  %v1845_v23 = vmul.f32 %v1811_v40, %v13726_v29  ;;  %v13796_v27 = vadd.f32 %v13743_v42, %v1342_v7  ;;  %v12006_v29 = vld [vmem:[#allocation14 + $0x508] ss:$20 sps:$4 sm:$0xff]  }
 0x204   :  { %v13799_v28 = vsel %vm1444_vm6, %v13683_v60, %v10331_v12  ;;  %v1667_v30 = vmul.f32 %v1639_v54, %v13791_v21  ;;  %v1757_v39 = vmul.f32 %v1729_v61, %v13791_v21  ;;  %v1705_v31 = vadd.f32 %v1685_v11, %v1615_v13 }
 0x205   :  { %v1794_v18 = vadd.f32 %v1774_v10, %v1704_v59  ;;  %v10334_v2 = vadd.f32 -1.0, %v12982_v16  ;;  %v2059_v45 = vrot.slane %v13745_v44, %v13720_v26  ;;  %v2149_v40 = vrot.slane %v13745_v44, %v13733_v38 }
 0x206   :  { %v1775_v48 = vrot.slane %v1755_v9, 4  ;;  %v13809_v49 = vsel %vm1445_vm7, %v13687_v1, %v10332_v20  ;;  %v1934_v51 = vmul.f32 %v1897_v46, %v13799_v28  ;;  %v1456_v53 = vmin.f32 %v13796_v27, 0.0 }
 0x207   :  { %15049 = vst [vmem:[#allocation32_spill] sm:$0xff] %v13809_v49  ;;  %v1884_v60 = vadd.f32 %v1864_v22, %v1794_v18  ;;  %v1617_v54 = vmul.f32 %v1589_v52, %v13791_v21  ;;  %v1865_v61 = vrot.slane %v1845_v23, 6  ;;  %v1687_v59 = vrot.slane %v1667_v30, 2 }
 0x208   :  { %v1777_v62 = vrot.slane %v1757_v39, 4  ;;  %v1847_v4 = vmul.f32 %v1819_v55, %v13791_v21  ;;  %v1795_v5 = vadd.f32 %v1775_v48, %v1705_v31  ;;  %v13817_v44 = vsel %vm1447_vm8, %v13693_v6, %v10334_v2 }
 0x209   :  { %v1935_v1 = vmul.f32 %v1901_v32, %v13809_v49  ;;  %v1995_v7 = vmul.f32 %v1961_v50, %v13809_v49  ;;  %v2085_v10 = vmul.f32 %v2051_v47, %v13809_v49  ;;  %v1944_v11 = vadd.f32 %v1934_v51, %v1884_v60 }
 0x20a   :  { %v1885_v46 = vadd.f32 %v1865_v61, %v1795_v5  ;;  %v1994_v12 = vmul.f32 %v1957_v0, %v13799_v28  ;;  %v2084_v52 = vmul.f32 %v2047_v3, %v13799_v28  ;;  %v1478_v13 = vmul.f32 1.442695, %v1456_v53  ;;  %v13828_v0 = vld [vmem:[#allocation13] sm:$0xff] }
 0x20b   :  { %v2015_v16 = vrot.slane %v1995_v7, 2  ;;  %v2175_v55 = vmul.f32 %v2141_v57, %v13809_v49  ;;  %v2174_v18 = vmul.f32 %v2137_v8, %v13799_v28  ;;  %v2105_v9 = vrot.slane %v2085_v10, 4 }
 0x20c   :  { %v1945_v6 = vadd.f32 %v1935_v1, %v1885_v46  ;;  %v2014_v20 = vrot.slane %v1994_v12, 2  ;;  %v1707_v32 = vadd.f32 %v1687_v59, %v1617_v54  ;;  %v2104_v22 = vrot.slane %v2084_v52, 4 }
 0x20d   :  { %v1867_v50 = vrot.slane %v1847_v4, 6  ;;  %v1937_v47 = vmul.f32 %v1909_v15, %v13817_v44  ;;  %v1997_v23 = vmul.f32 %v1969_v56, %v13817_v44  ;;  %v2087_v31 = vmul.f32 %v2059_v45, %v13817_v44 }
 0x20e   :  { %v2035_v30 = vadd.f32 %v2015_v16, %v1945_v6  ;;  %v2034_v3 = vadd.f32 %v2014_v20, %v1944_v11  ;;  %v1797_v39 = vadd.f32 %v1777_v62, %v1707_v32  ;;  %12983 = vpow2.f32 %v1478_v13 }
 0x20f   :  { %v1352_v57 = vmul.f32 %v13739_v41, %v13685_v63  ;;  %v2195_v8 = vrot.slane %v2175_v55, 6  ;;  %v2194_v2 = vrot.slane %v2174_v18, 6  ;;  %v2017_v53 = vrot.slane %v1997_v23, 2 }
 0x210   :  { %v2125_v48 = vadd.f32 %v2105_v9, %v2035_v30  ;;  %v2124_v60 = vadd.f32 %v2104_v22, %v2034_v3  ;;  %v1887_v51 = vadd.f32 %v1867_v50, %v1797_v39  ;;  %v3013_v15 = vrot.slane %v13828_v0, %v13662_v36  ;;  %v13865_v39 = vld [vmem:[#allocation10 + $0x10] sm:$0xff] }
 0x211   :  { %v3009_v56 = vrot.slane %v13828_v0, %v13659_v35  ;;  %v2177_v54 = vmul.f32 %v2149_v40, %v13817_v44  ;;  %v2107_v62 = vrot.slane %v2087_v31, 4  ;;  %v13839_v63 = vadd.f32 %v13743_v42, %v1352_v57 }
 0x212   :  { %v2215_v61 = vadd.f32 %v2195_v8, %v2125_v48  ;;  %v2214_v45 = vadd.f32 %v2194_v2, %v2124_v60  ;;  %v1947_v59 = vadd.f32 %v1937_v47, %v1887_v51  ;;  %v1313_v1 = vrot.slane %v13656_v33, %v13717_v25 }
 0x213   :  { %v2197_v40 = vrot.slane %v2177_v54, 6  ;;  %v1466_v11 = vmin.f32 %v13839_v63, 0.0  ;;  %v3021_v22 = vrot.slane %v13828_v0, %v13675_v43  ;;  %vm1436_vm9 = vcmp.gt.f32.partialorder %v13796_v27, 0.0 }
 0x214   :  { %v2981_v41 = vmul.f32 %v2887_v34, %v2215_v61  ;;  %v2980_v4 = vmul.f32 %v2883_v14, %v2214_v45  ;;  %v2037_v5 = vadd.f32 %v2017_v53, %v1947_v59  ;;  %v1387_v34 = vrot.slane %v13664_v37, %v13717_v25 }
 0x215   :  { %v2895_v14 = vrot.slane %v13768_v58, %v13675_v43  ;;  %v1498_v47 = vmul.f32 1.442695, %v1466_v11  ;;  %v1635_v60 = vrot.slane %v13865_v39, %v13662_v36  ;;  %v1585_v59 = vrot.slane %v13865_v39, %v13659_v35 }
 0x216   :  { %v3107_v7 = vadd.f32 %v3013_v15, %v2981_v41  ;;  %v13849_v10 = vadd.f32 %v3009_v56, %v2980_v4  ;;  %v2127_v42 = vadd.f32 %v2107_v62, %v2037_v5  ;;  %v1725_v41 = vrot.slane %v13865_v39, %v13706_v19 }
 0x217   :  { %vm1446_vm12 = vcmp.gt.f32.partialorder %v13839_v63, 0.0 }
 0x218   :  { %v3147_v52 = vmin.f32 %v3107_v7, 0.0  ;;  %v3146_v13 = vmin.f32 %v13849_v10, 0.0  ;;  %v12984_v55 = vpop.eup %12983  ;;  %v2217_v6 = vadd.f32 %v2197_v40, %v2127_v42  ;;  %vm3127_vm10 = vcmp.gt.f32.partialorder %v3107_v7, 0.0 }
 0x219   :  { %v10323_v3 = vadd.f32 -1.0, %v12984_v55  ;;  %vm3126_vm11 = vcmp.gt.f32.partialorder %v13849_v10, 0.0 }
 0x21a   :  { %v3168_v20 = vmul.f32 1.442695, %v3147_v52  ;;  %v3166_v32 = vmul.f32 1.442695, %v3146_v13  ;;  %v2983_v30 = vmul.f32 %v2895_v14, %v2217_v6  ;;  %v11910_v14 = vld [vmem:[#allocation14 + $0x288] ss:$20 sps:$4 sm:$0xff]  }
 0x21b   :  { %v13882_v15 = vsel %vm1436_vm9, %v13796_v27, %v10323_v3  ;;  %v1815_v27 = vrot.slane %v13865_v39, %v13675_v43  ;;  %v11918_v6 = vld [vmem:[#allocation14 + $0x2b4] ss:$20 sps:$4 sm:$0xff]  }
 0x21c   :  { %12985 = vpow2.f32 %v3168_v20  ;;  %v13871_v8 = vadd.f32 %v3021_v22, %v2983_v30  ;;  %v1666_v62 = vmul.f32 %v1635_v60, %v13882_v15  ;;  %v1616_v40 = vmul.f32 %v1585_v59, %v13882_v15  ;;  %v11913_v60 = vld [vmem:[#allocation14 + $0x2a8] ss:$20 sps:$4 sm:$0xff]  }
 0x21d   :  { %12987 = vpow2.f32 %v3166_v32  ;;  %v1756_v11 = vmul.f32 %v1725_v41, %v13882_v15  ;;  %v1846_v30 = vmul.f32 %v1815_v27, %v13882_v15  ;;  %v1905_v59 = vrot.slane %v13865_v39, %v13714_v24  ;;  %v11924_v41 = vld [vmem:[#allocation14 + $0x2dc] ss:$20 sps:$4 sm:$0xff]  }
 0x21e   :  { %12989 = vpow2.f32 %v1498_v47  ;;  %v3149_v56 = vmin.f32 %v13871_v8, 0.0  ;;  %v1686_v42 = vrot.slane %v1666_v62, 2  ;;  %v11921_v62 = vld [vmem:[#allocation14 + $0x2d4] ss:$20 sps:$4 sm:$0xff]   ;;  %vm3129_vm14 = vcmp.gt.f32.partialorder %v13871_v8, 0.0 }
 0x21f   :  { %v1776_v47 = vrot.slane %v1756_v11, 4  ;;  %v11919_v11 = vld [vmem:[#allocation14 + $0x2d0] ss:$20 sps:$4 sm:$0xff]  }
 0x220   :  { %v13851_v46 = vpop.f32.mrb[4].mxu0  ;;  %v3172_v61 = vmul.f32 1.442695, %v3149_v56 }
 0x221   :  { %v1193_v12 = vpop.f32.mrb[5].mxu0 }
 0x222   :  { %v13859_v16 = vpop.f32.mrb[6].mxu0  ;;  %v1345_v18 = vmul.f32 %v1313_v1, %v1193_v12  ;;  %v13869_v57 = vpop.f32.mrb[4].mxu1 }
 0x223   :  { %v1197_v9 = vpop.f32.mrb[7].mxu0  ;;  %v13875_v48 = vpop.f32.mrb[5].mxu1 }
 0x224   :  { %v1355_v50 = vmul.f32 %v1313_v1, %v1197_v9  ;;  %v13863_v23 = vadd.f32 %v1387_v34, %v1345_v18  ;;  %v13879_v53 = vpop.f32.mrb[6].mxu1  ;;  %v11915_v18 = vld [vmem:[#allocation14 + $0x2ac] ss:$20 sps:$4 sm:$0xff]  }
 0x225   :  { %v13885_v54 = vpop.f32.mrb[7].mxu1  ;;  %v13898_v9 = vld [vmem:[#allocation10 + $0x28] sm:$0xff] }
 0x226   :  { %v1459_v31 = vmin.f32 %v13863_v23, 0.0  ;;  %v13873_v2 = vadd.f32 %v1387_v34, %v1355_v50  ;;  %v12986_v4 = vpop.eup %12985  ;;  %v11907_v34 = vld [vmem:[#allocation14 + $0x280] ss:$20 sps:$4 sm:$0xff]   ;;  %v1706_v50 = vadd.f32 %v1686_v42, %v1616_v40  ;;  %vm1439_vm13 = vcmp.gt.f32.partialorder %v13863_v23, 0.0 }
 0x227   :  { %v12988_v1 = vpop.eup %12987  ;;  %v10342_v12 = vadd.f32 -1.0, %v12986_v4  ;;  %v1647_v56 = vrot.slane %v13898_v9, %v13662_v36  ;;  %v1965_v4 = vrot.slane %v13865_v39, %v13717_v25  ;;  %v1737_v40 = vrot.slane %v13898_v9, %v13706_v19 }
 0x228   :  { %v1484_v51 = vmul.f32 1.442695, %v1459_v31  ;;  %v1469_v45 = vmin.f32 %v13873_v2, 0.0  ;;  %v10341_v52 = vadd.f32 -1.0, %v12988_v1  ;;  %v12990_v13 = vpop.eup %12989  ;;  %v1597_v1 = vrot.slane %v13898_v9, %v13659_v35 }
 0x229   :  { %v3227_v55 = vsel %vm3127_vm10, %v3107_v7, %v10342_v12  ;;  %v10333_v31 = vadd.f32 -1.0, %v12990_v13  ;;  %v11922_v12 = vld [vmem:[#allocation14 + $0x2d8] ss:$20 sps:$4 sm:$0xff]   ;;  %vm1449_vm15 = vcmp.gt.f32.partialorder %v13873_v2, 0.0 }
 0x22a   :  { %12991 = vpow2.f32 %v1484_v51  ;;  %v1504_v5 = vmul.f32 1.442695, %v1469_v45  ;;  %v13900_v20 = vpack.c.bf16 %v3227_v55, %v3227_v55  ;;  %v3226_v32 = vsel %vm3126_vm11, %v13849_v10, %v10341_v52  ;;  %v11916_v51 = vld [vmem:[#allocation14 + $0x2b0] ss:$20 sps:$4 sm:$0xff]  }
 0x22b   :  { %12993 = vpow2.f32 %v3172_v61  ;;  %v13904_v3 = vpack.c.bf16 %v3226_v32, %v3226_v32  ;;  %v1796_v61 = vadd.f32 %v1776_v47, %v1706_v50  ;;  %v1866_v45 = vrot.slane %v1846_v30, 6  ;;  %v11930_v52 = vld [vmem:[#allocation14 + $0x304] ss:$20 sps:$4 sm:$0xff]  }
 0x22c   :  { %15050 = vst [vmem:[#allocation33_spill] sm:$0xff] %v13900_v20  ;;  %12995 = vpow2.f32 %v1504_v5  ;;  %8418 = vmatprep.mubr.bf16.mxu1 %v13900_v20  ;;  %8828 = vmatprep.mubr.bf16.mxu0 %v13900_v20  ;;  %v13921_v27 = vsel %vm1446_vm12, %v13839_v63, %v10333_v31  ;;  %v2055_v63 = vrot.slane %v13865_v39, %v13720_v26  ;;  %v11925_v30 = vld [vmem:[#allocation14 + $0x2f8] ss:$20 sps:$4 sm:$0xff]   ;;  %v11928_v31 = vld [vmem:[#allocation14 + $0x300] ss:$20 sps:$4 sm:$0xff]  }
 0x22d   :  { %15051 = vst [vmem:[#allocation34_spill] sm:$0xff] %v13904_v3  ;;  %8419 = vmatmul.mubr.bf16.vlgmr.msra.gmra.mrb[8].mxu1 %v13904_v3  ;;  %8829 = vmatmul.mubr.bf16.vlgmr.msra.gmra.mrb[12].mxu0 %v13904_v3  ;;  %v1886_v13 = vadd.f32 %v1866_v45, %v1796_v61  ;;  %v1996_v55 = vmul.f32 %v1965_v4, %v13921_v27  ;;  %v11997_v3 = vld [vmem:[#allocation14 + $0x4d8] ss:$20 sps:$4 sm:$0xff]   ;;  %v12000_v20 = vld [vmem:[#allocation14 + $0x4e0] ss:$20 sps:$4 sm:$0xff]  }
 0x22e   :  { %8428 = vmatpush1.bf16.msra.mxu1 %v11907_v34  ;;  %8838 = vmatpush1.bf16.msra.mxu0 %v11910_v14  ;;  %v11927_v14 = vld [vmem:[#allocation14 + $0x2fc] ss:$20 sps:$4 sm:$0xff]  }
 0x22f   :  { %8429 = vmatprep.subr.bf16.mxu1 %v11915_v18  ;;  %8839 = vmatprep.subr.bf16.mxu0 %v11918_v6  ;;  %v1827_v6 = vrot.slane %v13898_v9, %v13675_v43  ;;  %v2016_v45 = vrot.slane %v1996_v55, 2  ;;  %v1917_v55 = vrot.slane %v13898_v9, %v13714_v24 }
 0x232   :  { %8430 = vmatpush1.bf16.msra.mxu1 %v11913_v60  ;;  %8840 = vmatpush1.bf16.msra.mxu0 %v11916_v51  ;;  %v11933_v60 = vld [vmem:[#allocation14 + $0x324] ss:$20 sps:$4 sm:$0xff]   ;;  %v11936_v51 = vld [vmem:[#allocation14 + $0x32c] ss:$20 sps:$4 sm:$0xff]  }
 0x233   :  { %8431 = vmatprep.subr.bf16.mxu1 %v11921_v62  ;;  %8841 = vmatprep.subr.bf16.mxu0 %v11924_v41  ;;  %v13958_v41 = vrot.slane %v13656_v33, %v13733_v38 }
 0x234   :  { %v12992_v22 = vpop.eup %12991 }
 0x235   :  { %v10326_v7 = vadd.f32 -1.0, %v12992_v22  ;;  %v12994_v10 = vpop.eup %12993 }
 0x236   :  { %v10344_v42 = vadd.f32 -1.0, %v12994_v10  ;;  %v12996_v18 = vpop.eup %12995  ;;  %8432 = vmatpush1.bf16.msra.mxu1 %v11919_v11  ;;  %8842 = vmatpush1.bf16.msra.mxu0 %v11922_v12  ;;  %v2145_v10 = vrot.slane %v13865_v39, %v13733_v38  ;;  %v1977_v11 = vrot.slane %v13898_v9, %v13717_v25  ;;  %v11939_v12 = vld [vmem:[#allocation14 + $0x34c] ss:$20 sps:$4 sm:$0xff]  }
 0x237   :  { %v13926_v5 = vsel %vm1439_vm13, %v13863_v23, %v10326_v7  ;;  %v1936_v23 = vmul.f32 %v1905_v59, %v13921_v27  ;;  %8433 = vmatprep.subr.bf16.mxu1 %v11927_v14  ;;  %8843 = vmatprep.subr.bf16.mxu0 %v11930_v52  ;;  %v2086_v59 = vmul.f32 %v2055_v63, %v13921_v27 }
 0x238   :  { %v1669_v34 = vmul.f32 %v1647_v56, %v13926_v5  ;;  %v1619_v32 = vmul.f32 %v1597_v1, %v13926_v5  ;;  %v1759_v50 = vmul.f32 %v1737_v40, %v13926_v5  ;;  %v3229_v47 = vsel %vm3129_vm14, %v13871_v8, %v10344_v42  ;;  %v11931_v40 = vld [vmem:[#allocation14 + $0x320] ss:$20 sps:$4 sm:$0xff]   ;;  %v11934_v42 = vld [vmem:[#allocation14 + $0x328] ss:$20 sps:$4 sm:$0xff]  }
 0x239   :  { %v13943_v7 = vpack.c.bf16 %v3229_v47, %v3229_v47  ;;  %v10336_v56 = vadd.f32 -1.0, %v12996_v18  ;;  %v1946_v61 = vadd.f32 %v1936_v23, %v1886_v13  ;;  %v13950_v8 = vrot.slane %v13656_v33, %v13714_v24 }
 0x23a   :  { %v1689_v22 = vrot.slane %v1669_v34, 2  ;;  %v1849_v62 = vmul.f32 %v1827_v6, %v13926_v5  ;;  %v1779_v39 = vrot.slane %v1759_v50, 4  ;;  %8434 = vmatpush1.bf16.msra.mxu1 %v11925_v30  ;;  %8844 = vmatpush1.bf16.msra.mxu0 %v11928_v31  ;;  %v13962_v1 = vrot.slane %v13664_v37, %v13714_v24  ;;  %v11942_v34 = vld [vmem:[#allocation14 + $0x354] ss:$20 sps:$4 sm:$0xff]   ;;  %v11940_v50 = vld [vmem:[#allocation14 + $0x350] ss:$20 sps:$4 sm:$0xff]  }
 0x23b   :  { %15052 = vst [vmem:[#allocation35_spill] sm:$0xff] %v13943_v7  ;;  %8459 = vmatprep.mubr.bf16.mxu1 %v13943_v7  ;;  %8869 = vmatprep.mubr.bf16.mxu0 %v13943_v7  ;;  %v13967_v63 = vsel %vm1449_vm15, %v13873_v2, %v10336_v56  ;;  %v2036_v33 = vadd.f32 %v2016_v45, %v1946_v61  ;;  %v2106_v23 = vrot.slane %v2086_v59, 4  ;;  %v11945_v30 = vld [vmem:[#allocation14 + $0x374] ss:$20 sps:$4 sm:$0xff]   ;;  %v11948_v31 = vld [vmem:[#allocation14 + $0x37c] ss:$20 sps:$4 sm:$0xff]  }
 0x23c   :  { %v1709_v4 = vadd.f32 %v1689_v22, %v1619_v32  ;;  %8435 = vmatprep.subr.bf16.mxu1 %v11933_v60  ;;  %8845 = vmatprep.subr.bf16.mxu0 %v11936_v51  ;;  %v2176_v14 = vmul.f32 %v2145_v10, %v13921_v27  ;;  %v1344_v52 = vmul.f32 %v13950_v8, %v13851_v46  ;;  %v1869_v13 = vrot.slane %v1849_v62, 6  ;;  %v11937_v22 = vld [vmem:[#allocation14 + $0x348] ss:$20 sps:$4 sm:$0xff]   ;;  %v11946_v45 = vld [vmem:[#allocation14 + $0x378] ss:$20 sps:$4 sm:$0xff]  }
 0x23d   :  { %v2067_v18 = vrot.slane %v13898_v9, %v13720_v26  ;;  %v1347_v6 = vmul.f32 %v13958_v41, %v13875_v48  ;;  %v13980_v2 = vrot.slane %v13664_v37, %v13733_v38  ;;  %v1999_v46 = vmul.f32 %v1977_v11, %v13967_v63 }
 0x23e   :  { %v1799_v32 = vadd.f32 %v1779_v39, %v1709_v4  ;;  %8436 = vmatpush1.bf16.msra.mxu1 %v11931_v40  ;;  %8846 = vmatpush1.bf16.msra.mxu0 %v11934_v42  ;;  %v2157_v47 = vrot.slane %v13898_v9, %v13733_v38  ;;  %v2126_v10 = vadd.f32 %v2106_v23, %v2036_v33  ;;  %v2196_v48 = vrot.slane %v2176_v14, 6  ;;  %v11943_v9 = vld [vmem:[#allocation14 + $0x370] ss:$20 sps:$4 sm:$0xff]   ;;  %v11949_v23 = vld [vmem:[#allocation14 + $0x398] ss:$20 sps:$4 sm:$0xff]  }
 0x23f   :  { %8437 = vmatprep.subr.bf16.mxu1 %v11939_v12  ;;  %8847 = vmatprep.subr.bf16.mxu0 %v11942_v34  ;;  %v13986_v60 = vadd.f32 %v13962_v1, %v1344_v52  ;;  %v1939_v51 = vmul.f32 %v1917_v55, %v13967_v63  ;;  %v2089_v56 = vmul.f32 %v2067_v18, %v13967_v63  ;;  %v2019_v59 = vrot.slane %v1999_v46, 2  ;;  %v11951_v39 = vld [vmem:[#allocation14 + $0x39c] ss:$20 sps:$4 sm:$0xff]   ;;  %v11954_v4 = vld [vmem:[#allocation14 + $0x3a4] ss:$20 sps:$4 sm:$0xff]  }
 0x240   :  { %v1889_v37 = vadd.f32 %v1869_v13, %v1799_v32  ;;  %v13991_v61 = vadd.f32 %v13980_v2, %v1347_v6  ;;  %v2179_v62 = vmul.f32 %v2157_v47, %v13967_v63  ;;  %v2216_v40 = vadd.f32 %v2196_v48, %v2126_v10  ;;  %v11952_v14 = vld [vmem:[#allocation14 + $0x3a0] ss:$20 sps:$4 sm:$0xff]   ;;  %v11957_v55 = vld [vmem:[#allocation14 + $0x3c4] ss:$20 sps:$4 sm:$0xff]   ;;  %v11958_v10 = vld [vmem:[#allocation14 + $0x3c8] ss:$20 sps:$4 sm:$0xff]  }
 0x241   :  { %v2891_v42 = vrot.slane %v13768_v58, %v13706_v19  ;;  %v1458_v11 = vmin.f32 %v13986_v60, 0.0  ;;  %v2109_v34 = vrot.slane %v2089_v56, 4  ;;  %v11960_v18 = vld [vmem:[#allocation14 + $0x3cc] ss:$20 sps:$4 sm:$0xff]   ;;  %v3017_v32 = vrot.slane %v13828_v0, %v13706_v19  ;;  %v11966_v56 = vld [vmem:[#allocation14 + $0x3f4] ss:$20 sps:$4 sm:$0xff]  }
 0x242   :  { %8438 = vmatpush1.bf16.msra.mxu1 %v11937_v22  ;;  %8848 = vmatpush1.bf16.msra.mxu0 %v11940_v50  ;;  %v1949_v12 = vadd.f32 %v1939_v51, %v1889_v37  ;;  %v1461_v33 = vmin.f32 %v13991_v61, 0.0  ;;  %v2199_v13 = vrot.slane %v2179_v62, 6  ;;  %v2903_v46 = vrot.slane %v13768_v58, %v13717_v25  ;;  %v11963_v51 = vld [vmem:[#allocation14 + $0x3ec] ss:$20 sps:$4 sm:$0xff]  }
 0x243   :  { %8439 = vmatprep.subr.bf16.mxu1 %v11945_v30  ;;  %8849 = vmatprep.subr.bf16.mxu0 %v11948_v31  ;;  %v2982_v6 = vmul.f32 %v2891_v42, %v2216_v40  ;;  %v1482_v22 = vmul.f32 1.442695, %v1458_v11  ;;  %v1354_v30 = vmul.f32 %v13950_v8, %v13859_v16  ;;  %v11955_v31 = vld [vmem:[#allocation14 + $0x3c0] ss:$20 sps:$4 sm:$0xff]   ;;  %v3029_v37 = vrot.slane %v13828_v0, %v13717_v25 }
 0x244   :  { %v2039_v52 = vadd.f32 %v2019_v59, %v1949_v12  ;;  %v1488_v47 = vmul.f32 1.442695, %v1461_v33  ;;  %v1357_v16 = vmul.f32 %v13958_v41, %v13885_v54  ;;  %v11964_v59 = vld [vmem:[#allocation14 + $0x3f0] ss:$20 sps:$4 sm:$0xff]   ;;  %v11970_v33 = vld [vmem:[#allocation14 + $0x418] ss:$20 sps:$4 sm:$0xff]  }
 0x245   :  { %12997 = vpow2.f32 %v1482_v22  ;;  %v14011_v8 = vadd.f32 %v13962_v1, %v1354_v30  ;;  %v11976_v22 = vld [vmem:[#allocation14 + $0x440] ss:$20 sps:$4 sm:$0xff]   ;;  %v11981_v30 = vld [vmem:[#allocation14 + $0x464] ss:$20 sps:$4 sm:$0xff]   ;;  %vm1438_vm0 = vcmp.gt.f32.partialorder %v13986_v60, 0.0  ;;  %vm1441_vm1 = vcmp.gt.f32.partialorder %v13991_v61, 0.0 }
 0x246   :  { %8440 = vmatpush1.bf16.msra.mxu1 %v11943_v9  ;;  %8850 = vmatpush1.bf16.msra.mxu0 %v11946_v45  ;;  %v2129_v50 = vadd.f32 %v2109_v34, %v2039_v52  ;;  %v14006_v9 = vadd.f32 %v3017_v32, %v2982_v6  ;;  %12999 = vpow2.f32 %v1488_v47  ;;  %v11961_v45 = vld [vmem:[#allocation14 + $0x3e8] ss:$20 sps:$4 sm:$0xff]   ;;  %v14024_v1 = vadd.f32 %v13980_v2, %v1357_v16  ;;  %v11967_v34 = vld [vmem:[#allocation14 + $0x410] ss:$20 sps:$4 sm:$0xff]   ;;  %v11973_v32 = vld [vmem:[#allocation14 + $0x438] ss:$20 sps:$4 sm:$0xff]  }
 0x247   :  { %8441 = vmatprep.subr.bf16.mxu1 %v11951_v39  ;;  %8851 = vmatprep.subr.bf16.mxu0 %v11954_v4  ;;  %v11969_v39 = vld [vmem:[#allocation14 + $0x414] ss:$20 sps:$4 sm:$0xff]   ;;  %v11972_v4 = vld [vmem:[#allocation14 + $0x41c] ss:$20 sps:$4 sm:$0xff]   ;;  %v1468_v12 = vmin.f32 %v14011_v8, 0.0  ;;  %vm1448_vm4 = vcmp.gt.f32.partialorder %v14011_v8, 0.0 }
 0x248   :  { %v2219_v48 = vadd.f32 %v2199_v13, %v2129_v50  ;;  %v3148_v40 = vmin.f32 %v14006_v9, 0.0  ;;  %v14029_v13 = vld [vmem:[#allocation10 + $0x50] sm:$0xff]  ;;  %v14034_v47 = vld [vmem:[#allocation10 + $0x20] sm:$0xff]  ;;  %vm3128_vm2 = vcmp.gt.f32.partialorder %v14006_v9, 0.0  ;;  %vm1451_vm5 = vcmp.gt.f32.partialorder %v14024_v1, 0.0 }
 0x249   :  { %v1502_v6 = vmul.f32 1.442695, %v1468_v12  ;;  %v11982_v16 = vld [vmem:[#allocation14 + $0x468] ss:$20 sps:$4 sm:$0xff]  }
 0x24a   :  { %8442 = vmatpush1.bf16.msra.mxu1 %v11949_v23  ;;  %8852 = vmatpush1.bf16.msra.mxu0 %v11952_v14  ;;  %v2985_v58 = vmul.f32 %v2903_v46, %v2219_v48  ;;  %v11975_v23 = vld [vmem:[#allocation14 + $0x43c] ss:$20 sps:$4 sm:$0xff]   ;;  %v11978_v14 = vld [vmem:[#allocation14 + $0x444] ss:$20 sps:$4 sm:$0xff]   ;;  %v3170_v52 = vmul.f32 1.442695, %v3148_v40 }
 0x24b   :  { %8443 = vmatprep.subr.bf16.mxu1 %v11957_v55  ;;  %8853 = vmatprep.subr.bf16.mxu0 %v11960_v18  ;;  %v1471_v18 = vmin.f32 %v14024_v1, 0.0  ;;  %v14032_v46 = vld [vmem:[#allocation10 + $0x60] sm:$0xff]  ;;  %v11990_v12 = vld [vmem:[#allocation14 + $0x494] ss:$20 sps:$4 sm:$0xff]  }
 0x24c   :  { %v14013_v0 = vadd.f32 %v3029_v37, %v2985_v58  ;;  %13001 = vpow2.f32 %v3170_v52  ;;  %v14038_v37 = vld [vmem:[#allocation10 + $0x68] sm:$0xff]  ;;  %v11999_v52 = vld [vmem:[#allocation14 + $0x4dc] ss:$20 sps:$4 sm:$0xff]  }
 0x24e   :  { %8444 = vmatpush1.bf16.msra.mxu1 %v11955_v31  ;;  %8854 = vmatpush1.bf16.msra.mxu0 %v11958_v10  ;;  %v3151_v54 = vmin.f32 %v14013_v0, 0.0  ;;  %v11984_v31 = vld [vmem:[#allocation14 + $0x46c] ss:$20 sps:$4 sm:$0xff]   ;;  %vm3131_vm3 = vcmp.gt.f32.partialorder %v14013_v0, 0.0 }
 0x24f   :  { %8445 = vmatprep.subr.bf16.mxu1 %v11963_v51  ;;  %8855 = vmatprep.subr.bf16.mxu0 %v11966_v56  ;;  %v12998_v2 = vpop.eup %12997  ;;  %v11979_v10 = vld [vmem:[#allocation14 + $0x460] ss:$20 sps:$4 sm:$0xff]   ;;  %v1508_v56 = vmul.f32 1.442695, %v1471_v18 }
 0x250   :  { %v3176_v55 = vmul.f32 1.442695, %v3151_v54  ;;  %v13000_v50 = vpop.eup %12999  ;;  %v10325_v51 = vadd.f32 -1.0, %v12998_v2  ;;  %v11987_v54 = vld [vmem:[#allocation14 + $0x48c] ss:$20 sps:$4 sm:$0xff]  }
 0x252   :  { %8446 = vmatpush1.bf16.msra.mxu1 %v11961_v45  ;;  %8856 = vmatpush1.bf16.msra.mxu0 %v11964_v59  ;;  %13003 = vpow2.f32 %v3176_v55  ;;  %v10328_v45 = vadd.f32 -1.0, %v13000_v50  ;;  %v14043_v59 = vld [vmem:[#allocation10 + $0x38] sm:$0xff]  ;;  %v14065_v55 = vsel %vm1438_vm0, %v13986_v60, %v10325_v51 }
 0x253   :  { %8447 = vmatprep.subr.bf16.mxu1 %v11969_v39  ;;  %8857 = vmatprep.subr.bf16.mxu0 %v11972_v4  ;;  %13005 = vpow2.f32 %v1502_v6  ;;  %v1655_v18 = vrot.slane %v14043_v59, %v13662_v36  ;;  %v11988_v50 = vld [vmem:[#allocation14 + $0x490] ss:$20 sps:$4 sm:$0xff]  }
 0x254   :  { %13007 = vpow2.f32 %v1508_v56  ;;  %v14078_v60 = vsel %vm1441_vm1, %v13991_v61, %v10328_v45  ;;  %v11996_v56 = vld [vmem:[#allocation14 + $0x4bc] ss:$20 sps:$4 sm:$0xff]   ;;  %v1733_v61 = vrot.slane %v14034_v47, %v13706_v19  ;;  %v1823_v45 = vrot.slane %v14034_v47, %v13675_v43  ;;  %v12002_v39 = vld [vmem:[#allocation14 + $0x4e4] ss:$20 sps:$4 sm:$0xff]  }
 0x255   :  { %15055 = vst [vmem:[#allocation38_spill] sm:$0xff] %v14078_v60  ;;  %v1671_v51 = vmul.f32 %v1655_v18, %v14078_v60  ;;  %v11991_v4 = vld [vmem:[#allocation14 + $0x4b0] ss:$20 sps:$4 sm:$0xff]  }
 0x256   :  { %8448 = vmatpush1.bf16.msra.mxu1 %v11967_v34  ;;  %8858 = vmatpush1.bf16.msra.mxu0 %v11970_v33  ;;  %v1758_v48 = vmul.f32 %v1733_v61, %v14065_v55  ;;  %v1848_v33 = vmul.f32 %v1823_v45, %v14065_v55  ;;  %v2153_v45 = vrot.slane %v14034_v47, %v13733_v38 }
 0x257   :  { %8449 = vmatprep.subr.bf16.mxu1 %v11975_v23  ;;  %8859 = vmatprep.subr.bf16.mxu0 %v11978_v14  ;;  %v1643_v14 = vrot.slane %v14034_v47, %v13662_v36  ;;  %v11994_v23 = vld [vmem:[#allocation14 + $0x4b8] ss:$20 sps:$4 sm:$0xff]   ;;  %v1691_v7 = vrot.slane %v1671_v51, 2  ;;  %v12014_v51 = vld [vmem:[#allocation14 + $0x534] ss:$20 sps:$4 sm:$0xff]  }
 0x258   :  { %v14015_v62 = vpop.f32.mrb[8].mxu0 }
 0x259   :  { %15053 = vst [vmem:[#allocation36_spill] sm:$0xff] %v14015_v62  ;;  %v14018_v42 = vpop.f32.mrb[9].mxu0  ;;  %v1668_v6 = vmul.f32 %v1643_v14, %v14065_v55  ;;  %v1745_v14 = vrot.slane %v14043_v59, %v13706_v19 }
 0x25a   :  { %v14021_v41 = vpop.f32.mrb[10].mxu0  ;;  %8450 = vmatpush1.bf16.msra.mxu1 %v11973_v32  ;;  %8860 = vmatpush1.bf16.msra.mxu0 %v11976_v22  ;;  %v14073_v32 = vld [vmem:[#allocation10 + $0x70] sm:$0xff] }
 0x25b   :  { %15054 = vst [vmem:[#allocation37_spill] sm:$0xff] %v14021_v41  ;;  %v14026_v11 = vpop.f32.mrb[11].mxu0  ;;  %8451 = vmatprep.subr.bf16.mxu1 %v11981_v30  ;;  %8861 = vmatprep.subr.bf16.mxu0 %v11984_v31  ;;  %v11985_v22 = vld [vmem:[#allocation14 + $0x488] ss:$20 sps:$4 sm:$0xff]   ;;  %v14093_v30 = vld [vmem:[#allocation10 + $0x78] sm:$0xff]  ;;  %v13002_v31 = vpop.eup %13001 }
 0x25c   :  { %v13004_v2 = vpop.eup %13003  ;;  %v10343_v58 = vadd.f32 -1.0, %v13002_v31  ;;  %v12011_v41 = vld [vmem:[#allocation14 + $0x52c] ss:$20 sps:$4 sm:$0xff]  }
 0x25e   :  { %8452 = vmatpush1.bf16.msra.mxu1 %v11979_v10  ;;  %8862 = vmatpush1.bf16.msra.mxu0 %v11982_v16  ;;  %v11993_v10 = vld [vmem:[#allocation14 + $0x4b4] ss:$20 sps:$4 sm:$0xff]   ;;  %v1593_v16 = vrot.slane %v14034_v47, %v13659_v35  ;;  %v3228_v49 = vsel %vm3128_vm2, %v14006_v9, %v10343_v58 }
 0x25f   :  { %8453 = vmatprep.subr.bf16.mxu1 %v11987_v54  ;;  %8863 = vmatprep.subr.bf16.mxu0 %v11990_v12  ;;  %v1605_v12 = vrot.slane %v14043_v59, %v13659_v35  ;;  %v13061_v54 = vld [vmem:[#allocation7] sm:$0xff] }
 0x260   :  { %v14107_v34 = vrot.slane %v13061_v54, %v13720_v26  ;;  %v1618_v40 = vmul.f32 %v1593_v16, %v14065_v55  ;;  %v1688_v54 = vrot.slane %v1668_v6, 2  ;;  %v13062_v6 = vld [vmem:[#allocation8] sm:$0xff] }
 0x261   :  { %v1621_v18 = vmul.f32 %v1605_v12, %v14078_v60  ;;  %v14125_v61 = vrot.slane %v13062_v6, %v13720_v26  ;;  %v12008_v12 = vld [vmem:[#allocation14 + $0x50c] ss:$20 sps:$4 sm:$0xff]   ;;  %v1778_v6 = vrot.slane %v1758_v48, 4  ;;  %v15056_v48 = vrot.slane %v14029_v13, %v13662_v36 }
 0x262   :  { %8454 = vmatpush1.bf16.msra.mxu1 %v11985_v22  ;;  %8864 = vmatpush1.bf16.msra.mxu0 %v11988_v50  ;;  %v1835_v22 = vrot.slane %v14043_v59, %v13675_v43  ;;  %v13006_v50 = vpop.eup %13005  ;;  %v1346_v16 = vmul.f32 %v14107_v34, %v13869_v57  ;;  %v12005_v57 = vld [vmem:[#allocation14 + $0x504] ss:$20 sps:$4 sm:$0xff]  }
 0x263   :  { %8455 = vmatprep.subr.bf16.mxu1 %v11993_v10  ;;  %8865 = vmatprep.subr.bf16.mxu0 %v11996_v56  ;;  %v1761_v10 = vmul.f32 %v1745_v14, %v14078_v60  ;;  %v10346_v56 = vadd.f32 -1.0, %v13004_v2  ;;  %v13008_v31 = vpop.eup %13007  ;;  %v1708_v14 = vadd.f32 %v1688_v54, %v1618_v40  ;;  %v12003_v2 = vld [vmem:[#allocation14 + $0x500] ss:$20 sps:$4 sm:$0xff]   ;;  %v2314_v40 = vmul.f32 %v15056_v48, %v13703_v17 }
 0x264   :  { %v1851_v62 = vmul.f32 %v1835_v22, %v14078_v60  ;;  %v14148_v9 = vadd.f32 %v14125_v61, %v1346_v16  ;;  %v10338_v58 = vadd.f32 -1.0, %v13008_v31  ;;  %v14152_v22 = vpack.c.bf16 %v3228_v49, %v3228_v49  ;;  %v12009_v49 = vld [vmem:[#allocation14 + $0x528] ss:$20 sps:$4 sm:$0xff]  }
 0x265   :  { %v1985_v16 = vrot.slane %v14043_v59, %v13717_v25  ;;  %v2334_v31 = vrot.slane %v2314_v40, 2 }
 0x266   :  { %8456 = vmatpush1.bf16.msra.mxu1 %v11991_v4  ;;  %8866 = vmatpush1.bf16.msra.mxu0 %v11994_v23  ;;  %v10335_v4 = vadd.f32 -1.0, %v13006_v50  ;;  %v1913_v23 = vrot.slane %v14034_v47, %v13714_v24  ;;  %v1781_v50 = vrot.slane %v1761_v10, 4  ;;  %15057 = vst [vmem:[#allocation39_spill] sm:$0xff] %v14152_v22  ;;  %vm1440_vm6 = vcmp.gt.f32.partialorder %v14148_v9, 0.0 }
 0x267   :  { %8457 = vmatprep.subr.bf16.mxu1 %v11999_v52  ;;  %8867 = vmatprep.subr.bf16.mxu0 %v12002_v39  ;;  %v3231_v39 = vsel %vm3131_vm3, %v14013_v0, %v10346_v56  ;;  %v1711_v52 = vadd.f32 %v1691_v7, %v1621_v18  ;;  %v1973_v7 = vrot.slane %v14034_v47, %v13717_v25  ;;  %v1868_v18 = vrot.slane %v1848_v33, 6  ;;  %v12012_v33 = vld [vmem:[#allocation14 + $0x530] ss:$20 sps:$4 sm:$0xff]  }
 0x268   :  { %v1798_v0 = vadd.f32 %v1778_v6, %v1708_v14  ;;  %v14162_v54 = vsel %vm1448_vm4, %v14011_v8, %v10335_v4  ;;  %v1871_v56 = vrot.slane %v1851_v62, 6  ;;  %v14172_v8 = vsel %vm1451_vm5, %v14024_v1, %v10338_v58  ;;  %v12017_v1 = vld [vmem:[#allocation14 + $0x554] ss:$20 sps:$4 sm:$0xff]  }
 0x269   :  { %v1801_v10 = vadd.f32 %v1781_v50, %v1711_v52  ;;  %15059 = vst [vmem:[#allocation41_spill] sm:$0xff] %v14172_v8  ;;  %v2063_v4 = vrot.slane %v14034_v47, %v13720_v26  ;;  %v15060_v62 = vrot.slane %v14029_v13, %v13659_v35  ;;  %v15062_v14 = vrot.slane %v14032_v46, %v13662_v36  ;;  %v12020_v50 = vld [vmem:[#allocation14 + $0x55c] ss:$20 sps:$4 sm:$0xff]   ;;  %v12026_v47 = vld [vmem:[#allocation14 + $0x584] ss:$20 sps:$4 sm:$0xff]  }
 0x26a   :  { %8458 = vmatpush1.bf16.msra.mxu1 %v11997_v3  ;;  %8868 = vmatpush1.bf16.msra.mxu0 %v12000_v20  ;;  %v14157_v3 = vpack.c.bf16 %v3231_v39, %v3231_v39  ;;  %v1925_v20 = vrot.slane %v14043_v59, %v13714_v24  ;;  %v1938_v39 = vmul.f32 %v1913_v23, %v14162_v54  ;;  %v12015_v52 = vld [vmem:[#allocation14 + $0x550] ss:$20 sps:$4 sm:$0xff]   ;;  %v12018_v23 = vld [vmem:[#allocation14 + $0x558] ss:$20 sps:$4 sm:$0xff]  }
 0x26b   :  { %8468 = vmatprep.subr.bf16.mxu1 %v12005_v57  ;;  %8878 = vmatprep.subr.bf16.mxu0 %v12008_v12  ;;  %v1460_v57 = vmin.f32 %v14148_v9, 0.0  ;;  %v2264_v12 = vmul.f32 %v15060_v62, %v13703_v17  ;;  %v2316_v6 = vmul.f32 %v15062_v14, %v13882_v15  ;;  %v1888_v48 = vadd.f32 %v1868_v18, %v1798_v0 }
 0x26c   :  { %15058 = vst [vmem:[#allocation40_spill] sm:$0xff] %v14157_v3  ;;  %v1998_v40 = vmul.f32 %v1973_v7, %v14162_v54  ;;  %v1891_v58 = vadd.f32 %v1871_v56, %v1801_v10  ;;  %v1941_v62 = vmul.f32 %v1925_v20, %v14172_v8  ;;  %v15063_v0 = vrot.slane %v14032_v46, %v13659_v35  ;;  %v12023_v56 = vld [vmem:[#allocation14 + $0x57c] ss:$20 sps:$4 sm:$0xff]  }
 0x26d   :  { %8460 = vmatmul.mubr.bf16.vlgmr.msra.gmra.mrb[8].mxu1 %v14152_v22  ;;  %8870 = vmatmul.mubr.bf16.vlgmr.msra.gmra.mrb[12].mxu0 %v14152_v22  ;;  %v1486_v14 = vmul.f32 1.442695, %v1460_v57  ;;  %v14198_v22 = vld [vmem:[#allocation11] sm:$0xff]  ;;  %v2336_v20 = vrot.slane %v2316_v6, 2  ;;  %v2088_v6 = vmul.f32 %v2063_v4, %v14162_v54 }
 0x26e   :  { %8469 = vmatpush1.bf16.msra.mxu1 %v12003_v2  ;;  %8879 = vmatpush1.bf16.msra.mxu0 %v12006_v29  ;;  %v15061_v29 = vrot.slane %v14029_v13, %v13706_v19  ;;  %v2266_v18 = vmul.f32 %v15063_v0, %v13882_v15  ;;  %v12021_v57 = vld [vmem:[#allocation14 + $0x578] ss:$20 sps:$4 sm:$0xff]   ;;  %v2018_v7 = vrot.slane %v1998_v40, 2  ;;  %v1951_v0 = vadd.f32 %v1941_v62, %v1891_v58 }
 0x26f   :  { %8470 = vmatprep.subr.bf16.mxu1 %v12011_v41  ;;  %8880 = vmatprep.subr.bf16.mxu0 %v12014_v51  ;;  %v2075_v41 = vrot.slane %v14043_v59, %v13720_v26  ;;  %v2354_v51 = vadd.f32 %v2334_v31, %v2264_v12  ;;  %v1948_v12 = vadd.f32 %v1938_v39, %v1888_v48  ;;  %v12024_v39 = vld [vmem:[#allocation14 + $0x580] ss:$20 sps:$4 sm:$0xff]   ;;  %13009 = vpow2.f32 %v1486_v14  ;;  %v12029_v48 = vld [vmem:[#allocation14 + $0x5a4] ss:$20 sps:$4 sm:$0xff]  }
 0x270   :  { %v2404_v2 = vmul.f32 %v15061_v29, %v13703_v17  ;;  %8500 = vmatprep.mubr.bf16.mxu1 %v14157_v3  ;;  %8910 = vmatprep.mubr.bf16.mxu0 %v14157_v3  ;;  %v2001_v29 = vmul.f32 %v1985_v16, %v14172_v8  ;;  %v14210_v16 = vld [vmem:[#allocation13] sm:$0xff]  ;;  %v15067_v58 = vrot.slane %v14032_v46, %v13675_v43 }
 0x271   :  { %v2091_v60 = vmul.f32 %v2075_v41, %v14172_v8  ;;  %v14244_v41 = vld [vmem:[#allocation7 + $0x8] sm:$0x3]  ;;  %v2038_v14 = vadd.f32 %v2018_v7, %v1948_v12 }
 0x272   :  { %8471 = vmatpush1.bf16.msra.mxu1 %v12009_v49  ;;  %8881 = vmatpush1.bf16.msra.mxu0 %v12012_v33  ;;  %v15064_v49 = vrot.slane %v14032_v46, %v13706_v19  ;;  %v2424_v33 = vrot.slane %v2404_v2, 4  ;;  %v2021_v3 = vrot.slane %v2001_v29, 2  ;;  %v15066_v2 = vrot.slane %v14029_v13, %v13714_v24  ;;  %v12035_v12 = vld [vmem:[#allocation14 + $0x5cc] ss:$20 sps:$4 sm:$0xff]  }
 0x273   :  { %8472 = vmatprep.subr.bf16.mxu1 %v12017_v1  ;;  %8882 = vmatprep.subr.bf16.mxu0 %v12020_v50  ;;  %v2165_v1 = vrot.slane %v14043_v59, %v13733_v38  ;;  %v2356_v59 = vadd.f32 %v2336_v20, %v2266_v18  ;;  %v14236_v62 = vmul.f32 %v15067_v58, %v13882_v15  ;;  %v2108_v18 = vrot.slane %v2088_v6, 4 }
 0x274   :  { %v2406_v10 = vmul.f32 %v15064_v49, %v13882_v15  ;;  %v14218_v50 = vadd.f32 %v2424_v33, %v2354_v51  ;;  %v15065_v49 = vrot.slane %v14029_v13, %v13675_v43  ;;  %v14230_v4 = vmul.f32 %v15066_v2, %v13799_v28  ;;  %v12027_v51 = vld [vmem:[#allocation14 + $0x5a0] ss:$20 sps:$4 sm:$0xff]   ;;  %v14253_v33 = vld [vmem:[#allocation10 + $0x30] sm:$0xff] }
 0x275   :  { %v2178_v15 = vmul.f32 %v2153_v45, %v14162_v54  ;;  %v15069_v20 = vrot.slane %v14073_v32, %v13662_v36  ;;  %v15071_v45 = vrot.slane %v14038_v37, %v13706_v19 }
 0x276   :  { %v14224_v31 = vmul.f32 %v15065_v49, %v13703_v17  ;;  %8473 = vmatpush1.bf16.msra.mxu1 %v12015_v52  ;;  %8883 = vmatpush1.bf16.msra.mxu0 %v12018_v23  ;;  %v2426_v40 = vrot.slane %v2406_v10, 4  ;;  %v15068_v17 = vrot.slane %v14038_v37, %v13659_v35  ;;  %v12032_v52 = vld [vmem:[#allocation14 + $0x5ac] ss:$20 sps:$4 sm:$0xff]   ;;  %v1356_v23 = vmul.f32 %v14107_v34, %v13879_v53 }
 0x277   :  { %8474 = vmatprep.subr.bf16.mxu1 %v12023_v56  ;;  %8884 = vmatprep.subr.bf16.mxu0 %v12026_v47  ;;  %v2318_v10 = vmul.f32 %v15069_v20, %v14065_v55  ;;  %v2041_v56 = vadd.f32 %v2021_v3, %v1951_v0  ;;  %v2111_v47 = vrot.slane %v2091_v60, 4  ;;  %v2181_v49 = vmul.f32 %v2165_v1, %v14172_v8  ;;  %v14284_v20 = vld [vmem:[#allocation8 + $0x8] sm:$0x3]  ;;  %v12042_v0 = vld [vmem:[#allocation14 + $0x5f8] ss:$20 sps:$4 sm:$0xff]  }
 0x278   :  { %v14242_v29 = vmul.f32 %v15068_v17, %v13791_v21  ;;  %v2514_v2 = vrot.slane %v14224_v31, 6  ;;  %v15070_v53 = vrot.slane %v14038_v37, %v13662_v36  ;;  %v14267_v7 = vmul.f32 %v15071_v45, %v13791_v21  ;;  %v12030_v31 = vld [vmem:[#allocation14 + $0x5a8] ss:$20 sps:$4 sm:$0xff]   ;;  %15074 = vst [vmem:[#allocation42_spill] sm:$0xff] %v14284_v20 }
 0x279   :  { %v15072_v60 = vrot.slane %v14038_v37, %v13675_v43  ;;  %v14275_v6 = vadd.f32 %v2426_v40, %v2356_v59  ;;  %v15073_v1 = vrot.slane %v14032_v46, %v13714_v24  ;;  %v12038_v17 = vld [vmem:[#allocation14 + $0x5d4] ss:$20 sps:$4 sm:$0xff]   ;;  %v14295_v59 = vadd.f32 %v14125_v61, %v1356_v23 }
 0x27a   :  { %v14261_v34 = vmul.f32 %v15070_v53, %v13791_v21  ;;  %8475 = vmatpush1.bf16.msra.mxu1 %v12021_v57  ;;  %8885 = vmatpush1.bf16.msra.mxu0 %v12024_v39  ;;  %v15075_v57 = vrot.slane %v14073_v32, %v13659_v35  ;;  %v2128_v40 = vadd.f32 %v2108_v18, %v2038_v14  ;;  %v2198_v53 = vrot.slane %v2178_v15, 6  ;;  %v12033_v14 = vld [vmem:[#allocation14 + $0x5c8] ss:$20 sps:$4 sm:$0xff]   ;;  %v12036_v18 = vld [vmem:[#allocation14 + $0x5d0] ss:$20 sps:$4 sm:$0xff]  }
 0x27b   :  { %v14273_v3 = vmul.f32 %v15072_v60, %v13791_v21  ;;  %v14282_v58 = vmul.f32 %v15073_v1, %v13921_v27  ;;  %8476 = vmatprep.subr.bf16.mxu1 %v12029_v48  ;;  %8886 = vmatprep.subr.bf16.mxu0 %v12032_v52  ;;  %v14288_v21 = vrot.slane %v14244_v41, %v13662_v36  ;;  %v2338_v45 = vrot.slane %v2318_v10, 2 }
 0x27c   :  { %v2268_v39 = vmul.f32 %v15075_v57, %v14065_v55  ;;  %15076 = vst [vmem:[#allocation43_spill] sm:$0xff] %v14295_v59  ;;  %v15077_v48 = vrot.slane %v14073_v32, %v13706_v19  ;;  %v2131_v60 = vadd.f32 %v2111_v47, %v2041_v56  ;;  %v2201_v1 = vrot.slane %v2181_v49, 6  ;;  %v12041_v56 = vld [vmem:[#allocation14 + $0x5f4] ss:$20 sps:$4 sm:$0xff]   ;;  %v12039_v49 = vld [vmem:[#allocation14 + $0x5f0] ss:$20 sps:$4 sm:$0xff]  }
 0x27d   :  { %v15078_v8 = vrot.slane %v14073_v32, %v13675_v43  ;;  %v14319_v47 = vrot.slane %v14284_v20, %v13662_v36  ;;  %v2911_v61 = vrot.slane %v14198_v22, %v13733_v38  ;;  %v15079_v23 = vrot.slane %v14093_v30, %v13659_v35 }
 0x27e   :  { %v2408_v52 = vmul.f32 %v15077_v48, %v14065_v55  ;;  %8477 = vmatpush1.bf16.msra.mxu1 %v12027_v51  ;;  %8887 = vmatpush1.bf16.msra.mxu0 %v12030_v31  ;;  %v13010_v51 = vpop.eup %13009  ;;  %v1470_v31 = vmin.f32 %v14295_v59, 0.0  ;;  %v2218_v48 = vadd.f32 %v2198_v53, %v2128_v40  ;;  %v2221_v10 = vadd.f32 %v2201_v1, %v2131_v60  ;;  %v12047_v60 = vld [vmem:[#allocation14 + $0x61c] ss:$20 sps:$4 sm:$0xff]   ;;  %v12050_v1 = vld [vmem:[#allocation14 + $0x624] ss:$20 sps:$4 sm:$0xff]  }
 0x27f   :  { %v14306_v57 = vmul.f32 %v15078_v8, %v14065_v55  ;;  %8478 = vmatprep.subr.bf16.mxu1 %v12035_v12  ;;  %8888 = vmatprep.subr.bf16.mxu0 %v12038_v17  ;;  %v12044_v55 = vld [vmem:[#allocation14 + $0x5fc] ss:$20 sps:$4 sm:$0xff]   ;;  %v1349_v8 = vmul.f32 %v14288_v21, %v14018_v42  ;;  %v2358_v12 = vadd.f32 %v2338_v45, %v2268_v39  ;;  %v14351_v42 = vld [vmem:[#allocation11 + $0x8] sm:$0xff] }
 0x280   :  { %v2428_v17 = vrot.slane %v2408_v52, 4  ;;  %v14332_v15 = vmul.f32 %v15079_v23, %v13926_v5  ;;  %v2534_v40 = vadd.f32 %v2514_v2, %v14218_v50  ;;  %v2607_v39 = vrot.slane %v14029_v13, %v13717_v25  ;;  %v12045_v2 = vld [vmem:[#allocation14 + $0x618] ss:$20 sps:$4 sm:$0xff]  }
 0x281   :  { %v15080_v53 = vrot.slane %v14093_v30, %v13662_v36  ;;  %v10327_v52 = vadd.f32 -1.0, %v13010_v51  ;;  %v14344_v23 = vadd.f32 %v14319_v47, %v1349_v8  ;;  %v2697_v50 = vrot.slane %v14029_v13, %v13720_v26 }
 0x282   :  { %8479 = vmatpush1.bf16.msra.mxu1 %v12033_v14  ;;  %8889 = vmatpush1.bf16.msra.mxu0 %v12036_v18  ;;  %v15081_v14 = vrot.slane %v14198_v22, %v13714_v24  ;;  %v14357_v51 = vadd.f32 %v2428_v17, %v2358_v12  ;;  %v2987_v8 = vmul.f32 %v2911_v61, %v2221_v10  ;;  %v12053_v61 = vld [vmem:[#allocation14 + $0x644] ss:$20 sps:$4 sm:$0xff]  }
 0x283   :  { %v14341_v45 = vmul.f32 %v15080_v53, %v13926_v5  ;;  %8480 = vmatprep.subr.bf16.mxu1 %v12041_v56  ;;  %8890 = vmatprep.subr.bf16.mxu0 %v12044_v55  ;;  %v2594_v53 = vadd.f32 %v14230_v4, %v2534_v40  ;;  %v2644_v56 = vmul.f32 %v2607_v39, %v13799_v28  ;;  %v14374_v10 = vld [vmem:[#allocation13 + $0x8] sm:$0xff]  ;;  %v12054_v39 = vld [vmem:[#allocation14 + $0x648] ss:$20 sps:$4 sm:$0xff]   ;;  %vm1443_vm7 = vcmp.gt.f32.partialorder %v14344_v23, 0.0 }
 0x284   :  { %v2984_v18 = vmul.f32 %v15081_v14, %v2218_v48  ;;  %v2787_v55 = vrot.slane %v14029_v13, %v13733_v38  ;;  %v3037_v20 = vrot.slane %v14210_v16, %v13733_v38  ;;  %v2734_v59 = vmul.f32 %v2697_v50, %v13799_v28  ;;  %v12048_v13 = vld [vmem:[#allocation14 + $0x620] ss:$20 sps:$4 sm:$0xff]  }
 0x285   :  { %v15082_v22 = vrot.slane %v14093_v30, %v13706_v19  ;;  %v15083_v4 = vrot.slane %v14093_v30, %v13675_v43  ;;  %v2664_v12 = vrot.slane %v2644_v56, 2  ;;  %v14381_v50 = vsel %vm1440_vm6, %v14148_v9, %v10327_v52 }
 0x286   :  { %8481 = vmatpush1.bf16.msra.mxu1 %v12039_v49  ;;  %8891 = vmatpush1.bf16.msra.mxu0 %v12042_v0  ;;  %v2824_v17 = vmul.f32 %v2787_v55, %v13799_v28  ;;  %v14383_v14 = vmul.f32 1.442695, %v1470_v31  ;;  %v1463_v0 = vmin.f32 %v14344_v23, 0.0  ;;  %v12051_v49 = vld [vmem:[#allocation14 + $0x640] ss:$20 sps:$4 sm:$0xff]   ;;  %v15084_v56 = vrot.slane %v14210_v16, %v13714_v24 }
 0x287   :  { %v14366_v48 = vmul.f32 %v15082_v22, %v13926_v5  ;;  %v14372_v40 = vmul.f32 %v15083_v4, %v13926_v5  ;;  %8482 = vmatprep.subr.bf16.mxu1 %v12047_v60  ;;  %8892 = vmatprep.subr.bf16.mxu0 %v12050_v1  ;;  %v12056_v5 = vld [vmem:[#allocation14 + $0x64c] ss:$20 sps:$4 sm:$0xff]   ;;  %v2684_v28 = vadd.f32 %v2664_v12, %v2594_v53  ;;  %v2754_v55 = vrot.slane %v2734_v59, 4  ;;  %v12062_v53 = vld [vmem:[#allocation14 + $0x674] ss:$20 sps:$4 sm:$0xff]  }
 0x288   :  { %v14389_v22 = vadd.f32 %v15084_v56, %v2984_v18  ;;  %v2517_v4 = vrot.slane %v14273_v3, 6  ;;  %v14392_v9 = vadd.f32 %v3037_v20, %v2987_v8  ;;  %v2923_v31 = vrot.slane %v14351_v42, %v13706_v19  ;;  %v12059_v16 = vld [vmem:[#allocation14 + $0x66c] ss:$20 sps:$4 sm:$0xff]  }
 0x289   :  { %v15085_v52 = vrot.slane %v14261_v34, 2  ;;  %v2559_v1 = vrot.slane %v14038_v37, %v13714_v24  ;;  %v2774_v18 = vadd.f32 %v2754_v55, %v2684_v28  ;;  %v2844_v59 = vrot.slane %v2824_v17, 6 }
 0x28a   :  { %8483 = vmatpush1.bf16.msra.mxu1 %v12045_v2  ;;  %8893 = vmatpush1.bf16.msra.mxu0 %v12048_v13  ;;  %v2619_v3 = vrot.slane %v14038_v37, %v13717_v25  ;;  %v2709_v20 = vrot.slane %v14038_v37, %v13720_v26  ;;  %v1492_v8 = vmul.f32 1.442695, %v1463_v0  ;;  %v15086_v34 = vrot.slane %v14267_v7, 4 }
 0x28b   :  { %v2357_v60 = vadd.f32 %v15085_v52, %v14242_v29  ;;  %8484 = vmatprep.subr.bf16.mxu1 %v12053_v61  ;;  %8894 = vmatprep.subr.bf16.mxu0 %v12056_v5  ;;  %v3049_v29 = vrot.slane %v14374_v10, %v13706_v19  ;;  %v2587_v13 = vmul.f32 %v2559_v1, %v13817_v44  ;;  %v3150_v7 = vmin.f32 %v14389_v22, 0.0  ;;  %v12057_v52 = vld [vmem:[#allocation14 + $0x668] ss:$20 sps:$4 sm:$0xff]  }
 0x28c   :  { %v2864_v12 = vadd.f32 %v2844_v59, %v2774_v18  ;;  %v2647_v17 = vmul.f32 %v2619_v3, %v13817_v44  ;;  %v2737_v56 = vmul.f32 %v2709_v20, %v13817_v44  ;;  %v2799_v28 = vrot.slane %v14038_v37, %v13733_v38  ;;  %v12065_v3 = vld [vmem:[#allocation14 + $0x694] ss:$20 sps:$4 sm:$0xff]   ;;  %v12068_v20 = vld [vmem:[#allocation14 + $0x69c] ss:$20 sps:$4 sm:$0xff]  }
 0x28d   :  { %v2447_v2 = vadd.f32 %v15086_v34, %v2357_v60  ;;  %v15087_v5 = vrot.slane %v14253_v33, %v13662_v36  ;;  %v12060_v60 = vld [vmem:[#allocation14 + $0x670] ss:$20 sps:$4 sm:$0xff]   ;;  %v1359_v1 = vmul.f32 %v14288_v21, %v14026_v11  ;;  %v3153_v34 = vmin.f32 %v14392_v9, 0.0 }
 0x28e   :  { %8485 = vmatpush1.bf16.msra.mxu1 %v12051_v49  ;;  %8895 = vmatpush1.bf16.msra.mxu0 %v12054_v39  ;;  %v2990_v18 = vmul.f32 %v2923_v31, %v2864_v12  ;;  %v2667_v37 = vrot.slane %v2647_v17, 2  ;;  %v2827_v59 = vmul.f32 %v2799_v28, %v13817_v44  ;;  %v2757_v61 = vrot.slane %v2737_v56, 4  ;;  %v12074_v56 = vld [vmem:[#allocation14 + $0x6c4] ss:$20 sps:$4 sm:$0xff]  }
 0x28f   :  { %v14419_v0 = vmul.f32 %v15087_v5, %v14381_v50  ;;  %v2537_v55 = vadd.f32 %v2517_v4, %v2447_v2  ;;  %8486 = vmatprep.subr.bf16.mxu1 %v12059_v16  ;;  %8896 = vmatprep.subr.bf16.mxu0 %v12062_v53  ;;  %v15088_v39 = vrot.slane %v14236_v62, 6  ;;  %v12063_v4 = vld [vmem:[#allocation14 + $0x690] ss:$20 sps:$4 sm:$0xff]   ;;  %13011 = vpow2.f32 %v1492_v8  ;;  %v12066_v8 = vld [vmem:[#allocation14 + $0x698] ss:$20 sps:$4 sm:$0xff]  }
 0x290   :  { %v14429_v2 = vadd.f32 %v3049_v29, %v2990_v18  ;;  %v2847_v11 = vrot.slane %v2827_v59, 6  ;;  %v2615_v44 = vrot.slane %v14032_v46, %v13717_v25  ;;  %v15089_v21 = vrot.slane %v14073_v32, %v13714_v24  ;;  %v12071_v29 = vld [vmem:[#allocation14 + $0x6bc] ss:$20 sps:$4 sm:$0xff]  }
 0x291   :  { %v2597_v5 = vadd.f32 %v2587_v13, %v2537_v55  ;;  %v2536_v49 = vadd.f32 %v15088_v39, %v14275_v6  ;;  %v15090_v16 = vrot.slane %v14253_v33, %v13659_v35  ;;  %v2705_v53 = vrot.slane %v14032_v46, %v13720_v26  ;;  %v12080_v39 = vld [vmem:[#allocation14 + $0x6ec] ss:$20 sps:$4 sm:$0xff]  }
 0x292   :  { %v14437_v31 = vmul.f32 %v15089_v21, %v14162_v54  ;;  %8487 = vmatpush1.bf16.msra.mxu1 %v12057_v52  ;;  %8897 = vmatpush1.bf16.msra.mxu0 %v12060_v60  ;;  %v3174_v13 = vmul.f32 1.442695, %v3150_v7  ;;  %v14448_v12 = vadd.f32 %v14319_v47, %v1359_v1  ;;  %v2646_v17 = vmul.f32 %v2615_v44, %v13921_v27 }
 0x293   :  { %v14443_v62 = vmul.f32 %v15090_v16, %v14381_v50  ;;  %v2687_v6 = vadd.f32 %v2667_v37, %v2597_v5  ;;  %v2596_v32 = vadd.f32 %v14282_v58, %v2536_v49  ;;  %8488 = vmatprep.subr.bf16.mxu1 %v12065_v3  ;;  %8898 = vmatprep.subr.bf16.mxu0 %v12068_v20  ;;  %v3180_v28 = vmul.f32 1.442695, %v3153_v34  ;;  %v12069_v20 = vld [vmem:[#allocation14 + $0x6b8] ss:$20 sps:$4 sm:$0xff]   ;;  %v12072_v34 = vld [vmem:[#allocation14 + $0x6c0] ss:$20 sps:$4 sm:$0xff]  }
 0x294   :  { %v2935_v18 = vrot.slane %v14351_v42, %v13717_v25  ;;  %v2736_v52 = vmul.f32 %v2705_v53, %v13921_v27  ;;  %v1690_v60 = vrot.slane %v14419_v0, 2  ;;  %v2666_v7 = vrot.slane %v2646_v17, 2 }
 0x295   :  { %v2777_v55 = vadd.f32 %v2757_v61, %v2687_v6  ;;  %v2795_v47 = vrot.slane %v14032_v46, %v13733_v38  ;;  %v2519_v58 = vrot.slane %v14372_v40, 6  ;;  %v3061_v37 = vrot.slane %v14374_v10, %v13717_v25  ;;  %v12077_v40 = vld [vmem:[#allocation14 + $0x6e4] ss:$20 sps:$4 sm:$0xff]  }
 0x296   :  { %v2756_v59 = vrot.slane %v2736_v52, 4  ;;  %v15091_v61 = vrot.slane %v14341_v45, 2  ;;  %8489 = vmatpush1.bf16.msra.mxu1 %v12063_v4  ;;  %8899 = vmatpush1.bf16.msra.mxu0 %v12066_v8  ;;  %13013 = vpow2.f32 %v3174_v13  ;;  %v1473_v0 = vmin.f32 %v14448_v12, 0.0  ;;  %v12078_v13 = vld [vmem:[#allocation14 + $0x6e8] ss:$20 sps:$4 sm:$0xff]  }
 0x297   :  { %v2867_v1 = vadd.f32 %v2847_v11, %v2777_v55  ;;  %v2686_v5 = vadd.f32 %v2666_v7, %v2596_v32  ;;  %v2826_v46 = vmul.f32 %v2795_v47, %v13921_v27  ;;  %8490 = vmatprep.subr.bf16.mxu1 %v12071_v29  ;;  %8900 = vmatprep.subr.bf16.mxu0 %v12074_v56  ;;  %13015 = vpow2.f32 %v3180_v28  ;;  %v12075_v29 = vld [vmem:[#allocation14 + $0x6e0] ss:$20 sps:$4 sm:$0xff]  }
 0x298   :  { %v2359_v3 = vadd.f32 %v15091_v61, %v14332_v15  ;;  %v15092_v11 = vrot.slane %v14366_v48, 4  ;;  %v2567_v15 = vrot.slane %v14093_v30, %v13714_v24  ;;  %v2931_v21 = vrot.slane %v14351_v42, %v13714_v24 }
 0x299   :  { %v2993_v49 = vmul.f32 %v2935_v18, %v2867_v1  ;;  %v2776_v4 = vadd.f32 %v2756_v59, %v2686_v5  ;;  %v2846_v44 = vrot.slane %v2826_v46, 6  ;;  %v2627_v27 = vrot.slane %v14093_v30, %v13717_v25  ;;  %v13012_v8 = vpop.eup %13011  ;;  %v12083_v18 = vld [vmem:[#allocation14 + $0x70c] ss:$20 sps:$4 sm:$0xff]   ;;  %v12081_v5 = vld [vmem:[#allocation14 + $0x708] ss:$20 sps:$4 sm:$0xff]  }
 0x29a   :  { %v2449_v45 = vadd.f32 %v15092_v11, %v2359_v3  ;;  %v3057_v6 = vrot.slane %v14374_v10, %v13714_v24  ;;  %v2589_v48 = vmul.f32 %v2567_v15, %v13967_v63  ;;  %13017 = vpow2.f32 %v14383_v14  ;;  %8491 = vmatpush1.bf16.msra.mxu1 %v12069_v20  ;;  %8901 = vmatpush1.bf16.msra.mxu0 %v12072_v34  ;;  %v12086_v14 = vld [vmem:[#allocation14 + $0x714] ss:$20 sps:$4 sm:$0xff]   ;;  %v12084_v46 = vld [vmem:[#allocation14 + $0x710] ss:$20 sps:$4 sm:$0xff]  }
 0x29b   :  { %v14474_v16 = vadd.f32 %v3061_v37, %v2993_v49  ;;  %v2866_v32 = vadd.f32 %v2846_v44, %v2776_v4  ;;  %v2649_v17 = vmul.f32 %v2627_v27, %v13967_v63  ;;  %v2717_v56 = vrot.slane %v14093_v30, %v13720_v26  ;;  %8492 = vmatprep.subr.bf16.mxu1 %v12077_v40  ;;  %v14497_v37 = vld [vmem:[#allocation10 + $0x48] sm:$0xff]  ;;  %v15096_v44 = vld [vmem:[#allocation43_spill] sm:$0xff] }
 0x29c   :  { %v2539_v53 = vadd.f32 %v2519_v58, %v2449_v45  ;;  %v15093_v28 = vrot.slane %v14253_v33, %v13706_v19  ;;  %8902 = vmatprep.subr.bf16.mxu0 %v12080_v39  ;;  %v1512_v52 = vmul.f32 1.442695, %v1473_v0  ;;  %v2807_v47 = vrot.slane %v14093_v30, %v13733_v38 }
 0x29d   :  { %v15094_v58 = vrot.slane %v14253_v33, %v13675_v43  ;;  %v2992_v59 = vmul.f32 %v2931_v21, %v2866_v32  ;;  %v2669_v61 = vrot.slane %v2649_v17, 2  ;;  %v2739_v3 = vmul.f32 %v2717_v56, %v13967_v63  ;;  %v12087_v32 = vld [vmem:[#allocation14 + $0x730] ss:$20 sps:$4 sm:$0xff]   ;;  %v12090_v17 = vld [vmem:[#allocation14 + $0x738] ss:$20 sps:$4 sm:$0xff]  }
 0x29e   :  { %v14487_v55 = vmul.f32 %v15093_v28, %v14381_v50  ;;  %v2599_v7 = vadd.f32 %v2589_v48, %v2539_v53  ;;  %v14501_v20 = vadd.f32 %v1690_v60, %v14443_v62  ;;  %v14505_v34 = vrot.slane %v14244_v41, %v13659_v35  ;;  %8493 = vmatpush1.bf16.msra.mxu1 %v12075_v29  ;;  %v12089_v62 = vld [vmem:[#allocation14 + $0x734] ss:$20 sps:$4 sm:$0xff]   ;;  %v12092_v60 = vld [vmem:[#allocation14 + $0x73c] ss:$20 sps:$4 sm:$0xff]  }
 0x29f   :  { %v14495_v1 = vmul.f32 %v15094_v58, %v14381_v50  ;;  %v10330_v30 = vadd.f32 -1.0, %v13012_v8  ;;  %v2829_v0 = vmul.f32 %v2807_v47, %v13967_v63  ;;  %8903 = vmatpush1.bf16.msra.mxu0 %v12078_v13  ;;  %v14509_v40 = vadd.f32 %v3057_v6, %v2992_v59  ;;  %8494 = vmatprep.subr.bf16.mxu1 %v12083_v18  ;;  %v13065_v6 = vld [vmem:[#allocation10 + $0x70] sm:$0xff] }
 0x2a0   :  { %v2689_v39 = vadd.f32 %v2669_v61, %v2599_v7  ;;  %v2759_v49 = vrot.slane %v2739_v3, 4  ;;  %8904 = vmatprep.subr.bf16.mxu0 %v12086_v14  ;;  %v1613_v41 = vrot.slane %v14497_v37, %v13659_v35  ;;  %v1663_v63 = vrot.slane %v14497_v37, %v13662_v36  ;;  %v13014_v4 = vpop.eup %13013  ;;  %v12098_v14 = vld [vmem:[#allocation14 + $0x764] ss:$20 sps:$4 sm:$0xff]  }
 0x2a1   :  { %v2849_v11 = vrot.slane %v2829_v0, 6  ;;  %v15095_v45 = vrot.slane %v14306_v57, 6  ;;  %vm1450_vm8 = vcmp.gt.f32.partialorder %v15096_v44, 0.0  ;;  %13019 = vpow2.f32 %v1512_v52  ;;  %v13016_v48 = vpop.eup %13015  ;;  %v12093_v3 = vld [vmem:[#allocation14 + $0x758] ss:$20 sps:$4 sm:$0xff]  }
 0x2a2   :  { %v2779_v21 = vadd.f32 %v2759_v49, %v2689_v39  ;;  %v2943_v27 = vrot.slane %v14351_v42, %v13733_v38  ;;  %v2623_v53 = vrot.slane %v13065_v6, %v13717_v25  ;;  %v14525_v8 = vsel %vm1443_vm7, %v14344_v23, %v10330_v30  ;;  %8495 = vmatpush1.bf16.msra.mxu1 %v12081_v5  ;;  %v12095_v23 = vld [vmem:[#allocation14 + $0x75c] ss:$20 sps:$4 sm:$0xff]   ;;  %v15098_v5 = vld [vmem:[#allocation42_spill] sm:$0xff] }
 0x2a3   :  { %v2538_v15 = vadd.f32 %v15095_v45, %v14357_v51  ;;  %v3069_v57 = vrot.slane %v14374_v10, %v13733_v38  ;;  %v2713_v51 = vrot.slane %v13065_v6, %v13720_v26  ;;  %v2803_v29 = vrot.slane %v13065_v6, %v13733_v38  ;;  %8905 = vmatpush1.bf16.msra.mxu0 %v12084_v46  ;;  %v15097_v30 = vld [vmem:[#allocation36_spill] sm:$0xff]  ;;  %v12099_v6 = vld [vmem:[#allocation14 + $0x780] ss:$20 sps:$4 sm:$0xff]  }
 0x2a4   :  { %v1780_v13 = vrot.slane %v14487_v55, 4  ;;  %v2869_v56 = vadd.f32 %v2849_v11, %v2779_v21  ;;  %v2648_v18 = vmul.f32 %v2623_v53, %v14162_v54  ;;  %8496 = vmatprep.subr.bf16.mxu1 %v12089_v62  ;;  %8906 = vmatprep.subr.bf16.mxu0 %v12092_v60  ;;  %v10345_v52 = vadd.f32 -1.0, %v13014_v4  ;;  %v13018_v58 = vpop.eup %13017  ;;  %v12104_v4 = vld [vmem:[#allocation14 + $0x78c] ss:$20 sps:$4 sm:$0xff]   ;;  %v12102_v53 = vld [vmem:[#allocation14 + $0x788] ss:$20 sps:$4 sm:$0xff]  }
 0x2a5   :  { %v2598_v28 = vadd.f32 %v14437_v31, %v2538_v15  ;;  %v1753_v7 = vrot.slane %v14497_v37, %v13706_v19  ;;  %v2738_v47 = vmul.f32 %v2713_v51, %v14162_v54  ;;  %v2828_v55 = vmul.f32 %v2803_v29, %v14162_v54  ;;  %v12096_v54 = vld [vmem:[#allocation14 + $0x760] ss:$20 sps:$4 sm:$0xff]   ;;  %v12101_v15 = vld [vmem:[#allocation14 + $0x784] ss:$20 sps:$4 sm:$0xff]  }
 0x2a6   :  { %vm3130_vm9 = vcmp.gt.f32.partialorder %v14389_v22, 0.0  ;;  %v1673_v59 = vmul.f32 %v1663_v63, %v14525_v8  ;;  %v2995_v31 = vmul.f32 %v2943_v27, %v2869_v56  ;;  %v2668_v61 = vrot.slane %v2648_v18, 2  ;;  %8497 = vmatpush1.bf16.msra.mxu1 %v12087_v32 }
 0x2a7   :  { %v1348_v0 = vmul.f32 %v14505_v34, %v15097_v30  ;;  %v14544_v46 = vrot.slane %v15098_v5, %v13659_v35  ;;  %v10348_v39 = vadd.f32 -1.0, %v13016_v48  ;;  %v2758_v49 = vrot.slane %v2738_v47, 4  ;;  %8907 = vmatpush1.bf16.msra.mxu0 %v12090_v17  ;;  %8498 = vmatprep.subr.bf16.mxu1 %v12095_v23  ;;  %v12107_v17 = vld [vmem:[#allocation14 + $0x7ac] ss:$20 sps:$4 sm:$0xff]   ;;  %v12116_v5 = vld [vmem:[#allocation14 + $0x7dc] ss:$20 sps:$4 sm:$0xff]  }
 0x2a8   :  { %vm3133_vm10 = vcmp.gt.f32.partialorder %v14392_v9, 0.0  ;;  %v14547_v62 = vadd.f32 %v3069_v57, %v2995_v31  ;;  %v2688_v60 = vadd.f32 %v2668_v61, %v2598_v28  ;;  %v2848_v63 = vrot.slane %v2828_v55, 6  ;;  %8908 = vmatprep.subr.bf16.mxu0 %v12098_v14  ;;  %v12108_v61 = vld [vmem:[#allocation14 + $0x7b0] ss:$20 sps:$4 sm:$0xff]  }
 0x2a9   :  { %v10337_v11 = vadd.f32 -1.0, %v13018_v58  ;;  %v3230_v45 = vsel %vm3130_vm9, %v14389_v22, %v10345_v52  ;;  %v1763_v21 = vmul.f32 %v1753_v7, %v14525_v8  ;;  %v1843_v27 = vrot.slane %v14497_v37, %v13675_v43 }
 0x2aa   :  { %v1623_v48 = vmul.f32 %v1613_v41, %v14525_v8  ;;  %v1693_v57 = vrot.slane %v1673_v59, 2  ;;  %v2778_v51 = vadd.f32 %v2758_v49, %v2688_v60  ;;  %v2939_v29 = vrot.slane %v14351_v42, %v13720_v26  ;;  %8499 = vmatpush1.bf16.msra.mxu1 %v12093_v3  ;;  %v12110_v41 = vld [vmem:[#allocation14 + $0x7b4] ss:$20 sps:$4 sm:$0xff]   ;;  %v12111_v60 = vld [vmem:[#allocation14 + $0x7d0] ss:$20 sps:$4 sm:$0xff]  }
 0x2ab   :  { %v1800_v32 = vadd.f32 %v1780_v13, %v14501_v20  ;;  %v1921_v22 = vrot.slane %v14253_v33, %v13714_v24  ;;  %v3233_v56 = vsel %vm3133_vm10, %v14392_v9, %v10348_v39  ;;  %v13020_v28 = vpop.eup %13019  ;;  %v1870_v18 = vrot.slane %v14495_v1, 6  ;;  %8909 = vmatpush1.bf16.msra.mxu0 %v12096_v54  ;;  %8509 = vmatprep.subr.bf16.mxu1 %v12101_v15 }
 0x2ac   :  { %v14566_v23 = vadd.f32 %v14544_v46, %v1348_v0  ;;  %v2868_v14 = vadd.f32 %v2848_v63, %v2778_v51  ;;  %v3065_v20 = vrot.slane %v14374_v10, %v13720_v26  ;;  %v14573_v13 = vsel %vm1450_vm8, %v15096_v44, %v10337_v11  ;;  %8919 = vmatprep.subr.bf16.mxu0 %v12104_v4  ;;  %v12105_v44 = vld [vmem:[#allocation14 + $0x7a8] ss:$20 sps:$4 sm:$0xff]  }
 0x2ad   :  { %v14575_v52 = vpack.c.bf16 %v3230_v45, %v3230_v45  ;;  %v1783_v9 = vrot.slane %v1763_v21, 4  ;;  %v1981_v1 = vrot.slane %v14253_v33, %v13717_v25  ;;  %v1853_v7 = vmul.f32 %v1843_v27, %v14525_v8  ;;  %v12113_v0 = vld [vmem:[#allocation14 + $0x7d4] ss:$20 sps:$4 sm:$0xff]   ;;  %v12114_v21 = vld [vmem:[#allocation14 + $0x7d8] ss:$20 sps:$4 sm:$0xff]  }
 0x2ae   :  { %v14580_v47 = vpack.c.bf16 %v3233_v56, %v3233_v56  ;;  %v1713_v55 = vadd.f32 %v1693_v57, %v1623_v48  ;;  %v2994_v58 = vmul.f32 %v2939_v29, %v2868_v14  ;;  %v10340_v59 = vadd.f32 -1.0, %v13020_v28  ;;  %v12119_v48 = vld [vmem:[#allocation14 + $0x7fc] ss:$20 sps:$4 sm:$0xff]   ;;  %v12122_v57 = vld [vmem:[#allocation14 + $0x804] ss:$20 sps:$4 sm:$0xff]  }
 0x2af   :  { %8501 = vmatmul.mubr.bf16.vlgmr.msra.gmra.mrb[8].mxu1 %v14575_v52  ;;  %8911 = vmatmul.mubr.bf16.vlgmr.msra.gmra.mrb[12].mxu0 %v14575_v52  ;;  %v1940_v31 = vmul.f32 %v1921_v22, %v14573_v13  ;;  %v1462_v3 = vmin.f32 %v14566_v23, 0.0  ;;  %vm1453_vm11 = vcmp.gt.f32.partialorder %v14448_v12, 0.0  ;;  %v1890_v39 = vadd.f32 %v1870_v18, %v1800_v32  ;;  %v12128_v14 = vld [vmem:[#allocation14 + $0x82c] ss:$20 sps:$4 sm:$0xff]  }
 0x2b0   :  { %8510 = vmatpush1.bf16.msra.mxu1 %v12099_v6  ;;  %8920 = vmatpush1.bf16.msra.mxu0 %v12102_v53  ;;  %v14587_v30 = vadd.f32 %v3065_v20, %v2994_v58  ;;  %v2000_v49 = vmul.f32 %v1981_v1, %v14573_v13  ;;  %v2071_v54 = vrot.slane %v14253_v33, %v13720_v26  ;;  %v1873_v11 = vrot.slane %v1853_v7, 6  ;;  %v15099_v6 = vld [vmem:[#allocation37_spill] sm:$0xff]  ;;  %v14616_v7 = vld [vmem:[#allocation10 + $0x58] sm:$0xff] }
 0x2b1   :  { %8511 = vmatprep.subr.bf16.mxu1 %v12107_v17  ;;  %8921 = vmatprep.subr.bf16.mxu0 %v12110_v41  ;;  %v1803_v63 = vadd.f32 %v1783_v9, %v1713_v55  ;;  %v1933_v45 = vrot.slane %v14497_v37, %v13714_v24  ;;  %v1993_v15 = vrot.slane %v14497_v37, %v13717_v25  ;;  %v1490_v27 = vmul.f32 1.442695, %v1462_v3  ;;  %v12120_v17 = vld [vmem:[#allocation14 + $0x800] ss:$20 sps:$4 sm:$0xff]   ;;  %v12125_v41 = vld [vmem:[#allocation14 + $0x824] ss:$20 sps:$4 sm:$0xff]  }
 0x2b2   :  { %8541 = vmatprep.mubr.bf16.mxu1 %v14580_v47  ;;  %8951 = vmatprep.mubr.bf16.mxu0 %v14580_v47  ;;  %v14601_v4 = vsel %vm1453_vm11, %v14448_v12, %v10340_v59  ;;  %v1358_v53 = vmul.f32 %v14505_v34, %v15099_v6  ;;  %v1950_v51 = vadd.f32 %v1940_v31, %v1890_v39  ;;  %v2020_v29 = vrot.slane %v2000_v49, 2  ;;  %v12117_v12 = vld [vmem:[#allocation14 + $0x7f8] ss:$20 sps:$4 sm:$0xff]   ;;  %v12123_v55 = vld [vmem:[#allocation14 + $0x820] ss:$20 sps:$4 sm:$0xff]  }
 0x2b3   :  { %v2090_v32 = vmul.f32 %v2071_v54, %v14573_v13  ;;  %v2161_v22 = vrot.slane %v14253_v33, %v13733_v38  ;;  %v1893_v56 = vadd.f32 %v1873_v11, %v1803_v63  ;;  %v1943_v28 = vmul.f32 %v1933_v45, %v14601_v4  ;;  %v12131_v3 = vld [vmem:[#allocation14 + $0x84c] ss:$20 sps:$4 sm:$0xff]   ;;  %v12129_v49 = vld [vmem:[#allocation14 + $0x848] ss:$20 sps:$4 sm:$0xff]   ;;  %v12132_v45 = vld [vmem:[#allocation14 + $0x850] ss:$20 sps:$4 sm:$0xff]  }
 0x2b4   :  { %8512 = vmatpush1.bf16.msra.mxu1 %v12105_v44  ;;  %8922 = vmatpush1.bf16.msra.mxu0 %v12108_v61  ;;  %v2003_v18 = vmul.f32 %v1993_v15, %v14601_v4  ;;  %v2083_v34 = vrot.slane %v14497_v37, %v13720_v26  ;;  %13021 = vpow2.f32 %v1490_v27  ;;  %v14613_v20 = vadd.f32 %v14544_v46, %v1358_v53  ;;  %v12126_v61 = vld [vmem:[#allocation14 + $0x828] ss:$20 sps:$4 sm:$0xff]   ;;  %v15100_v15 = vld [vmem:[#allocation31_spill] sm:$0xff] }
 0x2b5   :  { %8513 = vmatprep.subr.bf16.mxu1 %v12113_v0  ;;  %8923 = vmatprep.subr.bf16.mxu0 %v12116_v5  ;;  %v2040_v33 = vadd.f32 %v2020_v29, %v1950_v51  ;;  %v2110_v9 = vrot.slane %v2090_v32, 4  ;;  %v2180_v1 = vmul.f32 %v2161_v22, %v14573_v13  ;;  %v1953_v58 = vadd.f32 %v1943_v28, %v1893_v56  ;;  %v12134_v0 = vld [vmem:[#allocation14 + $0x854] ss:$20 sps:$4 sm:$0xff]   ;;  %v12140_v6 = vld [vmem:[#allocation14 + $0x87c] ss:$20 sps:$4 sm:$0xff]  }
 0x2b6   :  { %v2023_v44 = vrot.slane %v2003_v18, 2  ;;  %v2093_v59 = vmul.f32 %v2083_v34, %v14601_v4  ;;  %v2173_v31 = vrot.slane %v14497_v37, %v13733_v38  ;;  %v2281_v46 = vrot.slane %v14616_v7, %v13662_v36  ;;  %v12137_v27 = vld [vmem:[#allocation14 + $0x874] ss:$20 sps:$4 sm:$0xff]   ;;  %v12135_v32 = vld [vmem:[#allocation14 + $0x870] ss:$20 sps:$4 sm:$0xff]   ;;  %v14635_v18 = vld [vmem:[#allocation10 + $0x40] sm:$0xff] }
 0x2b7   :  { %v2130_v5 = vadd.f32 %v2110_v9, %v2040_v33  ;;  %v2200_v39 = vrot.slane %v2180_v1, 6  ;;  %v1472_v54 = vmin.f32 %v14613_v20, 0.0  ;;  %v2371_v37 = vrot.slane %v14616_v7, %v13706_v19  ;;  %v12138_v22 = vld [vmem:[#allocation14 + $0x878] ss:$20 sps:$4 sm:$0xff]   ;;  %v12143_v34 = vld [vmem:[#allocation14 + $0x89c] ss:$20 sps:$4 sm:$0xff]  }
 0x2b8   :  { %8514 = vmatpush1.bf16.msra.mxu1 %v12111_v60  ;;  %8924 = vmatpush1.bf16.msra.mxu0 %v12114_v21  ;;  %v2043_v60 = vadd.f32 %v2023_v44, %v1953_v58  ;;  %v2113_v63 = vrot.slane %v2093_v59, 4  ;;  %v2183_v11 = vmul.f32 %v2173_v31, %v14601_v4  ;;  %v14628_v21 = vmul.f32 %v2281_v46, %v15100_v15  ;;  %v13067_v33 = vld [vmem:[#allocation13] sm:$0xff]  ;;  %v12144_v58 = vld [vmem:[#allocation14 + $0x8a0] ss:$20 sps:$4 sm:$0xff]  }
 0x2b9   :  { %8515 = vmatprep.subr.bf16.mxu1 %v12119_v48  ;;  %8925 = vmatprep.subr.bf16.mxu0 %v12122_v57  ;;  %v2220_v53 = vadd.f32 %v2200_v39, %v2130_v5  ;;  %v13066_v48 = vld [vmem:[#allocation11] sm:$0xff]  ;;  %v1510_v29 = vmul.f32 1.442695, %v1472_v54  ;;  %v14633_v28 = vmul.f32 %v2371_v37, %v15100_v15  ;;  %v3033_v9 = vrot.slane %v13067_v33, %v13720_v26  ;;  %v14641_v31 = vld [vmem:[#allocation10 + $0x90] sm:$0xff]  ;;  %v12147_v54 = vld [vmem:[#allocation14 + $0x8c0] ss:$20 sps:$4 sm:$0xff]  }
 0x2ba   :  { %v2907_v57 = vrot.slane %v13066_v48, %v13720_v26  ;;  %vm1442_vm12 = vcmp.gt.f32.partialorder %v14566_v23, 0.0  ;;  %v2919_v59 = vrot.slane %v14351_v42, %v13662_v36  ;;  %v1659_v46 = vrot.slane %v14635_v18, %v13662_v36  ;;  %v12152_v5 = vld [vmem:[#allocation14 + $0x8cc] ss:$20 sps:$4 sm:$0xff]  }
 0x2bb   :  { %13023 = vpow2.f32 %v1510_v29  ;;  %v12161_v29 = vld [vmem:[#allocation14 + $0x914] ss:$20 sps:$4 sm:$0xff]   ;;  %vm1452_vm13 = vcmp.gt.f32.partialorder %v14613_v20, 0.0  ;;  %vm3136_vm2 = vcmp.gt.f32.partialorder %v14429_v2, 0.0  ;;  %vm3139_vm3 = vcmp.gt.f32.partialorder %v14474_v16, 0.0 }
 0x2bc   :  { %8516 = vmatpush1.bf16.msra.mxu1 %v12117_v12  ;;  %8926 = vmatpush1.bf16.msra.mxu0 %v12120_v17  ;;  %v2133_v12 = vadd.f32 %v2113_v63, %v2043_v60  ;;  %v2203_v17 = vrot.slane %v2183_v11, 6  ;;  %v12150_v60 = vld [vmem:[#allocation14 + $0x8c8] ss:$20 sps:$4 sm:$0xff]   ;;  %v3045_v11 = vrot.slane %v14374_v10, %v13662_v36  ;;  %v12171_v56 = vld [vmem:[#allocation14 + $0x960] ss:$20 sps:$4 sm:$0xff]   ;;  %vm3138_vm4 = vcmp.gt.f32.partialorder %v14509_v40, 0.0 }
 0x2bd   :  { %8517 = vmatprep.subr.bf16.mxu1 %v12125_v41  ;;  %8927 = vmatprep.subr.bf16.mxu0 %v12128_v14  ;;  %v12146_v41 = vld [vmem:[#allocation14 + $0x8a4] ss:$20 sps:$4 sm:$0xff]   ;;  %v2986_v14 = vmul.f32 %v2907_v57, %v2220_v53  ;;  %v12153_v10 = vld [vmem:[#allocation14 + $0x8e8] ss:$20 sps:$4 sm:$0xff]   ;;  %vm3141_vm5 = vcmp.gt.f32.partialorder %v14547_v62, 0.0  ;;  %vm3140_vm6 = vcmp.gt.f32.partialorder %v14587_v30, 0.0 }
 0x2be   :  { %v13022_v51 = vpop.eup %13021  ;;  %v2223_v44 = vadd.f32 %v2203_v17, %v2133_v12  ;;  %v12156_v57 = vld [vmem:[#allocation14 + $0x8f0] ss:$20 sps:$4 sm:$0xff]   ;;  %v2399_v12 = vrot.slane %v14641_v31, %v13706_v19 }
 0x2bf   :  { %v10329_v1 = vadd.f32 -1.0, %v13022_v51  ;;  %v14648_v39 = vadd.f32 %v3033_v9, %v2986_v14  ;;  %v12164_v14 = vld [vmem:[#allocation14 + $0x91c] ss:$20 sps:$4 sm:$0xff]  }
 0x2c0   :  { %8518 = vmatpush1.bf16.msra.mxu1 %v12123_v55  ;;  %8928 = vmatpush1.bf16.msra.mxu0 %v12126_v61  ;;  %v12141_v55 = vld [vmem:[#allocation14 + $0x898] ss:$20 sps:$4 sm:$0xff]   ;;  %v2989_v63 = vmul.f32 %v2919_v59, %v2223_v44  ;;  %v12159_v44 = vld [vmem:[#allocation14 + $0x910] ss:$20 sps:$4 sm:$0xff]  }
 0x2c1   :  { %8519 = vmatprep.subr.bf16.mxu1 %v12131_v3  ;;  %8929 = vmatprep.subr.bf16.mxu0 %v12134_v0  ;;  %v14646_v3 = vld [vmem:[#allocation10 + $0x98] sm:$0xff]  ;;  %v12149_v0 = vld [vmem:[#allocation14 + $0x8c4] ss:$20 sps:$4 sm:$0xff]   ;;  %v14653_v42 = vsel %vm1442_vm12, %v14566_v23, %v10329_v1  ;;  %v3152_v53 = vmin.f32 %v14648_v39, 0.0  ;;  %v2461_v1 = vrot.slane %v14616_v7, %v13675_v43  ;;  %vm3132_vm14 = vcmp.gt.f32.partialorder %v14648_v39, 0.0 }
 0x2c2   :  { %v1672_v37 = vmul.f32 %v1659_v46, %v14653_v42  ;;  %v2313_v23 = vrot.slane %v14646_v3, %v13662_v36  ;;  %v14668_v51 = vadd.f32 %v3045_v11, %v2989_v63  ;;  %v12162_v59 = vld [vmem:[#allocation14 + $0x918] ss:$20 sps:$4 sm:$0xff]   ;;  %v2263_v63 = vrot.slane %v14646_v3, %v13659_v35 }
 0x2c3   :  { %v3178_v33 = vmul.f32 1.442695, %v3152_v53 }
 0x2c4   :  { %8520 = vmatpush1.bf16.msra.mxu1 %v12129_v49  ;;  %8930 = vmatpush1.bf16.msra.mxu0 %v12132_v45  ;;  %v1749_v49 = vrot.slane %v14635_v18, %v13706_v19  ;;  %v2309_v45 = vrot.slane %v14641_v31, %v13662_v36  ;;  %v1692_v17 = vrot.slane %v1672_v37, 2  ;;  %v3155_v46 = vmin.f32 %v14668_v51, 0.0 }
 0x2c5   :  { %8521 = vmatprep.subr.bf16.mxu1 %v12137_v27  ;;  %8931 = vmatprep.subr.bf16.mxu0 %v12140_v6  ;;  %v12155_v27 = vld [vmem:[#allocation14 + $0x8ec] ss:$20 sps:$4 sm:$0xff]   ;;  %v12158_v6 = vld [vmem:[#allocation14 + $0x8f4] ss:$20 sps:$4 sm:$0xff]   ;;  %v13024_v9 = vpop.eup %13023  ;;  %v2412_v37 = vmul.f32 %v2399_v12, %v14653_v42  ;;  %13025 = vpow2.f32 %v3178_v33  ;;  %v1929_v33 = vrot.slane %v14635_v18, %v13714_v24  ;;  %vm3135_vm15 = vcmp.gt.f32.partialorder %v14668_v51, 0.0 }
 0x2c6   :  { %v14666_v48 = vmul.f32 %v1749_v49, %v14653_v42  ;;  %v12167_v49 = vld [vmem:[#allocation14 + $0x93c] ss:$20 sps:$4 sm:$0xff]  }
 0x2c8   :  { %8522 = vmatpush1.bf16.msra.mxu1 %v12135_v32  ;;  %8932 = vmatpush1.bf16.msra.mxu0 %v12138_v22  ;;  %v1609_v32 = vrot.slane %v14635_v18, %v13659_v35  ;;  %v2259_v22 = vrot.slane %v14641_v31, %v13659_v35 }
 0x2c9   :  { %8523 = vmatprep.subr.bf16.mxu1 %v12143_v34  ;;  %8933 = vmatprep.subr.bf16.mxu0 %v12146_v41  ;;  %v2322_v34 = vmul.f32 %v2309_v45, %v14653_v42  ;;  %v2323_v41 = vmul.f32 %v2313_v23, %v14525_v8  ;;  %v10339_v23 = vadd.f32 -1.0, %v13024_v9 }
 0x2cb   :  { %v2342_v11 = vrot.slane %v2322_v34, 2  ;;  %v2343_v45 = vrot.slane %v2323_v41, 2 }
 0x2cc   :  { %8524 = vmatpush1.bf16.msra.mxu1 %v12141_v55  ;;  %8934 = vmatpush1.bf16.msra.mxu0 %v12144_v58  ;;  %v1782_v55 = vrot.slane %v14666_v48, 4  ;;  %v2403_v58 = vrot.slane %v14646_v3, %v13706_v19  ;;  %v2493_v48 = vrot.slane %v14646_v3, %v13675_v43 }
 0x2cd   :  { %8525 = vmatprep.subr.bf16.mxu1 %v12149_v0  ;;  %8935 = vmatprep.subr.bf16.mxu0 %v12152_v5  ;;  %v1839_v0 = vrot.slane %v14635_v18, %v13675_v43  ;;  %v2489_v5 = vrot.slane %v14641_v31, %v13675_v43 }
 0x2ce   :  { %v2413_v53 = vmul.f32 %v2403_v58, %v14525_v8  ;;  %v12176_v58 = vld [vmem:[#allocation14 + $0x96c] ss:$20 sps:$4 sm:$0xff]   ;;  %v2503_v61 = vmul.f32 %v2493_v48, %v14525_v8  ;;  %v1989_v48 = vrot.slane %v14635_v18, %v13717_v25 }
 0x2cf   :  { %v14703_v12 = vmul.f32 %v1839_v0, %v14653_v42  ;;  %v2502_v9 = vmul.f32 %v2489_v5, %v14653_v42  ;;  %v12174_v0 = vld [vmem:[#allocation14 + $0x968] ss:$20 sps:$4 sm:$0xff]  }
 0x2d0   :  { %8526 = vmatpush1.bf16.msra.mxu1 %v12147_v54  ;;  %8936 = vmatpush1.bf16.msra.mxu0 %v12150_v60  ;;  %v1622_v54 = vmul.f32 %v1609_v32, %v14653_v42  ;;  %v2272_v60 = vmul.f32 %v2259_v22, %v14653_v42  ;;  %v12165_v32 = vld [vmem:[#allocation14 + $0x938] ss:$20 sps:$4 sm:$0xff]   ;;  %v12168_v22 = vld [vmem:[#allocation14 + $0x940] ss:$20 sps:$4 sm:$0xff]  }
 0x2d1   :  { %8527 = vmatprep.subr.bf16.mxu1 %v12155_v27  ;;  %8937 = vmatprep.subr.bf16.mxu0 %v12158_v6  ;;  %v12170_v27 = vld [vmem:[#allocation14 + $0x944] ss:$20 sps:$4 sm:$0xff]   ;;  %v14695_v6 = vmul.f32 %v2461_v1, %v15100_v15  ;;  %v1872_v5 = vrot.slane %v14703_v12, 6 }
 0x2d2   :  { %v1712_v34 = vadd.f32 %v1692_v17, %v1622_v54  ;;  %v2362_v41 = vadd.f32 %v2342_v11, %v2272_v60  ;;  %v12173_v1 = vld [vmem:[#allocation14 + $0x964] ss:$20 sps:$4 sm:$0xff]   ;;  %v2579_v17 = vrot.slane %v14641_v31, %v13714_v24  ;;  %v2522_v54 = vrot.slane %v2502_v9, 6  ;;  %v12179_v60 = vld [vmem:[#allocation14 + $0x98c] ss:$20 sps:$4 sm:$0xff]   ;;  %v13026_v9 = vpop.eup %13025 }
 0x2d3   :  { %v12182_v11 = vld [vmem:[#allocation14 + $0x994] ss:$20 sps:$4 sm:$0xff]  }
 0x2d4   :  { %8528 = vmatpush1.bf16.msra.mxu1 %v12153_v10  ;;  %8938 = vmatpush1.bf16.msra.mxu0 %v12156_v57  ;;  %v3184_v10 = vmul.f32 1.442695, %v3155_v46  ;;  %v2231_v57 = vrot.slane %v14616_v7, %v13659_v35  ;;  %v2433_v46 = vrot.slane %v2413_v53, 4  ;;  %v2523_v53 = vrot.slane %v2503_v61, 6 }
 0x2d5   :  { %8529 = vmatprep.subr.bf16.mxu1 %v12161_v29  ;;  %8939 = vmatprep.subr.bf16.mxu0 %v12164_v14  ;;  %v2273_v29 = vmul.f32 %v2263_v63, %v14525_v8  ;;  %v2432_v14 = vrot.slane %v2412_v37, 4  ;;  %v2515_v63 = vrot.slane %v14695_v6, 6  ;;  %v12180_v37 = vld [vmem:[#allocation14 + $0x990] ss:$20 sps:$4 sm:$0xff]  }
 0x2d6   :  { %13027 = vpow2.f32 %v3184_v10  ;;  %v14714_v42 = vmul.f32 %v2231_v57, %v15100_v15  ;;  %v12177_v15 = vld [vmem:[#allocation14 + $0x988] ss:$20 sps:$4 sm:$0xff]   ;;  %v12218_v6 = vld [vmem:[#allocation14 + $0xa84] ss:$20 sps:$4 sm:$0xff]  }
 0x2d7   :  { %v2363_v8 = vadd.f32 %v2343_v45, %v2273_v29  ;;  %v2643_v45 = vrot.slane %v14646_v3, %v13717_v25  ;;  %v12185_v57 = vld [vmem:[#allocation14 + $0x9b4] ss:$20 sps:$4 sm:$0xff]   ;;  %v12188_v29 = vld [vmem:[#allocation14 + $0x9bc] ss:$20 sps:$4 sm:$0xff]  }
 0x2d8   :  { %8530 = vmatpush1.bf16.msra.mxu1 %v12159_v44  ;;  %8940 = vmatpush1.bf16.msra.mxu0 %v12162_v59  ;;  %v14719_v44 = vsel %vm1452_vm13, %v14613_v20, %v10339_v23  ;;  %v14721_v59 = vadd.f32 %v1782_v55, %v1712_v34  ;;  %v2583_v20 = vrot.slane %v14646_v3, %v13714_v24 }
 0x2d9   :  { %8531 = vmatprep.subr.bf16.mxu1 %v12167_v49  ;;  %8941 = vmatprep.subr.bf16.mxu0 %v12170_v27  ;;  %v2452_v49 = vadd.f32 %v2432_v14, %v2362_v41  ;;  %v2453_v27 = vadd.f32 %v2433_v46, %v2363_v8  ;;  %v14729_v55 = vmul.f32 %v1929_v33, %v14719_v44 }
 0x2da   :  { %v2592_v23 = vmul.f32 %v2579_v17, %v14719_v44  ;;  %v2653_v10 = vmul.f32 %v2643_v45, %v14601_v4  ;;  %v2733_v34 = vrot.slane %v14646_v3, %v13720_v26  ;;  %v2729_v33 = vrot.slane %v14641_v31, %v13720_v26 }
 0x2db   :  { %v2543_v61 = vadd.f32 %v2523_v53, %v2453_v27  ;;  %v2542_v41 = vadd.f32 %v2522_v54, %v2452_v49  ;;  %v2819_v49 = vrot.slane %v14641_v31, %v13733_v38  ;;  %v10347_v45 = vadd.f32 -1.0, %v13026_v9 }
 0x2dc   :  { %8532 = vmatpush1.bf16.msra.mxu1 %v12165_v32  ;;  %8942 = vmatpush1.bf16.msra.mxu0 %v12168_v22  ;;  %v2639_v32 = vrot.slane %v14641_v31, %v13717_v25  ;;  %v2593_v22 = vmul.f32 %v2583_v20, %v14601_v4  ;;  %v2673_v46 = vrot.slane %v2653_v10, 2  ;;  %v2743_v17 = vmul.f32 %v2733_v34, %v14601_v4  ;;  %v12194_v20 = vld [vmem:[#allocation14 + $0x9e4] ss:$20 sps:$4 sm:$0xff]  }
 0x2dd   :  { %8533 = vmatprep.subr.bf16.mxu1 %v12173_v1  ;;  %8943 = vmatprep.subr.bf16.mxu0 %v12176_v58  ;;  %v12186_v1 = vld [vmem:[#allocation14 + $0x9b8] ss:$20 sps:$4 sm:$0xff]   ;;  %v2602_v8 = vadd.f32 %v2592_v23, %v2542_v41  ;;  %v2742_v53 = vmul.f32 %v2729_v33, %v14719_v44  ;;  %v3002_v33 = vld [vmem:[#allocation13 + $0x10] sm:$0xf] }
 0x2de   :  { %v2652_v14 = vmul.f32 %v2639_v32, %v14719_v44  ;;  %v2603_v58 = vadd.f32 %v2593_v22, %v2543_v61  ;;  %v14752_v32 = vmul.f32 %v1989_v48, %v14719_v44  ;;  %v2832_v61 = vmul.f32 %v2819_v49, %v14719_v44  ;;  %v12189_v31 = vld [vmem:[#allocation14 + $0x9d8] ss:$20 sps:$4 sm:$0xff]   ;;  %v12192_v22 = vld [vmem:[#allocation14 + $0x9e0] ss:$20 sps:$4 sm:$0xff]  }
 0x2df   :  { %v2762_v10 = vrot.slane %v2742_v53, 4  ;;  %v12197_v34 = vld [vmem:[#allocation14 + $0xa04] ss:$20 sps:$4 sm:$0xff]   ;;  %v2079_v48 = vrot.slane %v14635_v18, %v13720_v26 }
 0x2e0   :  { %8534 = vmatpush1.bf16.msra.mxu1 %v12171_v56  ;;  %8944 = vmatpush1.bf16.msra.mxu0 %v12174_v0  ;;  %v12183_v56 = vld [vmem:[#allocation14 + $0x9b0] ss:$20 sps:$4 sm:$0xff]   ;;  %v2823_v0 = vrot.slane %v14646_v3, %v13733_v38  ;;  %v13028_v54 = vpop.eup %13027  ;;  %v2852_v41 = vrot.slane %v2832_v61, 6  ;;  %v2022_v12 = vrot.slane %v14752_v32, 2  ;;  %v15102_v32 = vrot.slane %v14633_v28, 4 }
 0x2e1   :  { %8535 = vmatprep.subr.bf16.mxu1 %v12179_v60  ;;  %8945 = vmatprep.subr.bf16.mxu0 %v12182_v11  ;;  %v2672_v60 = vrot.slane %v2652_v14, 2  ;;  %v2693_v11 = vadd.f32 %v2673_v46, %v2603_v58  ;;  %v12191_v3 = vld [vmem:[#allocation14 + $0x9dc] ss:$20 sps:$4 sm:$0xff]   ;;  %v3232_v46 = vsel %vm3132_vm14, %v14648_v39, %v10347_v45  ;;  %v12206_v39 = vld [vmem:[#allocation14 + $0xa34] ss:$20 sps:$4 sm:$0xff]   ;;  %v2169_v45 = vrot.slane %v14635_v18, %v13733_v38 }
 0x2e2   :  { %v2833_v27 = vmul.f32 %v2823_v0, %v14601_v4  ;;  %v12200_v0 = vld [vmem:[#allocation14 + $0xa0c] ss:$20 sps:$4 sm:$0xff]   ;;  %v2551_v18 = vrot.slane %v14616_v7, %v13714_v24  ;;  %v12209_v28 = vld [vmem:[#allocation14 + $0xa54] ss:$20 sps:$4 sm:$0xff]  }
 0x2e3   :  { %v2692_v23 = vadd.f32 %v2672_v60, %v2602_v8  ;;  %v3085_v60 = vrot.slane %v3002_v33, %v13675_v43 }
 0x2e4   :  { %8536 = vmatpush1.bf16.msra.mxu1 %v12177_v15  ;;  %8946 = vmatpush1.bf16.msra.mxu0 %v12180_v37  ;;  %v2876_v15 = vld [vmem:[#allocation11 + $0x10] sm:$0xf]  ;;  %v2763_v37 = vrot.slane %v2743_v17, 4  ;;  %v2853_v4 = vrot.slane %v2833_v27, 6 }
 0x2e5   :  { %8537 = vmatprep.subr.bf16.mxu1 %v12185_v57  ;;  %8947 = vmatprep.subr.bf16.mxu0 %v12188_v29  ;;  %v10350_v57 = vadd.f32 -1.0, %v13028_v54  ;;  %v1892_v29 = vadd.f32 %v1872_v5, %v14721_v59  ;;  %v2959_v9 = vrot.slane %v2876_v15, %v13675_v43  ;;  %v2782_v58 = vadd.f32 %v2762_v10, %v2692_v23  ;;  %v12198_v17 = vld [vmem:[#allocation14 + $0xa08] ss:$20 sps:$4 sm:$0xff]  }
 0x2e6   :  { %v2783_v14 = vadd.f32 %v2763_v37, %v2693_v11  ;;  %v15101_v59 = vrot.slane %v14628_v21, 2  ;;  %v3081_v54 = vrot.slane %v3002_v33, %v13706_v19  ;;  %v12203_v11 = vld [vmem:[#allocation14 + $0xa2c] ss:$20 sps:$4 sm:$0xff]   ;;  %v12212_v37 = vld [vmem:[#allocation14 + $0xa5c] ss:$20 sps:$4 sm:$0xff]  }
 0x2e7   :  { %v2872_v49 = vadd.f32 %v2852_v41, %v2782_v58  ;;  %v3235_v27 = vsel %vm3135_vm15, %v14668_v51, %v10350_v57  ;;  %v1952_v21 = vadd.f32 %v14729_v55, %v1892_v29  ;;  %v2611_v51 = vrot.slane %v14616_v7, %v13717_v25  ;;  %v15103_v29 = vld [vmem:[#allocation32_spill] sm:$0xff] }
 0x2e8   :  { %8538 = vmatpush1.bf16.msra.mxu1 %v12183_v56  ;;  %8948 = vmatpush1.bf16.msra.mxu0 %v12186_v1  ;;  %v2355_v5 = vadd.f32 %v15101_v59, %v14714_v42  ;;  %v2955_v56 = vrot.slane %v2876_v15, %v13706_v19  ;;  %v12195_v1 = vld [vmem:[#allocation14 + $0xa00] ss:$20 sps:$4 sm:$0xff]   ;;  %v2873_v8 = vadd.f32 %v2853_v4, %v2783_v14  ;;  %v12204_v15 = vld [vmem:[#allocation14 + $0xa30] ss:$20 sps:$4 sm:$0xff]   ;;  %vm13398_vm15 = vmmov 0  }
 0x2e9   :  { %8539 = vmatprep.subr.bf16.mxu1 %v12191_v3  ;;  %8949 = vmatprep.subr.bf16.mxu0 %v12194_v20  ;;  %v2092_v42 = vmul.f32 %v2079_v48, %v14719_v44  ;;  %v14777_v20 = vpack.c.bf16 %v3232_v46, %v3232_v46  ;;  %v14783_v61 = vpack.c.bf16 %v3235_v27, %v3235_v27  ;;  %v12207_v14 = vld [vmem:[#allocation14 + $0xa50] ss:$20 sps:$4 sm:$0xff]   ;;  %v12216_v59 = vld [vmem:[#allocation14 + $0xa80] ss:$20 sps:$4 sm:$0xff]  }
 0x2ea   :  { %v2999_v53 = vmul.f32 %v2959_v9, %v2873_v8  ;;  %v2998_v3 = vmul.f32 %v2955_v56, %v2872_v49  ;;  %v2445_v23 = vadd.f32 %v15102_v32, %v2355_v5  ;;  %v2042_v10 = vadd.f32 %v2022_v12, %v1952_v21  ;;  %v12210_v9 = vld [vmem:[#allocation14 + $0xa58] ss:$20 sps:$4 sm:$0xff]  }
 0x2eb   :  { %v2112_v4 = vrot.slane %v2092_v42, 4  ;;  %v2645_v48 = vmul.f32 %v2611_v51, %v15103_v29  ;;  %v2701_v41 = vrot.slane %v14616_v7, %v13720_v26  ;;  %v2585_v58 = vmul.f32 %v2551_v18, %v15103_v29  ;;  %v12213_v12 = vld [vmem:[#allocation14 + $0xa78] ss:$20 sps:$4 sm:$0xff]   ;;  %v12230_v42 = vld [vmem:[#allocation14 + $0xad4] ss:$20 sps:$4 sm:$0xff]  }
 0x2ec   :  { %8540 = vmatpush1.bf16.msra.mxu1 %v12189_v31  ;;  %8950 = vmatpush1.bf16.msra.mxu0 %v12192_v22  ;;  %v14787_v55 = vadd.f32 %v3085_v60, %v2999_v53  ;;  %v14789_v31 = vadd.f32 %v3081_v54, %v2998_v3  ;;  %v12201_v22 = vld [vmem:[#allocation14 + $0xa28] ss:$20 sps:$4 sm:$0xff]   ;;  %v2535_v57 = vadd.f32 %v2515_v63, %v2445_v23  ;;  %v13068_v60 = vld [vmem:[#allocation11 + $0x8] sm:$0xff]  ;;  %v13069_v3 = vld [vmem:[#allocation13 + $0x8] sm:$0xff] }
 0x2ed   :  { %8550 = vmatprep.subr.bf16.mxu1 %v12197_v34  ;;  %8960 = vmatprep.subr.bf16.mxu0 %v12200_v0  ;;  %v2182_v34 = vmul.f32 %v2169_v45, %v14719_v44  ;;  %v12215_v44 = vld [vmem:[#allocation14 + $0xa7c] ss:$20 sps:$4 sm:$0xff]   ;;  %v2132_v63 = vadd.f32 %v2112_v4, %v2042_v10  ;;  %v2665_v5 = vrot.slane %v2645_v48, 2  ;;  %v2735_v33 = vmul.f32 %v2701_v41, %v15103_v29 }
 0x2ee   :  { %v2595_v0 = vadd.f32 %v2585_v58, %v2535_v57  ;;  %v2791_v56 = vrot.slane %v14616_v7, %v13733_v38  ;;  %v2915_v49 = vrot.slane %v13068_v60, %v13659_v35  ;;  %v12227_v7 = vld [vmem:[#allocation14 + $0xacc] ss:$20 sps:$4 sm:$0xff]   ;;  %v3041_v45 = vrot.slane %v13069_v3, %v13659_v35  ;;  %v12225_v23 = vld [vmem:[#allocation14 + $0xac8] ss:$20 sps:$4 sm:$0xff]   ;;  %v12231_v10 = vld [vmem:[#allocation14 + $0xaf0] ss:$20 sps:$4 sm:$0xff]  }
 0x2ef   :  { %8542 = vmatmul.mubr.bf16.vlgmr.msra.gmra.mrb[8].mxu1 %v14777_v20  ;;  %8952 = vmatmul.mubr.bf16.vlgmr.msra.gmra.mrb[12].mxu0 %v14777_v20  ;;  %v2202_v46 = vrot.slane %v2182_v34, 6  ;;  %v2755_v27 = vrot.slane %v2735_v33, 4  ;;  %v12236_v18 = vld [vmem:[#allocation14 + $0xafc] ss:$20 sps:$4 sm:$0xff]   ;;  %v2927_v4 = vrot.slane %v13068_v60, %v13675_v43  ;;  %v12234_v34 = vld [vmem:[#allocation14 + $0xaf8] ss:$20 sps:$4 sm:$0xff]  }
 0x2f0   :  { %8551 = vmatpush1.bf16.msra.mxu1 %v12195_v1  ;;  %8961 = vmatpush1.bf16.msra.mxu0 %v12198_v17  ;;  %v12221_v1 = vld [vmem:[#allocation14 + $0xaa4] ss:$20 sps:$4 sm:$0xff]   ;;  %v12224_v17 = vld [vmem:[#allocation14 + $0xaac] ss:$20 sps:$4 sm:$0xff]   ;;  %v2685_v54 = vadd.f32 %v2665_v5, %v2595_v0  ;;  %v2825_v21 = vmul.f32 %v2791_v56, %v15103_v29  ;;  %v12239_v57 = vld [vmem:[#allocation14 + $0xb1c] ss:$20 sps:$4 sm:$0xff]  }
 0x2f1   :  { %8552 = vmatprep.subr.bf16.mxu1 %v12203_v11  ;;  %8962 = vmatprep.subr.bf16.mxu0 %v12206_v39  ;;  %v2222_v8 = vadd.f32 %v2202_v46, %v2132_v63  ;;  %v12219_v11 = vld [vmem:[#allocation14 + $0xaa0] ss:$20 sps:$4 sm:$0xff]   ;;  %v12222_v39 = vld [vmem:[#allocation14 + $0xaa8] ss:$20 sps:$4 sm:$0xff]   ;;  %v12242_v29 = vld [vmem:[#allocation14 + $0xb24] ss:$20 sps:$4 sm:$0xff]  }
 0x2f2   :  { %8582 = vmatprep.mubr.bf16.mxu1 %v14783_v61  ;;  %8992 = vmatprep.mubr.bf16.mxu0 %v14783_v61  ;;  %v2775_v32 = vadd.f32 %v2755_v27, %v2685_v54  ;;  %v2845_v51 = vrot.slane %v2825_v21, 6  ;;  %v12240_v58 = vld [vmem:[#allocation14 + $0xb20] ss:$20 sps:$4 sm:$0xff]   ;;  %v12249_v56 = vld [vmem:[#allocation14 + $0xb68] ss:$20 sps:$4 sm:$0xff]   ;;  %vm3145_vm9 = vcmp.gt.f32.partialorder %v14787_v55, 0.0 }
 0x2f3   :  { %v2988_v53 = vmul.f32 %v2915_v49, %v2222_v8  ;;  %v12243_v0 = vld [vmem:[#allocation14 + $0xb40] ss:$20 sps:$4 sm:$0xff]   ;;  %v12260_v8 = vld [vmem:[#allocation14 + $0xb9c] ss:$20 sps:$4 sm:$0xff]   ;;  %v12258_v54 = vld [vmem:[#allocation14 + $0xb98] ss:$20 sps:$4 sm:$0xff]  }
 0x2f4   :  { %8553 = vmatpush1.bf16.msra.mxu1 %v12201_v22  ;;  %8963 = vmatpush1.bf16.msra.mxu0 %v12204_v15  ;;  %v12228_v22 = vld [vmem:[#allocation14 + $0xad0] ss:$20 sps:$4 sm:$0xff]   ;;  %v12233_v15 = vld [vmem:[#allocation14 + $0xaf4] ss:$20 sps:$4 sm:$0xff]   ;;  %v12261_v27 = vld [vmem:[#allocation14 + $0xbb8] ss:$20 sps:$4 sm:$0xff]  }
 0x2f5   :  { %8554 = vmatprep.subr.bf16.mxu1 %v12209_v28  ;;  %8964 = vmatprep.subr.bf16.mxu0 %v12212_v37  ;;  %v14810_v28 = vadd.f32 %v3041_v45, %v2988_v53  ;;  %v2865_v37 = vadd.f32 %v2845_v51, %v2775_v32  ;;  %v12254_v5 = vld [vmem:[#allocation14 + $0xb74] ss:$20 sps:$4 sm:$0xff]   ;;  %v12255_v49 = vld [vmem:[#allocation14 + $0xb90] ss:$20 sps:$4 sm:$0xff]   ;;  %v12275_v45 = vld [vmem:[#allocation14 + $0xc0c] ss:$20 sps:$4 sm:$0xff]  }
 0x2f6   :  { %v12264_v21 = vld [vmem:[#allocation14 + $0xbc0] ss:$20 sps:$4 sm:$0xff]   ;;  %v12276_v51 = vld [vmem:[#allocation14 + $0xc10] ss:$20 sps:$4 sm:$0xff]   ;;  %vm3144_vm10 = vcmp.gt.f32.partialorder %v14789_v31, 0.0 }
 0x2f7   :  { %v3154_v48 = vmin.f32 %v14810_v28, 0.0  ;;  %v2991_v41 = vmul.f32 %v2927_v4, %v2865_v37  ;;  %v12267_v53 = vld [vmem:[#allocation14 + $0xbe0] ss:$20 sps:$4 sm:$0xff]   ;;  %vm3134_vm0 = vcmp.gt.f32.partialorder %v14810_v28, 0.0  ;;  %v12279_v4 = vld [vmem:[#allocation14 + $0xc30] ss:$20 sps:$4 sm:$0xff]  }
 0x2f8   :  { %8555 = vmatpush1.bf16.msra.mxu1 %v12207_v14  ;;  %8965 = vmatpush1.bf16.msra.mxu0 %v12210_v9  ;;  %v3053_v14 = vrot.slane %v13069_v3, %v13675_v43  ;;  %v12237_v9 = vld [vmem:[#allocation14 + $0xb18] ss:$20 sps:$4 sm:$0xff]   ;;  %v12270_v3 = vld [vmem:[#allocation14 + $0xbe8] ss:$20 sps:$4 sm:$0xff]  }
 0x2f9   :  { %8556 = vmatprep.subr.bf16.mxu1 %v12215_v44  ;;  %8966 = vmatprep.subr.bf16.mxu0 %v12218_v6  ;;  %v12245_v44 = vld [vmem:[#allocation14 + $0xb44] ss:$20 sps:$4 sm:$0xff]   ;;  %v12248_v6 = vld [vmem:[#allocation14 + $0xb4c] ss:$20 sps:$4 sm:$0xff]   ;;  %v3182_v63 = vmul.f32 1.442695, %v3154_v48 }
 0x2fa   :  { %v14815_v46 = vadd.f32 %v3053_v14, %v2991_v41  ;;  %v12278_v32 = vld [vmem:[#allocation14 + $0xc14] ss:$20 sps:$4 sm:$0xff]   ;;  %v12285_v41 = vld [vmem:[#allocation14 + $0xc58] ss:$20 sps:$4 sm:$0xff]  }
 0x2fb   :  { %13029 = vpow2.f32 %v3182_v63  ;;  %v12288_v14 = vld [vmem:[#allocation14 + $0xc60] ss:$20 sps:$4 sm:$0xff]   ;;  %v12294_v63 = vld [vmem:[#allocation14 + $0xc88] ss:$20 sps:$4 sm:$0xff]  }
 0x2fc   :  { %8557 = vmatpush1.bf16.msra.mxu1 %v12213_v12  ;;  %8967 = vmatpush1.bf16.msra.mxu0 %v12216_v59  ;;  %v12246_v12 = vld [vmem:[#allocation14 + $0xb48] ss:$20 sps:$4 sm:$0xff]   ;;  %v12251_v59 = vld [vmem:[#allocation14 + $0xb6c] ss:$20 sps:$4 sm:$0xff]   ;;  %v3157_v33 = vmin.f32 %v14815_v46, 0.0  ;;  %vm3137_vm1 = vcmp.gt.f32.partialorder %v14815_v46, 0.0 }
 0x2fd   :  { %8558 = vmatprep.subr.bf16.mxu1 %v12221_v1  ;;  %8968 = vmatprep.subr.bf16.mxu0 %v12224_v17  ;;  %v12252_v1 = vld [vmem:[#allocation14 + $0xb70] ss:$20 sps:$4 sm:$0xff]   ;;  %v12257_v17 = vld [vmem:[#allocation14 + $0xb94] ss:$20 sps:$4 sm:$0xff]  }
 0x2fe   :  { %v3188_v60 = vmul.f32 1.442695, %v3157_v33 }
 0x300   :  { %8559 = vmatpush1.bf16.msra.mxu1 %v12219_v11  ;;  %8969 = vmatpush1.bf16.msra.mxu0 %v12222_v39  ;;  %v12263_v11 = vld [vmem:[#allocation14 + $0xbbc] ss:$20 sps:$4 sm:$0xff]   ;;  %v12266_v39 = vld [vmem:[#allocation14 + $0xbc4] ss:$20 sps:$4 sm:$0xff]   ;;  %13031 = vpow2.f32 %v3188_v60 }
 0x301   :  { %8560 = vmatprep.subr.bf16.mxu1 %v12227_v7  ;;  %8970 = vmatprep.subr.bf16.mxu0 %v12230_v42  ;;  %v12269_v7 = vld [vmem:[#allocation14 + $0xbe4] ss:$20 sps:$4 sm:$0xff]   ;;  %v12272_v42 = vld [vmem:[#allocation14 + $0xbec] ss:$20 sps:$4 sm:$0xff]   ;;  %v12311_v60 = vld [vmem:[#allocation14 + $0xcfc] ss:$20 sps:$4 sm:$0xff]  }
 0x304   :  { %8561 = vmatpush1.bf16.msra.mxu1 %v12225_v23  ;;  %8971 = vmatpush1.bf16.msra.mxu0 %v12228_v22  ;;  %v12273_v23 = vld [vmem:[#allocation14 + $0xc08] ss:$20 sps:$4 sm:$0xff]  }
 0x305   :  { %8562 = vmatprep.subr.bf16.mxu1 %v12233_v15  ;;  %8972 = vmatprep.subr.bf16.mxu0 %v12236_v18  ;;  %v13030_v22 = vpop.eup %13029  ;;  %v12281_v15 = vld [vmem:[#allocation14 + $0xc34] ss:$20 sps:$4 sm:$0xff]   ;;  %v12284_v18 = vld [vmem:[#allocation14 + $0xc3c] ss:$20 sps:$4 sm:$0xff]  }
 0x308   :  { %8563 = vmatpush1.bf16.msra.mxu1 %v12231_v10  ;;  %8973 = vmatpush1.bf16.msra.mxu0 %v12234_v34  ;;  %v12282_v10 = vld [vmem:[#allocation14 + $0xc38] ss:$20 sps:$4 sm:$0xff]   ;;  %v12287_v34 = vld [vmem:[#allocation14 + $0xc5c] ss:$20 sps:$4 sm:$0xff]  }
 0x309   :  { %8564 = vmatprep.subr.bf16.mxu1 %v12239_v57  ;;  %8974 = vmatprep.subr.bf16.mxu0 %v12242_v29  ;;  %v12290_v57 = vld [vmem:[#allocation14 + $0xc64] ss:$20 sps:$4 sm:$0xff]   ;;  %v10349_v29 = vadd.f32 -1.0, %v13030_v22 }
 0x30a   :  { %v13032_v37 = vpop.eup %13031  ;;  %v12330_v22 = vld [vmem:[#allocation14 + $0xd78] ss:$20 sps:$4 sm:$0xff]  }
 0x30b   :  { %v10352_v48 = vadd.f32 -1.0, %v13032_v37  ;;  %v12333_v37 = vld [vmem:[#allocation14 + $0xd98] ss:$20 sps:$4 sm:$0xff]  }
 0x30c   :  { %8565 = vmatpush1.bf16.msra.mxu1 %v12237_v9  ;;  %8975 = vmatpush1.bf16.msra.mxu0 %v12240_v58  ;;  %v12293_v9 = vld [vmem:[#allocation14 + $0xc84] ss:$20 sps:$4 sm:$0xff]   ;;  %v12296_v58 = vld [vmem:[#allocation14 + $0xc8c] ss:$20 sps:$4 sm:$0xff]  }
 0x30d   :  { %8566 = vmatprep.subr.bf16.mxu1 %v12245_v44  ;;  %8976 = vmatprep.subr.bf16.mxu0 %v12248_v6  ;;  %v3234_v44 = vsel %vm3134_vm0, %v14810_v28, %v10349_v29  ;;  %v12291_v6 = vld [vmem:[#allocation14 + $0xc80] ss:$20 sps:$4 sm:$0xff]   ;;  %v12300_v28 = vld [vmem:[#allocation14 + $0xcb0] ss:$20 sps:$4 sm:$0xff]  }
 0x30e   :  { %v12339_v29 = vld [vmem:[#allocation14 + $0xdc0] ss:$20 sps:$4 sm:$0xff]  }
 0x310   :  { %8567 = vmatpush1.bf16.msra.mxu1 %v12243_v0  ;;  %8977 = vmatpush1.bf16.msra.mxu0 %v12246_v12  ;;  %v3237_v0 = vsel %vm3137_vm1, %v14815_v46, %v10352_v48  ;;  %v12299_v12 = vld [vmem:[#allocation14 + $0xcac] ss:$20 sps:$4 sm:$0xff]   ;;  %v12305_v46 = vld [vmem:[#allocation14 + $0xcd4] ss:$20 sps:$4 sm:$0xff]  }
 0x311   :  { %8568 = vmatprep.subr.bf16.mxu1 %v12251_v59  ;;  %8978 = vmatprep.subr.bf16.mxu0 %v12254_v5  ;;  %v12302_v59 = vld [vmem:[#allocation14 + $0xcb4] ss:$20 sps:$4 sm:$0xff]   ;;  %v14824_v5 = vpack.c.bf16 %v3234_v44, %v3234_v44  ;;  %v14826_v33 = vpack.c.bf16 %v3237_v0, %v3237_v0  ;;  %v12344_v48 = vld [vmem:[#allocation14 + $0xdcc] ss:$20 sps:$4 sm:$0xff]  }
 0x312   :  { %v12350_v44 = vld [vmem:[#allocation14 + $0xdf4] ss:$20 sps:$4 sm:$0xff]  }
 0x314   :  { %8569 = vmatpush1.bf16.msra.mxu1 %v12249_v56  ;;  %8979 = vmatpush1.bf16.msra.mxu0 %v12252_v1  ;;  %v12297_v56 = vld [vmem:[#allocation14 + $0xca8] ss:$20 sps:$4 sm:$0xff]  }
 0x315   :  { %8570 = vmatprep.subr.bf16.mxu1 %v12257_v17  ;;  %8980 = vmatprep.subr.bf16.mxu0 %v12260_v8  ;;  %v12308_v1 = vld [vmem:[#allocation14 + $0xcdc] ss:$20 sps:$4 sm:$0xff]   ;;  %v12306_v8 = vld [vmem:[#allocation14 + $0xcd8] ss:$20 sps:$4 sm:$0xff]  }
 0x316   :  { %v12303_v17 = vld [vmem:[#allocation14 + $0xcd0] ss:$20 sps:$4 sm:$0xff]  }
 0x318   :  { %8571 = vmatpush1.bf16.msra.mxu1 %v12255_v49  ;;  %8981 = vmatpush1.bf16.msra.mxu0 %v12258_v54  ;;  %v12309_v49 = vld [vmem:[#allocation14 + $0xcf8] ss:$20 sps:$4 sm:$0xff]  }
 0x319   :  { %8572 = vmatprep.subr.bf16.mxu1 %v12263_v11  ;;  %8982 = vmatprep.subr.bf16.mxu0 %v12266_v39  ;;  %v12314_v54 = vld [vmem:[#allocation14 + $0xd04] ss:$20 sps:$4 sm:$0xff]   ;;  %v12312_v11 = vld [vmem:[#allocation14 + $0xd00] ss:$20 sps:$4 sm:$0xff]  }
 0x31a   :  { %v12317_v39 = vld [vmem:[#allocation14 + $0xd24] ss:$20 sps:$4 sm:$0xff]  }
 0x31c   :  { %8573 = vmatpush1.bf16.msra.mxu1 %v12261_v27  ;;  %8983 = vmatpush1.bf16.msra.mxu0 %v12264_v21  ;;  %v12315_v27 = vld [vmem:[#allocation14 + $0xd20] ss:$20 sps:$4 sm:$0xff]  }
 0x31d   :  { %8574 = vmatprep.subr.bf16.mxu1 %v12269_v7  ;;  %8984 = vmatprep.subr.bf16.mxu0 %v12272_v42  ;;  %v12320_v21 = vld [vmem:[#allocation14 + $0xd2c] ss:$20 sps:$4 sm:$0xff]   ;;  %v12318_v7 = vld [vmem:[#allocation14 + $0xd28] ss:$20 sps:$4 sm:$0xff]  }
 0x31e   :  { %v12323_v42 = vld [vmem:[#allocation14 + $0xd4c] ss:$20 sps:$4 sm:$0xff]  }
 0x320   :  { %8575 = vmatpush1.bf16.msra.mxu1 %v12267_v53  ;;  %8985 = vmatpush1.bf16.msra.mxu0 %v12270_v3  ;;  %v12321_v53 = vld [vmem:[#allocation14 + $0xd48] ss:$20 sps:$4 sm:$0xff]  }
 0x321   :  { %8576 = vmatprep.subr.bf16.mxu1 %v12275_v45  ;;  %8986 = vmatprep.subr.bf16.mxu0 %v12278_v32  ;;  %v12326_v3 = vld [vmem:[#allocation14 + $0xd54] ss:$20 sps:$4 sm:$0xff]   ;;  %v12324_v45 = vld [vmem:[#allocation14 + $0xd50] ss:$20 sps:$4 sm:$0xff]  }
 0x322   :  { %v12329_v32 = vld [vmem:[#allocation14 + $0xd74] ss:$20 sps:$4 sm:$0xff]  }
 0x324   :  { %8577 = vmatpush1.bf16.msra.mxu1 %v12273_v23  ;;  %8987 = vmatpush1.bf16.msra.mxu0 %v12276_v51  ;;  %v12327_v23 = vld [vmem:[#allocation14 + $0xd70] ss:$20 sps:$4 sm:$0xff]  }
 0x325   :  { %8578 = vmatprep.subr.bf16.mxu1 %v12281_v15  ;;  %8988 = vmatprep.subr.bf16.mxu0 %v12284_v18  ;;  %v12332_v51 = vld [vmem:[#allocation14 + $0xd7c] ss:$20 sps:$4 sm:$0xff]   ;;  %v3156_v18 = vmin.f32 %v14429_v2, 0.0 }
 0x326   :  { %v12335_v15 = vld [vmem:[#allocation14 + $0xd9c] ss:$20 sps:$4 sm:$0xff]  }
 0x328   :  { %8579 = vmatpush1.bf16.msra.mxu1 %v12279_v4  ;;  %8989 = vmatpush1.bf16.msra.mxu0 %v12282_v10  ;;  %v12338_v4 = vld [vmem:[#allocation14 + $0xda4] ss:$20 sps:$4 sm:$0xff]   ;;  %v12336_v10 = vld [vmem:[#allocation14 + $0xda0] ss:$20 sps:$4 sm:$0xff]  }
 0x329   :  { %8580 = vmatprep.subr.bf16.mxu1 %v12287_v34  ;;  %8990 = vmatprep.subr.bf16.mxu0 %v12290_v57  ;;  %v12341_v34 = vld [vmem:[#allocation14 + $0xdc4] ss:$20 sps:$4 sm:$0xff]   ;;  %v3186_v57 = vmul.f32 1.442695, %v3156_v18 }
 0x32a   :  { %v12386_v18 = vld [vmem:[#allocation14 + $0xee4] ss:$20 sps:$4 sm:$0xff]  }
 0x32b   :  { %13033 = vpow2.f32 %v3186_v57  ;;  %v12387_v57 = vld [vmem:[#allocation14 + $0xf00] ss:$20 sps:$4 sm:$0xff]  }
 0x32c   :  { %8581 = vmatpush1.bf16.msra.mxu1 %v12285_v41  ;;  %8991 = vmatpush1.bf16.msra.mxu0 %v12288_v14  ;;  %v12342_v41 = vld [vmem:[#allocation14 + $0xdc8] ss:$20 sps:$4 sm:$0xff]   ;;  %v12347_v14 = vld [vmem:[#allocation14 + $0xdec] ss:$20 sps:$4 sm:$0xff]  }
 0x32d   :  { %8591 = vmatprep.subr.bf16.mxu1 %v12293_v9  ;;  %9001 = vmatprep.subr.bf16.mxu0 %v12296_v58  ;;  %v3159_v9 = vmin.f32 %v14474_v16, 0.0  ;;  %v12345_v58 = vld [vmem:[#allocation14 + $0xde8] ss:$20 sps:$4 sm:$0xff]  }
 0x32f   :  { %8583 = vmatmul.mubr.bf16.vlgmr.msra.gmra.mrb[8].mxu1 %v14824_v5  ;;  %8993 = vmatmul.mubr.bf16.vlgmr.msra.gmra.mrb[12].mxu0 %v14824_v5  ;;  %v3192_v0 = vmul.f32 1.442695, %v3159_v9 }
 0x330   :  { %8592 = vmatpush1.bf16.msra.mxu1 %v12291_v6  ;;  %8623 = vmatprep.mubr.bf16.mxu1 %v14826_v33  ;;  %v12348_v6 = vld [vmem:[#allocation14 + $0xdf0] ss:$20 sps:$4 sm:$0xff]  }
 0x331   :  { %9002 = vmatpush1.bf16.msra.mxu0 %v12294_v63  ;;  %9033 = vmatprep.mubr.bf16.mxu0 %v14826_v33  ;;  %v12353_v63 = vld [vmem:[#allocation14 + $0xe14] ss:$20 sps:$4 sm:$0xff]   ;;  %13035 = vpow2.f32 %v3192_v0  ;;  %v12402_v0 = vld [vmem:[#allocation14 + $0xf58] ss:$20 sps:$4 sm:$0xff]  }
 0x332   :  { %8593 = vmatprep.subr.bf16.mxu1 %v12299_v12  ;;  %9003 = vmatprep.subr.bf16.mxu0 %v12302_v59  ;;  %v12351_v12 = vld [vmem:[#allocation14 + $0xe10] ss:$20 sps:$4 sm:$0xff]  }
 0x333   :  { %v12356_v59 = vld [vmem:[#allocation14 + $0xe1c] ss:$20 sps:$4 sm:$0xff]  }
 0x334   :  { %8594 = vmatpush1.bf16.msra.mxu1 %v12297_v56  ;;  %v12354_v56 = vld [vmem:[#allocation14 + $0xe18] ss:$20 sps:$4 sm:$0xff]  }
 0x335   :  { %9004 = vmatpush1.bf16.msra.mxu0 %v12300_v28  ;;  %8595 = vmatprep.subr.bf16.mxu1 %v12305_v46  ;;  %v12359_v28 = vld [vmem:[#allocation14 + $0xe3c] ss:$20 sps:$4 sm:$0xff]   ;;  %v12357_v46 = vld [vmem:[#allocation14 + $0xe38] ss:$20 sps:$4 sm:$0xff]  }
 0x336   :  { %9005 = vmatprep.subr.bf16.mxu0 %v12308_v1  ;;  %v12362_v1 = vld [vmem:[#allocation14 + $0xe44] ss:$20 sps:$4 sm:$0xff]  }
 0x338   :  { %8596 = vmatpush1.bf16.msra.mxu1 %v12303_v17  ;;  %v12360_v17 = vld [vmem:[#allocation14 + $0xe40] ss:$20 sps:$4 sm:$0xff]  }
 0x339   :  { %9006 = vmatpush1.bf16.msra.mxu0 %v12306_v8  ;;  %8597 = vmatprep.subr.bf16.mxu1 %v12311_v60  ;;  %v12365_v8 = vld [vmem:[#allocation14 + $0xe64] ss:$20 sps:$4 sm:$0xff]   ;;  %v12363_v60 = vld [vmem:[#allocation14 + $0xe60] ss:$20 sps:$4 sm:$0xff]  }
 0x33a   :  { %9007 = vmatprep.subr.bf16.mxu0 %v12314_v54  ;;  %v12366_v54 = vld [vmem:[#allocation14 + $0xe68] ss:$20 sps:$4 sm:$0xff]  }
 0x33c   :  { %8598 = vmatpush1.bf16.msra.mxu1 %v12309_v49  ;;  %v12368_v49 = vld [vmem:[#allocation14 + $0xe6c] ss:$20 sps:$4 sm:$0xff]  }
 0x33d   :  { %9008 = vmatpush1.bf16.msra.mxu0 %v12312_v11  ;;  %8599 = vmatprep.subr.bf16.mxu1 %v12317_v39  ;;  %v12371_v11 = vld [vmem:[#allocation14 + $0xe8c] ss:$20 sps:$4 sm:$0xff]   ;;  %v12369_v39 = vld [vmem:[#allocation14 + $0xe88] ss:$20 sps:$4 sm:$0xff]  }
 0x33e   :  { %9009 = vmatprep.subr.bf16.mxu0 %v12320_v21  ;;  %v13034_v21 = vpop.eup %13033 }
 0x340   :  { %8600 = vmatpush1.bf16.msra.mxu1 %v12315_v27  ;;  %v12374_v27 = vld [vmem:[#allocation14 + $0xe94] ss:$20 sps:$4 sm:$0xff]  }
 0x341   :  { %9010 = vmatpush1.bf16.msra.mxu0 %v12318_v7  ;;  %8601 = vmatprep.subr.bf16.mxu1 %v12323_v42  ;;  %v12372_v7 = vld [vmem:[#allocation14 + $0xe90] ss:$20 sps:$4 sm:$0xff]   ;;  %v12377_v42 = vld [vmem:[#allocation14 + $0xeb4] ss:$20 sps:$4 sm:$0xff]  }
 0x342   :  { %9011 = vmatprep.subr.bf16.mxu0 %v12326_v3  ;;  %v12375_v3 = vld [vmem:[#allocation14 + $0xeb0] ss:$20 sps:$4 sm:$0xff]  }
 0x344   :  { %8602 = vmatpush1.bf16.msra.mxu1 %v12321_v53  ;;  %v13036_v53 = vpop.eup %13035 }
 0x345   :  { %9012 = vmatpush1.bf16.msra.mxu0 %v12324_v45  ;;  %8603 = vmatprep.subr.bf16.mxu1 %v12329_v32  ;;  %v12380_v45 = vld [vmem:[#allocation14 + $0xebc] ss:$20 sps:$4 sm:$0xff]   ;;  %v12378_v32 = vld [vmem:[#allocation14 + $0xeb8] ss:$20 sps:$4 sm:$0xff]  }
 0x346   :  { %9013 = vmatprep.subr.bf16.mxu0 %v12332_v51  ;;  %v10351_v51 = vadd.f32 -1.0, %v13034_v21  ;;  %v12423_v21 = vld [vmem:[#allocation14 + $0xff0] ss:$20 sps:$4 sm:$0xff]  }
 0x348   :  { %8604 = vmatpush1.bf16.msra.mxu1 %v12327_v23  ;;  %v12383_v23 = vld [vmem:[#allocation14 + $0xedc] ss:$20 sps:$4 sm:$0xff]  }
 0x349   :  { %9014 = vmatpush1.bf16.msra.mxu0 %v12330_v22  ;;  %8605 = vmatprep.subr.bf16.mxu1 %v12335_v15  ;;  %v10354_v22 = vadd.f32 -1.0, %v13036_v53  ;;  %v12381_v15 = vld [vmem:[#allocation14 + $0xed8] ss:$20 sps:$4 sm:$0xff]  }
 0x34a   :  { %9015 = vmatprep.subr.bf16.mxu0 %v12338_v4  ;;  %v12389_v4 = vld [vmem:[#allocation14 + $0xf04] ss:$20 sps:$4 sm:$0xff]  }
 0x34b   :  { %v12434_v53 = vld [vmem:[#allocation14 + $0x1024] ss:$20 sps:$4 sm:$0xff]  }
 0x34c   :  { %8606 = vmatpush1.bf16.msra.mxu1 %v12333_v37  ;;  %v12384_v37 = vld [vmem:[#allocation14 + $0xee0] ss:$20 sps:$4 sm:$0xff]  }
 0x34d   :  { %9016 = vmatpush1.bf16.msra.mxu0 %v12336_v10  ;;  %8607 = vmatprep.subr.bf16.mxu1 %v12341_v34  ;;  %v3236_v10 = vsel %vm3136_vm2, %v14429_v2, %v10351_v51  ;;  %v12392_v34 = vld [vmem:[#allocation14 + $0xf0c] ss:$20 sps:$4 sm:$0xff]   ;;  %v12393_v2 = vld [vmem:[#allocation14 + $0xf28] ss:$20 sps:$4 sm:$0xff]  }
 0x34e   :  { %9017 = vmatprep.subr.bf16.mxu0 %v12344_v48  ;;  %v14838_v48 = vpack.c.bf16 %v3236_v10, %v3236_v10  ;;  %v12435_v51 = vld [vmem:[#allocation14 + $0x1040] ss:$20 sps:$4 sm:$0xff]  }
 0x34f   :  { %v12449_v10 = vld [vmem:[#allocation14 + $0x1094] ss:$20 sps:$4 sm:$0xff]  }
 0x350   :  { %8608 = vmatpush1.bf16.msra.mxu1 %v12339_v29  ;;  %v3239_v29 = vsel %vm3139_vm3, %v14474_v16, %v10354_v22  ;;  %v12396_v16 = vld [vmem:[#allocation14 + $0xf30] ss:$20 sps:$4 sm:$0xff]   ;;  %v12438_v22 = vld [vmem:[#allocation14 + $0x1048] ss:$20 sps:$4 sm:$0xff]  }
 0x351   :  { %9018 = vmatpush1.bf16.msra.mxu0 %v12342_v41  ;;  %8609 = vmatprep.subr.bf16.mxu1 %v12347_v14  ;;  %v12390_v41 = vld [vmem:[#allocation14 + $0xf08] ss:$20 sps:$4 sm:$0xff]   ;;  %v12395_v14 = vld [vmem:[#allocation14 + $0xf2c] ss:$20 sps:$4 sm:$0xff]   ;;  %v14841_v9 = vpack.c.bf16 %v3239_v29, %v3239_v29  ;;  %v3161_v29 = vmin.f32 %v14547_v62, 0.0 }
 0x352   :  { %9019 = vmatprep.subr.bf16.mxu0 %v12350_v44  ;;  %v12401_v44 = vld [vmem:[#allocation14 + $0xf54] ss:$20 sps:$4 sm:$0xff]  }
 0x354   :  { %8610 = vmatpush1.bf16.msra.mxu1 %v12345_v58  ;;  %v12398_v58 = vld [vmem:[#allocation14 + $0xf34] ss:$20 sps:$4 sm:$0xff]  }
 0x355   :  { %9020 = vmatpush1.bf16.msra.mxu0 %v12348_v6  ;;  %8611 = vmatprep.subr.bf16.mxu1 %v12353_v63  ;;  %v12404_v6 = vld [vmem:[#allocation14 + $0xf5c] ss:$20 sps:$4 sm:$0xff]  }
 0x356   :  { %9021 = vmatprep.subr.bf16.mxu0 %v12356_v59  ;;  %v12399_v63 = vld [vmem:[#allocation14 + $0xf50] ss:$20 sps:$4 sm:$0xff]  }
 0x357   :  { %v12410_v59 = vld [vmem:[#allocation14 + $0xf84] ss:$20 sps:$4 sm:$0xff]  }
 0x358   :  { %8612 = vmatpush1.bf16.msra.mxu1 %v12351_v12  ;;  %v12407_v12 = vld [vmem:[#allocation14 + $0xf7c] ss:$20 sps:$4 sm:$0xff]  }
 0x359   :  { %9022 = vmatpush1.bf16.msra.mxu0 %v12354_v56  ;;  %8613 = vmatprep.subr.bf16.mxu1 %v12359_v28  ;;  %v12405_v56 = vld [vmem:[#allocation14 + $0xf78] ss:$20 sps:$4 sm:$0xff]   ;;  %v12408_v28 = vld [vmem:[#allocation14 + $0xf80] ss:$20 sps:$4 sm:$0xff]  }
 0x35a   :  { %9023 = vmatprep.subr.bf16.mxu0 %v12362_v1  ;;  %v12416_v1 = vld [vmem:[#allocation14 + $0xfac] ss:$20 sps:$4 sm:$0xff]  }
 0x35c   :  { %8614 = vmatpush1.bf16.msra.mxu1 %v12357_v46  ;;  %v12413_v46 = vld [vmem:[#allocation14 + $0xfa4] ss:$20 sps:$4 sm:$0xff]  }
 0x35d   :  { %9024 = vmatpush1.bf16.msra.mxu0 %v12360_v17  ;;  %8615 = vmatprep.subr.bf16.mxu1 %v12365_v8  ;;  %v12411_v17 = vld [vmem:[#allocation14 + $0xfa0] ss:$20 sps:$4 sm:$0xff]   ;;  %v12414_v8 = vld [vmem:[#allocation14 + $0xfa8] ss:$20 sps:$4 sm:$0xff]  }
 0x35e   :  { %9025 = vmatprep.subr.bf16.mxu0 %v12368_v49  ;;  %v12422_v49 = vld [vmem:[#allocation14 + $0xfd4] ss:$20 sps:$4 sm:$0xff]  }
 0x360   :  { %8616 = vmatpush1.bf16.msra.mxu1 %v12363_v60  ;;  %v12419_v60 = vld [vmem:[#allocation14 + $0xfcc] ss:$20 sps:$4 sm:$0xff]  }
 0x361   :  { %9026 = vmatpush1.bf16.msra.mxu0 %v12366_v54  ;;  %8617 = vmatprep.subr.bf16.mxu1 %v12371_v11  ;;  %v12417_v54 = vld [vmem:[#allocation14 + $0xfc8] ss:$20 sps:$4 sm:$0xff]   ;;  %v12420_v11 = vld [vmem:[#allocation14 + $0xfd0] ss:$20 sps:$4 sm:$0xff]  }
 0x362   :  { %9027 = vmatprep.subr.bf16.mxu0 %v12374_v27  ;;  %v12428_v27 = vld [vmem:[#allocation14 + $0xffc] ss:$20 sps:$4 sm:$0xff]  }
 0x364   :  { %8618 = vmatpush1.bf16.msra.mxu1 %v12369_v39  ;;  %v12425_v39 = vld [vmem:[#allocation14 + $0xff4] ss:$20 sps:$4 sm:$0xff]  }
 0x365   :  { %9028 = vmatpush1.bf16.msra.mxu0 %v12372_v7  ;;  %8619 = vmatprep.subr.bf16.mxu1 %v12377_v42  ;;  %v12426_v7 = vld [vmem:[#allocation14 + $0xff8] ss:$20 sps:$4 sm:$0xff]   ;;  %v12431_v42 = vld [vmem:[#allocation14 + $0x101c] ss:$20 sps:$4 sm:$0xff]  }
 0x366   :  { %9029 = vmatprep.subr.bf16.mxu0 %v12380_v45  ;;  %v12432_v45 = vld [vmem:[#allocation14 + $0x1020] ss:$20 sps:$4 sm:$0xff]  }
 0x368   :  { %8620 = vmatpush1.bf16.msra.mxu1 %v12375_v3  ;;  %v12429_v3 = vld [vmem:[#allocation14 + $0x1018] ss:$20 sps:$4 sm:$0xff]  }
 0x369   :  { %9030 = vmatpush1.bf16.msra.mxu0 %v12378_v32  ;;  %8621 = vmatprep.subr.bf16.mxu1 %v12383_v23  ;;  %v12437_v32 = vld [vmem:[#allocation14 + $0x1044] ss:$20 sps:$4 sm:$0xff]   ;;  %v12440_v23 = vld [vmem:[#allocation14 + $0x104c] ss:$20 sps:$4 sm:$0xff]  }
 0x36a   :  { %9031 = vmatprep.subr.bf16.mxu0 %v12386_v18  ;;  %v12446_v18 = vld [vmem:[#allocation14 + $0x1074] ss:$20 sps:$4 sm:$0xff]  }
 0x36c   :  { %8622 = vmatpush1.bf16.msra.mxu1 %v12381_v15  ;;  %v12443_v15 = vld [vmem:[#allocation14 + $0x106c] ss:$20 sps:$4 sm:$0xff]  }
 0x36d   :  { %9032 = vmatpush1.bf16.msra.mxu0 %v12384_v37  ;;  %8632 = vmatprep.subr.bf16.mxu1 %v12389_v4  ;;  %v12441_v37 = vld [vmem:[#allocation14 + $0x1068] ss:$20 sps:$4 sm:$0xff]   ;;  %v12444_v4 = vld [vmem:[#allocation14 + $0x1070] ss:$20 sps:$4 sm:$0xff]  }
 0x36e   :  { %9042 = vmatprep.subr.bf16.mxu0 %v12392_v34  ;;  %v3158_v34 = vmin.f32 %v14509_v40, 0.0 }
 0x36f   :  { %8624 = vmatmul.mubr.bf16.vlgmr.msra.gmra.mrb[8].mxu1 %v14838_v48 }
 0x370   :  { %9034 = vmatmul.mubr.bf16.vlgmr.msra.gmra.mrb[12].mxu0 %v14838_v48  ;;  %8633 = vmatpush1.bf16.msra.mxu1 %v12387_v57  ;;  %v12452_v57 = vld [vmem:[#allocation14 + $0x109c] ss:$20 sps:$4 sm:$0xff]  }
 0x371   :  { %8664 = vmatprep.mubr.bf16.mxu1 %v14841_v9  ;;  %9043 = vmatpush1.bf16.msra.mxu0 %v12390_v41  ;;  %v12447_v41 = vld [vmem:[#allocation14 + $0x1090] ss:$20 sps:$4 sm:$0xff]  }
 0x372   :  { %9074 = vmatprep.mubr.bf16.mxu0 %v14841_v9  ;;  %8634 = vmatprep.subr.bf16.mxu1 %v12395_v14  ;;  %v12450_v14 = vld [vmem:[#allocation14 + $0x1098] ss:$20 sps:$4 sm:$0xff]  }
 0x373   :  { %9044 = vmatprep.subr.bf16.mxu0 %v12398_v58  ;;  %v12455_v58 = vld [vmem:[#allocation14 + $0x10bc] ss:$20 sps:$4 sm:$0xff]  }
 0x374   :  { %8635 = vmatpush1.bf16.msra.mxu1 %v12393_v2  ;;  %v3190_v2 = vmul.f32 1.442695, %v3158_v34 }
 0x375   :  { %9045 = vmatpush1.bf16.msra.mxu0 %v12396_v16  ;;  %8636 = vmatprep.subr.bf16.mxu1 %v12401_v44  ;;  %v12458_v16 = vld [vmem:[#allocation14 + $0x10c4] ss:$20 sps:$4 sm:$0xff]   ;;  %v3196_v44 = vmul.f32 1.442695, %v3161_v29 }
 0x376   :  { %9046 = vmatprep.subr.bf16.mxu0 %v12404_v6  ;;  %v12453_v6 = vld [vmem:[#allocation14 + $0x10b8] ss:$20 sps:$4 sm:$0xff]   ;;  %13037 = vpow2.f32 %v3190_v2  ;;  %v12486_v2 = vld [vmem:[#allocation14 + $0x1188] ss:$20 sps:$4 sm:$0xff]  }
 0x377   :  { %13039 = vpow2.f32 %v3196_v44 }
 0x378   :  { %8637 = vmatpush1.bf16.msra.mxu1 %v12399_v63  ;;  %v12456_v63 = vld [vmem:[#allocation14 + $0x10c0] ss:$20 sps:$4 sm:$0xff]  }
 0x379   :  { %9047 = vmatpush1.bf16.msra.mxu0 %v12402_v0  ;;  %8638 = vmatprep.subr.bf16.mxu1 %v12407_v12  ;;  %v12461_v0 = vld [vmem:[#allocation14 + $0x10e4] ss:$20 sps:$4 sm:$0xff]   ;;  %v12464_v12 = vld [vmem:[#allocation14 + $0x10ec] ss:$20 sps:$4 sm:$0xff]  }
 0x37a   :  { %9048 = vmatprep.subr.bf16.mxu0 %v12410_v59  ;;  %v12459_v59 = vld [vmem:[#allocation14 + $0x10e0] ss:$20 sps:$4 sm:$0xff]  }
 0x37c   :  { %8639 = vmatpush1.bf16.msra.mxu1 %v12405_v56  ;;  %v12462_v56 = vld [vmem:[#allocation14 + $0x10e8] ss:$20 sps:$4 sm:$0xff]  }
 0x37d   :  { %9049 = vmatpush1.bf16.msra.mxu0 %v12408_v28  ;;  %8640 = vmatprep.subr.bf16.mxu1 %v12413_v46  ;;  %v12467_v28 = vld [vmem:[#allocation14 + $0x110c] ss:$20 sps:$4 sm:$0xff]   ;;  %v12470_v46 = vld [vmem:[#allocation14 + $0x1114] ss:$20 sps:$4 sm:$0xff]  }
 0x37e   :  { %9050 = vmatprep.subr.bf16.mxu0 %v12416_v1  ;;  %v14848_v1 = vld [vmem:[#allocation10 + $0x88] sm:$0xff] }
 0x37f   :  { %v2485_v29 = vrot.slane %v14848_v1, %v13675_v43 }
 0x380   :  { %8641 = vmatpush1.bf16.msra.mxu1 %v12411_v17  ;;  %v12465_v17 = vld [vmem:[#allocation14 + $0x1108] ss:$20 sps:$4 sm:$0xff]  }
 0x381   :  { %9051 = vmatpush1.bf16.msra.mxu0 %v12414_v8  ;;  %8642 = vmatprep.subr.bf16.mxu1 %v12419_v60  ;;  %v12468_v8 = vld [vmem:[#allocation14 + $0x1110] ss:$20 sps:$4 sm:$0xff]   ;;  %v12473_v60 = vld [vmem:[#allocation14 + $0x1134] ss:$20 sps:$4 sm:$0xff]  }
 0x382   :  { %9052 = vmatprep.subr.bf16.mxu0 %v12422_v49  ;;  %v12476_v49 = vld [vmem:[#allocation14 + $0x113c] ss:$20 sps:$4 sm:$0xff]  }
 0x384   :  { %8643 = vmatpush1.bf16.msra.mxu1 %v12417_v54  ;;  %v13038_v54 = vpop.eup %13037 }
 0x385   :  { %9053 = vmatpush1.bf16.msra.mxu0 %v12420_v11  ;;  %8644 = vmatprep.subr.bf16.mxu1 %v12425_v39  ;;  %v2305_v11 = vrot.slane %v14848_v1, %v13662_v36  ;;  %v12471_v39 = vld [vmem:[#allocation14 + $0x1130] ss:$20 sps:$4 sm:$0xff]  }
 0x386   :  { %9054 = vmatprep.subr.bf16.mxu0 %v12428_v27  ;;  %v13040_v27 = vpop.eup %13039 }
 0x388   :  { %8645 = vmatpush1.bf16.msra.mxu1 %v12423_v21  ;;  %v12474_v21 = vld [vmem:[#allocation14 + $0x1138] ss:$20 sps:$4 sm:$0xff]  }
 0x389   :  { %9055 = vmatpush1.bf16.msra.mxu0 %v12426_v7  ;;  %8646 = vmatprep.subr.bf16.mxu1 %v12431_v42  ;;  %v12479_v7 = vld [vmem:[#allocation14 + $0x115c] ss:$20 sps:$4 sm:$0xff]   ;;  %v12482_v42 = vld [vmem:[#allocation14 + $0x1164] ss:$20 sps:$4 sm:$0xff]  }
 0x38a   :  { %9056 = vmatprep.subr.bf16.mxu0 %v12434_v53  ;;  %v10353_v53 = vadd.f32 -1.0, %v13038_v54  ;;  %v12503_v54 = vld [vmem:[#allocation14 + $0x11fc] ss:$20 sps:$4 sm:$0xff]  }
 0x38c   :  { %8647 = vmatpush1.bf16.msra.mxu1 %v12429_v3  ;;  %v2255_v3 = vrot.slane %v14848_v1, %v13659_v35 }
 0x38d   :  { %9057 = vmatpush1.bf16.msra.mxu0 %v12432_v45  ;;  %8648 = vmatprep.subr.bf16.mxu1 %v12437_v32  ;;  %v15104_v45 = vld [vmem:[#allocation38_spill] sm:$0xff] }
 0x38e   :  { %9058 = vmatprep.subr.bf16.mxu0 %v12440_v23  ;;  %v2321_v32 = vmul.f32 %v2305_v11, %v15104_v45  ;;  %v2395_v23 = vrot.slane %v14848_v1, %v13706_v19  ;;  %v2501_v44 = vmul.f32 %v2485_v29, %v15104_v45  ;;  %v12506_v11 = vld [vmem:[#allocation14 + $0x1204] ss:$20 sps:$4 sm:$0xff]  }
 0x390   :  { %8649 = vmatpush1.bf16.msra.mxu1 %v12435_v51  ;;  %v12477_v51 = vld [vmem:[#allocation14 + $0x1158] ss:$20 sps:$4 sm:$0xff]   ;;  %v2341_v34 = vrot.slane %v2321_v32, 2 }
 0x391   :  { %9059 = vmatpush1.bf16.msra.mxu0 %v12438_v22  ;;  %8650 = vmatprep.subr.bf16.mxu1 %v12443_v15  ;;  %v10356_v22 = vadd.f32 -1.0, %v13040_v27  ;;  %v12480_v15 = vld [vmem:[#allocation14 + $0x1160] ss:$20 sps:$4 sm:$0xff]  }
 0x392   :  { %9060 = vmatprep.subr.bf16.mxu0 %v12446_v18  ;;  %v12485_v18 = vld [vmem:[#allocation14 + $0x1184] ss:$20 sps:$4 sm:$0xff]   ;;  %v12512_v32 = vld [vmem:[#allocation14 + $0x122c] ss:$20 sps:$4 sm:$0xff]  }
 0x393   :  { %v15105_v27 = vld [vmem:[#allocation41_spill] sm:$0xff] }
 0x394   :  { %8651 = vmatpush1.bf16.msra.mxu1 %v12441_v37  ;;  %v3238_v37 = vsel %vm3138_vm4, %v14509_v40, %v10353_v53  ;;  %v12491_v40 = vld [vmem:[#allocation14 + $0x11ac] ss:$20 sps:$4 sm:$0xff]  }
 0x395   :  { %9061 = vmatpush1.bf16.msra.mxu0 %v12444_v4  ;;  %8652 = vmatprep.subr.bf16.mxu1 %v12449_v10  ;;  %v12488_v4 = vld [vmem:[#allocation14 + $0x118c] ss:$20 sps:$4 sm:$0xff]   ;;  %v2271_v10 = vmul.f32 %v2255_v3, %v15104_v45 }
 0x396   :  { %9062 = vmatprep.subr.bf16.mxu0 %v12452_v57  ;;  %v2411_v57 = vmul.f32 %v2395_v23, %v15104_v45  ;;  %v12501_v53 = vld [vmem:[#allocation14 + $0x11f8] ss:$20 sps:$4 sm:$0xff]   ;;  %v12504_v3 = vld [vmem:[#allocation14 + $0x1200] ss:$20 sps:$4 sm:$0xff]  }
 0x397   :  { %v12509_v45 = vld [vmem:[#allocation14 + $0x1224] ss:$20 sps:$4 sm:$0xff]  }
 0x398   :  { %8653 = vmatpush1.bf16.msra.mxu1 %v12447_v41  ;;  %v12483_v41 = vld [vmem:[#allocation14 + $0x1180] ss:$20 sps:$4 sm:$0xff]  }
 0x399   :  { %9063 = vmatpush1.bf16.msra.mxu0 %v12450_v14  ;;  %8654 = vmatprep.subr.bf16.mxu1 %v12455_v58  ;;  %v3241_v14 = vsel %vm3141_vm5, %v14547_v62, %v10356_v22  ;;  %v14865_v58 = vpack.c.bf16 %v3238_v37, %v3238_v37  ;;  %v12489_v62 = vld [vmem:[#allocation14 + $0x11a8] ss:$20 sps:$4 sm:$0xff]  }
 0x39a   :  { %9064 = vmatprep.subr.bf16.mxu0 %v12458_v16  ;;  %v2431_v16 = vrot.slane %v2411_v57, 4  ;;  %v12510_v37 = vld [vmem:[#allocation14 + $0x1228] ss:$20 sps:$4 sm:$0xff]  }
 0x39c   :  { %8655 = vmatpush1.bf16.msra.mxu1 %v12453_v6  ;;  %v14869_v6 = vpack.c.bf16 %v3241_v14, %v3241_v14  ;;  %v12516_v14 = vld [vmem:[#allocation14 + $0x1250] ss:$20 sps:$4 sm:$0xff]  }
 0x39d   :  { %9065 = vmatpush1.bf16.msra.mxu0 %v12456_v63  ;;  %8656 = vmatprep.subr.bf16.mxu1 %v12461_v0  ;;  %v12494_v63 = vld [vmem:[#allocation14 + $0x11b4] ss:$20 sps:$4 sm:$0xff]   ;;  %v2361_v0 = vadd.f32 %v2341_v34, %v2271_v10 }
 0x39e   :  { %9066 = vmatprep.subr.bf16.mxu0 %v12464_v12  ;;  %v12492_v12 = vld [vmem:[#allocation14 + $0x11b0] ss:$20 sps:$4 sm:$0xff]   ;;  %v12518_v10 = vld [vmem:[#allocation14 + $0x1254] ss:$20 sps:$4 sm:$0xff]  }
 0x3a0   :  { %8657 = vmatpush1.bf16.msra.mxu1 %v12459_v59  ;;  %v12497_v59 = vld [vmem:[#allocation14 + $0x11d4] ss:$20 sps:$4 sm:$0xff]  }
 0x3a1   :  { %9067 = vmatpush1.bf16.msra.mxu0 %v12462_v56  ;;  %8658 = vmatprep.subr.bf16.mxu1 %v12467_v28  ;;  %v12500_v56 = vld [vmem:[#allocation14 + $0x11dc] ss:$20 sps:$4 sm:$0xff]   ;;  %v2451_v28 = vadd.f32 %v2431_v16, %v2361_v0 }
 0x3a2   :  { %9068 = vmatprep.subr.bf16.mxu0 %v12470_v46  ;;  %v2521_v46 = vrot.slane %v2501_v44, 6  ;;  %v12519_v44 = vld [vmem:[#allocation14 + $0x1270] ss:$20 sps:$4 sm:$0xff]  }
 0x3a3   :  { %v12527_v0 = vld [vmem:[#allocation14 + $0x129c] ss:$20 sps:$4 sm:$0xff]  }
 0x3a4   :  { %8659 = vmatpush1.bf16.msra.mxu1 %v12465_v17  ;;  %v2575_v17 = vrot.slane %v14848_v1, %v13714_v24 }
 0x3a5   :  { %9069 = vmatpush1.bf16.msra.mxu0 %v12468_v8  ;;  %8660 = vmatprep.subr.bf16.mxu1 %v12473_v60  ;;  %v2635_v8 = vrot.slane %v14848_v1, %v13717_v25  ;;  %v12495_v60 = vld [vmem:[#allocation14 + $0x11d0] ss:$20 sps:$4 sm:$0xff]  }
 0x3a6   :  { %9070 = vmatprep.subr.bf16.mxu0 %v12476_v49  ;;  %v12498_v49 = vld [vmem:[#allocation14 + $0x11d8] ss:$20 sps:$4 sm:$0xff]  }
 0x3a8   :  { %8661 = vmatpush1.bf16.msra.mxu1 %v12471_v39  ;;  %v2541_v39 = vadd.f32 %v2521_v46, %v2451_v28  ;;  %v12525_v28 = vld [vmem:[#allocation14 + $0x1298] ss:$20 sps:$4 sm:$0xff]   ;;  %v12528_v46 = vld [vmem:[#allocation14 + $0x12a0] ss:$20 sps:$4 sm:$0xff]  }
 0x3a9   :  { %9071 = vmatpush1.bf16.msra.mxu0 %v12474_v21  ;;  %8662 = vmatprep.subr.bf16.mxu1 %v12479_v7  ;;  %v2591_v21 = vmul.f32 %v2575_v17, %v15105_v27  ;;  %v2651_v7 = vmul.f32 %v2635_v8, %v15105_v27  ;;  %v12533_v17 = vld [vmem:[#allocation14 + $0x12c4] ss:$20 sps:$4 sm:$0xff]   ;;  %v12536_v8 = vld [vmem:[#allocation14 + $0x12cc] ss:$20 sps:$4 sm:$0xff]  }
 0x3aa   :  { %9072 = vmatprep.subr.bf16.mxu0 %v12482_v42  ;;  %v2725_v42 = vrot.slane %v14848_v1, %v13720_v26 }
 0x3ab   :  { %v2601_v23 = vadd.f32 %v2591_v21, %v2541_v39  ;;  %v12534_v39 = vld [vmem:[#allocation14 + $0x12c8] ss:$20 sps:$4 sm:$0xff]  }
 0x3ac   :  { %8663 = vmatpush1.bf16.msra.mxu1 %v12477_v51  ;;  %v2671_v51 = vrot.slane %v2651_v7, 2  ;;  %v2741_v22 = vmul.f32 %v2725_v42, %v15105_v27  ;;  %v12542_v21 = vld [vmem:[#allocation14 + $0x12f4] ss:$20 sps:$4 sm:$0xff]  }
 0x3ad   :  { %9073 = vmatpush1.bf16.msra.mxu0 %v12480_v15  ;;  %8673 = vmatprep.subr.bf16.mxu1 %v12485_v18  ;;  %v2815_v15 = vrot.slane %v14848_v1, %v13733_v38  ;;  %v12507_v18 = vld [vmem:[#allocation14 + $0x1220] ss:$20 sps:$4 sm:$0xff]   ;;  %v12524_v1 = vld [vmem:[#allocation14 + $0x127c] ss:$20 sps:$4 sm:$0xff]  }
 0x3ae   :  { %9083 = vmatprep.subr.bf16.mxu0 %v12488_v4  ;;  %v12515_v4 = vld [vmem:[#allocation14 + $0x124c] ss:$20 sps:$4 sm:$0xff]   ;;  %v2691_v34 = vadd.f32 %v2671_v51, %v2601_v23  ;;  %v2761_v57 = vrot.slane %v2741_v22, 4  ;;  %v12537_v42 = vld [vmem:[#allocation14 + $0x12e8] ss:$20 sps:$4 sm:$0xff]  }
 0x3af   :  { %8665 = vmatmul.mubr.bf16.vlgmr.msra.gmra.mrb[8].mxu1 %v14865_v58  ;;  %v2831_v29 = vmul.f32 %v2815_v15, %v15105_v27  ;;  %v12539_v27 = vld [vmem:[#allocation14 + $0x12ec] ss:$20 sps:$4 sm:$0xff]   ;;  %v12543_v51 = vld [vmem:[#allocation14 + $0x1310] ss:$20 sps:$4 sm:$0xff]  }
 0x3b0   :  { %9075 = vmatmul.mubr.bf16.vlgmr.msra.gmra.mrb[12].mxu0 %v14865_v58  ;;  %8674 = vmatpush1.bf16.msra.mxu1 %v12483_v41  ;;  %v12513_v41 = vld [vmem:[#allocation14 + $0x1248] ss:$20 sps:$4 sm:$0xff]   ;;  %v12546_v22 = vld [vmem:[#allocation14 + $0x1318] ss:$20 sps:$4 sm:$0xff]  }
 0x3b1   :  { %8705 = vmatprep.mubr.bf16.mxu1 %v14869_v6  ;;  %9084 = vmatpush1.bf16.msra.mxu0 %v12486_v2  ;;  %v12521_v2 = vld [vmem:[#allocation14 + $0x1274] ss:$20 sps:$4 sm:$0xff]   ;;  %v2851_v16 = vrot.slane %v2831_v29, 6  ;;  %v12551_v15 = vld [vmem:[#allocation14 + $0x133c] ss:$20 sps:$4 sm:$0xff]  }
 0x3b2   :  { %9115 = vmatprep.mubr.bf16.mxu0 %v14869_v6  ;;  %8675 = vmatprep.subr.bf16.mxu1 %v12491_v40  ;;  %v2781_v40 = vadd.f32 %v2761_v57, %v2691_v34  ;;  %v12552_v34 = vld [vmem:[#allocation14 + $0x1340] ss:$20 sps:$4 sm:$0xff]   ;;  %v12557_v57 = vld [vmem:[#allocation14 + $0x1364] ss:$20 sps:$4 sm:$0xff]  }
 0x3b3   :  { %9085 = vmatprep.subr.bf16.mxu0 %v12494_v63  ;;  %v12522_v63 = vld [vmem:[#allocation14 + $0x1278] ss:$20 sps:$4 sm:$0xff]  }
 0x3b4   :  { %8676 = vmatpush1.bf16.msra.mxu1 %v12489_v62  ;;  %v12530_v62 = vld [vmem:[#allocation14 + $0x12a4] ss:$20 sps:$4 sm:$0xff]   ;;  %v12560_v29 = vld [vmem:[#allocation14 + $0x136c] ss:$20 sps:$4 sm:$0xff]  }
 0x3b5   :  { %9086 = vmatpush1.bf16.msra.mxu0 %v12492_v12  ;;  %8677 = vmatprep.subr.bf16.mxu1 %v12497_v59  ;;  %v2871_v12 = vadd.f32 %v2851_v16, %v2781_v40  ;;  %v14886_v59 = vld [vmem:[#allocation11 + $0x10] sm:$0xf] }
 0x3b6   :  { %9087 = vmatprep.subr.bf16.mxu0 %v12500_v56  ;;  %v2951_v56 = vrot.slane %v14886_v59, %v13662_v36  ;;  %v12566_v40 = vld [vmem:[#allocation14 + $0x1394] ss:$20 sps:$4 sm:$0xff]  }
 0x3b7   :  { %v12561_v16 = vld [vmem:[#allocation14 + $0x1388] ss:$20 sps:$4 sm:$0xff]  }
 0x3b8   :  { %8678 = vmatpush1.bf16.msra.mxu1 %v12495_v60  ;;  %v2997_v60 = vmul.f32 %v2951_v56, %v2871_v12  ;;  %v12567_v56 = vld [vmem:[#allocation14 + $0x13b0] ss:$20 sps:$4 sm:$0xff]  }
 0x3b9   :  { %9088 = vmatpush1.bf16.msra.mxu0 %v12498_v49  ;;  %8679 = vmatprep.subr.bf16.mxu1 %v12503_v54  ;;  %v14890_v49 = vld [vmem:[#allocation13 + $0x10] sm:$0xf] }
 0x3ba   :  { %9089 = vmatprep.subr.bf16.mxu0 %v12506_v11  ;;  %v3077_v54 = vrot.slane %v14890_v49, %v13662_v36  ;;  %v12531_v11 = vld [vmem:[#allocation14 + $0x12c0] ss:$20 sps:$4 sm:$0xff]  }
 0x3bc   :  { %8680 = vmatpush1.bf16.msra.mxu1 %v12501_v53  ;;  %v14894_v7 = vadd.f32 %v3077_v54, %v2997_v60  ;;  %v12540_v53 = vld [vmem:[#allocation14 + $0x12f0] ss:$20 sps:$4 sm:$0xff]   ;;  %v12570_v60 = vld [vmem:[#allocation14 + $0x13b8] ss:$20 sps:$4 sm:$0xff]  }
 0x3bd   :  { %9090 = vmatpush1.bf16.msra.mxu0 %v12504_v3  ;;  %8681 = vmatprep.subr.bf16.mxu1 %v12509_v45  ;;  %v12545_v3 = vld [vmem:[#allocation14 + $0x1314] ss:$20 sps:$4 sm:$0xff]   ;;  %v3160_v45 = vmin.f32 %v14587_v30, 0.0  ;;  %v12575_v54 = vld [vmem:[#allocation14 + $0x13dc] ss:$20 sps:$4 sm:$0xff]  }
 0x3be   :  { %9091 = vmatprep.subr.bf16.mxu0 %v12512_v32  ;;  %v12548_v32 = vld [vmem:[#allocation14 + $0x131c] ss:$20 sps:$4 sm:$0xff]   ;;  %v3163_v23 = vmin.f32 %v14894_v7, 0.0  ;;  %vm3143_vm7 = vcmp.gt.f32.partialorder %v14894_v7, 0.0 }
 0x3c0   :  { %8682 = vmatpush1.bf16.msra.mxu1 %v12507_v18  ;;  %v3194_v18 = vmul.f32 1.442695, %v3160_v45 }
 0x3c1   :  { %9092 = vmatpush1.bf16.msra.mxu0 %v12510_v37  ;;  %8683 = vmatprep.subr.bf16.mxu1 %v12515_v4  ;;  %v12554_v37 = vld [vmem:[#allocation14 + $0x1344] ss:$20 sps:$4 sm:$0xff]   ;;  %v3200_v4 = vmul.f32 1.442695, %v3163_v23 }
 0x3c2   :  { %9093 = vmatprep.subr.bf16.mxu0 %v12518_v10  ;;  %v12549_v10 = vld [vmem:[#allocation14 + $0x1338] ss:$20 sps:$4 sm:$0xff]   ;;  %13041 = vpow2.f32 %v3194_v18 }
 0x3c3   :  { %13043 = vpow2.f32 %v3200_v4  ;;  %v12581_v23 = vld [vmem:[#allocation14 + $0x1404] ss:$20 sps:$4 sm:$0xff]  }
 0x3c4   :  { %8684 = vmatpush1.bf16.msra.mxu1 %v12513_v41  ;;  %v12555_v41 = vld [vmem:[#allocation14 + $0x1360] ss:$20 sps:$4 sm:$0xff]  }
 0x3c5   :  { %9094 = vmatpush1.bf16.msra.mxu0 %v12516_v14  ;;  %8685 = vmatprep.subr.bf16.mxu1 %v12521_v2  ;;  %v12558_v14 = vld [vmem:[#allocation14 + $0x1368] ss:$20 sps:$4 sm:$0xff]   ;;  %v12563_v2 = vld [vmem:[#allocation14 + $0x138c] ss:$20 sps:$4 sm:$0xff]  }
 0x3c6   :  { %9095 = vmatprep.subr.bf16.mxu0 %v12524_v1  ;;  %v14898_v1 = vld [vmem:[#allocation10 + $0x80] sm:$0xff] }
 0x3c8   :  { %8686 = vmatpush1.bf16.msra.mxu1 %v12519_v44  ;;  %v2301_v44 = vrot.slane %v14898_v1, %v13662_v36 }
 0x3c9   :  { %9096 = vmatpush1.bf16.msra.mxu0 %v12522_v63  ;;  %8687 = vmatprep.subr.bf16.mxu1 %v12527_v0  ;;  %v12564_v63 = vld [vmem:[#allocation14 + $0x1390] ss:$20 sps:$4 sm:$0xff]   ;;  %v12569_v0 = vld [vmem:[#allocation14 + $0x13b4] ss:$20 sps:$4 sm:$0xff]  }
 0x3ca   :  { %9097 = vmatprep.subr.bf16.mxu0 %v12530_v62  ;;  %v12572_v62 = vld [vmem:[#allocation14 + $0x13bc] ss:$20 sps:$4 sm:$0xff]  }
 0x3cc   :  { %8688 = vmatpush1.bf16.msra.mxu1 %v12525_v28  ;;  %v13042_v12 = vpop.eup %13041 }
 0x3cd   :  { %9098 = vmatpush1.bf16.msra.mxu0 %v12528_v46  ;;  %8689 = vmatprep.subr.bf16.mxu1 %v12533_v17  ;;  %v13044_v28 = vpop.eup %13043  ;;  %v2251_v46 = vrot.slane %v14898_v1, %v13659_v35  ;;  %v2320_v17 = vmul.f32 %v2301_v44, %v14381_v50  ;;  %v2631_v44 = vrot.slane %v14898_v1, %v13717_v25  ;;  %v12602_v25 = vld [vmem:[#allocation14 + $0x1484] ss:$20 sps:$4 sm:$0xff]  }
 0x3ce   :  { %9099 = vmatprep.subr.bf16.mxu0 %v12536_v8  ;;  %v2391_v8 = vrot.slane %v14898_v1, %v13706_v19 }
 0x3d0   :  { %8690 = vmatpush1.bf16.msra.mxu1 %v12531_v11  ;;  %v12578_v11 = vld [vmem:[#allocation14 + $0x13e4] ss:$20 sps:$4 sm:$0xff]   ;;  %v2410_v45 = vmul.f32 %v2391_v8, %v14381_v50 }
 0x3d1   :  { %9100 = vmatpush1.bf16.msra.mxu0 %v12534_v39  ;;  %8691 = vmatprep.subr.bf16.mxu1 %v12539_v27  ;;  %v10355_v39 = vadd.f32 -1.0, %v13042_v12  ;;  %v2481_v27 = vrot.slane %v14898_v1, %v13675_v43  ;;  %v12594_v12 = vld [vmem:[#allocation14 + $0x1458] ss:$20 sps:$4 sm:$0xff]  }
 0x3d2   :  { %9101 = vmatprep.subr.bf16.mxu0 %v12542_v21  ;;  %v12573_v21 = vld [vmem:[#allocation14 + $0x13d8] ss:$20 sps:$4 sm:$0xff]   ;;  %v2430_v4 = vrot.slane %v2410_v45, 4 }
 0x3d3   :  { %v12597_v8 = vld [vmem:[#allocation14 + $0x1478] ss:$20 sps:$4 sm:$0xff]  }
 0x3d4   :  { %8692 = vmatpush1.bf16.msra.mxu1 %v12537_v42  ;;  %v10358_v42 = vadd.f32 -1.0, %v13044_v28 }
 0x3d5   :  { %9102 = vmatpush1.bf16.msra.mxu0 %v12540_v53  ;;  %8693 = vmatprep.subr.bf16.mxu1 %v12545_v3  ;;  %v2270_v53 = vmul.f32 %v2251_v46, %v14381_v50  ;;  %v2340_v3 = vrot.slane %v2320_v17, 2  ;;  %v2650_v46 = vmul.f32 %v2631_v44, %v14573_v13  ;;  %v2721_v17 = vrot.slane %v14898_v1, %v13720_v26  ;;  %v12606_v26 = vld [vmem:[#allocation14 + $0x14a8] ss:$20 sps:$4 sm:$0xff]   ;;  %v12627_v44 = vld [vmem:[#allocation14 + $0x1540] ss:$20 sps:$4 sm:$0xff]  }
 0x3d6   :  { %9103 = vmatprep.subr.bf16.mxu0 %v12548_v32  ;;  %v12576_v32 = vld [vmem:[#allocation14 + $0x13e0] ss:$20 sps:$4 sm:$0xff]   ;;  %v3243_v18 = vsel %vm3143_vm7, %v14894_v7, %v10358_v42  ;;  %v12585_v7 = vld [vmem:[#allocation14 + $0x1428] ss:$20 sps:$4 sm:$0xff]  }
 0x3d7   :  { %v12608_v42 = vld [vmem:[#allocation14 + $0x14ac] ss:$20 sps:$4 sm:$0xff]  }
 0x3d8   :  { %8694 = vmatpush1.bf16.msra.mxu1 %v12543_v51  ;;  %v3240_v51 = vsel %vm3140_vm6, %v14587_v30, %v10355_v39  ;;  %v12590_v30 = vld [vmem:[#allocation14 + $0x1434] ss:$20 sps:$4 sm:$0xff]   ;;  %v2670_v39 = vrot.slane %v2650_v46, 2  ;;  %v12644_v46 = vld [vmem:[#allocation14 + $0x159c] ss:$20 sps:$4 sm:$0xff]  }
 0x3d9   :  { %9104 = vmatpush1.bf16.msra.mxu0 %v12546_v22  ;;  %8695 = vmatprep.subr.bf16.mxu1 %v12551_v15  ;;  %v12584_v22 = vld [vmem:[#allocation14 + $0x140c] ss:$20 sps:$4 sm:$0xff]  }
 0x3da   :  { %9105 = vmatprep.subr.bf16.mxu0 %v12554_v37  ;;  %v12579_v15 = vld [vmem:[#allocation14 + $0x1400] ss:$20 sps:$4 sm:$0xff]   ;;  %v2360_v37 = vadd.f32 %v2340_v3, %v2270_v53 }
 0x3db   :  { %v12603_v53 = vld [vmem:[#allocation14 + $0x14a0] ss:$20 sps:$4 sm:$0xff]  }
 0x3dc   :  { %8696 = vmatpush1.bf16.msra.mxu1 %v12549_v10  ;;  %v2500_v10 = vmul.f32 %v2481_v27, %v14381_v50  ;;  %v2450_v50 = vadd.f32 %v2430_v4, %v2360_v37  ;;  %v2740_v27 = vmul.f32 %v2721_v17, %v14573_v13  ;;  %v12611_v3 = vld [vmem:[#allocation14 + $0x14cc] ss:$20 sps:$4 sm:$0xff]   ;;  %v12620_v37 = vld [vmem:[#allocation14 + $0x14fc] ss:$20 sps:$4 sm:$0xff]   ;;  %v3165_v17 = vmin.f32 %v14787_v55, 0.0 }
 0x3dd   :  { %9106 = vmatpush1.bf16.msra.mxu0 %v12552_v34  ;;  %8697 = vmatprep.subr.bf16.mxu1 %v12557_v57  ;;  %v14916_v34 = vpack.c.bf16 %v3240_v51, %v3240_v51  ;;  %v12582_v57 = vld [vmem:[#allocation14 + $0x1408] ss:$20 sps:$4 sm:$0xff]   ;;  %v12615_v4 = vld [vmem:[#allocation14 + $0x14f0] ss:$20 sps:$4 sm:$0xff]  }
 0x3de   :  { %9107 = vmatprep.subr.bf16.mxu0 %v12560_v29  ;;  %v12587_v29 = vld [vmem:[#allocation14 + $0x142c] ss:$20 sps:$4 sm:$0xff]   ;;  %v12614_v51 = vld [vmem:[#allocation14 + $0x14d4] ss:$20 sps:$4 sm:$0xff]  }
 0x3e0   :  { %8698 = vmatpush1.bf16.msra.mxu1 %v12555_v41  ;;  %v14919_v41 = vpack.c.bf16 %v3243_v18, %v3243_v18 }
 0x3e1   :  { %9108 = vmatpush1.bf16.msra.mxu0 %v12558_v14  ;;  %8699 = vmatprep.subr.bf16.mxu1 %v12563_v2  ;;  %v2571_v14 = vrot.slane %v14898_v1, %v13714_v24  ;;  %v2520_v2 = vrot.slane %v2500_v10, 6  ;;  %v12618_v10 = vld [vmem:[#allocation14 + $0x14f8] ss:$20 sps:$4 sm:$0xff]  }
 0x3e2   :  { %9109 = vmatprep.subr.bf16.mxu0 %v12566_v40  ;;  %v12588_v40 = vld [vmem:[#allocation14 + $0x1430] ss:$20 sps:$4 sm:$0xff]  }
 0x3e3   :  { %v2540_v28 = vadd.f32 %v2520_v2, %v2450_v50  ;;  %v12629_v50 = vld [vmem:[#allocation14 + $0x1544] ss:$20 sps:$4 sm:$0xff]  }
 0x3e4   :  { %8700 = vmatpush1.bf16.msra.mxu1 %v12561_v16  ;;  %v12593_v16 = vld [vmem:[#allocation14 + $0x1454] ss:$20 sps:$4 sm:$0xff]  }
 0x3e5   :  { %9110 = vmatpush1.bf16.msra.mxu0 %v12564_v63  ;;  %8701 = vmatprep.subr.bf16.mxu1 %v12569_v0  ;;  %v12596_v63 = vld [vmem:[#allocation14 + $0x145c] ss:$20 sps:$4 sm:$0xff]   ;;  %v2590_v0 = vmul.f32 %v2571_v14, %v14573_v13  ;;  %v12621_v14 = vld [vmem:[#allocation14 + $0x1518] ss:$20 sps:$4 sm:$0xff]  }
 0x3e6   :  { %9111 = vmatprep.subr.bf16.mxu0 %v12572_v62  ;;  %v12591_v62 = vld [vmem:[#allocation14 + $0x1450] ss:$20 sps:$4 sm:$0xff]  }
 0x3e8   :  { %8702 = vmatpush1.bf16.msra.mxu1 %v12567_v56  ;;  %v12599_v56 = vld [vmem:[#allocation14 + $0x147c] ss:$20 sps:$4 sm:$0xff]  }
 0x3e9   :  { %9112 = vmatpush1.bf16.msra.mxu0 %v12570_v60  ;;  %8703 = vmatprep.subr.bf16.mxu1 %v12575_v54  ;;  %v12600_v60 = vld [vmem:[#allocation14 + $0x1480] ss:$20 sps:$4 sm:$0xff]   ;;  %v12605_v54 = vld [vmem:[#allocation14 + $0x14a4] ss:$20 sps:$4 sm:$0xff]  }
 0x3ea   :  { %9113 = vmatprep.subr.bf16.mxu0 %v12578_v11  ;;  %v2600_v11 = vadd.f32 %v2590_v0, %v2540_v28  ;;  %v12641_v28 = vld [vmem:[#allocation14 + $0x1594] ss:$20 sps:$4 sm:$0xff]  }
 0x3ec   :  { %8704 = vmatpush1.bf16.msra.mxu1 %v12573_v21  ;;  %v2811_v21 = vrot.slane %v14898_v1, %v13733_v38  ;;  %v2690_v45 = vadd.f32 %v2670_v39, %v2600_v11  ;;  %v12617_v38 = vld [vmem:[#allocation14 + $0x14f4] ss:$20 sps:$4 sm:$0xff]   ;;  %v12650_v11 = vld [vmem:[#allocation14 + $0x15c4] ss:$20 sps:$4 sm:$0xff]   ;;  %v3204_v39 = vmul.f32 1.442695, %v3165_v17 }
 0x3ed   :  { %9114 = vmatpush1.bf16.msra.mxu0 %v12576_v32  ;;  %8714 = vmatprep.subr.bf16.mxu1 %v12581_v23  ;;  %v2760_v32 = vrot.slane %v2740_v27, 4  ;;  %v12645_v27 = vld [vmem:[#allocation14 + $0x15b8] ss:$20 sps:$4 sm:$0xff]  }
 0x3ee   :  { %9124 = vmatprep.subr.bf16.mxu0 %v12584_v22  ;;  %v2830_v23 = vmul.f32 %v2811_v21, %v14573_v13  ;;  %v12609_v22 = vld [vmem:[#allocation14 + $0x14c8] ss:$20 sps:$4 sm:$0xff]   ;;  %v2947_v13 = vrot.slane %v14886_v59, %v13659_v35  ;;  %v12635_v59 = vld [vmem:[#allocation14 + $0x156c] ss:$20 sps:$4 sm:$0xff]   ;;  %v12698_v17 = vld [vmem:[#allocation14 + $0x1704] ss:$20 sps:$4 sm:$0xff]  }
 0x3ef   :  { %8706 = vmatmul.mubr.bf16.vlgmr.msra.gmra.mrb[8].mxu1 %v14916_v34  ;;  %v2780_v1 = vadd.f32 %v2760_v32, %v2690_v45  ;;  %v12648_v21 = vld [vmem:[#allocation14 + $0x15c0] ss:$20 sps:$4 sm:$0xff]  }
 0x3f0   :  { %9116 = vmatmul.mubr.bf16.vlgmr.msra.gmra.mrb[12].mxu0 %v14916_v34  ;;  %8715 = vmatpush1.bf16.msra.mxu1 %v12579_v15  ;;  %v12612_v15 = vld [vmem:[#allocation14 + $0x14d0] ss:$20 sps:$4 sm:$0xff]   ;;  %v2850_v18 = vrot.slane %v2830_v23, 6  ;;  %v12659_v45 = vld [vmem:[#allocation14 + $0x160c] ss:$20 sps:$4 sm:$0xff]  }
 0x3f1   :  { %8746 = vmatprep.mubr.bf16.mxu1 %v14919_v41  ;;  %9125 = vmatpush1.bf16.msra.mxu0 %v12582_v57  ;;  %v12623_v57 = vld [vmem:[#allocation14 + $0x151c] ss:$20 sps:$4 sm:$0xff]   ;;  %v12662_v32 = vld [vmem:[#allocation14 + $0x1614] ss:$20 sps:$4 sm:$0xff]  }
 0x3f2   :  { %9156 = vmatprep.mubr.bf16.mxu0 %v14919_v41  ;;  %8716 = vmatprep.subr.bf16.mxu1 %v12587_v29  ;;  %v2870_v29 = vadd.f32 %v2850_v18, %v2780_v1  ;;  %v12657_v23 = vld [vmem:[#allocation14 + $0x1608] ss:$20 sps:$4 sm:$0xff]   ;;  %v12663_v1 = vld [vmem:[#allocation14 + $0x1630] ss:$20 sps:$4 sm:$0xff]  }
 0x3f3   :  { %9126 = vmatprep.subr.bf16.mxu0 %v12590_v30  ;;  %v12626_v30 = vld [vmem:[#allocation14 + $0x1524] ss:$20 sps:$4 sm:$0xff]  }
 0x3f4   :  { %8717 = vmatpush1.bf16.msra.mxu1 %v12585_v7  ;;  %v12624_v7 = vld [vmem:[#allocation14 + $0x1520] ss:$20 sps:$4 sm:$0xff]   ;;  %v2996_v2 = vmul.f32 %v2947_v13, %v2870_v29  ;;  %v12669_v29 = vld [vmem:[#allocation14 + $0x1658] ss:$20 sps:$4 sm:$0xff]  }
 0x3f5   :  { %9127 = vmatpush1.bf16.msra.mxu0 %v12588_v40  ;;  %8718 = vmatprep.subr.bf16.mxu1 %v12593_v16  ;;  %v3073_v40 = vrot.slane %v14890_v49, %v13659_v35  ;;  %v12632_v16 = vld [vmem:[#allocation14 + $0x154c] ss:$20 sps:$4 sm:$0xff]  }
 0x3f6   :  { %9128 = vmatprep.subr.bf16.mxu0 %v12596_v63  ;;  %v12630_v63 = vld [vmem:[#allocation14 + $0x1548] ss:$20 sps:$4 sm:$0xff]  }
 0x3f7   :  { %v14940_v0 = vadd.f32 %v3073_v40, %v2996_v2  ;;  %v12675_v2 = vld [vmem:[#allocation14 + $0x1680] ss:$20 sps:$4 sm:$0xff]  }
 0x3f8   :  { %8719 = vmatpush1.bf16.msra.mxu1 %v12591_v62  ;;  %v12638_v62 = vld [vmem:[#allocation14 + $0x1574] ss:$20 sps:$4 sm:$0xff]  }
 0x3f9   :  { %9129 = vmatpush1.bf16.msra.mxu0 %v12594_v12  ;;  %8720 = vmatprep.subr.bf16.mxu1 %v12599_v56  ;;  %v12633_v12 = vld [vmem:[#allocation14 + $0x1568] ss:$20 sps:$4 sm:$0xff]   ;;  %v12636_v56 = vld [vmem:[#allocation14 + $0x1570] ss:$20 sps:$4 sm:$0xff]   ;;  %v3162_v49 = vmin.f32 %v14940_v0, 0.0  ;;  %vm3142_vm8 = vcmp.gt.f32.partialorder %v14940_v0, 0.0 }
 0x3fa   :  { %9130 = vmatprep.subr.bf16.mxu0 %v12602_v25  ;;  %v12639_v25 = vld [vmem:[#allocation14 + $0x1590] ss:$20 sps:$4 sm:$0xff]  }
 0x3fc   :  { %8721 = vmatpush1.bf16.msra.mxu1 %v12597_v8  ;;  %v12642_v8 = vld [vmem:[#allocation14 + $0x1598] ss:$20 sps:$4 sm:$0xff]  }
 0x3fd   :  { %9131 = vmatpush1.bf16.msra.mxu0 %v12600_v60  ;;  %8722 = vmatprep.subr.bf16.mxu1 %v12605_v54  ;;  %v12647_v60 = vld [vmem:[#allocation14 + $0x15bc] ss:$20 sps:$4 sm:$0xff]   ;;  %v3198_v54 = vmul.f32 1.442695, %v3162_v49  ;;  %v12690_v49 = vld [vmem:[#allocation14 + $0x16d8] ss:$20 sps:$4 sm:$0xff]  }
 0x3fe   :  { %9132 = vmatprep.subr.bf16.mxu0 %v12608_v42  ;;  %v12653_v42 = vld [vmem:[#allocation14 + $0x15e4] ss:$20 sps:$4 sm:$0xff]  }
 0x3ff   :  { %13045 = vpow2.f32 %v3198_v54  ;;  %v12704_v54 = vld [vmem:[#allocation14 + $0x172c] ss:$20 sps:$4 sm:$0xff]  }
 0x400   :  { %8723 = vmatpush1.bf16.msra.mxu1 %v12603_v53  ;;  %v12656_v53 = vld [vmem:[#allocation14 + $0x15ec] ss:$20 sps:$4 sm:$0xff]   ;;  %13047 = vpow2.f32 %v3204_v39  ;;  %v12702_v39 = vld [vmem:[#allocation14 + $0x1728] ss:$20 sps:$4 sm:$0xff]  }
 0x401   :  { %9133 = vmatpush1.bf16.msra.mxu0 %v12606_v26  ;;  %8724 = vmatprep.subr.bf16.mxu1 %v12611_v3  ;;  %v12651_v26 = vld [vmem:[#allocation14 + $0x15e0] ss:$20 sps:$4 sm:$0xff]   ;;  %v12654_v3 = vld [vmem:[#allocation14 + $0x15e8] ss:$20 sps:$4 sm:$0xff]  }
 0x402   :  { %9134 = vmatprep.subr.bf16.mxu0 %v12614_v51  ;;  %v12660_v51 = vld [vmem:[#allocation14 + $0x1610] ss:$20 sps:$4 sm:$0xff]  }
 0x404   :  { %8725 = vmatpush1.bf16.msra.mxu1 %v12609_v22  ;;  %v12665_v22 = vld [vmem:[#allocation14 + $0x1634] ss:$20 sps:$4 sm:$0xff]  }
 0x405   :  { %9135 = vmatpush1.bf16.msra.mxu0 %v12612_v15  ;;  %8726 = vmatprep.subr.bf16.mxu1 %v12617_v38  ;;  %v12668_v15 = vld [vmem:[#allocation14 + $0x163c] ss:$20 sps:$4 sm:$0xff]  }
 0x406   :  { %9136 = vmatprep.subr.bf16.mxu0 %v12620_v37  ;;  %v12666_v37 = vld [vmem:[#allocation14 + $0x1638] ss:$20 sps:$4 sm:$0xff]  }
 0x408   :  { %8727 = vmatpush1.bf16.msra.mxu1 %v12615_v4  ;;  %v12671_v4 = vld [vmem:[#allocation14 + $0x165c] ss:$20 sps:$4 sm:$0xff]  }
 0x409   :  { %9137 = vmatpush1.bf16.msra.mxu0 %v12618_v10  ;;  %8728 = vmatprep.subr.bf16.mxu1 %v12623_v57  ;;  %v13046_v38 = vpop.eup %13045  ;;  %v12674_v10 = vld [vmem:[#allocation14 + $0x1664] ss:$20 sps:$4 sm:$0xff]  }
 0x40a   :  { %9138 = vmatprep.subr.bf16.mxu0 %v12626_v30  ;;  %v13048_v18 = vpop.eup %13047  ;;  %v10357_v57 = vadd.f32 -1.0, %v13046_v38  ;;  %v12672_v30 = vld [vmem:[#allocation14 + $0x1660] ss:$20 sps:$4 sm:$0xff]   ;;  %v12725_v38 = vld [vmem:[#allocation14 + $0x17c4] ss:$20 sps:$4 sm:$0xff]  }
 0x40b   :  { %v10360_v13 = vadd.f32 -1.0, %v13048_v18  ;;  %v12723_v18 = vld [vmem:[#allocation14 + $0x17c0] ss:$20 sps:$4 sm:$0xff]  }
 0x40c   :  { %8729 = vmatpush1.bf16.msra.mxu1 %v12621_v14  ;;  %v12677_v14 = vld [vmem:[#allocation14 + $0x1684] ss:$20 sps:$4 sm:$0xff]  }
 0x40d   :  { %9139 = vmatpush1.bf16.msra.mxu0 %v12624_v7  ;;  %8730 = vmatprep.subr.bf16.mxu1 %v12629_v50  ;;  %v3242_v7 = vsel %vm3142_vm8, %v14940_v0, %v10357_v57  ;;  %v12680_v50 = vld [vmem:[#allocation14 + $0x168c] ss:$20 sps:$4 sm:$0xff]   ;;  %v3245_v40 = vsel %vm3145_vm9, %v14787_v55, %v10360_v13  ;;  %v12681_v0 = vld [vmem:[#allocation14 + $0x16a8] ss:$20 sps:$4 sm:$0xff]   ;;  %v12684_v55 = vld [vmem:[#allocation14 + $0x16b0] ss:$20 sps:$4 sm:$0xff]  }
 0x40e   :  { %9140 = vmatprep.subr.bf16.mxu0 %v12632_v16  ;;  %v14948_v16 = vpack.c.bf16 %v3242_v7, %v3242_v7  ;;  %v12729_v57 = vld [vmem:[#allocation14 + $0x17e8] ss:$20 sps:$4 sm:$0xff]   ;;  %v12735_v7 = vld [vmem:[#allocation14 + $0x1810] ss:$20 sps:$4 sm:$0xff]  }
 0x40f   :  { %v12737_v13 = vld [vmem:[#allocation14 + $0x1814] ss:$20 sps:$4 sm:$0xff]  }
 0x410   :  { %8731 = vmatpush1.bf16.msra.mxu1 %v12627_v44  ;;  %v12678_v44 = vld [vmem:[#allocation14 + $0x1688] ss:$20 sps:$4 sm:$0xff]  }
 0x411   :  { %9141 = vmatpush1.bf16.msra.mxu0 %v12630_v63  ;;  %8732 = vmatprep.subr.bf16.mxu1 %v12635_v59  ;;  %v12683_v63 = vld [vmem:[#allocation14 + $0x16ac] ss:$20 sps:$4 sm:$0xff]   ;;  %v14951_v59 = vpack.c.bf16 %v3245_v40, %v3245_v40 }
 0x412   :  { %9142 = vmatprep.subr.bf16.mxu0 %v12638_v62  ;;  %v12686_v62 = vld [vmem:[#allocation14 + $0x16b4] ss:$20 sps:$4 sm:$0xff]  }
 0x414   :  { %8733 = vmatpush1.bf16.msra.mxu1 %v12633_v12  ;;  %v12689_v12 = vld [vmem:[#allocation14 + $0x16d4] ss:$20 sps:$4 sm:$0xff]  }
 0x415   :  { %9143 = vmatpush1.bf16.msra.mxu0 %v12636_v56  ;;  %8734 = vmatprep.subr.bf16.mxu1 %v12641_v28  ;;  %v12692_v56 = vld [vmem:[#allocation14 + $0x16dc] ss:$20 sps:$4 sm:$0xff]  }
 0x416   :  { %9144 = vmatprep.subr.bf16.mxu0 %v12644_v46  ;;  %v12687_v28 = vld [vmem:[#allocation14 + $0x16d0] ss:$20 sps:$4 sm:$0xff]  }
 0x417   :  { %v12695_v46 = vld [vmem:[#allocation14 + $0x16fc] ss:$20 sps:$4 sm:$0xff]  }
 0x418   :  { %8735 = vmatpush1.bf16.msra.mxu1 %v12639_v25  ;;  %v12693_v25 = vld [vmem:[#allocation14 + $0x16f8] ss:$20 sps:$4 sm:$0xff]  }
 0x419   :  { %9145 = vmatpush1.bf16.msra.mxu0 %v12642_v8  ;;  %8736 = vmatprep.subr.bf16.mxu1 %v12647_v60  ;;  %v12696_v8 = vld [vmem:[#allocation14 + $0x1700] ss:$20 sps:$4 sm:$0xff]   ;;  %v12701_v60 = vld [vmem:[#allocation14 + $0x1724] ss:$20 sps:$4 sm:$0xff]  }
 0x41a   :  { %9146 = vmatprep.subr.bf16.mxu0 %v12650_v11  ;;  %v12699_v11 = vld [vmem:[#allocation14 + $0x1720] ss:$20 sps:$4 sm:$0xff]  }
 0x41c   :  { %8737 = vmatpush1.bf16.msra.mxu1 %v12645_v27  ;;  %v12707_v27 = vld [vmem:[#allocation14 + $0x174c] ss:$20 sps:$4 sm:$0xff]  }
 0x41d   :  { %9147 = vmatpush1.bf16.msra.mxu0 %v12648_v21  ;;  %8738 = vmatprep.subr.bf16.mxu1 %v12653_v42  ;;  %v12710_v21 = vld [vmem:[#allocation14 + $0x1754] ss:$20 sps:$4 sm:$0xff]  }
 0x41e   :  { %9148 = vmatprep.subr.bf16.mxu0 %v12656_v53  ;;  %v12705_v42 = vld [vmem:[#allocation14 + $0x1748] ss:$20 sps:$4 sm:$0xff]   ;;  %v12708_v53 = vld [vmem:[#allocation14 + $0x1750] ss:$20 sps:$4 sm:$0xff]  }
 0x420   :  { %8739 = vmatpush1.bf16.msra.mxu1 %v12651_v26  ;;  %v12713_v26 = vld [vmem:[#allocation14 + $0x1774] ss:$20 sps:$4 sm:$0xff]  }
 0x421   :  { %9149 = vmatpush1.bf16.msra.mxu0 %v12654_v3  ;;  %8740 = vmatprep.subr.bf16.mxu1 %v12659_v45  ;;  %v12716_v3 = vld [vmem:[#allocation14 + $0x177c] ss:$20 sps:$4 sm:$0xff]  }
 0x422   :  { %9150 = vmatprep.subr.bf16.mxu0 %v12662_v32  ;;  %v12711_v45 = vld [vmem:[#allocation14 + $0x1770] ss:$20 sps:$4 sm:$0xff]   ;;  %v12714_v32 = vld [vmem:[#allocation14 + $0x1778] ss:$20 sps:$4 sm:$0xff]  }
 0x424   :  { %8741 = vmatpush1.bf16.msra.mxu1 %v12657_v23  ;;  %v12719_v23 = vld [vmem:[#allocation14 + $0x179c] ss:$20 sps:$4 sm:$0xff]  }
 0x425   :  { %9151 = vmatpush1.bf16.msra.mxu0 %v12660_v51  ;;  %8742 = vmatprep.subr.bf16.mxu1 %v12665_v22  ;;  %v12722_v51 = vld [vmem:[#allocation14 + $0x17a4] ss:$20 sps:$4 sm:$0xff]  }
 0x426   :  { %9152 = vmatprep.subr.bf16.mxu0 %v12668_v15  ;;  %v12717_v22 = vld [vmem:[#allocation14 + $0x1798] ss:$20 sps:$4 sm:$0xff]   ;;  %v12720_v15 = vld [vmem:[#allocation14 + $0x17a0] ss:$20 sps:$4 sm:$0xff]  }
 0x428   :  { %8743 = vmatpush1.bf16.msra.mxu1 %v12663_v1  ;;  %v12728_v1 = vld [vmem:[#allocation14 + $0x17cc] ss:$20 sps:$4 sm:$0xff]  }
 0x429   :  { %9153 = vmatpush1.bf16.msra.mxu0 %v12666_v37  ;;  %8744 = vmatprep.subr.bf16.mxu1 %v12671_v4  ;;  %v12726_v37 = vld [vmem:[#allocation14 + $0x17c8] ss:$20 sps:$4 sm:$0xff]   ;;  %v12731_v4 = vld [vmem:[#allocation14 + $0x17ec] ss:$20 sps:$4 sm:$0xff]  }
 0x42a   :  { %9154 = vmatprep.subr.bf16.mxu0 %v12674_v10  ;;  %v12734_v10 = vld [vmem:[#allocation14 + $0x17f4] ss:$20 sps:$4 sm:$0xff]  }
 0x42c   :  { %8745 = vmatpush1.bf16.msra.mxu1 %v12669_v29  ;;  %v12732_v29 = vld [vmem:[#allocation14 + $0x17f0] ss:$20 sps:$4 sm:$0xff]  }
 0x42d   :  { %9155 = vmatpush1.bf16.msra.mxu0 %v12672_v30  ;;  %8755 = vmatprep.subr.bf16.mxu1 %v12677_v14  ;;  %v3164_v30 = vmin.f32 %v14789_v31, 0.0  ;;  %v12740_v14 = vld [vmem:[#allocation14 + $0x181c] ss:$20 sps:$4 sm:$0xff]  }
 0x42e   :  { %9165 = vmatprep.subr.bf16.mxu0 %v12680_v50  ;;  %v12738_v50 = vld [vmem:[#allocation14 + $0x1818] ss:$20 sps:$4 sm:$0xff]  }
 0x42f   :  { %8747 = vmatmul.mubr.bf16.vlgmr.msra.gmra.mrb[8].mxu1 %v14948_v16  ;;  %v3202_v40 = vmul.f32 1.442695, %v3164_v30  ;;  %v12785_v30 = vld [vmem:[#allocation14 + $0x88] ss:$20 sps:$4 sm:$0xff]  }
 0x430   :  { %9157 = vmatmul.mubr.bf16.vlgmr.msra.gmra.mrb[12].mxu0 %v14948_v16  ;;  %8756 = vmatpush1.bf16.msra.mxu1 %v12675_v2  ;;  %v12743_v2 = vld [vmem:[#allocation14 + $0x183c] ss:$20 sps:$4 sm:$0xff]  }
 0x431   :  { %8787 = vmatprep.mubr.bf16.mxu1 %v14951_v59  ;;  %9166 = vmatpush1.bf16.msra.mxu0 %v12678_v44  ;;  %v12746_v44 = vld [vmem:[#allocation14 + $0x1844] ss:$20 sps:$4 sm:$0xff]   ;;  %13049 = vpow2.f32 %v3202_v40 }
 0x432   :  { %9197 = vmatprep.mubr.bf16.mxu0 %v14951_v59  ;;  %8757 = vmatprep.subr.bf16.mxu1 %v12683_v63  ;;  %v12741_v63 = vld [vmem:[#allocation14 + $0x1838] ss:$20 sps:$4 sm:$0xff]   ;;  %v12790_v40 = vld [vmem:[#allocation14 + $0x5b0] ss:$20 sps:$4 sm:$0xff]  }
 0x433   :  { %9167 = vmatprep.subr.bf16.mxu0 %v12686_v62  ;;  %v12744_v62 = vld [vmem:[#allocation14 + $0x1840] ss:$20 sps:$4 sm:$0xff]  }
 0x434   :  { %8758 = vmatpush1.bf16.msra.mxu1 %v12681_v0  ;;  %v12749_v0 = vld [vmem:[#allocation14 + $0x1864] ss:$20 sps:$4 sm:$0xff]  }
 0x435   :  { %9168 = vmatpush1.bf16.msra.mxu0 %v12684_v55  ;;  %8759 = vmatprep.subr.bf16.mxu1 %v12689_v12  ;;  %v12752_v55 = vld [vmem:[#allocation14 + $0x186c] ss:$20 sps:$4 sm:$0xff]  }
 0x436   :  { %9169 = vmatprep.subr.bf16.mxu0 %v12692_v56  ;;  %v12747_v12 = vld [vmem:[#allocation14 + $0x1860] ss:$20 sps:$4 sm:$0xff]   ;;  %v12750_v56 = vld [vmem:[#allocation14 + $0x1868] ss:$20 sps:$4 sm:$0xff]  }
 0x438   :  { %8760 = vmatpush1.bf16.msra.mxu1 %v12687_v28  ;;  %v12755_v28 = vld [vmem:[#allocation14 + $0x188c] ss:$20 sps:$4 sm:$0xff]  }
 0x439   :  { %9170 = vmatpush1.bf16.msra.mxu0 %v12690_v49  ;;  %8761 = vmatprep.subr.bf16.mxu1 %v12695_v46  ;;  %v12758_v49 = vld [vmem:[#allocation14 + $0x1894] ss:$20 sps:$4 sm:$0xff]  }
 0x43a   :  { %9171 = vmatprep.subr.bf16.mxu0 %v12698_v17  ;;  %v12753_v46 = vld [vmem:[#allocation14 + $0x1888] ss:$20 sps:$4 sm:$0xff]   ;;  %v12756_v17 = vld [vmem:[#allocation14 + $0x1890] ss:$20 sps:$4 sm:$0xff]  }
 0x43c   :  { %8762 = vmatpush1.bf16.msra.mxu1 %v12693_v25  ;;  %v12761_v25 = vld [vmem:[#allocation14 + $0x18b4] ss:$20 sps:$4 sm:$0xff]  }
 0x43d   :  { %9172 = vmatpush1.bf16.msra.mxu0 %v12696_v8  ;;  %8763 = vmatprep.subr.bf16.mxu1 %v12701_v60  ;;  %v12764_v8 = vld [vmem:[#allocation14 + $0x18bc] ss:$20 sps:$4 sm:$0xff]   ;;  %v13050_v60 = vpop.eup %13049 }
 0x43e   :  { %9173 = vmatprep.subr.bf16.mxu0 %v12704_v54  ;;  %v12759_v54 = vld [vmem:[#allocation14 + $0x18b0] ss:$20 sps:$4 sm:$0xff]  }
 0x440   :  { %8764 = vmatpush1.bf16.msra.mxu1 %v12699_v11  ;;  %v12762_v11 = vld [vmem:[#allocation14 + $0x18b8] ss:$20 sps:$4 sm:$0xff]  }
 0x441   :  { %9174 = vmatpush1.bf16.msra.mxu0 %v12702_v39  ;;  %8765 = vmatprep.subr.bf16.mxu1 %v12707_v27  ;;  %v12767_v39 = vld [vmem:[#allocation14 + $0x18dc] ss:$20 sps:$4 sm:$0xff]   ;;  %v12770_v27 = vld [vmem:[#allocation14 + $0x18e4] ss:$20 sps:$4 sm:$0xff]  }
 0x442   :  { %9175 = vmatprep.subr.bf16.mxu0 %v12710_v21  ;;  %v10359_v21 = vadd.f32 -1.0, %v13050_v60  ;;  %v12804_v60 = vld [vmem:[#allocation14 + $0xb50] ss:$20 sps:$4 sm:$0xff]  }
 0x444   :  { %8766 = vmatpush1.bf16.msra.mxu1 %v12705_v42  ;;  %v12765_v42 = vld [vmem:[#allocation14 + $0x18d8] ss:$20 sps:$4 sm:$0xff]  }
 0x445   :  { %9176 = vmatpush1.bf16.msra.mxu0 %v12708_v53  ;;  %8767 = vmatprep.subr.bf16.mxu1 %v12713_v26  ;;  %v12768_v53 = vld [vmem:[#allocation14 + $0x18e0] ss:$20 sps:$4 sm:$0xff]   ;;  %v12771_v26 = vld [vmem:[#allocation14 + $0x150] ss:$20 sps:$4 sm:$0xff]  }
 0x446   :  { %9177 = vmatprep.subr.bf16.mxu0 %v12716_v3  ;;  %v3244_v3 = vsel %vm3144_vm10, %v14789_v31, %v10359_v21  ;;  %v12778_v31 = vld [vmem:[#allocation14 + $0x538] ss:$20 sps:$4 sm:$0xff]  }
 0x447   :  { %v12808_v21 = vld [vmem:[#allocation14 + $0xb78] ss:$20 sps:$4 sm:$0xff]  }
 0x448   :  { %8768 = vmatpush1.bf16.msra.mxu1 %v12711_v45  ;;  %v12772_v45 = vld [vmem:[#allocation14 + $0x650] ss:$20 sps:$4 sm:$0xff]  }
 0x449   :  { %9178 = vmatpush1.bf16.msra.mxu0 %v12714_v32  ;;  %8769 = vmatprep.subr.bf16.mxu1 %v12719_v23  ;;  %v12773_v32 = vld [vmem:[#allocation14 + $0x10] ss:$20 sps:$4 sm:$0xff]   ;;  %v14959_v23 = vpack.c.bf16 %v3244_v3, %v3244_v3  ;;  %v12811_v3 = vld [vmem:[#allocation14 + $0x420] ss:$20 sps:$4 sm:$0xff]  }
 0x44a   :  { %9179 = vmatprep.subr.bf16.mxu0 %v12722_v51  ;;  %v12774_v51 = vld [vmem:[#allocation14 + $0x510] ss:$20 sps:$4 sm:$0xff]  }
 0x44c   :  { %8770 = vmatpush1.bf16.msra.mxu1 %v12717_v22  ;;  %v12775_v22 = vld [vmem:[#allocation14 + $0x178] ss:$20 sps:$4 sm:$0xff]  }
 0x44d   :  { %9180 = vmatpush1.bf16.msra.mxu0 %v12720_v15  ;;  %8771 = vmatprep.subr.bf16.mxu1 %v12725_v38  ;;  %v12776_v15 = vld [vmem:[#allocation14 + $0x678] ss:$20 sps:$4 sm:$0xff]  }
 0x44e   :  { %9181 = vmatprep.subr.bf16.mxu0 %v12728_v1  ;;  %v12777_v38 = vld [vmem:[#allocation14 + $0x38] ss:$20 sps:$4 sm:$0xff]   ;;  %v15106_v1 = vld [vmem:[#allocation33_spill] sm:$0xff] }
 0x450   :  { %8772 = vmatpush1.bf16.msra.mxu1 %v12723_v18  ;;  %v12779_v18 = vld [vmem:[#allocation14 + $0x1a0] ss:$20 sps:$4 sm:$0xff]  }
 0x451   :  { %9182 = vmatpush1.bf16.msra.mxu0 %v12726_v37  ;;  %8773 = vmatprep.subr.bf16.mxu1 %v12731_v4  ;;  %v15107_v37 = vld [vmem:[#allocation40_spill] sm:$0xff]  ;;  %v12780_v4 = vld [vmem:[#allocation14 + $0x6a0] ss:$20 sps:$4 sm:$0xff]  }
 0x452   :  { %9183 = vmatprep.subr.bf16.mxu0 %v12734_v10  ;;  %v12781_v10 = vld [vmem:[#allocation14 + $0x60] ss:$20 sps:$4 sm:$0xff]  }
 0x454   :  { %8774 = vmatpush1.bf16.msra.mxu1 %v12729_v57  ;;  %v12782_v57 = vld [vmem:[#allocation14 + $0x560] ss:$20 sps:$4 sm:$0xff]  }
 0x455   :  { %9184 = vmatpush1.bf16.msra.mxu0 %v12732_v29  ;;  %8775 = vmatprep.subr.bf16.mxu1 %v12737_v13  ;;  %v12783_v29 = vld [vmem:[#allocation14 + $0x1c8] ss:$20 sps:$4 sm:$0xff]  }
 0x456   :  { %9185 = vmatprep.subr.bf16.mxu0 %v12740_v14  ;;  %v12784_v13 = vld [vmem:[#allocation14 + $0x6c8] ss:$20 sps:$4 sm:$0xff]  }
 0x457   :  { %v12786_v14 = vld [vmem:[#allocation14 + $0x588] ss:$20 sps:$4 sm:$0xff]  }
 0x458   :  { %8776 = vmatpush1.bf16.msra.mxu1 %v12735_v7  ;;  %v12787_v7 = vld [vmem:[#allocation14 + $0x1f0] ss:$20 sps:$4 sm:$0xff]  }
 0x459   :  { %9186 = vmatpush1.bf16.msra.mxu0 %v12738_v50  ;;  %8777 = vmatprep.subr.bf16.mxu1 %v12743_v2  ;;  %v12788_v50 = vld [vmem:[#allocation14 + $0x6f0] ss:$20 sps:$4 sm:$0xff]  }
 0x45a   :  { %9187 = vmatprep.subr.bf16.mxu0 %v12746_v44  ;;  %v12789_v2 = vld [vmem:[#allocation14 + $0xb0] ss:$20 sps:$4 sm:$0xff]   ;;  %v12791_v44 = vld [vmem:[#allocation14 + $0x218] ss:$20 sps:$4 sm:$0xff]  }
 0x45c   :  { %8778 = vmatpush1.bf16.msra.mxu1 %v12741_v63  ;;  %v12792_v63 = vld [vmem:[#allocation14 + $0x718] ss:$20 sps:$4 sm:$0xff]  }
 0x45d   :  { %9188 = vmatpush1.bf16.msra.mxu0 %v12744_v62  ;;  %8779 = vmatprep.subr.bf16.mxu1 %v12749_v0  ;;  %v12793_v62 = vld [vmem:[#allocation14 + $0xd8] ss:$20 sps:$4 sm:$0xff]  }
 0x45e   :  { %9189 = vmatprep.subr.bf16.mxu0 %v12752_v55  ;;  %v12794_v0 = vld [vmem:[#allocation14 + $0x5d8] ss:$20 sps:$4 sm:$0xff]   ;;  %v12795_v55 = vld [vmem:[#allocation14 + $0x240] ss:$20 sps:$4 sm:$0xff]  }
 0x460   :  { %8780 = vmatpush1.bf16.msra.mxu1 %v12747_v12  ;;  %v12796_v12 = vld [vmem:[#allocation14 + $0x740] ss:$20 sps:$4 sm:$0xff]  }
 0x461   :  { %9190 = vmatpush1.bf16.msra.mxu0 %v12750_v56  ;;  %8781 = vmatprep.subr.bf16.mxu1 %v12755_v28  ;;  %v12797_v56 = vld [vmem:[#allocation14 + $0x100] ss:$20 sps:$4 sm:$0xff]  }
 0x462   :  { %9191 = vmatprep.subr.bf16.mxu0 %v12758_v49  ;;  %v12798_v28 = vld [vmem:[#allocation14 + $0x600] ss:$20 sps:$4 sm:$0xff]   ;;  %v12799_v49 = vld [vmem:[#allocation14 + $0x268] ss:$20 sps:$4 sm:$0xff]  }
 0x464   :  { %8782 = vmatpush1.bf16.msra.mxu1 %v12753_v46  ;;  %v12800_v46 = vld [vmem:[#allocation14 + $0x768] ss:$20 sps:$4 sm:$0xff]  }
 0x465   :  { %9192 = vmatpush1.bf16.msra.mxu0 %v12756_v17  ;;  %8783 = vmatprep.subr.bf16.mxu1 %v12761_v25  ;;  %v12801_v17 = vld [vmem:[#allocation14 + $0x128] ss:$20 sps:$4 sm:$0xff]  }
 0x466   :  { %9193 = vmatprep.subr.bf16.mxu0 %v12764_v8  ;;  %v12802_v25 = vld [vmem:[#allocation14 + $0x628] ss:$20 sps:$4 sm:$0xff]   ;;  %v12803_v8 = vld [vmem:[#allocation14 + $0x3d0] ss:$20 sps:$4 sm:$0xff]  }
 0x468   :  { %8784 = vmatpush1.bf16.msra.mxu1 %v12759_v54  ;;  %v12805_v54 = vld [vmem:[#allocation14 + $0x290] ss:$20 sps:$4 sm:$0xff]  }
 0x469   :  { %9194 = vmatpush1.bf16.msra.mxu0 %v12762_v11  ;;  %8785 = vmatprep.subr.bf16.mxu1 %v12767_v39  ;;  %v12806_v11 = vld [vmem:[#allocation14 + $0xa10] ss:$20 sps:$4 sm:$0xff]   ;;  %v12807_v39 = vld [vmem:[#allocation14 + $0x3f8] ss:$20 sps:$4 sm:$0xff]  }
 0x46a   :  { %9195 = vmatprep.subr.bf16.mxu0 %v12770_v27  ;;  %v15108_v27 = vld [vmem:[#allocation34_spill] sm:$0xff] }
 0x46c   :  { %8786 = vmatpush1.bf16.msra.mxu1 %v12765_v42  ;;  %v12809_v42 = vld [vmem:[#allocation14 + $0x2b8] ss:$20 sps:$4 sm:$0xff]  }
 0x46d   :  { %9196 = vmatpush1.bf16.msra.mxu0 %v12768_v53  ;;  %11207 = vmatprep.subr.bf16.mxu1 %v12771_v26  ;;  %v15109_v53 = vld [vmem:[#allocation35_spill] sm:$0xff]  ;;  %v12810_v26 = vld [vmem:[#allocation14 + $0xa38] ss:$20 sps:$4 sm:$0xff]  }
 0x46e   :  { %11251 = vmatprep.subr.bf16.mxu0 %v12772_v45  ;;  %v12812_v45 = vld [vmem:[#allocation14 + $0xba0] ss:$20 sps:$4 sm:$0xff]  }
 0x46f   :  { %8788 = vmatmul.mubr.bf16.vlgmr.msra.gmra.mrb[8].mxu1 %v14959_v23 }
 0x470   :  { %9198 = vmatmul.mubr.bf16.vlgmr.msra.gmra.mrb[12].mxu0 %v14959_v23  ;;  %11208 = vmatpush3.bf16.msra.mxu1 %v12773_v32  ;;  %v12813_v32 = vld [vmem:[#allocation14 + $0x2e0] ss:$20 sps:$4 sm:$0xff]  }
 0x471   :  { %9238 = vmatprep.mubr.bf16.mxu1 %v15106_v1  ;;  %11252 = vmatpush3.bf16.msra.mxu0 %v12774_v51  ;;  %v12814_v51 = vld [vmem:[#allocation14 + $0xa60] ss:$20 sps:$4 sm:$0xff]   ;;  %v12819_v1 = vld [vmem:[#allocation14 + $0x470] ss:$20 sps:$4 sm:$0xff]  }
 0x472   :  { %9318 = vmatprep.mubr.bf16.mxu0 %v15107_v37  ;;  %11209 = vmatprep.subr.bf16.mxu1 %v12775_v22  ;;  %v12815_v22 = vld [vmem:[#allocation14 + $0x448] ss:$20 sps:$4 sm:$0xff]   ;;  %v12823_v37 = vld [vmem:[#allocation14 + $0x498] ss:$20 sps:$4 sm:$0xff]  }
 0x473   :  { %11253 = vmatprep.subr.bf16.mxu0 %v12776_v15  ;;  %v12817_v15 = vld [vmem:[#allocation14 + $0x308] ss:$20 sps:$4 sm:$0xff]  }
 0x474   :  { %11210 = vmatpush3.bf16.msra.mxu1 %v12777_v38  ;;  %v12818_v38 = vld [vmem:[#allocation14 + $0xa88] ss:$20 sps:$4 sm:$0xff]  }
 0x475   :  { %11254 = vmatpush3.bf16.msra.mxu0 %v12778_v31  ;;  %11211 = vmatprep.subr.bf16.mxu1 %v12779_v18  ;;  %v12820_v31 = vld [vmem:[#allocation14 + $0xbf0] ss:$20 sps:$4 sm:$0xff]  }
 0x476   :  { %11255 = vmatprep.subr.bf16.mxu0 %v12780_v4  ;;  %v12822_v18 = vld [vmem:[#allocation14 + $0xab0] ss:$20 sps:$4 sm:$0xff]   ;;  %v12824_v4 = vld [vmem:[#allocation14 + $0xc18] ss:$20 sps:$4 sm:$0xff]  }
 0x478   :  { %11212 = vmatpush3.bf16.msra.mxu1 %v12781_v10  ;;  %v12825_v10 = vld [vmem:[#allocation14 + $0x358] ss:$20 sps:$4 sm:$0xff]  }
 0x479   :  { %11256 = vmatpush3.bf16.msra.mxu0 %v12782_v57  ;;  %11213 = vmatprep.subr.bf16.mxu1 %v12783_v29  ;;  %v12826_v57 = vld [vmem:[#allocation14 + $0xad8] ss:$20 sps:$4 sm:$0xff]   ;;  %v12827_v29 = vld [vmem:[#allocation14 + $0x4c0] ss:$20 sps:$4 sm:$0xff]  }
 0x47a   :  { %11257 = vmatprep.subr.bf16.mxu0 %v12784_v13  ;;  %v12828_v13 = vld [vmem:[#allocation14 + $0xc40] ss:$20 sps:$4 sm:$0xff]  }
 0x47c   :  { %11214 = vmatpush3.bf16.msra.mxu1 %v12785_v30  ;;  %v12829_v30 = vld [vmem:[#allocation14 + $0x380] ss:$20 sps:$4 sm:$0xff]  }
 0x47d   :  { %11258 = vmatpush3.bf16.msra.mxu0 %v12786_v14  ;;  %11215 = vmatprep.subr.bf16.mxu1 %v12787_v7  ;;  %v12830_v14 = vld [vmem:[#allocation14 + $0xb00] ss:$20 sps:$4 sm:$0xff]   ;;  %v12831_v7 = vld [vmem:[#allocation14 + $0x4e8] ss:$20 sps:$4 sm:$0xff]  }
 0x47e   :  { %11259 = vmatprep.subr.bf16.mxu0 %v12788_v50  ;;  %v12832_v50 = vld [vmem:[#allocation14 + $0xc68] ss:$20 sps:$4 sm:$0xff]  }
 0x480   :  { %11216 = vmatpush3.bf16.msra.mxu1 %v12789_v2  ;;  %v12833_v2 = vld [vmem:[#allocation14 + $0x3a8] ss:$20 sps:$4 sm:$0xff]  }
 0x481   :  { %11260 = vmatpush3.bf16.msra.mxu0 %v12790_v40  ;;  %11217 = vmatprep.subr.bf16.mxu1 %v12791_v44  ;;  %v12834_v40 = vld [vmem:[#allocation14 + $0xb28] ss:$20 sps:$4 sm:$0xff]   ;;  %v12835_v44 = vld [vmem:[#allocation14 + $0x8d0] ss:$20 sps:$4 sm:$0xff]  }
 0x482   :  { %11261 = vmatprep.subr.bf16.mxu0 %v12792_v63  ;;  %v12836_v63 = vld [vmem:[#allocation14 + $0x1050] ss:$20 sps:$4 sm:$0xff]  }
 0x484   :  { %11218 = vmatpush3.bf16.msra.mxu1 %v12793_v62  ;;  %v12837_v62 = vld [vmem:[#allocation14 + $0x790] ss:$20 sps:$4 sm:$0xff]  }
 0x485   :  { %11262 = vmatpush3.bf16.msra.mxu0 %v12794_v0  ;;  %11219 = vmatprep.subr.bf16.mxu1 %v12795_v55  ;;  %v12838_v0 = vld [vmem:[#allocation14 + $0xf10] ss:$20 sps:$4 sm:$0xff]   ;;  %v12839_v55 = vld [vmem:[#allocation14 + $0x8f8] ss:$20 sps:$4 sm:$0xff]  }
 0x486   :  { %11263 = vmatprep.subr.bf16.mxu0 %v12796_v12  ;;  %v15110_v12 = vld [vmem:[#allocation39_spill] sm:$0xff] }
 0x488   :  { %11220 = vmatpush3.bf16.msra.mxu1 %v12797_v56  ;;  %v12840_v56 = vld [vmem:[#allocation14 + $0x1078] ss:$20 sps:$4 sm:$0xff]  }
 0x489   :  { %11264 = vmatpush3.bf16.msra.mxu0 %v12798_v28  ;;  %11221 = vmatprep.subr.bf16.mxu1 %v12799_v49  ;;  %v12841_v28 = vld [vmem:[#allocation14 + $0x7b8] ss:$20 sps:$4 sm:$0xff]  }
 0x48a   :  { %11265 = vmatprep.subr.bf16.mxu0 %v12800_v46  ;;  %v12842_v49 = vld [vmem:[#allocation14 + $0xf38] ss:$20 sps:$4 sm:$0xff]   ;;  %v12843_v46 = vld [vmem:[#allocation14 + $0x920] ss:$20 sps:$4 sm:$0xff]  }
 0x48c   :  { %11222 = vmatpush3.bf16.msra.mxu1 %v12801_v17  ;;  %v12844_v17 = vld [vmem:[#allocation14 + $0x10a0] ss:$20 sps:$4 sm:$0xff]  }
 0x48d   :  { %11266 = vmatpush3.bf16.msra.mxu0 %v12802_v25  ;;  %11229 = vmatprep.subr.bf16.mxu1 %v12803_v8  ;;  %v12845_v25 = vld [vmem:[#allocation14 + $0x7e0] ss:$20 sps:$4 sm:$0xff]  }
 0x48e   :  { %11295 = vmatprep.subr.bf16.mxu0 %v12804_v60  ;;  %v12846_v8 = vld [vmem:[#allocation14 + $0xf60] ss:$20 sps:$4 sm:$0xff]   ;;  %v12847_v60 = vld [vmem:[#allocation14 + $0x948] ss:$20 sps:$4 sm:$0xff]  }
 0x48f   :  { %9239 = vmatmul.mubr.bf16.vlgmr.msra.gmra.mrb[12].mxu1 %v15108_v27  ;;  %v12854_v27 = vld [vmem:[#allocation14 + $0xfb0] ss:$20 sps:$4 sm:$0xff]  }
 0x490   :  { %9319 = vmatmul.mubr.bf16.vlgmr.msra.gmra.mrb[16].mxu0 %v14575_v52  ;;  %11230 = vmatpush3.bf16.msra.mxu1 %v12805_v54  ;;  %v12816_v52 = vld [vmem:[#allocation14 + $0xbc8] ss:$20 sps:$4 sm:$0xff]  }
 0x491   :  { %9278 = vmatprep.mubr.bf16.mxu1 %v15109_v53  ;;  %11296 = vmatpush3.bf16.msra.mxu0 %v12806_v11  ;;  %v12849_v54 = vld [vmem:[#allocation14 + $0x808] ss:$20 sps:$4 sm:$0xff]   ;;  %v12851_v11 = vld [vmem:[#allocation14 + $0x970] ss:$20 sps:$4 sm:$0xff]   ;;  %v12857_v53 = vld [vmem:[#allocation14 + $0x858] ss:$20 sps:$4 sm:$0xff]  }
 0x492   :  { %9398 = vmatprep.mubr.bf16.mxu0 %v14783_v61  ;;  %11231 = vmatprep.subr.bf16.mxu1 %v12807_v39  ;;  %v12821_v61 = vld [vmem:[#allocation14 + $0x330] ss:$20 sps:$4 sm:$0xff]  }
 0x493   :  { %11297 = vmatprep.subr.bf16.mxu0 %v12808_v21  ;;  %v12852_v39 = vld [vmem:[#allocation14 + $0x10f0] ss:$20 sps:$4 sm:$0xff]   ;;  %v12855_v21 = vld [vmem:[#allocation14 + $0x998] ss:$20 sps:$4 sm:$0xff]  }
 0x494   :  { %11232 = vmatpush3.bf16.msra.mxu1 %v12809_v42  ;;  %v12856_v42 = vld [vmem:[#allocation14 + $0x1118] ss:$20 sps:$4 sm:$0xff]  }
 0x495   :  { %11298 = vmatpush3.bf16.msra.mxu0 %v12810_v26  ;;  %11233 = vmatprep.subr.bf16.mxu1 %v12811_v3  ;;  %v12858_v26 = vld [vmem:[#allocation14 + $0xfd8] ss:$20 sps:$4 sm:$0xff]   ;;  %v12859_v3 = vld [vmem:[#allocation14 + $0x9c0] ss:$20 sps:$4 sm:$0xff]  }
 0x496   :  { %11299 = vmatprep.subr.bf16.mxu0 %v12812_v45  ;;  %v12860_v45 = vld [vmem:[#allocation14 + $0x1140] ss:$20 sps:$4 sm:$0xff]  }
 0x498   :  { %11234 = vmatpush3.bf16.msra.mxu1 %v12813_v32  ;;  %v12861_v32 = vld [vmem:[#allocation14 + $0x880] ss:$20 sps:$4 sm:$0xff]  }
 0x499   :  { %11300 = vmatpush3.bf16.msra.mxu0 %v12814_v51  ;;  %11235 = vmatprep.subr.bf16.mxu1 %v12815_v22  ;;  %v12862_v51 = vld [vmem:[#allocation14 + $0x1000] ss:$20 sps:$4 sm:$0xff]   ;;  %v12863_v22 = vld [vmem:[#allocation14 + $0x9e8] ss:$20 sps:$4 sm:$0xff]  }
 0x49a   :  { %11301 = vmatprep.subr.bf16.mxu0 %v12816_v52  ;;  %v12864_v52 = vld [vmem:[#allocation14 + $0x1168] ss:$20 sps:$4 sm:$0xff]  }
 0x49c   :  { %11236 = vmatpush3.bf16.msra.mxu1 %v12817_v15  ;;  %v12865_v15 = vld [vmem:[#allocation14 + $0x8a8] ss:$20 sps:$4 sm:$0xff]  }
 0x49d   :  { %11302 = vmatpush3.bf16.msra.mxu0 %v12818_v38  ;;  %11237 = vmatprep.subr.bf16.mxu1 %v12819_v1  ;;  %v12866_v38 = vld [vmem:[#allocation14 + $0x1028] ss:$20 sps:$4 sm:$0xff]   ;;  %v12867_v1 = vld [vmem:[#allocation14 + $0xdd0] ss:$20 sps:$4 sm:$0xff]  }
 0x49e   :  { %11303 = vmatprep.subr.bf16.mxu0 %v12820_v31  ;;  %v12868_v31 = vld [vmem:[#allocation14 + $0x1550] ss:$20 sps:$4 sm:$0xff]  }
 0x4a0   :  { %11238 = vmatpush3.bf16.msra.mxu1 %v12821_v61  ;;  %v12869_v61 = vld [vmem:[#allocation14 + $0xc90] ss:$20 sps:$4 sm:$0xff]  }
 0x4a1   :  { %11304 = vmatpush3.bf16.msra.mxu0 %v12822_v18  ;;  %11239 = vmatprep.subr.bf16.mxu1 %v12823_v37  ;;  %v12870_v18 = vld [vmem:[#allocation14 + $0x1410] ss:$20 sps:$4 sm:$0xff]   ;;  %v12871_v37 = vld [vmem:[#allocation14 + $0xdf8] ss:$20 sps:$4 sm:$0xff]  }
 0x4a2   :  { %11305 = vmatprep.subr.bf16.mxu0 %v12824_v4  ;;  %v12872_v4 = vld [vmem:[#allocation14 + $0x1578] ss:$20 sps:$4 sm:$0xff]  }
 0x4a4   :  { %11240 = vmatpush3.bf16.msra.mxu1 %v12825_v10  ;;  %v12873_v10 = vld [vmem:[#allocation14 + $0xcb8] ss:$20 sps:$4 sm:$0xff]  }
 0x4a5   :  { %11306 = vmatpush3.bf16.msra.mxu0 %v12826_v57  ;;  %11241 = vmatprep.subr.bf16.mxu1 %v12827_v29  ;;  %v12874_v57 = vld [vmem:[#allocation14 + $0x1438] ss:$20 sps:$4 sm:$0xff]   ;;  %v12875_v29 = vld [vmem:[#allocation14 + $0xe20] ss:$20 sps:$4 sm:$0xff]  }
 0x4a6   :  { %11307 = vmatprep.subr.bf16.mxu0 %v12828_v13  ;;  %v12876_v13 = vld [vmem:[#allocation14 + $0x15a0] ss:$20 sps:$4 sm:$0xff]  }
 0x4a8   :  { %11242 = vmatpush3.bf16.msra.mxu1 %v12829_v30  ;;  %v12877_v30 = vld [vmem:[#allocation14 + $0xce0] ss:$20 sps:$4 sm:$0xff]  }
 0x4a9   :  { %11308 = vmatpush3.bf16.msra.mxu0 %v12830_v14  ;;  %11243 = vmatprep.subr.bf16.mxu1 %v12831_v7  ;;  %v12879_v14 = vld [vmem:[#allocation14 + $0xe48] ss:$20 sps:$4 sm:$0xff]  }
 0x4aa   :  { %11309 = vmatprep.subr.bf16.mxu0 %v12832_v50  ;;  %v12881_v7 = vld [vmem:[#allocation14 + $0xd08] ss:$20 sps:$4 sm:$0xff]   ;;  %v12883_v50 = vld [vmem:[#allocation14 + $0xe70] ss:$20 sps:$4 sm:$0xff]  }
 0x4ac   :  { %11244 = vmatpush3.bf16.msra.mxu1 %v12833_v2  ;;  %v12884_v2 = vld [vmem:[#allocation14 + $0x15f0] ss:$20 sps:$4 sm:$0xff]  }
 0x4ad   :  { %11310 = vmatpush3.bf16.msra.mxu0 %v12834_v40  ;;  %11273 = vmatprep.subr.bf16.mxu1 %v12835_v44  ;;  %v12886_v40 = vld [vmem:[#allocation14 + $0x14b0] ss:$20 sps:$4 sm:$0xff]   ;;  %v12887_v44 = vld [vmem:[#allocation14 + $0xe98] ss:$20 sps:$4 sm:$0xff]  }
 0x4ae   :  { %11339 = vmatprep.subr.bf16.mxu0 %v12836_v63  ;;  %v12888_v63 = vld [vmem:[#allocation14 + $0x1618] ss:$20 sps:$4 sm:$0xff]  }
 0x4af   :  { %9279 = vmatmul.mubr.bf16.vlgmr.msra.gmra.mrb[16].mxu1 %v15110_v12  ;;  %v12892_v12 = vld [vmem:[#allocation14 + $0x1640] ss:$20 sps:$4 sm:$0xff]  }
 0x4b0   :  { %9399 = vmatmul.mubr.bf16.vlgmr.msra.gmra.mrb[20].mxu0 %v14824_v5  ;;  %11274 = vmatpush3.bf16.msra.mxu1 %v12837_v62  ;;  %v12848_v5 = vld [vmem:[#allocation14 + $0x10c8] ss:$20 sps:$4 sm:$0xff]   ;;  %v12889_v62 = vld [vmem:[#allocation14 + $0xd58] ss:$20 sps:$4 sm:$0xff]  }
 0x4b1   :  { %9358 = vmatprep.mubr.bf16.mxu1 %v14580_v47  ;;  %11340 = vmatpush3.bf16.msra.mxu0 %v12838_v0  ;;  %v12850_v47 = vld [vmem:[#allocation14 + $0xf88] ss:$20 sps:$4 sm:$0xff]   ;;  %v12890_v0 = vld [vmem:[#allocation14 + $0x14d8] ss:$20 sps:$4 sm:$0xff]  }
 0x4b2   :  { %9478 = vmatprep.mubr.bf16.mxu0 %v14841_v9  ;;  %11275 = vmatprep.subr.bf16.mxu1 %v12839_v55  ;;  %v12853_v9 = vld [vmem:[#allocation14 + $0x830] ss:$20 sps:$4 sm:$0xff]   ;;  %v12891_v55 = vld [vmem:[#allocation14 + $0xec0] ss:$20 sps:$4 sm:$0xff]  }
 0x4b3   :  { %11341 = vmatprep.subr.bf16.mxu0 %v12840_v56  ;;  %v12893_v56 = vld [vmem:[#allocation14 + $0xd80] ss:$20 sps:$4 sm:$0xff]  }
 0x4b4   :  { %11276 = vmatpush3.bf16.msra.mxu1 %v12841_v28  ;;  %v12894_v28 = vld [vmem:[#allocation14 + $0x1500] ss:$20 sps:$4 sm:$0xff]  }
 0x4b5   :  { %11342 = vmatpush3.bf16.msra.mxu0 %v12842_v49  ;;  %11277 = vmatprep.subr.bf16.mxu1 %v12843_v46  ;;  %v12895_v49 = vld [vmem:[#allocation14 + $0xee8] ss:$20 sps:$4 sm:$0xff]  }
 0x4b6   :  { %11343 = vmatprep.subr.bf16.mxu0 %v12844_v17  ;;  %v12896_v46 = vld [vmem:[#allocation14 + $0x1668] ss:$20 sps:$4 sm:$0xff]  }
 0x4b7   :  { %v12897_v17 = vld [vmem:[#allocation14 + $0xda8] ss:$20 sps:$4 sm:$0xff]  }
 0x4b8   :  { %11278 = vmatpush3.bf16.msra.mxu1 %v12845_v25  ;;  %v12898_v25 = vld [vmem:[#allocation14 + $0x1528] ss:$20 sps:$4 sm:$0xff]  }
 0x4b9   :  { %11344 = vmatpush3.bf16.msra.mxu0 %v12846_v8  ;;  %11279 = vmatprep.subr.bf16.mxu1 %v12847_v60  ;;  %v12899_v8 = vld [vmem:[#allocation14 + $0x12d0] ss:$20 sps:$4 sm:$0xff]  }
 0x4ba   :  { %11345 = vmatprep.subr.bf16.mxu0 %v12848_v5  ;;  %v12931_v60 = vld [vmem:[#allocation19 + $0x40] sm:$0xff]  }
 0x4bb   :  { %v12900_v5 = vld [vmem:[#allocation14 + $0x1190] ss:$20 sps:$4 sm:$0xff]  }
 0x4bc   :  { %11280 = vmatpush3.bf16.msra.mxu1 %v12849_v54  ;;  %v12901_v54 = vld [vmem:[#allocation14 + $0x12f8] ss:$20 sps:$4 sm:$0xff]  }
 0x4bd   :  { %11346 = vmatpush3.bf16.msra.mxu0 %v12850_v47  ;;  %11281 = vmatprep.subr.bf16.mxu1 %v12851_v11  ;;  %v12933_v47 = vld [vmem:[#allocation19] sm:$0xff]   ;;  %v12935_v11 = vld [vmem:[#allocation19 + $0x48] sm:$0xff]  }
 0x4be   :  { %11347 = vmatprep.subr.bf16.mxu0 %v12852_v39  ;;  %v12902_v39 = vld [vmem:[#allocation14 + $0x11b8] ss:$20 sps:$4 sm:$0xff]  }
 0x4c0   :  { %11282 = vmatpush3.bf16.msra.mxu1 %v12853_v9  ;;  %v12903_v9 = vld [vmem:[#allocation14 + $0x1320] ss:$20 sps:$4 sm:$0xff]  }
 0x4c1   :  { %11348 = vmatpush3.bf16.msra.mxu0 %v12854_v27  ;;  %11283 = vmatprep.subr.bf16.mxu1 %v12855_v21  ;;  %v12937_v27 = vld [vmem:[#allocation19 + $0x8] sm:$0xff]   ;;  %v12939_v21 = vld [vmem:[#allocation19 + $0x50] sm:$0xff]  }
 0x4c2   :  { %11349 = vmatprep.subr.bf16.mxu0 %v12856_v42  ;;  %v12904_v42 = vld [vmem:[#allocation14 + $0x11e0] ss:$20 sps:$4 sm:$0xff]  }
 0x4c4   :  { %11284 = vmatpush3.bf16.msra.mxu1 %v12857_v53  ;;  %v12905_v53 = vld [vmem:[#allocation14 + $0x1348] ss:$20 sps:$4 sm:$0xff]  }
 0x4c5   :  { %11350 = vmatpush3.bf16.msra.mxu0 %v12858_v26  ;;  %11285 = vmatprep.subr.bf16.mxu1 %v12859_v3  ;;  %v12941_v26 = vld [vmem:[#allocation19 + $0x10] sm:$0xff]   ;;  %v12907_v3 = vld [vmem:[#allocation14 + $0x1370] ss:$20 sps:$4 sm:$0xff]  }
 0x4c6   :  { %11351 = vmatprep.subr.bf16.mxu0 %v12860_v45  ;;  %v12947_v45 = vld [vmem:[#allocation19 + $0x60] sm:$0xff]  }
 0x4c8   :  { %11286 = vmatpush3.bf16.msra.mxu1 %v12861_v32  ;;  %v12908_v32 = vld [vmem:[#allocation14 + $0x1230] ss:$20 sps:$4 sm:$0xff]  }
 0x4c9   :  { %11352 = vmatpush3.bf16.msra.mxu0 %v12862_v51  ;;  %11287 = vmatprep.subr.bf16.mxu1 %v12863_v22  ;;  %v12909_v51 = vld [vmem:[#allocation14 + $0x1398] ss:$20 sps:$4 sm:$0xff]  }
 0x4ca   :  { %11353 = vmatprep.subr.bf16.mxu0 %v12864_v52  ;;  %v12949_v22 = vld [vmem:[#allocation19 + $0x20] sm:$0xff]   ;;  %v12951_v52 = vld [vmem:[#allocation19 + $0x68] sm:$0xff]  }
 0x4cc   :  { %11288 = vmatpush3.bf16.msra.mxu1 %v12865_v15  ;;  %v12910_v15 = vld [vmem:[#allocation14 + $0x1258] ss:$20 sps:$4 sm:$0xff]  }
 0x4cd   :  { %11354 = vmatpush3.bf16.msra.mxu0 %v12866_v38  ;;  %11317 = vmatprep.subr.bf16.mxu1 %v12867_v1  ;;  %v12911_v38 = vld [vmem:[#allocation14 + $0x13c0] ss:$20 sps:$4 sm:$0xff]  }
 0x4ce   :  { %11383 = vmatprep.subr.bf16.mxu0 %v12868_v31  ;;  %v12953_v1 = vld [vmem:[#allocation19 + $0x28] sm:$0xff]   ;;  %v12955_v31 = vld [vmem:[#allocation19 + $0x70] sm:$0xff]  }
 0x4cf   :  { %9359 = vmatmul.mubr.bf16.vlgmr.msra.gmra.mrb[20].mxu1 %v14777_v20  ;;  %v12878_v20 = vld [vmem:[#allocation14 + $0x1460] ss:$20 sps:$4 sm:$0xff]  }
 0x4d0   :  { %9479 = vmatmul.mubr.bf16.vlgmr.msra.gmra.mrb[24].mxu0 %v14865_v58  ;;  %11318 = vmatpush3.bf16.msra.mxu1 %v12869_v61  ;;  %v12880_v58 = vld [vmem:[#allocation14 + $0x15c8] ss:$20 sps:$4 sm:$0xff]   ;;  %v12912_v61 = vld [vmem:[#allocation14 + $0x1280] ss:$20 sps:$4 sm:$0xff]  }
 0x4d1   :  { %9438 = vmatprep.mubr.bf16.mxu1 %v14826_v33  ;;  %11384 = vmatpush3.bf16.msra.mxu0 %v12870_v18  ;;  %v12882_v33 = vld [vmem:[#allocation14 + $0x1488] ss:$20 sps:$4 sm:$0xff]  }
 0x4d2   :  { %9558 = vmatprep.mubr.bf16.mxu0 %v14919_v41  ;;  %11319 = vmatprep.subr.bf16.mxu1 %v12871_v37  ;;  %v12885_v41 = vld [vmem:[#allocation14 + $0xd30] ss:$20 sps:$4 sm:$0xff]   ;;  %v12913_v18 = vld [vmem:[#allocation14 + $0x13e8] ss:$20 sps:$4 sm:$0xff]  }
 0x4d3   :  { %11385 = vmatprep.subr.bf16.mxu0 %v12872_v4  ;;  %v12957_v37 = vld [vmem:[#allocation19 + $0x30] sm:$0xff]   ;;  %v12959_v4 = vld [vmem:[#allocation19 + $0x78] sm:$0xff]  }
 0x4d4   :  { %11320 = vmatpush3.bf16.msra.mxu1 %v12873_v10  ;;  %v12914_v10 = vld [vmem:[#allocation14 + $0x12a8] ss:$20 sps:$4 sm:$0xff]  }
 0x4d5   :  { %11386 = vmatpush3.bf16.msra.mxu0 %v12874_v57  ;;  %11321 = vmatprep.subr.bf16.mxu1 %v12875_v29  ;;  %v12915_v57 = vld [vmem:[#allocation14 + $0x17d0] ss:$20 sps:$4 sm:$0xff]  }
 0x4d6   :  { %11387 = vmatprep.subr.bf16.mxu0 %v12876_v13  ;;  %v12961_v29 = vld [vmem:[#allocation19 + $0x38] sm:$0xff]  }
 0x4d7   :  { %v12916_v13 = vld [vmem:[#allocation14 + $0x1690] ss:$20 sps:$4 sm:$0xff]  }
 0x4d8   :  { %11322 = vmatpush3.bf16.msra.mxu1 %v12877_v30  ;;  %v12917_v30 = vld [vmem:[#allocation14 + $0x17f8] ss:$20 sps:$4 sm:$0xff]  }
 0x4d9   :  { %11388 = vmatpush3.bf16.msra.mxu0 %v12878_v20  ;;  %11323 = vmatprep.subr.bf16.mxu1 %v12879_v14  ;;  %v12918_v20 = vld [vmem:[#allocation14 + $0x16b8] ss:$20 sps:$4 sm:$0xff]   ;;  %v12919_v14 = vld [vmem:[#allocation14 + $0x1820] ss:$20 sps:$4 sm:$0xff]  }
 0x4da   :  { %11389 = vmatprep.subr.bf16.mxu0 %v12880_v58  ;;  %v12920_v58 = vld [vmem:[#allocation14 + $0x16e0] ss:$20 sps:$4 sm:$0xff]  }
 0x4dc   :  { %11324 = vmatpush3.bf16.msra.mxu1 %v12881_v7  ;;  %v12921_v7 = vld [vmem:[#allocation14 + $0x1848] ss:$20 sps:$4 sm:$0xff]  }
 0x4dd   :  { %11390 = vmatpush3.bf16.msra.mxu0 %v12882_v33  ;;  %11325 = vmatprep.subr.bf16.mxu1 %v12883_v50  ;;  %v12922_v33 = vld [vmem:[#allocation14 + $0x1708] ss:$20 sps:$4 sm:$0xff]   ;;  %v12923_v50 = vld [vmem:[#allocation14 + $0x1870] ss:$20 sps:$4 sm:$0xff]  }
 0x4de   :  { %11391 = vmatprep.subr.bf16.mxu0 %v12884_v2  ;;  %v12924_v2 = vld [vmem:[#allocation14 + $0x1730] ss:$20 sps:$4 sm:$0xff]  }
 0x4e0   :  { %11326 = vmatpush3.bf16.msra.mxu1 %v12885_v41  ;;  %v12925_v41 = vld [vmem:[#allocation14 + $0x1898] ss:$20 sps:$4 sm:$0xff]  }
 0x4e1   :  { %11392 = vmatpush3.bf16.msra.mxu0 %v12886_v40  ;;  %11327 = vmatprep.subr.bf16.mxu1 %v12887_v44  ;;  %v12927_v40 = vld [vmem:[#allocation14 + $0x18c0] ss:$20 sps:$4 sm:$0xff]   ;;  %v12929_v44 = vld [vmem:[#allocation14 + $0x18e8] ss:$20 sps:$4 sm:$0xff]  }
 0x4e2   :  { %11393 = vmatprep.subr.bf16.mxu0 %v12888_v63  ;;  %v12930_v63 = vld [vmem:[#allocation14 + $0x17a8] ss:$20 sps:$4 sm:$0xff]  }
 0x4e4   :  { %11328 = vmatpush3.bf16.msra.mxu1 %v12889_v62  ;;  %v12932_v62 = vld [vmem:[#allocation19 + $0xc0] sm:$0xff]  }
 0x4e5   :  { %11394 = vmatpush3.bf16.msra.mxu0 %v12890_v0  ;;  %11329 = vmatprep.subr.bf16.mxu1 %v12891_v55  ;;  %v12934_v0 = vld [vmem:[#allocation19 + $0x80] sm:$0xff]   ;;  %v12936_v55 = vld [vmem:[#allocation19 + $0xc8] sm:$0xff]  }
 0x4e6   :  { %11395 = vmatprep.subr.bf16.mxu0 %v12892_v12  ;;  %v12938_v12 = vld [vmem:[#allocation19 + $0x88] sm:$0xff]  }
 0x4e8   :  { %11330 = vmatpush3.bf16.msra.mxu1 %v12893_v56  ;;  %v12940_v56 = vld [vmem:[#allocation19 + $0xd0] sm:$0xff]  }
 0x4e9   :  { %11396 = vmatpush3.bf16.msra.mxu0 %v12894_v28  ;;  %11331 = vmatprep.subr.bf16.mxu1 %v12895_v49  ;;  %v12942_v28 = vld [vmem:[#allocation19 + $0x90] sm:$0xff]   ;;  %v12944_v49 = vld [vmem:[#allocation19 + $0xd8] sm:$0xff]  }
 0x4ea   :  { %11397 = vmatprep.subr.bf16.mxu0 %v12896_v46  ;;  %v12946_v46 = vld [vmem:[#allocation19 + $0x98] sm:$0xff]  }
 0x4ec   :  { %11332 = vmatpush3.bf16.msra.mxu1 %v12897_v17  ;;  %v12948_v17 = vld [vmem:[#allocation19 + $0xe0] sm:$0xff]  }
 0x4ed   :  { %11398 = vmatpush3.bf16.msra.mxu0 %v12898_v25  ;;  %11361 = vmatprep.subr.bf16.mxu1 %v12899_v8  ;;  %v14983_v25 = vld [vmem:[#allocation16] sm:$0x1f]  ;;  %v12950_v8 = vld [vmem:[#allocation19 + $0xa0] sm:$0xff]  }
 0x4ee   :  { %11427 = vmatprep.subr.bf16.mxu0 %v12931_v60  ;;  %v12952_v60 = vld [vmem:[#allocation19 + $0xe8] sm:$0xff]  }
 0x4ef   :  { %9439 = vmatmul.mubr.bf16.vlgmr.msra.gmra.mrb[24].mxu1 %v14838_v48  ;;  %v12943_v48 = vld [vmem:[#allocation19 + $0x58] sm:$0xff]  }
 0x4f0   :  { %9559 = vmatmul.mubr.bf16.vlgmr.msra.gmra.mrb[28].mxu0 %v14948_v16  ;;  %11362 = vmatpush3.bf16.msra.mxu1 %v12900_v5  ;;  %v12906_v16 = vld [vmem:[#allocation14 + $0x1208] ss:$20 sps:$4 sm:$0xff]  }
 0x4f1   :  { %9518 = vmatprep.mubr.bf16.mxu1 %v14869_v6  ;;  %11363 = vmatprep.subr.bf16.mxu1 %v12901_v54  ;;  %v12945_v6 = vld [vmem:[#allocation19 + $0x18] sm:$0xff]   ;;  %v9619_v54 = vrot.slane %v14983_v25, %v13706_v19 }
 0x4f2   :  { %11428 = vmatpush3.bf16.msra.mxu0 %v12933_v47  ;;  %v14985_v5 = vld [vmem:[#allocation17] sm:$0x1f]  ;;  %v9615_v47 = vrot.slane %v14983_v25, %v13662_v36 }
 0x4f3   :  { %11429 = vmatprep.subr.bf16.mxu0 %v12935_v11  ;;  %v12954_v11 = vld [vmem:[#allocation19 + $0xa8] sm:$0xff]  }
 0x4f4   :  { %11364 = vmatpush3.bf16.msra.mxu1 %v12902_v39  ;;  %v9643_v39 = vrot.slane %v14985_v5, %v13659_v35 }
 0x4f5   :  { %11365 = vmatprep.subr.bf16.mxu1 %v12903_v9  ;;  %v9623_v9 = vrot.slane %v14983_v25, %v13675_v43 }
 0x4f6   :  { %11430 = vmatpush3.bf16.msra.mxu0 %v12937_v27  ;;  %v12956_v27 = vld [vmem:[#allocation19 + $0xf0] sm:$0xff]  }
 0x4f7   :  { %11431 = vmatprep.subr.bf16.mxu0 %v12939_v21 }
 0x4f8   :  { %11366 = vmatpush3.bf16.msra.mxu1 %v12904_v42  ;;  %v9651_v42 = vrot.slane %v14985_v5, %v13706_v19  ;;  %v12960_v19 = vld [vmem:[#allocation19 + $0xf8] sm:$0xff]  }
 0x4f9   :  { %11367 = vmatprep.subr.bf16.mxu1 %v12905_v53  ;;  %v9647_v53 = vrot.slane %v14985_v5, %v13662_v36 }
 0x4fa   :  { %11432 = vmatpush3.bf16.msra.mxu0 %v12941_v26 }
 0x4fb   :  { %11433 = vmatprep.subr.bf16.mxu0 %v12943_v48 }
 0x4fc   :  { %11368 = vmatpush3.bf16.msra.mxu1 %v12906_v16 }
 0x4fd   :  { %11369 = vmatprep.subr.bf16.mxu1 %v12907_v3  ;;  %v9655_v3 = vrot.slane %v14985_v5, %v13675_v43  ;;  %v12962_v43 = vld [vmem:[#allocation19 + $0xb8] sm:$0xff]  }
 0x4fe   :  { %11434 = vmatpush3.bf16.msra.mxu0 %v12945_v6 }
 0x4ff   :  { %11435 = vmatprep.subr.bf16.mxu0 %v12947_v45 }
 0x500   :  { %11370 = vmatpush3.bf16.msra.mxu1 %v12908_v32 }
 0x501   :  { %11371 = vmatprep.subr.bf16.mxu1 %v12909_v51  ;;  %v12958_v51 = vld [vmem:[#allocation19 + $0xb0] sm:$0xff]  }
 0x502   :  { %11436 = vmatpush3.bf16.msra.mxu0 %v12949_v22 }
 0x503   :  { %11437 = vmatprep.subr.bf16.mxu0 %v12951_v52 }
 0x504   :  { %11372 = vmatpush3.bf16.msra.mxu1 %v12910_v15 }
 0x505   :  { %11373 = vmatprep.subr.bf16.mxu1 %v12911_v38 }
 0x506   :  { %11438 = vmatpush3.bf16.msra.mxu0 %v12953_v1 }
 0x507   :  { %11439 = vmatprep.subr.bf16.mxu0 %v12955_v31 }
 0x508   :  { %11374 = vmatpush3.bf16.msra.mxu1 %v12912_v61 }
 0x509   :  { %11375 = vmatprep.subr.bf16.mxu1 %v12913_v18 }
 0x50a   :  { %11440 = vmatpush3.bf16.msra.mxu0 %v12957_v37 }
 0x50b   :  { %11441 = vmatprep.subr.bf16.mxu0 %v12959_v4 }
 0x50c   :  { %11376 = vmatpush3.bf16.msra.mxu1 %v12914_v10 }
 0x50d   :  { %11405 = vmatprep.subr.bf16.mxu1 %v12915_v57 }
 0x50e   :  { %11442 = vmatpush3.bf16.msra.mxu0 %v12961_v29 }
 0x50f   :  { %9519 = vmatmul.mubr.bf16.vlgmr.msra.gmra.mrb[28].mxu1 %v14916_v34  ;;  %v12926_v34 = vld [vmem:[#allocation14 + $0x1758] ss:$20 sps:$4 sm:$0xff]  }
 0x510   :  { %11406 = vmatpush3.bf16.msra.mxu1 %v12916_v13  ;;  %9598 = vmatprep.mubr.bf16.mxu1 %v14951_v59  ;;  %v12928_v59 = vld [vmem:[#allocation14 + $0x1780] ss:$20 sps:$4 sm:$0xff]  }
 0x511   :  { %11407 = vmatprep.subr.bf16.mxu1 %v12917_v30 }
 0x514   :  { %11408 = vmatpush3.bf16.msra.mxu1 %v12918_v20 }
 0x515   :  { %11409 = vmatprep.subr.bf16.mxu1 %v12919_v14 }
 0x518   :  { %11410 = vmatpush3.bf16.msra.mxu1 %v12920_v58 }
 0x519   :  { %11411 = vmatprep.subr.bf16.mxu1 %v12921_v7 }
 0x51c   :  { %11412 = vmatpush3.bf16.msra.mxu1 %v12922_v33 }
 0x51d   :  { %11413 = vmatprep.subr.bf16.mxu1 %v12923_v50 }
 0x520   :  { %11414 = vmatpush3.bf16.msra.mxu1 %v12924_v2 }
 0x521   :  { %11415 = vmatprep.subr.bf16.mxu1 %v12925_v41 }
 0x524   :  { %11416 = vmatpush3.bf16.msra.mxu1 %v12926_v34 }
 0x525   :  { %11417 = vmatprep.subr.bf16.mxu1 %v12927_v40 }
 0x528   :  { %11418 = vmatpush3.bf16.msra.mxu1 %v12928_v59 }
 0x529   :  { %11419 = vmatprep.subr.bf16.mxu1 %v12929_v44 }
 0x52c   :  { %11420 = vmatpush3.bf16.msra.mxu1 %v12930_v63 }
 0x52d   :  { %11449 = vmatprep.subr.bf16.mxu1 %v12932_v62 }
 0x52f   :  { %9599 = vmatmul.mubr.bf16.vlgmr.msra.gmra.mrb[32].mxu1 %v14959_v23  ;;  %v9611_v23 = vrot.slane %v14983_v25, %v13659_v35 }
 0x530   :  { %11450 = vmatpush3.bf16.msra.mxu1 %v12934_v0 }
 0x531   :  { %11451 = vmatprep.subr.bf16.mxu1 %v12936_v55 }
 0x534   :  { %11452 = vmatpush3.bf16.msra.mxu1 %v12938_v12 }
 0x535   :  { %11453 = vmatprep.subr.bf16.mxu1 %v12940_v56 }
 0x538   :  { %11454 = vmatpush3.bf16.msra.mxu1 %v12942_v28 }
 0x539   :  { %11455 = vmatprep.subr.bf16.mxu1 %v12944_v49 }
 0x53c   :  { %11456 = vmatpush3.bf16.msra.mxu1 %v12946_v46 }
 0x53d   :  { %11457 = vmatprep.subr.bf16.mxu1 %v12948_v17 }
 0x540   :  { %11458 = vmatpush3.bf16.msra.mxu1 %v12950_v8 }
 0x541   :  { %11459 = vmatprep.subr.bf16.mxu1 %v12952_v60 }
 0x542   :  { %v8789_v21 = vpop.f32.mrb[8].mxu1 }
 0x543   :  { %v9633_v26 = vmul.f32 %v9611_v23, %v8789_v21  ;;  %v9199_v48 = vpop.f32.mrb[12].mxu0  ;;  %v8791_v16 = vpop.f32.mrb[9].mxu1 }
 0x544   :  { %v9635_v6 = vmul.f32 %v9619_v54, %v9199_v48  ;;  %v9634_v35 = vmul.f32 %v9615_v47, %v8791_v16  ;;  %v9201_v45 = vpop.f32.mrb[13].mxu0  ;;  %v8793_v32 = vpop.f32.mrb[10].mxu1  ;;  %11460 = vmatpush3.bf16.msra.mxu1 %v12954_v11  ;;  %v12963_v47 = vld [vmem:[#allocation19 + $0x100] sm:$0xff]   ;;  %v13397_v11 = vmov 0.0  }
 0x545   :  { %v9665_v22 = vadd.f32 %v9643_v39, %v9633_v26  ;;  %v9636_v52 = vmul.f32 %v9623_v9, %v9201_v45  ;;  %v9203_v15 = vpop.f32.mrb[14].mxu0  ;;  %v8794_v38 = vpop.f32.mrb[11].mxu1  ;;  %11461 = vmatprep.subr.bf16.mxu1 %v12956_v27  ;;  %11480 = vmatprep.subr.bf16.mxu0 %v13397_v11  ;;  %v12964_v45 = vld [vmem:[#allocation19 + $0x108] sm:$0xff]   ;;  %v12965_v32 = vld [vmem:[#allocation19 + $0x110] sm:$0xff]  }
 0x546   :  { %v9667_v1 = vadd.f32 %v9651_v42, %v9635_v6  ;;  %v9666_v36 = vadd.f32 %v9647_v53, %v9634_v35  ;;  %v9204_v31 = vpop.f32.mrb[15].mxu0  ;;  %v12969_v38 = vld [vmem:[#allocation19 + $0x130] sm:$0xff]  }
 0x547   :  { %v9675_v61 = vmin.f32 %v9665_v22, 0.0  ;;  %v9668_v18 = vadd.f32 %v9655_v3, %v9636_v52  ;;  %vm9670_vm11 = vcmp.gt.f32.partialorder %v9665_v22, 0.0  ;;  %v12968_v52 = vld [vmem:[#allocation19 + $0x128] sm:$0xff]  }
 0x548   :  { %v9677_v37 = vmin.f32 %v9667_v1, 0.0  ;;  %v9676_v4 = vmin.f32 %v9666_v36, 0.0  ;;  %11462 = vmatpush3.bf16.msra.mxu1 %v12958_v51  ;;  %vm9672_vm12 = vcmp.gt.f32.partialorder %v9667_v1, 0.0  ;;  %vm9671_vm13 = vcmp.gt.f32.partialorder %v9666_v36, 0.0  ;;  %v12966_v51 = vld [vmem:[#allocation19 + $0x118] sm:$0xff]  }
 0x549   :  { %v9680_v10 = vmul.f32 1.442695, %v9675_v61  ;;  %v9678_v57 = vmin.f32 %v9668_v18, 0.0  ;;  %11463 = vmatprep.subr.bf16.mxu1 %v12960_v19  ;;  %vm9673_vm14 = vcmp.gt.f32.partialorder %v9668_v18, 0.0 }
 0x54a   :  { %v9684_v29 = vmul.f32 1.442695, %v9677_v37  ;;  %v9682_v13 = vmul.f32 1.442695, %v9676_v4 }
 0x54b   :  { %13051 = vpow2.f32 %v9680_v10  ;;  %v9686_v30 = vmul.f32 1.442695, %v9678_v57  ;;  %v12970_v57 = vld [vmem:[#allocation19 + $0x138] sm:$0xff]  }
 0x54c   :  { %13053 = vpow2.f32 %v9684_v29  ;;  %11464 = vmatpush3.bf16.msra.mxu1 %v12962_v43 }
 0x54d   :  { %13055 = vpow2.f32 %v9682_v13 }
 0x54e   :  { %13057 = vpow2.f32 %v9686_v30 }
 0x555   :  { %v13052_v20 = vpop.eup %13051 }
 0x556   :  { %v13054_v14 = vpop.eup %13053  ;;  %v11161_v58 = vadd.f32 -1.0, %v13052_v20 }
 0x557   :  { %v13056_v7 = vpop.eup %13055  ;;  %v11163_v33 = vadd.f32 -1.0, %v13054_v14 }
 0x558   :  { %v13058_v50 = vpop.eup %13057  ;;  %v11162_v2 = vadd.f32 -1.0, %v13056_v7  ;;  %v9695_v41 = vsel %vm9670_vm11, %v9665_v22, %v11161_v58  ;;  %v12967_v22 = vld [vmem:[#allocation19 + $0x120] sm:$0xff]  }
 0x559   :  { %v11164_v34 = vadd.f32 -1.0, %v13058_v50  ;;  %v9697_v40 = vsel %vm9672_vm12, %v9667_v1, %v11163_v33  ;;  %v9700_v62 = vpack.c.bf16 %v9695_v41, %v9695_v41 }
 0x55a   :  { %v9696_v59 = vsel %vm9671_vm13, %v9666_v36, %v11162_v2  ;;  %v9702_v55 = vpack.c.bf16 %v9697_v40, %v9697_v40 }
 0x55b   :  { %v9701_v44 = vpack.c.bf16 %v9696_v59, %v9696_v59  ;;  %v9698_v63 = vsel %vm9673_vm14, %v9668_v18, %v11164_v34 }
 0x55c   :  { %v9703_v0 = vpack.c.bf16 %v9698_v63, %v9698_v63 }
 0x55d   :  { %10064 = vmatprep.mubr.bf16.mxu0 %v9701_v44 }
 0x55e   :  { %10104 = vmatprep.mubr.bf16.mxu1 %v9703_v0  ;;  %10065 = vmatmul.mubr.bf16.vlgmr.msra.gmra.mrb[32].mxu0 %v9700_v62 }
 0x55f   :  { %10105 = vmatmul.mubr.bf16.vlgmr.msra.gmra.mrb[36].mxu1 %v9702_v55  ;;  %11481 = vmatpush3.bf16.msra.mxu0 %v12963_v47 }
 0x560   :  { %11482 = vmatprep.subr.bf16.mxu0 %v13397_v11  ;;  %11496 = vmatprep.mubr.msk.bf16.mxu0 %vm13398_vm15, %v13397_v11 }
 0x562   :  { %v11223_v12 = vpop.f32.mrb[12].mxu1 }
 0x563   :  { %v11267_v56 = vpop.f32.mrb[16].mxu0  ;;  %v11224_v28 = vpop.f32.mrb[13].mxu1  ;;  %11483 = vmatpush3.bf16.msra.mxu0 %v12964_v45 }
 0x564   :  { %v11225_v49 = vadd.f32 %v11224_v28, %v11223_v12  ;;  %v11268_v46 = vpop.f32.mrb[17].mxu0  ;;  %v11226_v17 = vpop.f32.mrb[14].mxu1  ;;  %11484 = vmatprep.subr.bf16.mxu0 %v13397_v11 }
 0x565   :  { %v11269_v8 = vadd.f32 %v11268_v46, %v11267_v56  ;;  %v11270_v60 = vpop.f32.mrb[18].mxu0  ;;  %v11227_v23 = vpop.f32.mrb[15].mxu1  ;;  %v9627_v46 = vrot.slane %v14983_v25, %v13714_v24  ;;  %v11166_v25 = vld [vmem:[#allocation20] ss:$0 sm:$0xff] }
 0x566   :  { %v11271_v54 = vpop.f32.mrb[19].mxu0  ;;  %v9659_v23 = vrot.slane %v14985_v5, %v13714_v24 }
 0x567   :  { %11485 = vmatpush3.bf16.msra.mxu0 %v12965_v32 }
 0x568   :  { %11486 = vmatprep.subr.bf16.mxu0 %v13397_v11 }
 0x56b   :  { %11487 = vmatpush3.bf16.msra.mxu0 %v12966_v51 }
 0x56c   :  { %11488 = vmatprep.subr.bf16.mxu0 %v13397_v11 }
 0x56f   :  { %11489 = vmatpush3.bf16.msra.mxu0 %v12967_v22 }
 0x570   :  { %11490 = vmatprep.subr.bf16.mxu0 %v13397_v11 }
 0x573   :  { %11491 = vmatpush3.bf16.msra.mxu0 %v12968_v52 }
 0x574   :  { %11492 = vmatprep.subr.bf16.mxu0 %v13397_v11 }
 0x577   :  { %11493 = vmatpush3.bf16.msra.mxu0 %v12969_v38 }
 0x578   :  { %11494 = vmatprep.subr.bf16.mxu0 %v13397_v11 }
 0x57b   :  { %11495 = vmatpush3.bf16.msra.mxu0 %v12970_v57 }
 0x582   :  { %v11245_v39 = vpop.f32.mrb[16].mxu1 }
 0x583   :  { %v11311_v9 = vpop.f32.mrb[20].mxu0  ;;  %v11246_v27 = vpop.f32.mrb[17].mxu1 }
 0x584   :  { %v11247_v21 = vadd.f32 %v11246_v27, %v11245_v39  ;;  %v11312_v42 = vpop.f32.mrb[21].mxu0  ;;  %v11248_v53 = vpop.f32.mrb[18].mxu1 }
 0x585   :  { %v11313_v26 = vadd.f32 %v11312_v42, %v11311_v9  ;;  %v11314_v48 = vpop.f32.mrb[22].mxu0  ;;  %v11249_v16 = vpop.f32.mrb[19].mxu1 }
 0x586   :  { %v9281_v3 = vadd.f32 %v11247_v21, %v11225_v49  ;;  %v11315_v6 = vpop.f32.mrb[23].mxu0 }
 0x588   :  { %v9321_v35 = vadd.f32 %v11269_v8, %v9281_v3 }
 0x5a2   :  { %v11289_v15 = vpop.f32.mrb[20].mxu1 }
 0x5a3   :  { %v11355_v19 = vpop.f32.mrb[24].mxu0  ;;  %v11290_v1 = vpop.f32.mrb[21].mxu1 }
 0x5a4   :  { %v11291_v36 = vadd.f32 %v11290_v1, %v11289_v15  ;;  %v11356_v31 = vpop.f32.mrb[25].mxu0  ;;  %v11292_v61 = vpop.f32.mrb[22].mxu1 }
 0x5a5   :  { %v11357_v18 = vadd.f32 %v11356_v31, %v11355_v19  ;;  %v11358_v37 = vpop.f32.mrb[26].mxu0  ;;  %v11293_v4 = vpop.f32.mrb[23].mxu1 }
 0x5a6   :  { %v9361_v43 = vadd.f32 %v11291_v36, %v9321_v35  ;;  %v11359_v10 = vpop.f32.mrb[27].mxu0 }
 0x5a8   :  { %v9401_v29 = vadd.f32 %v11313_v26, %v9361_v43 }
 0x5c2   :  { %v11333_v13 = vpop.f32.mrb[24].mxu1 }
 0x5c3   :  { %v11399_v30 = vpop.f32.mrb[28].mxu0  ;;  %v11334_v20 = vpop.f32.mrb[25].mxu1 }
 0x5c4   :  { %v11335_v14 = vadd.f32 %v11334_v20, %v11333_v13  ;;  %v11400_v58 = vpop.f32.mrb[29].mxu0  ;;  %v11336_v7 = vpop.f32.mrb[26].mxu1 }
 0x5c5   :  { %v11401_v33 = vadd.f32 %v11400_v58, %v11399_v30  ;;  %v11402_v50 = vpop.f32.mrb[30].mxu0  ;;  %v11337_v2 = vpop.f32.mrb[27].mxu1 }
 0x5c6   :  { %v9441_v41 = vadd.f32 %v11335_v14, %v9401_v29  ;;  %v11403_v34 = vpop.f32.mrb[31].mxu0 }
 0x5c8   :  { %v9481_v40 = vadd.f32 %v11357_v18, %v9441_v41 }
 0x5e2   :  { %v11377_v59 = vpop.f32.mrb[28].mxu1 }
 0x5e3   :  { %v11378_v44 = vpop.f32.mrb[29].mxu1 }
 0x5e4   :  { %v11379_v63 = vadd.f32 %v11378_v44, %v11377_v59  ;;  %v11380_v62 = vpop.f32.mrb[30].mxu1 }
 0x5e5   :  { %v11381_v0 = vpop.f32.mrb[31].mxu1 }
 0x5e6   :  { %v9521_v55 = vadd.f32 %v11379_v63, %v9481_v40 }
 0x5e8   :  { %v9561_v12 = vadd.f32 %v11401_v33, %v9521_v55 }
 0x602   :  { %v11421_v56 = vpop.f32.mrb[32].mxu1 }
 0x603   :  { %v11422_v28 = vpop.f32.mrb[33].mxu1 }
 0x604   :  { %v11423_v49 = vadd.f32 %v11422_v28, %v11421_v56  ;;  %v11424_v17 = vpop.f32.mrb[34].mxu1 }
 0x605   :  { %v11425_v8 = vpop.f32.mrb[35].mxu1 }
 0x606   :  { %v9601_v60 = vadd.f32 %v11423_v49, %v9561_v12 }
 0x608   :  { %v9637_v54 = vmul.f32 %v9627_v46, %v9601_v60 }
 0x60a   :  { %v9669_v47 = vadd.f32 %v9659_v23, %v9637_v54 }
 0x60c   :  { %v9679_v11 = vmin.f32 %v9669_v47, 0.0  ;;  %vm9674_vm0 = vcmp.gt.f32.partialorder %v9669_v47, 0.0 }
 0x60e   :  { %v9688_v39 = vmul.f32 1.442695, %v9679_v11 }
 0x610   :  { %13059 = vpow2.f32 %v9688_v39 }
 0x61a   :  { %v13060_v9 = vpop.eup %13059 }
 0x61b   :  { %v11165_v27 = vadd.f32 -1.0, %v13060_v9 }
 0x61d   :  { %v9699_v21 = vsel %vm9674_vm0, %v9669_v47, %v11165_v27 }
 0x61e   :  { %v9704_v42 = vpack.c.bf16 %v9699_v21, %v9699_v21 }
 0x620   :  { %11497 = vmatmul.mubr.bf16.vlgmr.msra.gmra.mrb[36].mxu0 %v9704_v42 }
 0x631   :  { %v11443_v53 = vpop.f32.mrb[32].mxu0 }
 0x632   :  { %v11465_v26 = vpop.f32.mrb[36].mxu1  ;;  %v11444_v48 = vpop.f32.mrb[33].mxu0 }
 0x633   :  { %v11445_v16 = vadd.f32 %v11444_v48, %v11443_v53  ;;  %v11466_v3 = vpop.f32.mrb[37].mxu1  ;;  %v11446_v6 = vpop.f32.mrb[34].mxu0 }
 0x634   :  { %v11467_v35 = vadd.f32 %v11466_v3, %v11465_v26  ;;  %v11468_v24 = vpop.f32.mrb[38].mxu1  ;;  %v11447_v5 = vpop.f32.mrb[35].mxu0 }
 0x635   :  { %v10067_v45 = vadd.f32 %v11445_v16, %v11166_v25  ;;  %v11469_v32 = vpop.f32.mrb[39].mxu1 }
 0x637   :  { %v10107_v51 = vadd.f32 %v11467_v35, %v10067_v45 }
 0x6f3   :  { %v10146_v22 = vpop.f32.mrb[36].mxu0 }
 0x6f4   :  { %v10147_v52 = vadd.f32 %v10146_v22, %v10107_v51  ;;  %v11498_v15 = vpop.f32.mrb[37].mxu0 }
 0x6f5   :  { %v10149_v38 = vpop.f32.mrb[38].mxu0 }
 0x6f6   :  { %10152 = vst [vmem:[#allocation22] sm:$0x3] %v10147_v52  ;;  %v11499_v19 = vpop.f32.mrb[39].mxu0 }
 0x6f7   :  { %13347 = shalt.err (!%p13344_p2)
}
 0x6f8   :  { %s13348_s18 = scalar_lea.hbm %s15031_s12, 32 }
 0x6f9   :  { %p13349_p3 = scmp.ne.s32.totalorder %s15031_s12, %s13348_s18  ;;  %p13352_p4 = scmp.lt.u32.totalorder %s13348_s18, %s15031_s12 }
 0x6fb   :  { %p13354_p5 = pnand %p13352_p4, %p13349_p3 }
 0x6fd   :  { %13357 = shalt.err (!%p13354_p5)
}
 0x6fe   :  { %10162 = dma.vmem_to_hbm [thread:$0]  %s10160_s6, 32, %s15031_s12, [#allocation4]  }
 0x6ff   :  { %13372 = dma.done.wait [#allocation4], 32  }
 0x700   :  { %13373 = vsyncadd [#allocation4], 4294967264 }
 0x701   :  { %10166 = vsyncpa [#allocation3], 1 }
 0x702   :  { %10167 = vsyncpa [#allocation6], 1 }
 0x703   :  { %10168 = vsyncpa [#allocation9], 1 }
 0x704   :  { %10169 = vsyncpa [#allocation12], 1 }
 0x705   :  { %10170 = vsyncpa [#allocation15], 1 }
 0x706   :  { %10171 = vsyncpa [#allocation18], 1 }
 0x707   :  { %10172 = vsyncpa [#allocation21], 1 }
 0x708   :  { %10173 = vsyncpa [#allocation4], 1 }

</bundles_post_ra>
